<compile_context>
chip_gen: v7x
topology: tpu7x:2x2x1
jax: 0.10.0
libtpu: 0.0.40
codegen_flags: <defaults>
</compile_context>

<pallas_src>
import functools

import numpy as np
import jax
import jax.numpy as jnp
from jax.experimental import pallas as pl
from jax.experimental.pallas import tpu as pltpu


# ----------------------------------------------------------------------------
# Border-validity masks for the 27 depthwise taps (built once, tiny constant).
# mask[tap, f] = 1.0 iff the input coordinate (d+sd, h+sh, w+sw) is in bounds.
# ----------------------------------------------------------------------------
def _build_tap_masks(D, H, W):
    d = np.arange(D)[:, None, None]
    h = np.arange(H)[None, :, None]
    w = np.arange(W)[None, None, :]
    masks = []
    for sd in (-1, 0, 1):
        for sh in (-1, 0, 1):
            for sw in (-1, 0, 1):
                valid = ((d + sd >= 0) & (d + sd < D) &
                         (h + sh >= 0) & (h + sh < H) &
                         (w + sw >= 0) & (w + sw < W))
                masks.append(valid.reshape(-1))
    return jnp.asarray(np.stack(masks).astype(np.float32))   # (27, D*H*W)


# ----------------------------------------------------------------------------
# Fused kernel: conv1..conv7 for one batch element, channels-first (C, R).
# ----------------------------------------------------------------------------
def _fused_kernel(x_ref, masks_ref, w1_ref, w3_ref, w5_ref, w7_ref,
                  wdw_ref, s_ref, b_ref, o_ref, *, D, H, W):
    R = D * H * W
    # flat-shift padding, rounded up to a lane-aligned width
    PAD = ((H * W + W + 1 + 127) // 128) * 128

    x = x_ref[0].astype(jnp.float32)                      # (Cin, R)

    def pw(h, w_r):
        # pointwise 1x1x1 conv as Cin unrolled VPU broadcast-FMAs (no MXU)
        w = w_r[...].astype(jnp.float32)                  # (Cout, Cin)
        cin = w.shape[1]
        acc = w[:, 0:1] * h[0:1, :]                       # (Cout,1)*(1,R)
        for c in range(1, cin):
            acc = acc + w[:, c:c + 1] * h[c:c + 1, :]
        return acc                                        # (Cout, R)

    def bn(y, k):
        return y * s_ref[:, k:k + 1] + b_ref[:, k:k + 1]

    def dw_residual(h, layer, k):
        # h + relu(bn(depthwise3x3x3(h)))
        C = h.shape[0]
        zpad = jnp.zeros((C, PAD), jnp.float32)
        hp = jnp.concatenate([zpad, h, zpad], axis=1)     # (C, R + 2*PAD)
        acc = jnp.zeros((C, R), jnp.float32)
        tap = 0
        for sd in (-1, 0, 1):
            for sh in (-1, 0, 1):
                for sw in (-1, 0, 1):
                    off = sd * H * W + sh * W + sw
                    shifted = hp[:, PAD + off:PAD + off + R]            # (C, R)
                    m = masks_ref[tap:tap + 1, :]                       # (1, R)
                    col = 27 * layer + tap
                    wcol = wdw_ref[:, col:col + 1]                      # (C, 1)
                    acc = acc + wcol * (shifted * m)
                    tap += 1
        y = jnp.maximum(bn(acc, k), 0.0)
        return h + y

    h = jnp.maximum(bn(pw(x, w1_ref), 0), 0.0)            # conv1 + BN + ReLU
    h = dw_residual(h, 0, 1)                              # x + conv2(x)
    h = jnp.maximum(bn(pw(h, w3_ref), 2), 0.0)            # conv3 + BN + ReLU
    h = dw_residual(h, 1, 3)                              # x + conv4(x)
    y5 = bn(pw(h, w5_ref), 4)
    h = y5 * jax.nn.sigmoid(y5)                           # conv5 + BN + SiLU
    h = dw_residual(h, 2, 5)                              # x + conv6(x)
    y7 = jnp.maximum(pw(h, w7_ref), 0.0)                  # conv7 + ReLU (no BN)
    gate = jax.nn.sigmoid(y7)                             # sigmoid_spatial
    o_ref[0] = (x + x * gate).astype(o_ref.dtype)         # res2 + res1*mask


# ----------------------------------------------------------------------------
# Forward wrapper: free reshapes only (no transposes / pads in XLA).
# ----------------------------------------------------------------------------
def conv_branch3d_forward(x_ncdhw, p):
    N, Cin, D, H, W = x_ncdhw.shape
    R = D * H * W
    Ch = p["w1"].shape[0]
    Cout = p["w7"].shape[0]
    assert Cout == Cin, "sigmoid gating requires out_features == in_features"

    x2 = x_ncdhw.reshape(N, Cin, R).astype(jnp.float32)
    masks = _build_tap_masks(D, H, W)                                  # (27, R)
    wdw = jnp.concatenate([p["w2"], p["w4"], p["w6"]], axis=1)         # (Ch, 81)
    s_all = jnp.stack([p["s1"], p["s2"], p["s3"],
                       p["s4"], p["s5"], p["s6"]], axis=1)             # (Ch, 6)
    b_all = jnp.stack([p["b1"], p["b2"], p["b3"],
                       p["b4"], p["b5"], p["b6"]], axis=1)             # (Ch, 6)

    kern = functools.partial(_fused_kernel, D=D, H=H, W=W)
    out2 = pl.pallas_call(
        kern,
        out_shape=jax.ShapeDtypeStruct((N, Cout, R), jnp.float32),
        grid=(N,),
        in_specs=[
            pl.BlockSpec((1, Cin, R), lambda n: (n, 0, 0)),     # x
            pl.BlockSpec((27, R), lambda n: (0, 0)),            # tap masks
            pl.BlockSpec((Ch, Cin), lambda n: (0, 0)),          # w1
            pl.BlockSpec((Ch, Ch), lambda n: (0, 0)),           # w3
            pl.BlockSpec((Ch, Ch), lambda n: (0, 0)),           # w5
            pl.BlockSpec((Cout, Ch), lambda n: (0, 0)),         # w7
            pl.BlockSpec((Ch, 81), lambda n: (0, 0)),           # depthwise taps
            pl.BlockSpec((Ch, 6), lambda n: (0, 0)),            # BN scales
            pl.BlockSpec((Ch, 6), lambda n: (0, 0)),            # BN biases
        ],
        out_specs=pl.BlockSpec((1, Cout, R), lambda n: (n, 0, 0)),
        compiler_params=pltpu.CompilerParams(dimension_semantics=("parallel",)),
    )(x2, masks, p["w1"], p["w3"], p["w5"], p["w7"], wdw, s_all, b_all)
    return out2.reshape(N, Cout, D, H, W)


# ----------------------------------------------------------------------------
# Pure-JAX reference (same math, no Pallas) for the correctness check.
# ----------------------------------------------------------------------------
def ref_forward(x, p):
    x = x.astype(jnp.float32)

    def bn(y, s, b):
        return y * s[None, :, None, None, None] + b[None, :, None, None, None]

    def pw(h, w):
        return jnp.einsum("ncdhw,oc->nodhw", h, w)

    def dw(h, wdw):
        N, C, D, H, W = h.shape
        hp = jnp.pad(h, ((0, 0), (0, 0), (1, 1), (1, 1), (1, 1)))
        acc = jnp.zeros_like(h)
        t = 0
        for kd in range(3):
            for kh in range(3):
                for kw in range(3):
                    acc = acc + (hp[:, :, kd:kd + D, kh:kh + H, kw:kw + W]
                                 * wdw[None, :, t, None, None, None])
                    t += 1
        return acc

    h = jnp.maximum(bn(pw(x, p["w1"]), p["s1"], p["b1"]), 0.0)
    h = h + jnp.maximum(bn(dw(h, p["w2"]), p["s2"], p["b2"]), 0.0)
    h = jnp.maximum(bn(pw(h, p["w3"]), p["s3"], p["b3"]), 0.0)
    h = h + jnp.maximum(bn(dw(h, p["w4"]), p["s4"], p["b4"]), 0.0)
    y5 = bn(pw(h, p["w5"]), p["s5"], p["b5"])
    h = y5 * jax.nn.sigmoid(y5)
    h = h + jnp.maximum(bn(dw(h, p["w6"]), p["s6"], p["b6"]), 0.0)
    y7 = jnp.maximum(pw(h, p["w7"]), 0.0)
    return x + x * jax.nn.sigmoid(y7)


# ----------------------------------------------------------------------------
# Deterministic parameter init (BN folded into scale/bias).
# ----------------------------------------------------------------------------
def make_params(key, cin, ch, cout):
    ks = jax.random.split(key, 16)
    eps = 1e-5

    def bn_fold(k, c):
        k1, k2, k3, k4 = jax.random.split(k, 4)
        gamma = 1.0 + 0.1 * jax.random.normal(k1, (c,), jnp.float32)
        beta = 0.1 * jax.random.normal(k2, (c,), jnp.float32)
        mean = 0.1 * jax.random.normal(k3, (c,), jnp.float32)
        var = jnp.abs(jax.random.normal(k4, (c,), jnp.float32)) + 0.5
        scale = gamma / jnp.sqrt(var + eps)
        bias = beta - mean * scale
        return scale, bias

    p = {}
    p["w1"] = 0.3 * jax.random.normal(ks[0], (ch, cin), jnp.float32)   # 1x1x1
    p["s1"], p["b1"] = bn_fold(ks[1], ch)
    p["w2"] = 0.3 * jax.random.normal(ks[2], (ch, 27), jnp.float32)    # depthwise
    p["s2"], p["b2"] = bn_fold(ks[3], ch)
    p["w3"] = 0.3 * jax.random.normal(ks[4], (ch, ch), jnp.float32)
    p["s3"], p["b3"] = bn_fold(ks[5], ch)
    p["w4"] = 0.3 * jax.random.normal(ks[6], (ch, 27), jnp.float32)
    p["s4"], p["b4"] = bn_fold(ks[7], ch)
    p["w5"] = 0.3 * jax.random.normal(ks[8], (ch, ch), jnp.float32)
    p["s5"], p["b5"] = bn_fold(ks[9], ch)
    p["w6"] = 0.3 * jax.random.normal(ks[10], (ch, 27), jnp.float32)
    p["s6"], p["b6"] = bn_fold(ks[11], ch)
    p["w7"] = 0.3 * jax.random.normal(ks[12], (cout, ch), jnp.float32)  # conv7
    return p


if __name__ == "__main__":
    key = jax.random.PRNGKey(0)
    kx, kp = jax.random.split(key)

    # N=2, in_features=4, hidden_features=8, out_features=4, D=H=W=8
    # -> per-batch flat spatial R = 512 lanes (lane-dense), grid=(2,) parallel.
    N, Cin, Ch, D, H, W = 2, 4, 8, 8, 8, 8
    x = jax.random.normal(kx, (N, Cin, D, H, W), jnp.float32)   # NCDHW like PyTorch
    params = make_params(kp, Cin, Ch, Cin)

    fwd = jax.jit(conv_branch3d_forward)
    out = jax.block_until_ready(fwd(x, params))
    ref = jax.block_until_ready(ref_forward(x, params))

    assert out.shape == x.shape
    assert bool(jnp.allclose(out, ref, atol=3e-4, rtol=3e-4)), "mismatch vs reference"
    print("KERNEL_OK")
</pallas_src>

<mosaic_0001>
module attributes {stable_mosaic.version = 11 : i64} {
  func.func @_fused_kernel(%arg0: i32, %arg1: memref<1x4x512xf32, #tpu.memory_space<vmem>>, %arg2: memref<27x512xf32, #tpu.memory_space<vmem>>, %arg3: memref<8x4xf32, #tpu.memory_space<vmem>>, %arg4: memref<8x8xf32, #tpu.memory_space<vmem>>, %arg5: memref<8x8xf32, #tpu.memory_space<vmem>>, %arg6: memref<4x8xf32, #tpu.memory_space<vmem>>, %arg7: memref<8x81xf32, #tpu.memory_space<vmem>>, %arg8: memref<8x6xf32, #tpu.memory_space<vmem>>, %arg9: memref<8x6xf32, #tpu.memory_space<vmem>>, %arg10: memref<1x4x512xf32, #tpu.memory_space<vmem>>) attributes {dimension_semantics = [#tpu.dimension_semantics<parallel>], iteration_bounds = array<i64: 2>, scalar_prefetch = 0 : i64, scratch_operands = 0 : i64, tpu.core_type = #tpu.core_type<tc>, window_params = [{transform_indices = @transform_0, window_bounds = array<i64: 1, 4, 512>}, {pipeline_mode = #tpu.pipeline_mode<synchronous>, transform_indices = @transform_1, window_bounds = array<i64: 27, 512>}, {pipeline_mode = #tpu.pipeline_mode<synchronous>, transform_indices = @transform_2, window_bounds = array<i64: 8, 4>}, {pipeline_mode = #tpu.pipeline_mode<synchronous>, transform_indices = @transform_3, window_bounds = array<i64: 8, 8>}, {pipeline_mode = #tpu.pipeline_mode<synchronous>, transform_indices = @transform_4, window_bounds = array<i64: 8, 8>}, {pipeline_mode = #tpu.pipeline_mode<synchronous>, transform_indices = @transform_5, window_bounds = array<i64: 4, 8>}, {pipeline_mode = #tpu.pipeline_mode<synchronous>, transform_indices = @transform_6, window_bounds = array<i64: 8, 81>}, {pipeline_mode = #tpu.pipeline_mode<synchronous>, transform_indices = @transform_7, window_bounds = array<i64: 8, 6>}, {pipeline_mode = #tpu.pipeline_mode<synchronous>, transform_indices = @transform_8, window_bounds = array<i64: 8, 6>}, {transform_indices = @transform_9, window_bounds = array<i64: 1, 4, 512>}]} {
    %c0 = arith.constant 0 : index
    %c0_0 = arith.constant 0 : index
    %c0_1 = arith.constant 0 : index
    %0 = vector.load %arg1[%c0, %c0_0, %c0_1] : memref<1x4x512xf32, #tpu.memory_space<vmem>>, vector<1x4x512xf32>
    %1 = vector.shape_cast %0 : vector<1x4x512xf32> to vector<4x512xf32>
    %c0_2 = arith.constant 0 : index
    %c0_3 = arith.constant 0 : index
    %2 = vector.load %arg3[%c0_2, %c0_3] : memref<8x4xf32, #tpu.memory_space<vmem>>, vector<8x4xf32>
    %3 = vector.extract_strided_slice %2 {offsets = [0, 0], sizes = [8, 1], strides = [1, 1]} : vector<8x4xf32> to vector<8x1xf32>
    %4 = vector.extract_strided_slice %1 {offsets = [0, 0], sizes = [1, 512], strides = [1, 1]} : vector<4x512xf32> to vector<1x512xf32>
    %5 = vector.broadcast %3 : vector<8x1xf32> to vector<8x512xf32>
    %6 = vector.broadcast %4 : vector<1x512xf32> to vector<8x512xf32>
    %7 = arith.mulf %5, %6 : vector<8x512xf32>
    %8 = vector.extract_strided_slice %2 {offsets = [0, 1], sizes = [8, 1], strides = [1, 1]} : vector<8x4xf32> to vector<8x1xf32>
    %9 = vector.extract_strided_slice %1 {offsets = [1, 0], sizes = [1, 512], strides = [1, 1]} : vector<4x512xf32> to vector<1x512xf32>
    %10 = vector.broadcast %8 : vector<8x1xf32> to vector<8x512xf32>
    %11 = vector.broadcast %9 : vector<1x512xf32> to vector<8x512xf32>
    %12 = arith.mulf %10, %11 : vector<8x512xf32>
    %13 = arith.addf %7, %12 : vector<8x512xf32>
    %14 = vector.extract_strided_slice %2 {offsets = [0, 2], sizes = [8, 1], strides = [1, 1]} : vector<8x4xf32> to vector<8x1xf32>
    %15 = vector.extract_strided_slice %1 {offsets = [2, 0], sizes = [1, 512], strides = [1, 1]} : vector<4x512xf32> to vector<1x512xf32>
    %16 = vector.broadcast %14 : vector<8x1xf32> to vector<8x512xf32>
    %17 = vector.broadcast %15 : vector<1x512xf32> to vector<8x512xf32>
    %18 = arith.mulf %16, %17 : vector<8x512xf32>
    %19 = arith.addf %13, %18 : vector<8x512xf32>
    %20 = vector.extract_strided_slice %2 {offsets = [0, 3], sizes = [8, 1], strides = [1, 1]} : vector<8x4xf32> to vector<8x1xf32>
    %21 = vector.extract_strided_slice %1 {offsets = [3, 0], sizes = [1, 512], strides = [1, 1]} : vector<4x512xf32> to vector<1x512xf32>
    %22 = vector.broadcast %20 : vector<8x1xf32> to vector<8x512xf32>
    %23 = vector.broadcast %21 : vector<1x512xf32> to vector<8x512xf32>
    %24 = arith.mulf %22, %23 : vector<8x512xf32>
    %25 = arith.addf %19, %24 : vector<8x512xf32>
    %c0_4 = arith.constant 0 : index
    %c0_5 = arith.constant 0 : index
    %26 = vector.load %arg8[%c0_4, %c0_5] : memref<8x6xf32, #tpu.memory_space<vmem>>, vector<8x1xf32>
    %27 = vector.broadcast %26 : vector<8x1xf32> to vector<8x512xf32>
    %28 = arith.mulf %25, %27 : vector<8x512xf32>
    %c0_6 = arith.constant 0 : index
    %c0_7 = arith.constant 0 : index
    %29 = vector.load %arg9[%c0_6, %c0_7] : memref<8x6xf32, #tpu.memory_space<vmem>>, vector<8x1xf32>
    %30 = vector.broadcast %29 : vector<8x1xf32> to vector<8x512xf32>
    %31 = arith.addf %28, %30 : vector<8x512xf32>
    %cst = arith.constant 0.000000e+00 : f32
    %32 = vector.broadcast %cst : f32 to vector<8x512xf32>
    %33 = arith.maximumf %31, %32 : vector<8x512xf32>
    %cst_8 = arith.constant 0.000000e+00 : f32
    %34 = vector.broadcast %cst_8 : f32 to vector<8x128xf32>
    %35 = tpu.concatenate %34, %33, %34 in 1 : vector<8x128xf32>, vector<8x512xf32>, vector<8x128xf32> -> vector<8x768xf32>
    %cst_9 = arith.constant 0.000000e+00 : f32
    %36 = vector.broadcast %cst_9 : f32 to vector<8x512xf32>
    %37 = vector.extract_strided_slice %35 {offsets = [0, 55], sizes = [8, 512], strides = [1, 1]} : vector<8x768xf32> to vector<8x512xf32>
    %c0_10 = arith.constant 0 : index
    %c0_11 = arith.constant 0 : index
    %38 = vector.load %arg2[%c0_10, %c0_11] : memref<27x512xf32, #tpu.memory_space<vmem>>, vector<1x512xf32>
    %c0_12 = arith.constant 0 : index
    %c0_13 = arith.constant 0 : index
    %39 = vector.load %arg7[%c0_12, %c0_13] : memref<8x81xf32, #tpu.memory_space<vmem>>, vector<8x1xf32>
    %40 = vector.broadcast %38 : vector<1x512xf32> to vector<8x512xf32>
    %41 = arith.mulf %37, %40 : vector<8x512xf32>
    %42 = vector.broadcast %39 : vector<8x1xf32> to vector<8x512xf32>
    %43 = arith.mulf %42, %41 : vector<8x512xf32>
    %44 = arith.addf %36, %43 : vector<8x512xf32>
    %45 = vector.extract_strided_slice %35 {offsets = [0, 56], sizes = [8, 512], strides = [1, 1]} : vector<8x768xf32> to vector<8x512xf32>
    %c1 = arith.constant 1 : index
    %c0_14 = arith.constant 0 : index
    %46 = vector.load %arg2[%c1, %c0_14] : memref<27x512xf32, #tpu.memory_space<vmem>>, vector<1x512xf32>
    %c0_15 = arith.constant 0 : index
    %c1_16 = arith.constant 1 : index
    %47 = vector.load %arg7[%c0_15, %c1_16] : memref<8x81xf32, #tpu.memory_space<vmem>>, vector<8x1xf32>
    %48 = vector.broadcast %46 : vector<1x512xf32> to vector<8x512xf32>
    %49 = arith.mulf %45, %48 : vector<8x512xf32>
    %50 = vector.broadcast %47 : vector<8x1xf32> to vector<8x512xf32>
    %51 = arith.mulf %50, %49 : vector<8x512xf32>
    %52 = arith.addf %44, %51 : vector<8x512xf32>
    %53 = vector.extract_strided_slice %35 {offsets = [0, 57], sizes = [8, 512], strides = [1, 1]} : vector<8x768xf32> to vector<8x512xf32>
    %c2 = arith.constant 2 : index
    %c0_17 = arith.constant 0 : index
    %54 = vector.load %arg2[%c2, %c0_17] : memref<27x512xf32, #tpu.memory_space<vmem>>, vector<1x512xf32>
    %c0_18 = arith.constant 0 : index
    %c2_19 = arith.constant 2 : index
    %55 = vector.load %arg7[%c0_18, %c2_19] : memref<8x81xf32, #tpu.memory_space<vmem>>, vector<8x1xf32>
    %56 = vector.broadcast %54 : vector<1x512xf32> to vector<8x512xf32>
    %57 = arith.mulf %53, %56 : vector<8x512xf32>
    %58 = vector.broadcast %55 : vector<8x1xf32> to vector<8x512xf32>
    %59 = arith.mulf %58, %57 : vector<8x512xf32>
    %60 = arith.addf %52, %59 : vector<8x512xf32>
    %61 = vector.extract_strided_slice %35 {offsets = [0, 63], sizes = [8, 512], strides = [1, 1]} : vector<8x768xf32> to vector<8x512xf32>
    %c3 = arith.constant 3 : index
    %c0_20 = arith.constant 0 : index
    %62 = vector.load %arg2[%c3, %c0_20] : memref<27x512xf32, #tpu.memory_space<vmem>>, vector<1x512xf32>
    %c0_21 = arith.constant 0 : index
    %c3_22 = arith.constant 3 : index
    %63 = vector.load %arg7[%c0_21, %c3_22] : memref<8x81xf32, #tpu.memory_space<vmem>>, vector<8x1xf32>
    %64 = vector.broadcast %62 : vector<1x512xf32> to vector<8x512xf32>
    %65 = arith.mulf %61, %64 : vector<8x512xf32>
    %66 = vector.broadcast %63 : vector<8x1xf32> to vector<8x512xf32>
    %67 = arith.mulf %66, %65 : vector<8x512xf32>
    %68 = arith.addf %60, %67 : vector<8x512xf32>
    %69 = vector.extract_strided_slice %35 {offsets = [0, 64], sizes = [8, 512], strides = [1, 1]} : vector<8x768xf32> to vector<8x512xf32>
    %c4 = arith.constant 4 : index
    %c0_23 = arith.constant 0 : index
    %70 = vector.load %arg2[%c4, %c0_23] : memref<27x512xf32, #tpu.memory_space<vmem>>, vector<1x512xf32>
    %c0_24 = arith.constant 0 : index
    %c4_25 = arith.constant 4 : index
    %71 = vector.load %arg7[%c0_24, %c4_25] : memref<8x81xf32, #tpu.memory_space<vmem>>, vector<8x1xf32>
    %72 = vector.broadcast %70 : vector<1x512xf32> to vector<8x512xf32>
    %73 = arith.mulf %69, %72 : vector<8x512xf32>
    %74 = vector.broadcast %71 : vector<8x1xf32> to vector<8x512xf32>
    %75 = arith.mulf %74, %73 : vector<8x512xf32>
    %76 = arith.addf %68, %75 : vector<8x512xf32>
    %77 = vector.extract_strided_slice %35 {offsets = [0, 65], sizes = [8, 512], strides = [1, 1]} : vector<8x768xf32> to vector<8x512xf32>
    %c5 = arith.constant 5 : index
    %c0_26 = arith.constant 0 : index
    %78 = vector.load %arg2[%c5, %c0_26] : memref<27x512xf32, #tpu.memory_space<vmem>>, vector<1x512xf32>
    %c0_27 = arith.constant 0 : index
    %c5_28 = arith.constant 5 : index
    %79 = vector.load %arg7[%c0_27, %c5_28] : memref<8x81xf32, #tpu.memory_space<vmem>>, vector<8x1xf32>
    %80 = vector.broadcast %78 : vector<1x512xf32> to vector<8x512xf32>
    %81 = arith.mulf %77, %80 : vector<8x512xf32>
    %82 = vector.broadcast %79 : vector<8x1xf32> to vector<8x512xf32>
    %83 = arith.mulf %82, %81 : vector<8x512xf32>
    %84 = arith.addf %76, %83 : vector<8x512xf32>
    %85 = vector.extract_strided_slice %35 {offsets = [0, 71], sizes = [8, 512], strides = [1, 1]} : vector<8x768xf32> to vector<8x512xf32>
    %c6 = arith.constant 6 : index
    %c0_29 = arith.constant 0 : index
    %86 = vector.load %arg2[%c6, %c0_29] : memref<27x512xf32, #tpu.memory_space<vmem>>, vector<1x512xf32>
    %c0_30 = arith.constant 0 : index
    %c6_31 = arith.constant 6 : index
    %87 = vector.load %arg7[%c0_30, %c6_31] : memref<8x81xf32, #tpu.memory_space<vmem>>, vector<8x1xf32>
    %88 = vector.broadcast %86 : vector<1x512xf32> to vector<8x512xf32>
    %89 = arith.mulf %85, %88 : vector<8x512xf32>
    %90 = vector.broadcast %87 : vector<8x1xf32> to vector<8x512xf32>
    %91 = arith.mulf %90, %89 : vector<8x512xf32>
    %92 = arith.addf %84, %91 : vector<8x512xf32>
    %93 = vector.extract_strided_slice %35 {offsets = [0, 72], sizes = [8, 512], strides = [1, 1]} : vector<8x768xf32> to vector<8x512xf32>
    %c7 = arith.constant 7 : index
    %c0_32 = arith.constant 0 : index
    %94 = vector.load %arg2[%c7, %c0_32] : memref<27x512xf32, #tpu.memory_space<vmem>>, vector<1x512xf32>
    %c0_33 = arith.constant 0 : index
    %c7_34 = arith.constant 7 : index
    %95 = vector.load %arg7[%c0_33, %c7_34] : memref<8x81xf32, #tpu.memory_space<vmem>>, vector<8x1xf32>
    %96 = vector.broadcast %94 : vector<1x512xf32> to vector<8x512xf32>
    %97 = arith.mulf %93, %96 : vector<8x512xf32>
    %98 = vector.broadcast %95 : vector<8x1xf32> to vector<8x512xf32>
    %99 = arith.mulf %98, %97 : vector<8x512xf32>
    %100 = arith.addf %92, %99 : vector<8x512xf32>
    %101 = vector.extract_strided_slice %35 {offsets = [0, 73], sizes = [8, 512], strides = [1, 1]} : vector<8x768xf32> to vector<8x512xf32>
    %c8 = arith.constant 8 : index
    %c0_35 = arith.constant 0 : index
    %102 = vector.load %arg2[%c8, %c0_35] : memref<27x512xf32, #tpu.memory_space<vmem>>, vector<1x512xf32>
    %c0_36 = arith.constant 0 : index
    %c8_37 = arith.constant 8 : index
    %103 = vector.load %arg7[%c0_36, %c8_37] : memref<8x81xf32, #tpu.memory_space<vmem>>, vector<8x1xf32>
    %104 = vector.broadcast %102 : vector<1x512xf32> to vector<8x512xf32>
    %105 = arith.mulf %101, %104 : vector<8x512xf32>
    %106 = vector.broadcast %103 : vector<8x1xf32> to vector<8x512xf32>
    %107 = arith.mulf %106, %105 : vector<8x512xf32>
    %108 = arith.addf %100, %107 : vector<8x512xf32>
    %109 = vector.extract_strided_slice %35 {offsets = [0, 119], sizes = [8, 512], strides = [1, 1]} : vector<8x768xf32> to vector<8x512xf32>
    %c9 = arith.constant 9 : index
    %c0_38 = arith.constant 0 : index
    %110 = vector.load %arg2[%c9, %c0_38] : memref<27x512xf32, #tpu.memory_space<vmem>>, vector<1x512xf32>
    %c0_39 = arith.constant 0 : index
    %c9_40 = arith.constant 9 : index
    %111 = vector.load %arg7[%c0_39, %c9_40] : memref<8x81xf32, #tpu.memory_space<vmem>>, vector<8x1xf32>
    %112 = vector.broadcast %110 : vector<1x512xf32> to vector<8x512xf32>
    %113 = arith.mulf %109, %112 : vector<8x512xf32>
    %114 = vector.broadcast %111 : vector<8x1xf32> to vector<8x512xf32>
    %115 = arith.mulf %114, %113 : vector<8x512xf32>
    %116 = arith.addf %108, %115 : vector<8x512xf32>
    %117 = vector.extract_strided_slice %35 {offsets = [0, 120], sizes = [8, 512], strides = [1, 1]} : vector<8x768xf32> to vector<8x512xf32>
    %c10 = arith.constant 10 : index
    %c0_41 = arith.constant 0 : index
    %118 = vector.load %arg2[%c10, %c0_41] : memref<27x512xf32, #tpu.memory_space<vmem>>, vector<1x512xf32>
    %c0_42 = arith.constant 0 : index
    %c10_43 = arith.constant 10 : index
    %119 = vector.load %arg7[%c0_42, %c10_43] : memref<8x81xf32, #tpu.memory_space<vmem>>, vector<8x1xf32>
    %120 = vector.broadcast %118 : vector<1x512xf32> to vector<8x512xf32>
    %121 = arith.mulf %117, %120 : vector<8x512xf32>
    %122 = vector.broadcast %119 : vector<8x1xf32> to vector<8x512xf32>
    %123 = arith.mulf %122, %121 : vector<8x512xf32>
    %124 = arith.addf %116, %123 : vector<8x512xf32>
    %125 = vector.extract_strided_slice %35 {offsets = [0, 121], sizes = [8, 512], strides = [1, 1]} : vector<8x768xf32> to vector<8x512xf32>
    %c11 = arith.constant 11 : index
    %c0_44 = arith.constant 0 : index
    %126 = vector.load %arg2[%c11, %c0_44] : memref<27x512xf32, #tpu.memory_space<vmem>>, vector<1x512xf32>
    %c0_45 = arith.constant 0 : index
    %c11_46 = arith.constant 11 : index
    %127 = vector.load %arg7[%c0_45, %c11_46] : memref<8x81xf32, #tpu.memory_space<vmem>>, vector<8x1xf32>
    %128 = vector.broadcast %126 : vector<1x512xf32> to vector<8x512xf32>
    %129 = arith.mulf %125, %128 : vector<8x512xf32>
    %130 = vector.broadcast %127 : vector<8x1xf32> to vector<8x512xf32>
    %131 = arith.mulf %130, %129 : vector<8x512xf32>
    %132 = arith.addf %124, %131 : vector<8x512xf32>
    %133 = vector.extract_strided_slice %35 {offsets = [0, 127], sizes = [8, 512], strides = [1, 1]} : vector<8x768xf32> to vector<8x512xf32>
    %c12 = arith.constant 12 : index
    %c0_47 = arith.constant 0 : index
    %134 = vector.load %arg2[%c12, %c0_47] : memref<27x512xf32, #tpu.memory_space<vmem>>, vector<1x512xf32>
    %c0_48 = arith.constant 0 : index
    %c12_49 = arith.constant 12 : index
    %135 = vector.load %arg7[%c0_48, %c12_49] : memref<8x81xf32, #tpu.memory_space<vmem>>, vector<8x1xf32>
    %136 = vector.broadcast %134 : vector<1x512xf32> to vector<8x512xf32>
    %137 = arith.mulf %133, %136 : vector<8x512xf32>
    %138 = vector.broadcast %135 : vector<8x1xf32> to vector<8x512xf32>
    %139 = arith.mulf %138, %137 : vector<8x512xf32>
    %140 = arith.addf %132, %139 : vector<8x512xf32>
    %141 = vector.extract_strided_slice %35 {offsets = [0, 128], sizes = [8, 512], strides = [1, 1]} : vector<8x768xf32> to vector<8x512xf32>
    %c13 = arith.constant 13 : index
    %c0_50 = arith.constant 0 : index
    %142 = vector.load %arg2[%c13, %c0_50] : memref<27x512xf32, #tpu.memory_space<vmem>>, vector<1x512xf32>
    %c0_51 = arith.constant 0 : index
    %c13_52 = arith.constant 13 : index
    %143 = vector.load %arg7[%c0_51, %c13_52] : memref<8x81xf32, #tpu.memory_space<vmem>>, vector<8x1xf32>
    %144 = vector.broadcast %142 : vector<1x512xf32> to vector<8x512xf32>
    %145 = arith.mulf %141, %144 : vector<8x512xf32>
    %146 = vector.broadcast %143 : vector<8x1xf32> to vector<8x512xf32>
    %147 = arith.mulf %146, %145 : vector<8x512xf32>
    %148 = arith.addf %140, %147 : vector<8x512xf32>
    %149 = vector.extract_strided_slice %35 {offsets = [0, 129], sizes = [8, 512], strides = [1, 1]} : vector<8x768xf32> to vector<8x512xf32>
    %c14 = arith.constant 14 : index
    %c0_53 = arith.constant 0 : index
    %150 = vector.load %arg2[%c14, %c0_53] : memref<27x512xf32, #tpu.memory_space<vmem>>, vector<1x512xf32>
    %c0_54 = arith.constant 0 : index
    %c14_55 = arith.constant 14 : index
    %151 = vector.load %arg7[%c0_54, %c14_55] : memref<8x81xf32, #tpu.memory_space<vmem>>, vector<8x1xf32>
    %152 = vector.broadcast %150 : vector<1x512xf32> to vector<8x512xf32>
    %153 = arith.mulf %149, %152 : vector<8x512xf32>
    %154 = vector.broadcast %151 : vector<8x1xf32> to vector<8x512xf32>
    %155 = arith.mulf %154, %153 : vector<8x512xf32>
    %156 = arith.addf %148, %155 : vector<8x512xf32>
    %157 = vector.extract_strided_slice %35 {offsets = [0, 135], sizes = [8, 512], strides = [1, 1]} : vector<8x768xf32> to vector<8x512xf32>
    %c15 = arith.constant 15 : index
    %c0_56 = arith.constant 0 : index
    %158 = vector.load %arg2[%c15, %c0_56] : memref<27x512xf32, #tpu.memory_space<vmem>>, vector<1x512xf32>
    %c0_57 = arith.constant 0 : index
    %c15_58 = arith.constant 15 : index
    %159 = vector.load %arg7[%c0_57, %c15_58] : memref<8x81xf32, #tpu.memory_space<vmem>>, vector<8x1xf32>
    %160 = vector.broadcast %158 : vector<1x512xf32> to vector<8x512xf32>
    %161 = arith.mulf %157, %160 : vector<8x512xf32>
    %162 = vector.broadcast %159 : vector<8x1xf32> to vector<8x512xf32>
    %163 = arith.mulf %162, %161 : vector<8x512xf32>
    %164 = arith.addf %156, %163 : vector<8x512xf32>
    %165 = vector.extract_strided_slice %35 {offsets = [0, 136], sizes = [8, 512], strides = [1, 1]} : vector<8x768xf32> to vector<8x512xf32>
    %c16 = arith.constant 16 : index
    %c0_59 = arith.constant 0 : index
    %166 = vector.load %arg2[%c16, %c0_59] : memref<27x512xf32, #tpu.memory_space<vmem>>, vector<1x512xf32>
    %c0_60 = arith.constant 0 : index
    %c16_61 = arith.constant 16 : index
    %167 = vector.load %arg7[%c0_60, %c16_61] : memref<8x81xf32, #tpu.memory_space<vmem>>, vector<8x1xf32>
    %168 = vector.broadcast %166 : vector<1x512xf32> to vector<8x512xf32>
    %169 = arith.mulf %165, %168 : vector<8x512xf32>
    %170 = vector.broadcast %167 : vector<8x1xf32> to vector<8x512xf32>
    %171 = arith.mulf %170, %169 : vector<8x512xf32>
    %172 = arith.addf %164, %171 : vector<8x512xf32>
    %173 = vector.extract_strided_slice %35 {offsets = [0, 137], sizes = [8, 512], strides = [1, 1]} : vector<8x768xf32> to vector<8x512xf32>
    %c17 = arith.constant 17 : index
    %c0_62 = arith.constant 0 : index
    %174 = vector.load %arg2[%c17, %c0_62] : memref<27x512xf32, #tpu.memory_space<vmem>>, vector<1x512xf32>
    %c0_63 = arith.constant 0 : index
    %c17_64 = arith.constant 17 : index
    %175 = vector.load %arg7[%c0_63, %c17_64] : memref<8x81xf32, #tpu.memory_space<vmem>>, vector<8x1xf32>
    %176 = vector.broadcast %174 : vector<1x512xf32> to vector<8x512xf32>
    %177 = arith.mulf %173, %176 : vector<8x512xf32>
    %178 = vector.broadcast %175 : vector<8x1xf32> to vector<8x512xf32>
    %179 = arith.mulf %178, %177 : vector<8x512xf32>
    %180 = arith.addf %172, %179 : vector<8x512xf32>
    %181 = vector.extract_strided_slice %35 {offsets = [0, 183], sizes = [8, 512], strides = [1, 1]} : vector<8x768xf32> to vector<8x512xf32>
    %c18 = arith.constant 18 : index
    %c0_65 = arith.constant 0 : index
    %182 = vector.load %arg2[%c18, %c0_65] : memref<27x512xf32, #tpu.memory_space<vmem>>, vector<1x512xf32>
    %c0_66 = arith.constant 0 : index
    %c18_67 = arith.constant 18 : index
    %183 = vector.load %arg7[%c0_66, %c18_67] : memref<8x81xf32, #tpu.memory_space<vmem>>, vector<8x1xf32>
    %184 = vector.broadcast %182 : vector<1x512xf32> to vector<8x512xf32>
    %185 = arith.mulf %181, %184 : vector<8x512xf32>
    %186 = vector.broadcast %183 : vector<8x1xf32> to vector<8x512xf32>
    %187 = arith.mulf %186, %185 : vector<8x512xf32>
    %188 = arith.addf %180, %187 : vector<8x512xf32>
    %189 = vector.extract_strided_slice %35 {offsets = [0, 184], sizes = [8, 512], strides = [1, 1]} : vector<8x768xf32> to vector<8x512xf32>
    %c19 = arith.constant 19 : index
    %c0_68 = arith.constant 0 : index
    %190 = vector.load %arg2[%c19, %c0_68] : memref<27x512xf32, #tpu.memory_space<vmem>>, vector<1x512xf32>
    %c0_69 = arith.constant 0 : index
    %c19_70 = arith.constant 19 : index
    %191 = vector.load %arg7[%c0_69, %c19_70] : memref<8x81xf32, #tpu.memory_space<vmem>>, vector<8x1xf32>
    %192 = vector.broadcast %190 : vector<1x512xf32> to vector<8x512xf32>
    %193 = arith.mulf %189, %192 : vector<8x512xf32>
    %194 = vector.broadcast %191 : vector<8x1xf32> to vector<8x512xf32>
    %195 = arith.mulf %194, %193 : vector<8x512xf32>
    %196 = arith.addf %188, %195 : vector<8x512xf32>
    %197 = vector.extract_strided_slice %35 {offsets = [0, 185], sizes = [8, 512], strides = [1, 1]} : vector<8x768xf32> to vector<8x512xf32>
    %c20 = arith.constant 20 : index
    %c0_71 = arith.constant 0 : index
    %198 = vector.load %arg2[%c20, %c0_71] : memref<27x512xf32, #tpu.memory_space<vmem>>, vector<1x512xf32>
    %c0_72 = arith.constant 0 : index
    %c20_73 = arith.constant 20 : index
    %199 = vector.load %arg7[%c0_72, %c20_73] : memref<8x81xf32, #tpu.memory_space<vmem>>, vector<8x1xf32>
    %200 = vector.broadcast %198 : vector<1x512xf32> to vector<8x512xf32>
    %201 = arith.mulf %197, %200 : vector<8x512xf32>
    %202 = vector.broadcast %199 : vector<8x1xf32> to vector<8x512xf32>
    %203 = arith.mulf %202, %201 : vector<8x512xf32>
    %204 = arith.addf %196, %203 : vector<8x512xf32>
    %205 = vector.extract_strided_slice %35 {offsets = [0, 191], sizes = [8, 512], strides = [1, 1]} : vector<8x768xf32> to vector<8x512xf32>
    %c21 = arith.constant 21 : index
    %c0_74 = arith.constant 0 : index
    %206 = vector.load %arg2[%c21, %c0_74] : memref<27x512xf32, #tpu.memory_space<vmem>>, vector<1x512xf32>
    %c0_75 = arith.constant 0 : index
    %c21_76 = arith.constant 21 : index
    %207 = vector.load %arg7[%c0_75, %c21_76] : memref<8x81xf32, #tpu.memory_space<vmem>>, vector<8x1xf32>
    %208 = vector.broadcast %206 : vector<1x512xf32> to vector<8x512xf32>
    %209 = arith.mulf %205, %208 : vector<8x512xf32>
    %210 = vector.broadcast %207 : vector<8x1xf32> to vector<8x512xf32>
    %211 = arith.mulf %210, %209 : vector<8x512xf32>
    %212 = arith.addf %204, %211 : vector<8x512xf32>
    %213 = vector.extract_strided_slice %35 {offsets = [0, 192], sizes = [8, 512], strides = [1, 1]} : vector<8x768xf32> to vector<8x512xf32>
    %c22 = arith.constant 22 : index
    %c0_77 = arith.constant 0 : index
    %214 = vector.load %arg2[%c22, %c0_77] : memref<27x512xf32, #tpu.memory_space<vmem>>, vector<1x512xf32>
    %c0_78 = arith.constant 0 : index
    %c22_79 = arith.constant 22 : index
    %215 = vector.load %arg7[%c0_78, %c22_79] : memref<8x81xf32, #tpu.memory_space<vmem>>, vector<8x1xf32>
    %216 = vector.broadcast %214 : vector<1x512xf32> to vector<8x512xf32>
    %217 = arith.mulf %213, %216 : vector<8x512xf32>
    %218 = vector.broadcast %215 : vector<8x1xf32> to vector<8x512xf32>
    %219 = arith.mulf %218, %217 : vector<8x512xf32>
    %220 = arith.addf %212, %219 : vector<8x512xf32>
    %221 = vector.extract_strided_slice %35 {offsets = [0, 193], sizes = [8, 512], strides = [1, 1]} : vector<8x768xf32> to vector<8x512xf32>
    %c23 = arith.constant 23 : index
    %c0_80 = arith.constant 0 : index
    %222 = vector.load %arg2[%c23, %c0_80] : memref<27x512xf32, #tpu.memory_space<vmem>>, vector<1x512xf32>
    %c0_81 = arith.constant 0 : index
    %c23_82 = arith.constant 23 : index
    %223 = vector.load %arg7[%c0_81, %c23_82] : memref<8x81xf32, #tpu.memory_space<vmem>>, vector<8x1xf32>
    %224 = vector.broadcast %222 : vector<1x512xf32> to vector<8x512xf32>
    %225 = arith.mulf %221, %224 : vector<8x512xf32>
    %226 = vector.broadcast %223 : vector<8x1xf32> to vector<8x512xf32>
    %227 = arith.mulf %226, %225 : vector<8x512xf32>
    %228 = arith.addf %220, %227 : vector<8x512xf32>
    %229 = vector.extract_strided_slice %35 {offsets = [0, 199], sizes = [8, 512], strides = [1, 1]} : vector<8x768xf32> to vector<8x512xf32>
    %c24 = arith.constant 24 : index
    %c0_83 = arith.constant 0 : index
    %230 = vector.load %arg2[%c24, %c0_83] : memref<27x512xf32, #tpu.memory_space<vmem>>, vector<1x512xf32>
    %c0_84 = arith.constant 0 : index
    %c24_85 = arith.constant 24 : index
    %231 = vector.load %arg7[%c0_84, %c24_85] : memref<8x81xf32, #tpu.memory_space<vmem>>, vector<8x1xf32>
    %232 = vector.broadcast %230 : vector<1x512xf32> to vector<8x512xf32>
    %233 = arith.mulf %229, %232 : vector<8x512xf32>
    %234 = vector.broadcast %231 : vector<8x1xf32> to vector<8x512xf32>
    %235 = arith.mulf %234, %233 : vector<8x512xf32>
    %236 = arith.addf %228, %235 : vector<8x512xf32>
    %237 = vector.extract_strided_slice %35 {offsets = [0, 200], sizes = [8, 512], strides = [1, 1]} : vector<8x768xf32> to vector<8x512xf32>
    %c25 = arith.constant 25 : index
    %c0_86 = arith.constant 0 : index
    %238 = vector.load %arg2[%c25, %c0_86] : memref<27x512xf32, #tpu.memory_space<vmem>>, vector<1x512xf32>
    %c0_87 = arith.constant 0 : index
    %c25_88 = arith.constant 25 : index
    %239 = vector.load %arg7[%c0_87, %c25_88] : memref<8x81xf32, #tpu.memory_space<vmem>>, vector<8x1xf32>
    %240 = vector.broadcast %238 : vector<1x512xf32> to vector<8x512xf32>
    %241 = arith.mulf %237, %240 : vector<8x512xf32>
    %242 = vector.broadcast %239 : vector<8x1xf32> to vector<8x512xf32>
    %243 = arith.mulf %242, %241 : vector<8x512xf32>
    %244 = arith.addf %236, %243 : vector<8x512xf32>
    %245 = vector.extract_strided_slice %35 {offsets = [0, 201], sizes = [8, 512], strides = [1, 1]} : vector<8x768xf32> to vector<8x512xf32>
    %c26 = arith.constant 26 : index
    %c0_89 = arith.constant 0 : index
    %246 = vector.load %arg2[%c26, %c0_89] : memref<27x512xf32, #tpu.memory_space<vmem>>, vector<1x512xf32>
    %c0_90 = arith.constant 0 : index
    %c26_91 = arith.constant 26 : index
    %247 = vector.load %arg7[%c0_90, %c26_91] : memref<8x81xf32, #tpu.memory_space<vmem>>, vector<8x1xf32>
    %248 = vector.broadcast %246 : vector<1x512xf32> to vector<8x512xf32>
    %249 = arith.mulf %245, %248 : vector<8x512xf32>
    %250 = vector.broadcast %247 : vector<8x1xf32> to vector<8x512xf32>
    %251 = arith.mulf %250, %249 : vector<8x512xf32>
    %252 = arith.addf %244, %251 : vector<8x512xf32>
    %c0_92 = arith.constant 0 : index
    %c1_93 = arith.constant 1 : index
    %253 = vector.load %arg8[%c0_92, %c1_93] : memref<8x6xf32, #tpu.memory_space<vmem>>, vector<8x1xf32>
    %254 = vector.broadcast %253 : vector<8x1xf32> to vector<8x512xf32>
    %255 = arith.mulf %252, %254 : vector<8x512xf32>
    %c0_94 = arith.constant 0 : index
    %c1_95 = arith.constant 1 : index
    %256 = vector.load %arg9[%c0_94, %c1_95] : memref<8x6xf32, #tpu.memory_space<vmem>>, vector<8x1xf32>
    %257 = vector.broadcast %256 : vector<8x1xf32> to vector<8x512xf32>
    %258 = arith.addf %255, %257 : vector<8x512xf32>
    %cst_96 = arith.constant 0.000000e+00 : f32
    %259 = vector.broadcast %cst_96 : f32 to vector<8x512xf32>
    %260 = arith.maximumf %258, %259 : vector<8x512xf32>
    %261 = arith.addf %33, %260 : vector<8x512xf32>
    %c0_97 = arith.constant 0 : index
    %c0_98 = arith.constant 0 : index
    %262 = vector.load %arg4[%c0_97, %c0_98] : memref<8x8xf32, #tpu.memory_space<vmem>>, vector<8x8xf32>
    %263 = vector.extract_strided_slice %262 {offsets = [0, 0], sizes = [8, 1], strides = [1, 1]} : vector<8x8xf32> to vector<8x1xf32>
    %264 = vector.extract_strided_slice %261 {offsets = [0, 0], sizes = [1, 512], strides = [1, 1]} : vector<8x512xf32> to vector<1x512xf32>
    %265 = vector.broadcast %263 : vector<8x1xf32> to vector<8x512xf32>
    %266 = vector.broadcast %264 : vector<1x512xf32> to vector<8x512xf32>
    %267 = arith.mulf %265, %266 : vector<8x512xf32>
    %268 = vector.extract_strided_slice %262 {offsets = [0, 1], sizes = [8, 1], strides = [1, 1]} : vector<8x8xf32> to vector<8x1xf32>
    %269 = vector.extract_strided_slice %261 {offsets = [1, 0], sizes = [1, 512], strides = [1, 1]} : vector<8x512xf32> to vector<1x512xf32>
    %270 = vector.broadcast %268 : vector<8x1xf32> to vector<8x512xf32>
    %271 = vector.broadcast %269 : vector<1x512xf32> to vector<8x512xf32>
    %272 = arith.mulf %270, %271 : vector<8x512xf32>
    %273 = arith.addf %267, %272 : vector<8x512xf32>
    %274 = vector.extract_strided_slice %262 {offsets = [0, 2], sizes = [8, 1], strides = [1, 1]} : vector<8x8xf32> to vector<8x1xf32>
    %275 = vector.extract_strided_slice %261 {offsets = [2, 0], sizes = [1, 512], strides = [1, 1]} : vector<8x512xf32> to vector<1x512xf32>
    %276 = vector.broadcast %274 : vector<8x1xf32> to vector<8x512xf32>
    %277 = vector.broadcast %275 : vector<1x512xf32> to vector<8x512xf32>
    %278 = arith.mulf %276, %277 : vector<8x512xf32>
    %279 = arith.addf %273, %278 : vector<8x512xf32>
    %280 = vector.extract_strided_slice %262 {offsets = [0, 3], sizes = [8, 1], strides = [1, 1]} : vector<8x8xf32> to vector<8x1xf32>
    %281 = vector.extract_strided_slice %261 {offsets = [3, 0], sizes = [1, 512], strides = [1, 1]} : vector<8x512xf32> to vector<1x512xf32>
    %282 = vector.broadcast %280 : vector<8x1xf32> to vector<8x512xf32>
    %283 = vector.broadcast %281 : vector<1x512xf32> to vector<8x512xf32>
    %284 = arith.mulf %282, %283 : vector<8x512xf32>
    %285 = arith.addf %279, %284 : vector<8x512xf32>
    %286 = vector.extract_strided_slice %262 {offsets = [0, 4], sizes = [8, 1], strides = [1, 1]} : vector<8x8xf32> to vector<8x1xf32>
    %287 = vector.extract_strided_slice %261 {offsets = [4, 0], sizes = [1, 512], strides = [1, 1]} : vector<8x512xf32> to vector<1x512xf32>
    %288 = vector.broadcast %286 : vector<8x1xf32> to vector<8x512xf32>
    %289 = vector.broadcast %287 : vector<1x512xf32> to vector<8x512xf32>
    %290 = arith.mulf %288, %289 : vector<8x512xf32>
    %291 = arith.addf %285, %290 : vector<8x512xf32>
    %292 = vector.extract_strided_slice %262 {offsets = [0, 5], sizes = [8, 1], strides = [1, 1]} : vector<8x8xf32> to vector<8x1xf32>
    %293 = vector.extract_strided_slice %261 {offsets = [5, 0], sizes = [1, 512], strides = [1, 1]} : vector<8x512xf32> to vector<1x512xf32>
    %294 = vector.broadcast %292 : vector<8x1xf32> to vector<8x512xf32>
    %295 = vector.broadcast %293 : vector<1x512xf32> to vector<8x512xf32>
    %296 = arith.mulf %294, %295 : vector<8x512xf32>
    %297 = arith.addf %291, %296 : vector<8x512xf32>
    %298 = vector.extract_strided_slice %262 {offsets = [0, 6], sizes = [8, 1], strides = [1, 1]} : vector<8x8xf32> to vector<8x1xf32>
    %299 = vector.extract_strided_slice %261 {offsets = [6, 0], sizes = [1, 512], strides = [1, 1]} : vector<8x512xf32> to vector<1x512xf32>
    %300 = vector.broadcast %298 : vector<8x1xf32> to vector<8x512xf32>
    %301 = vector.broadcast %299 : vector<1x512xf32> to vector<8x512xf32>
    %302 = arith.mulf %300, %301 : vector<8x512xf32>
    %303 = arith.addf %297, %302 : vector<8x512xf32>
    %304 = vector.extract_strided_slice %262 {offsets = [0, 7], sizes = [8, 1], strides = [1, 1]} : vector<8x8xf32> to vector<8x1xf32>
    %305 = vector.extract_strided_slice %261 {offsets = [7, 0], sizes = [1, 512], strides = [1, 1]} : vector<8x512xf32> to vector<1x512xf32>
    %306 = vector.broadcast %304 : vector<8x1xf32> to vector<8x512xf32>
    %307 = vector.broadcast %305 : vector<1x512xf32> to vector<8x512xf32>
    %308 = arith.mulf %306, %307 : vector<8x512xf32>
    %309 = arith.addf %303, %308 : vector<8x512xf32>
    %c0_99 = arith.constant 0 : index
    %c2_100 = arith.constant 2 : index
    %310 = vector.load %arg8[%c0_99, %c2_100] : memref<8x6xf32, #tpu.memory_space<vmem>>, vector<8x1xf32>
    %311 = vector.broadcast %310 : vector<8x1xf32> to vector<8x512xf32>
    %312 = arith.mulf %309, %311 : vector<8x512xf32>
    %c0_101 = arith.constant 0 : index
    %c2_102 = arith.constant 2 : index
    %313 = vector.load %arg9[%c0_101, %c2_102] : memref<8x6xf32, #tpu.memory_space<vmem>>, vector<8x1xf32>
    %314 = vector.broadcast %313 : vector<8x1xf32> to vector<8x512xf32>
    %315 = arith.addf %312, %314 : vector<8x512xf32>
    %cst_103 = arith.constant 0.000000e+00 : f32
    %316 = vector.broadcast %cst_103 : f32 to vector<8x512xf32>
    %317 = arith.maximumf %315, %316 : vector<8x512xf32>
    %cst_104 = arith.constant 0.000000e+00 : f32
    %318 = vector.broadcast %cst_104 : f32 to vector<8x128xf32>
    %319 = tpu.concatenate %318, %317, %318 in 1 : vector<8x128xf32>, vector<8x512xf32>, vector<8x128xf32> -> vector<8x768xf32>
    %cst_105 = arith.constant 0.000000e+00 : f32
    %320 = vector.broadcast %cst_105 : f32 to vector<8x512xf32>
    %321 = vector.extract_strided_slice %319 {offsets = [0, 55], sizes = [8, 512], strides = [1, 1]} : vector<8x768xf32> to vector<8x512xf32>
    %c0_106 = arith.constant 0 : index
    %c0_107 = arith.constant 0 : index
    %322 = vector.load %arg2[%c0_106, %c0_107] : memref<27x512xf32, #tpu.memory_space<vmem>>, vector<1x512xf32>
    %c0_108 = arith.constant 0 : index
    %c27 = arith.constant 27 : index
    %323 = vector.load %arg7[%c0_108, %c27] : memref<8x81xf32, #tpu.memory_space<vmem>>, vector<8x1xf32>
    %324 = vector.broadcast %322 : vector<1x512xf32> to vector<8x512xf32>
    %325 = arith.mulf %321, %324 : vector<8x512xf32>
    %326 = vector.broadcast %323 : vector<8x1xf32> to vector<8x512xf32>
    %327 = arith.mulf %326, %325 : vector<8x512xf32>
    %328 = arith.addf %320, %327 : vector<8x512xf32>
    %329 = vector.extract_strided_slice %319 {offsets = [0, 56], sizes = [8, 512], strides = [1, 1]} : vector<8x768xf32> to vector<8x512xf32>
    %c1_109 = arith.constant 1 : index
    %c0_110 = arith.constant 0 : index
    %330 = vector.load %arg2[%c1_109, %c0_110] : memref<27x512xf32, #tpu.memory_space<vmem>>, vector<1x512xf32>
    %c0_111 = arith.constant 0 : index
    %c28 = arith.constant 28 : index
    %331 = vector.load %arg7[%c0_111, %c28] : memref<8x81xf32, #tpu.memory_space<vmem>>, vector<8x1xf32>
    %332 = vector.broadcast %330 : vector<1x512xf32> to vector<8x512xf32>
    %333 = arith.mulf %329, %332 : vector<8x512xf32>
    %334 = vector.broadcast %331 : vector<8x1xf32> to vector<8x512xf32>
    %335 = arith.mulf %334, %333 : vector<8x512xf32>
    %336 = arith.addf %328, %335 : vector<8x512xf32>
    %337 = vector.extract_strided_slice %319 {offsets = [0, 57], sizes = [8, 512], strides = [1, 1]} : vector<8x768xf32> to vector<8x512xf32>
    %c2_112 = arith.constant 2 : index
    %c0_113 = arith.constant 0 : index
    %338 = vector.load %arg2[%c2_112, %c0_113] : memref<27x512xf32, #tpu.memory_space<vmem>>, vector<1x512xf32>
    %c0_114 = arith.constant 0 : index
    %c29 = arith.constant 29 : index
    %339 = vector.load %arg7[%c0_114, %c29] : memref<8x81xf32, #tpu.memory_space<vmem>>, vector<8x1xf32>
    %340 = vector.broadcast %338 : vector<1x512xf32> to vector<8x512xf32>
    %341 = arith.mulf %337, %340 : vector<8x512xf32>
    %342 = vector.broadcast %339 : vector<8x1xf32> to vector<8x512xf32>
    %343 = arith.mulf %342, %341 : vector<8x512xf32>
    %344 = arith.addf %336, %343 : vector<8x512xf32>
    %345 = vector.extract_strided_slice %319 {offsets = [0, 63], sizes = [8, 512], strides = [1, 1]} : vector<8x768xf32> to vector<8x512xf32>
    %c3_115 = arith.constant 3 : index
    %c0_116 = arith.constant 0 : index
    %346 = vector.load %arg2[%c3_115, %c0_116] : memref<27x512xf32, #tpu.memory_space<vmem>>, vector<1x512xf32>
    %c0_117 = arith.constant 0 : index
    %c30 = arith.constant 30 : index
    %347 = vector.load %arg7[%c0_117, %c30] : memref<8x81xf32, #tpu.memory_space<vmem>>, vector<8x1xf32>
    %348 = vector.broadcast %346 : vector<1x512xf32> to vector<8x512xf32>
    %349 = arith.mulf %345, %348 : vector<8x512xf32>
    %350 = vector.broadcast %347 : vector<8x1xf32> to vector<8x512xf32>
    %351 = arith.mulf %350, %349 : vector<8x512xf32>
    %352 = arith.addf %344, %351 : vector<8x512xf32>
    %353 = vector.extract_strided_slice %319 {offsets = [0, 64], sizes = [8, 512], strides = [1, 1]} : vector<8x768xf32> to vector<8x512xf32>
    %c4_118 = arith.constant 4 : index
    %c0_119 = arith.constant 0 : index
    %354 = vector.load %arg2[%c4_118, %c0_119] : memref<27x512xf32, #tpu.memory_space<vmem>>, vector<1x512xf32>
    %c0_120 = arith.constant 0 : index
    %c31 = arith.constant 31 : index
    %355 = vector.load %arg7[%c0_120, %c31] : memref<8x81xf32, #tpu.memory_space<vmem>>, vector<8x1xf32>
    %356 = vector.broadcast %354 : vector<1x512xf32> to vector<8x512xf32>
    %357 = arith.mulf %353, %356 : vector<8x512xf32>
    %358 = vector.broadcast %355 : vector<8x1xf32> to vector<8x512xf32>
    %359 = arith.mulf %358, %357 : vector<8x512xf32>
    %360 = arith.addf %352, %359 : vector<8x512xf32>
    %361 = vector.extract_strided_slice %319 {offsets = [0, 65], sizes = [8, 512], strides = [1, 1]} : vector<8x768xf32> to vector<8x512xf32>
    %c5_121 = arith.constant 5 : index
    %c0_122 = arith.constant 0 : index
    %362 = vector.load %arg2[%c5_121, %c0_122] : memref<27x512xf32, #tpu.memory_space<vmem>>, vector<1x512xf32>
    %c0_123 = arith.constant 0 : index
    %c32 = arith.constant 32 : index
    %363 = vector.load %arg7[%c0_123, %c32] : memref<8x81xf32, #tpu.memory_space<vmem>>, vector<8x1xf32>
    %364 = vector.broadcast %362 : vector<1x512xf32> to vector<8x512xf32>
    %365 = arith.mulf %361, %364 : vector<8x512xf32>
    %366 = vector.broadcast %363 : vector<8x1xf32> to vector<8x512xf32>
    %367 = arith.mulf %366, %365 : vector<8x512xf32>
    %368 = arith.addf %360, %367 : vector<8x512xf32>
    %369 = vector.extract_strided_slice %319 {offsets = [0, 71], sizes = [8, 512], strides = [1, 1]} : vector<8x768xf32> to vector<8x512xf32>
    %c6_124 = arith.constant 6 : index
    %c0_125 = arith.constant 0 : index
    %370 = vector.load %arg2[%c6_124, %c0_125] : memref<27x512xf32, #tpu.memory_space<vmem>>, vector<1x512xf32>
    %c0_126 = arith.constant 0 : index
    %c33 = arith.constant 33 : index
    %371 = vector.load %arg7[%c0_126, %c33] : memref<8x81xf32, #tpu.memory_space<vmem>>, vector<8x1xf32>
    %372 = vector.broadcast %370 : vector<1x512xf32> to vector<8x512xf32>
    %373 = arith.mulf %369, %372 : vector<8x512xf32>
    %374 = vector.broadcast %371 : vector<8x1xf32> to vector<8x512xf32>
    %375 = arith.mulf %374, %373 : vector<8x512xf32>
    %376 = arith.addf %368, %375 : vector<8x512xf32>
    %377 = vector.extract_strided_slice %319 {offsets = [0, 72], sizes = [8, 512], strides = [1, 1]} : vector<8x768xf32> to vector<8x512xf32>
    %c7_127 = arith.constant 7 : index
    %c0_128 = arith.constant 0 : index
    %378 = vector.load %arg2[%c7_127, %c0_128] : memref<27x512xf32, #tpu.memory_space<vmem>>, vector<1x512xf32>
    %c0_129 = arith.constant 0 : index
    %c34 = arith.constant 34 : index
    %379 = vector.load %arg7[%c0_129, %c34] : memref<8x81xf32, #tpu.memory_space<vmem>>, vector<8x1xf32>
    %380 = vector.broadcast %378 : vector<1x512xf32> to vector<8x512xf32>
    %381 = arith.mulf %377, %380 : vector<8x512xf32>
    %382 = vector.broadcast %379 : vector<8x1xf32> to vector<8x512xf32>
    %383 = arith.mulf %382, %381 : vector<8x512xf32>
    %384 = arith.addf %376, %383 : vector<8x512xf32>
    %385 = vector.extract_strided_slice %319 {offsets = [0, 73], sizes = [8, 512], strides = [1, 1]} : vector<8x768xf32> to vector<8x512xf32>
    %c8_130 = arith.constant 8 : index
    %c0_131 = arith.constant 0 : index
    %386 = vector.load %arg2[%c8_130, %c0_131] : memref<27x512xf32, #tpu.memory_space<vmem>>, vector<1x512xf32>
    %c0_132 = arith.constant 0 : index
    %c35 = arith.constant 35 : index
    %387 = vector.load %arg7[%c0_132, %c35] : memref<8x81xf32, #tpu.memory_space<vmem>>, vector<8x1xf32>
    %388 = vector.broadcast %386 : vector<1x512xf32> to vector<8x512xf32>
    %389 = arith.mulf %385, %388 : vector<8x512xf32>
    %390 = vector.broadcast %387 : vector<8x1xf32> to vector<8x512xf32>
    %391 = arith.mulf %390, %389 : vector<8x512xf32>
    %392 = arith.addf %384, %391 : vector<8x512xf32>
    %393 = vector.extract_strided_slice %319 {offsets = [0, 119], sizes = [8, 512], strides = [1, 1]} : vector<8x768xf32> to vector<8x512xf32>
    %c9_133 = arith.constant 9 : index
    %c0_134 = arith.constant 0 : index
    %394 = vector.load %arg2[%c9_133, %c0_134] : memref<27x512xf32, #tpu.memory_space<vmem>>, vector<1x512xf32>
    %c0_135 = arith.constant 0 : index
    %c36 = arith.constant 36 : index
    %395 = vector.load %arg7[%c0_135, %c36] : memref<8x81xf32, #tpu.memory_space<vmem>>, vector<8x1xf32>
    %396 = vector.broadcast %394 : vector<1x512xf32> to vector<8x512xf32>
    %397 = arith.mulf %393, %396 : vector<8x512xf32>
    %398 = vector.broadcast %395 : vector<8x1xf32> to vector<8x512xf32>
    %399 = arith.mulf %398, %397 : vector<8x512xf32>
    %400 = arith.addf %392, %399 : vector<8x512xf32>
    %401 = vector.extract_strided_slice %319 {offsets = [0, 120], sizes = [8, 512], strides = [1, 1]} : vector<8x768xf32> to vector<8x512xf32>
    %c10_136 = arith.constant 10 : index
    %c0_137 = arith.constant 0 : index
    %402 = vector.load %arg2[%c10_136, %c0_137] : memref<27x512xf32, #tpu.memory_space<vmem>>, vector<1x512xf32>
    %c0_138 = arith.constant 0 : index
    %c37 = arith.constant 37 : index
    %403 = vector.load %arg7[%c0_138, %c37] : memref<8x81xf32, #tpu.memory_space<vmem>>, vector<8x1xf32>
    %404 = vector.broadcast %402 : vector<1x512xf32> to vector<8x512xf32>
    %405 = arith.mulf %401, %404 : vector<8x512xf32>
    %406 = vector.broadcast %403 : vector<8x1xf32> to vector<8x512xf32>
    %407 = arith.mulf %406, %405 : vector<8x512xf32>
    %408 = arith.addf %400, %407 : vector<8x512xf32>
    %409 = vector.extract_strided_slice %319 {offsets = [0, 121], sizes = [8, 512], strides = [1, 1]} : vector<8x768xf32> to vector<8x512xf32>
    %c11_139 = arith.constant 11 : index
    %c0_140 = arith.constant 0 : index
    %410 = vector.load %arg2[%c11_139, %c0_140] : memref<27x512xf32, #tpu.memory_space<vmem>>, vector<1x512xf32>
    %c0_141 = arith.constant 0 : index
    %c38 = arith.constant 38 : index
    %411 = vector.load %arg7[%c0_141, %c38] : memref<8x81xf32, #tpu.memory_space<vmem>>, vector<8x1xf32>
    %412 = vector.broadcast %410 : vector<1x512xf32> to vector<8x512xf32>
    %413 = arith.mulf %409, %412 : vector<8x512xf32>
    %414 = vector.broadcast %411 : vector<8x1xf32> to vector<8x512xf32>
    %415 = arith.mulf %414, %413 : vector<8x512xf32>
    %416 = arith.addf %408, %415 : vector<8x512xf32>
    %417 = vector.extract_strided_slice %319 {offsets = [0, 127], sizes = [8, 512], strides = [1, 1]} : vector<8x768xf32> to vector<8x512xf32>
    %c12_142 = arith.constant 12 : index
    %c0_143 = arith.constant 0 : index
    %418 = vector.load %arg2[%c12_142, %c0_143] : memref<27x512xf32, #tpu.memory_space<vmem>>, vector<1x512xf32>
    %c0_144 = arith.constant 0 : index
    %c39 = arith.constant 39 : index
    %419 = vector.load %arg7[%c0_144, %c39] : memref<8x81xf32, #tpu.memory_space<vmem>>, vector<8x1xf32>
    %420 = vector.broadcast %418 : vector<1x512xf32> to vector<8x512xf32>
    %421 = arith.mulf %417, %420 : vector<8x512xf32>
    %422 = vector.broadcast %419 : vector<8x1xf32> to vector<8x512xf32>
    %423 = arith.mulf %422, %421 : vector<8x512xf32>
    %424 = arith.addf %416, %423 : vector<8x512xf32>
    %425 = vector.extract_strided_slice %319 {offsets = [0, 128], sizes = [8, 512], strides = [1, 1]} : vector<8x768xf32> to vector<8x512xf32>
    %c13_145 = arith.constant 13 : index
    %c0_146 = arith.constant 0 : index
    %426 = vector.load %arg2[%c13_145, %c0_146] : memref<27x512xf32, #tpu.memory_space<vmem>>, vector<1x512xf32>
    %c0_147 = arith.constant 0 : index
    %c40 = arith.constant 40 : index
    %427 = vector.load %arg7[%c0_147, %c40] : memref<8x81xf32, #tpu.memory_space<vmem>>, vector<8x1xf32>
    %428 = vector.broadcast %426 : vector<1x512xf32> to vector<8x512xf32>
    %429 = arith.mulf %425, %428 : vector<8x512xf32>
    %430 = vector.broadcast %427 : vector<8x1xf32> to vector<8x512xf32>
    %431 = arith.mulf %430, %429 : vector<8x512xf32>
    %432 = arith.addf %424, %431 : vector<8x512xf32>
    %433 = vector.extract_strided_slice %319 {offsets = [0, 129], sizes = [8, 512], strides = [1, 1]} : vector<8x768xf32> to vector<8x512xf32>
    %c14_148 = arith.constant 14 : index
    %c0_149 = arith.constant 0 : index
    %434 = vector.load %arg2[%c14_148, %c0_149] : memref<27x512xf32, #tpu.memory_space<vmem>>, vector<1x512xf32>
    %c0_150 = arith.constant 0 : index
    %c41 = arith.constant 41 : index
    %435 = vector.load %arg7[%c0_150, %c41] : memref<8x81xf32, #tpu.memory_space<vmem>>, vector<8x1xf32>
    %436 = vector.broadcast %434 : vector<1x512xf32> to vector<8x512xf32>
    %437 = arith.mulf %433, %436 : vector<8x512xf32>
    %438 = vector.broadcast %435 : vector<8x1xf32> to vector<8x512xf32>
    %439 = arith.mulf %438, %437 : vector<8x512xf32>
    %440 = arith.addf %432, %439 : vector<8x512xf32>
    %441 = vector.extract_strided_slice %319 {offsets = [0, 135], sizes = [8, 512], strides = [1, 1]} : vector<8x768xf32> to vector<8x512xf32>
    %c15_151 = arith.constant 15 : index
    %c0_152 = arith.constant 0 : index
    %442 = vector.load %arg2[%c15_151, %c0_152] : memref<27x512xf32, #tpu.memory_space<vmem>>, vector<1x512xf32>
    %c0_153 = arith.constant 0 : index
    %c42 = arith.constant 42 : index
    %443 = vector.load %arg7[%c0_153, %c42] : memref<8x81xf32, #tpu.memory_space<vmem>>, vector<8x1xf32>
    %444 = vector.broadcast %442 : vector<1x512xf32> to vector<8x512xf32>
    %445 = arith.mulf %441, %444 : vector<8x512xf32>
    %446 = vector.broadcast %443 : vector<8x1xf32> to vector<8x512xf32>
    %447 = arith.mulf %446, %445 : vector<8x512xf32>
    %448 = arith.addf %440, %447 : vector<8x512xf32>
    %449 = vector.extract_strided_slice %319 {offsets = [0, 136], sizes = [8, 512], strides = [1, 1]} : vector<8x768xf32> to vector<8x512xf32>
    %c16_154 = arith.constant 16 : index
    %c0_155 = arith.constant 0 : index
    %450 = vector.load %arg2[%c16_154, %c0_155] : memref<27x512xf32, #tpu.memory_space<vmem>>, vector<1x512xf32>
    %c0_156 = arith.constant 0 : index
    %c43 = arith.constant 43 : index
    %451 = vector.load %arg7[%c0_156, %c43] : memref<8x81xf32, #tpu.memory_space<vmem>>, vector<8x1xf32>
    %452 = vector.broadcast %450 : vector<1x512xf32> to vector<8x512xf32>
    %453 = arith.mulf %449, %452 : vector<8x512xf32>
    %454 = vector.broadcast %451 : vector<8x1xf32> to vector<8x512xf32>
    %455 = arith.mulf %454, %453 : vector<8x512xf32>
    %456 = arith.addf %448, %455 : vector<8x512xf32>
    %457 = vector.extract_strided_slice %319 {offsets = [0, 137], sizes = [8, 512], strides = [1, 1]} : vector<8x768xf32> to vector<8x512xf32>
    %c17_157 = arith.constant 17 : index
    %c0_158 = arith.constant 0 : index
    %458 = vector.load %arg2[%c17_157, %c0_158] : memref<27x512xf32, #tpu.memory_space<vmem>>, vector<1x512xf32>
    %c0_159 = arith.constant 0 : index
    %c44 = arith.constant 44 : index
    %459 = vector.load %arg7[%c0_159, %c44] : memref<8x81xf32, #tpu.memory_space<vmem>>, vector<8x1xf32>
    %460 = vector.broadcast %458 : vector<1x512xf32> to vector<8x512xf32>
    %461 = arith.mulf %457, %460 : vector<8x512xf32>
    %462 = vector.broadcast %459 : vector<8x1xf32> to vector<8x512xf32>
    %463 = arith.mulf %462, %461 : vector<8x512xf32>
    %464 = arith.addf %456, %463 : vector<8x512xf32>
    %465 = vector.extract_strided_slice %319 {offsets = [0, 183], sizes = [8, 512], strides = [1, 1]} : vector<8x768xf32> to vector<8x512xf32>
    %c18_160 = arith.constant 18 : index
    %c0_161 = arith.constant 0 : index
    %466 = vector.load %arg2[%c18_160, %c0_161] : memref<27x512xf32, #tpu.memory_space<vmem>>, vector<1x512xf32>
    %c0_162 = arith.constant 0 : index
    %c45 = arith.constant 45 : index
    %467 = vector.load %arg7[%c0_162, %c45] : memref<8x81xf32, #tpu.memory_space<vmem>>, vector<8x1xf32>
    %468 = vector.broadcast %466 : vector<1x512xf32> to vector<8x512xf32>
    %469 = arith.mulf %465, %468 : vector<8x512xf32>
    %470 = vector.broadcast %467 : vector<8x1xf32> to vector<8x512xf32>
    %471 = arith.mulf %470, %469 : vector<8x512xf32>
    %472 = arith.addf %464, %471 : vector<8x512xf32>
    %473 = vector.extract_strided_slice %319 {offsets = [0, 184], sizes = [8, 512], strides = [1, 1]} : vector<8x768xf32> to vector<8x512xf32>
    %c19_163 = arith.constant 19 : index
    %c0_164 = arith.constant 0 : index
    %474 = vector.load %arg2[%c19_163, %c0_164] : memref<27x512xf32, #tpu.memory_space<vmem>>, vector<1x512xf32>
    %c0_165 = arith.constant 0 : index
    %c46 = arith.constant 46 : index
    %475 = vector.load %arg7[%c0_165, %c46] : memref<8x81xf32, #tpu.memory_space<vmem>>, vector<8x1xf32>
    %476 = vector.broadcast %474 : vector<1x512xf32> to vector<8x512xf32>
    %477 = arith.mulf %473, %476 : vector<8x512xf32>
    %478 = vector.broadcast %475 : vector<8x1xf32> to vector<8x512xf32>
    %479 = arith.mulf %478, %477 : vector<8x512xf32>
    %480 = arith.addf %472, %479 : vector<8x512xf32>
    %481 = vector.extract_strided_slice %319 {offsets = [0, 185], sizes = [8, 512], strides = [1, 1]} : vector<8x768xf32> to vector<8x512xf32>
    %c20_166 = arith.constant 20 : index
    %c0_167 = arith.constant 0 : index
    %482 = vector.load %arg2[%c20_166, %c0_167] : memref<27x512xf32, #tpu.memory_space<vmem>>, vector<1x512xf32>
    %c0_168 = arith.constant 0 : index
    %c47 = arith.constant 47 : index
    %483 = vector.load %arg7[%c0_168, %c47] : memref<8x81xf32, #tpu.memory_space<vmem>>, vector<8x1xf32>
    %484 = vector.broadcast %482 : vector<1x512xf32> to vector<8x512xf32>
    %485 = arith.mulf %481, %484 : vector<8x512xf32>
    %486 = vector.broadcast %483 : vector<8x1xf32> to vector<8x512xf32>
    %487 = arith.mulf %486, %485 : vector<8x512xf32>
    %488 = arith.addf %480, %487 : vector<8x512xf32>
    %489 = vector.extract_strided_slice %319 {offsets = [0, 191], sizes = [8, 512], strides = [1, 1]} : vector<8x768xf32> to vector<8x512xf32>
    %c21_169 = arith.constant 21 : index
    %c0_170 = arith.constant 0 : index
    %490 = vector.load %arg2[%c21_169, %c0_170] : memref<27x512xf32, #tpu.memory_space<vmem>>, vector<1x512xf32>
    %c0_171 = arith.constant 0 : index
    %c48 = arith.constant 48 : index
    %491 = vector.load %arg7[%c0_171, %c48] : memref<8x81xf32, #tpu.memory_space<vmem>>, vector<8x1xf32>
    %492 = vector.broadcast %490 : vector<1x512xf32> to vector<8x512xf32>
    %493 = arith.mulf %489, %492 : vector<8x512xf32>
    %494 = vector.broadcast %491 : vector<8x1xf32> to vector<8x512xf32>
    %495 = arith.mulf %494, %493 : vector<8x512xf32>
    %496 = arith.addf %488, %495 : vector<8x512xf32>
    %497 = vector.extract_strided_slice %319 {offsets = [0, 192], sizes = [8, 512], strides = [1, 1]} : vector<8x768xf32> to vector<8x512xf32>
    %c22_172 = arith.constant 22 : index
    %c0_173 = arith.constant 0 : index
    %498 = vector.load %arg2[%c22_172, %c0_173] : memref<27x512xf32, #tpu.memory_space<vmem>>, vector<1x512xf32>
    %c0_174 = arith.constant 0 : index
    %c49 = arith.constant 49 : index
    %499 = vector.load %arg7[%c0_174, %c49] : memref<8x81xf32, #tpu.memory_space<vmem>>, vector<8x1xf32>
    %500 = vector.broadcast %498 : vector<1x512xf32> to vector<8x512xf32>
    %501 = arith.mulf %497, %500 : vector<8x512xf32>
    %502 = vector.broadcast %499 : vector<8x1xf32> to vector<8x512xf32>
    %503 = arith.mulf %502, %501 : vector<8x512xf32>
    %504 = arith.addf %496, %503 : vector<8x512xf32>
    %505 = vector.extract_strided_slice %319 {offsets = [0, 193], sizes = [8, 512], strides = [1, 1]} : vector<8x768xf32> to vector<8x512xf32>
    %c23_175 = arith.constant 23 : index
    %c0_176 = arith.constant 0 : index
    %506 = vector.load %arg2[%c23_175, %c0_176] : memref<27x512xf32, #tpu.memory_space<vmem>>, vector<1x512xf32>
    %c0_177 = arith.constant 0 : index
    %c50 = arith.constant 50 : index
    %507 = vector.load %arg7[%c0_177, %c50] : memref<8x81xf32, #tpu.memory_space<vmem>>, vector<8x1xf32>
    %508 = vector.broadcast %506 : vector<1x512xf32> to vector<8x512xf32>
    %509 = arith.mulf %505, %508 : vector<8x512xf32>
    %510 = vector.broadcast %507 : vector<8x1xf32> to vector<8x512xf32>
    %511 = arith.mulf %510, %509 : vector<8x512xf32>
    %512 = arith.addf %504, %511 : vector<8x512xf32>
    %513 = vector.extract_strided_slice %319 {offsets = [0, 199], sizes = [8, 512], strides = [1, 1]} : vector<8x768xf32> to vector<8x512xf32>
    %c24_178 = arith.constant 24 : index
    %c0_179 = arith.constant 0 : index
    %514 = vector.load %arg2[%c24_178, %c0_179] : memref<27x512xf32, #tpu.memory_space<vmem>>, vector<1x512xf32>
    %c0_180 = arith.constant 0 : index
    %c51 = arith.constant 51 : index
    %515 = vector.load %arg7[%c0_180, %c51] : memref<8x81xf32, #tpu.memory_space<vmem>>, vector<8x1xf32>
    %516 = vector.broadcast %514 : vector<1x512xf32> to vector<8x512xf32>
    %517 = arith.mulf %513, %516 : vector<8x512xf32>
    %518 = vector.broadcast %515 : vector<8x1xf32> to vector<8x512xf32>
    %519 = arith.mulf %518, %517 : vector<8x512xf32>
    %520 = arith.addf %512, %519 : vector<8x512xf32>
    %521 = vector.extract_strided_slice %319 {offsets = [0, 200], sizes = [8, 512], strides = [1, 1]} : vector<8x768xf32> to vector<8x512xf32>
    %c25_181 = arith.constant 25 : index
    %c0_182 = arith.constant 0 : index
    %522 = vector.load %arg2[%c25_181, %c0_182] : memref<27x512xf32, #tpu.memory_space<vmem>>, vector<1x512xf32>
    %c0_183 = arith.constant 0 : index
    %c52 = arith.constant 52 : index
    %523 = vector.load %arg7[%c0_183, %c52] : memref<8x81xf32, #tpu.memory_space<vmem>>, vector<8x1xf32>
    %524 = vector.broadcast %522 : vector<1x512xf32> to vector<8x512xf32>
    %525 = arith.mulf %521, %524 : vector<8x512xf32>
    %526 = vector.broadcast %523 : vector<8x1xf32> to vector<8x512xf32>
    %527 = arith.mulf %526, %525 : vector<8x512xf32>
    %528 = arith.addf %520, %527 : vector<8x512xf32>
    %529 = vector.extract_strided_slice %319 {offsets = [0, 201], sizes = [8, 512], strides = [1, 1]} : vector<8x768xf32> to vector<8x512xf32>
    %c26_184 = arith.constant 26 : index
    %c0_185 = arith.constant 0 : index
    %530 = vector.load %arg2[%c26_184, %c0_185] : memref<27x512xf32, #tpu.memory_space<vmem>>, vector<1x512xf32>
    %c0_186 = arith.constant 0 : index
    %c53 = arith.constant 53 : index
    %531 = vector.load %arg7[%c0_186, %c53] : memref<8x81xf32, #tpu.memory_space<vmem>>, vector<8x1xf32>
    %532 = vector.broadcast %530 : vector<1x512xf32> to vector<8x512xf32>
    %533 = arith.mulf %529, %532 : vector<8x512xf32>
    %534 = vector.broadcast %531 : vector<8x1xf32> to vector<8x512xf32>
    %535 = arith.mulf %534, %533 : vector<8x512xf32>
    %536 = arith.addf %528, %535 : vector<8x512xf32>
    %c0_187 = arith.constant 0 : index
    %c3_188 = arith.constant 3 : index
    %537 = vector.load %arg8[%c0_187, %c3_188] : memref<8x6xf32, #tpu.memory_space<vmem>>, vector<8x1xf32>
    %538 = vector.broadcast %537 : vector<8x1xf32> to vector<8x512xf32>
    %539 = arith.mulf %536, %538 : vector<8x512xf32>
    %c0_189 = arith.constant 0 : index
    %c3_190 = arith.constant 3 : index
    %540 = vector.load %arg9[%c0_189, %c3_190] : memref<8x6xf32, #tpu.memory_space<vmem>>, vector<8x1xf32>
    %541 = vector.broadcast %540 : vector<8x1xf32> to vector<8x512xf32>
    %542 = arith.addf %539, %541 : vector<8x512xf32>
    %cst_191 = arith.constant 0.000000e+00 : f32
    %543 = vector.broadcast %cst_191 : f32 to vector<8x512xf32>
    %544 = arith.maximumf %542, %543 : vector<8x512xf32>
    %545 = arith.addf %317, %544 : vector<8x512xf32>
    %c0_192 = arith.constant 0 : index
    %c0_193 = arith.constant 0 : index
    %546 = vector.load %arg5[%c0_192, %c0_193] : memref<8x8xf32, #tpu.memory_space<vmem>>, vector<8x8xf32>
    %547 = vector.extract_strided_slice %546 {offsets = [0, 0], sizes = [8, 1], strides = [1, 1]} : vector<8x8xf32> to vector<8x1xf32>
    %548 = vector.extract_strided_slice %545 {offsets = [0, 0], sizes = [1, 512], strides = [1, 1]} : vector<8x512xf32> to vector<1x512xf32>
    %549 = vector.broadcast %547 : vector<8x1xf32> to vector<8x512xf32>
    %550 = vector.broadcast %548 : vector<1x512xf32> to vector<8x512xf32>
    %551 = arith.mulf %549, %550 : vector<8x512xf32>
    %552 = vector.extract_strided_slice %546 {offsets = [0, 1], sizes = [8, 1], strides = [1, 1]} : vector<8x8xf32> to vector<8x1xf32>
    %553 = vector.extract_strided_slice %545 {offsets = [1, 0], sizes = [1, 512], strides = [1, 1]} : vector<8x512xf32> to vector<1x512xf32>
    %554 = vector.broadcast %552 : vector<8x1xf32> to vector<8x512xf32>
    %555 = vector.broadcast %553 : vector<1x512xf32> to vector<8x512xf32>
    %556 = arith.mulf %554, %555 : vector<8x512xf32>
    %557 = arith.addf %551, %556 : vector<8x512xf32>
    %558 = vector.extract_strided_slice %546 {offsets = [0, 2], sizes = [8, 1], strides = [1, 1]} : vector<8x8xf32> to vector<8x1xf32>
    %559 = vector.extract_strided_slice %545 {offsets = [2, 0], sizes = [1, 512], strides = [1, 1]} : vector<8x512xf32> to vector<1x512xf32>
    %560 = vector.broadcast %558 : vector<8x1xf32> to vector<8x512xf32>
    %561 = vector.broadcast %559 : vector<1x512xf32> to vector<8x512xf32>
    %562 = arith.mulf %560, %561 : vector<8x512xf32>
    %563 = arith.addf %557, %562 : vector<8x512xf32>
    %564 = vector.extract_strided_slice %546 {offsets = [0, 3], sizes = [8, 1], strides = [1, 1]} : vector<8x8xf32> to vector<8x1xf32>
    %565 = vector.extract_strided_slice %545 {offsets = [3, 0], sizes = [1, 512], strides = [1, 1]} : vector<8x512xf32> to vector<1x512xf32>
    %566 = vector.broadcast %564 : vector<8x1xf32> to vector<8x512xf32>
    %567 = vector.broadcast %565 : vector<1x512xf32> to vector<8x512xf32>
    %568 = arith.mulf %566, %567 : vector<8x512xf32>
    %569 = arith.addf %563, %568 : vector<8x512xf32>
    %570 = vector.extract_strided_slice %546 {offsets = [0, 4], sizes = [8, 1], strides = [1, 1]} : vector<8x8xf32> to vector<8x1xf32>
    %571 = vector.extract_strided_slice %545 {offsets = [4, 0], sizes = [1, 512], strides = [1, 1]} : vector<8x512xf32> to vector<1x512xf32>
    %572 = vector.broadcast %570 : vector<8x1xf32> to vector<8x512xf32>
    %573 = vector.broadcast %571 : vector<1x512xf32> to vector<8x512xf32>
    %574 = arith.mulf %572, %573 : vector<8x512xf32>
    %575 = arith.addf %569, %574 : vector<8x512xf32>
    %576 = vector.extract_strided_slice %546 {offsets = [0, 5], sizes = [8, 1], strides = [1, 1]} : vector<8x8xf32> to vector<8x1xf32>
    %577 = vector.extract_strided_slice %545 {offsets = [5, 0], sizes = [1, 512], strides = [1, 1]} : vector<8x512xf32> to vector<1x512xf32>
    %578 = vector.broadcast %576 : vector<8x1xf32> to vector<8x512xf32>
    %579 = vector.broadcast %577 : vector<1x512xf32> to vector<8x512xf32>
    %580 = arith.mulf %578, %579 : vector<8x512xf32>
    %581 = arith.addf %575, %580 : vector<8x512xf32>
    %582 = vector.extract_strided_slice %546 {offsets = [0, 6], sizes = [8, 1], strides = [1, 1]} : vector<8x8xf32> to vector<8x1xf32>
    %583 = vector.extract_strided_slice %545 {offsets = [6, 0], sizes = [1, 512], strides = [1, 1]} : vector<8x512xf32> to vector<1x512xf32>
    %584 = vector.broadcast %582 : vector<8x1xf32> to vector<8x512xf32>
    %585 = vector.broadcast %583 : vector<1x512xf32> to vector<8x512xf32>
    %586 = arith.mulf %584, %585 : vector<8x512xf32>
    %587 = arith.addf %581, %586 : vector<8x512xf32>
    %588 = vector.extract_strided_slice %546 {offsets = [0, 7], sizes = [8, 1], strides = [1, 1]} : vector<8x8xf32> to vector<8x1xf32>
    %589 = vector.extract_strided_slice %545 {offsets = [7, 0], sizes = [1, 512], strides = [1, 1]} : vector<8x512xf32> to vector<1x512xf32>
    %590 = vector.broadcast %588 : vector<8x1xf32> to vector<8x512xf32>
    %591 = vector.broadcast %589 : vector<1x512xf32> to vector<8x512xf32>
    %592 = arith.mulf %590, %591 : vector<8x512xf32>
    %593 = arith.addf %587, %592 : vector<8x512xf32>
    %c0_194 = arith.constant 0 : index
    %c4_195 = arith.constant 4 : index
    %594 = vector.load %arg8[%c0_194, %c4_195] : memref<8x6xf32, #tpu.memory_space<vmem>>, vector<8x1xf32>
    %595 = vector.broadcast %594 : vector<8x1xf32> to vector<8x512xf32>
    %596 = arith.mulf %593, %595 : vector<8x512xf32>
    %c0_196 = arith.constant 0 : index
    %c4_197 = arith.constant 4 : index
    %597 = vector.load %arg9[%c0_196, %c4_197] : memref<8x6xf32, #tpu.memory_space<vmem>>, vector<8x1xf32>
    %598 = vector.broadcast %597 : vector<8x1xf32> to vector<8x512xf32>
    %599 = arith.addf %596, %598 : vector<8x512xf32>
    %600 = arith.negf %599 : vector<8x512xf32>
    %601 = math.exp %600 : vector<8x512xf32>
    %cst_198 = arith.constant 1.000000e+00 : f32
    %602 = vector.broadcast %cst_198 : f32 to vector<8x512xf32>
    %603 = arith.addf %602, %601 : vector<8x512xf32>
    %604 = arith.divf %602, %603 : vector<8x512xf32>
    %605 = arith.mulf %599, %604 : vector<8x512xf32>
    %cst_199 = arith.constant 0.000000e+00 : f32
    %606 = vector.broadcast %cst_199 : f32 to vector<8x128xf32>
    %607 = tpu.concatenate %606, %605, %606 in 1 : vector<8x128xf32>, vector<8x512xf32>, vector<8x128xf32> -> vector<8x768xf32>
    %cst_200 = arith.constant 0.000000e+00 : f32
    %608 = vector.broadcast %cst_200 : f32 to vector<8x512xf32>
    %609 = vector.extract_strided_slice %607 {offsets = [0, 55], sizes = [8, 512], strides = [1, 1]} : vector<8x768xf32> to vector<8x512xf32>
    %c0_201 = arith.constant 0 : index
    %c0_202 = arith.constant 0 : index
    %610 = vector.load %arg2[%c0_201, %c0_202] : memref<27x512xf32, #tpu.memory_space<vmem>>, vector<1x512xf32>
    %c0_203 = arith.constant 0 : index
    %c54 = arith.constant 54 : index
    %611 = vector.load %arg7[%c0_203, %c54] : memref<8x81xf32, #tpu.memory_space<vmem>>, vector<8x1xf32>
    %612 = vector.broadcast %610 : vector<1x512xf32> to vector<8x512xf32>
    %613 = arith.mulf %609, %612 : vector<8x512xf32>
    %614 = vector.broadcast %611 : vector<8x1xf32> to vector<8x512xf32>
    %615 = arith.mulf %614, %613 : vector<8x512xf32>
    %616 = arith.addf %608, %615 : vector<8x512xf32>
    %617 = vector.extract_strided_slice %607 {offsets = [0, 56], sizes = [8, 512], strides = [1, 1]} : vector<8x768xf32> to vector<8x512xf32>
    %c1_204 = arith.constant 1 : index
    %c0_205 = arith.constant 0 : index
    %618 = vector.load %arg2[%c1_204, %c0_205] : memref<27x512xf32, #tpu.memory_space<vmem>>, vector<1x512xf32>
    %c0_206 = arith.constant 0 : index
    %c55 = arith.constant 55 : index
    %619 = vector.load %arg7[%c0_206, %c55] : memref<8x81xf32, #tpu.memory_space<vmem>>, vector<8x1xf32>
    %620 = vector.broadcast %618 : vector<1x512xf32> to vector<8x512xf32>
    %621 = arith.mulf %617, %620 : vector<8x512xf32>
    %622 = vector.broadcast %619 : vector<8x1xf32> to vector<8x512xf32>
    %623 = arith.mulf %622, %621 : vector<8x512xf32>
    %624 = arith.addf %616, %623 : vector<8x512xf32>
    %625 = vector.extract_strided_slice %607 {offsets = [0, 57], sizes = [8, 512], strides = [1, 1]} : vector<8x768xf32> to vector<8x512xf32>
    %c2_207 = arith.constant 2 : index
    %c0_208 = arith.constant 0 : index
    %626 = vector.load %arg2[%c2_207, %c0_208] : memref<27x512xf32, #tpu.memory_space<vmem>>, vector<1x512xf32>
    %c0_209 = arith.constant 0 : index
    %c56 = arith.constant 56 : index
    %627 = vector.load %arg7[%c0_209, %c56] : memref<8x81xf32, #tpu.memory_space<vmem>>, vector<8x1xf32>
    %628 = vector.broadcast %626 : vector<1x512xf32> to vector<8x512xf32>
    %629 = arith.mulf %625, %628 : vector<8x512xf32>
    %630 = vector.broadcast %627 : vector<8x1xf32> to vector<8x512xf32>
    %631 = arith.mulf %630, %629 : vector<8x512xf32>
    %632 = arith.addf %624, %631 : vector<8x512xf32>
    %633 = vector.extract_strided_slice %607 {offsets = [0, 63], sizes = [8, 512], strides = [1, 1]} : vector<8x768xf32> to vector<8x512xf32>
    %c3_210 = arith.constant 3 : index
    %c0_211 = arith.constant 0 : index
    %634 = vector.load %arg2[%c3_210, %c0_211] : memref<27x512xf32, #tpu.memory_space<vmem>>, vector<1x512xf32>
    %c0_212 = arith.constant 0 : index
    %c57 = arith.constant 57 : index
    %635 = vector.load %arg7[%c0_212, %c57] : memref<8x81xf32, #tpu.memory_space<vmem>>, vector<8x1xf32>
    %636 = vector.broadcast %634 : vector<1x512xf32> to vector<8x512xf32>
    %637 = arith.mulf %633, %636 : vector<8x512xf32>
    %638 = vector.broadcast %635 : vector<8x1xf32> to vector<8x512xf32>
    %639 = arith.mulf %638, %637 : vector<8x512xf32>
    %640 = arith.addf %632, %639 : vector<8x512xf32>
    %641 = vector.extract_strided_slice %607 {offsets = [0, 64], sizes = [8, 512], strides = [1, 1]} : vector<8x768xf32> to vector<8x512xf32>
    %c4_213 = arith.constant 4 : index
    %c0_214 = arith.constant 0 : index
    %642 = vector.load %arg2[%c4_213, %c0_214] : memref<27x512xf32, #tpu.memory_space<vmem>>, vector<1x512xf32>
    %c0_215 = arith.constant 0 : index
    %c58 = arith.constant 58 : index
    %643 = vector.load %arg7[%c0_215, %c58] : memref<8x81xf32, #tpu.memory_space<vmem>>, vector<8x1xf32>
    %644 = vector.broadcast %642 : vector<1x512xf32> to vector<8x512xf32>
    %645 = arith.mulf %641, %644 : vector<8x512xf32>
    %646 = vector.broadcast %643 : vector<8x1xf32> to vector<8x512xf32>
    %647 = arith.mulf %646, %645 : vector<8x512xf32>
    %648 = arith.addf %640, %647 : vector<8x512xf32>
    %649 = vector.extract_strided_slice %607 {offsets = [0, 65], sizes = [8, 512], strides = [1, 1]} : vector<8x768xf32> to vector<8x512xf32>
    %c5_216 = arith.constant 5 : index
    %c0_217 = arith.constant 0 : index
    %650 = vector.load %arg2[%c5_216, %c0_217] : memref<27x512xf32, #tpu.memory_space<vmem>>, vector<1x512xf32>
    %c0_218 = arith.constant 0 : index
    %c59 = arith.constant 59 : index
    %651 = vector.load %arg7[%c0_218, %c59] : memref<8x81xf32, #tpu.memory_space<vmem>>, vector<8x1xf32>
    %652 = vector.broadcast %650 : vector<1x512xf32> to vector<8x512xf32>
    %653 = arith.mulf %649, %652 : vector<8x512xf32>
    %654 = vector.broadcast %651 : vector<8x1xf32> to vector<8x512xf32>
    %655 = arith.mulf %654, %653 : vector<8x512xf32>
    %656 = arith.addf %648, %655 : vector<8x512xf32>
    %657 = vector.extract_strided_slice %607 {offsets = [0, 71], sizes = [8, 512], strides = [1, 1]} : vector<8x768xf32> to vector<8x512xf32>
    %c6_219 = arith.constant 6 : index
    %c0_220 = arith.constant 0 : index
    %658 = vector.load %arg2[%c6_219, %c0_220] : memref<27x512xf32, #tpu.memory_space<vmem>>, vector<1x512xf32>
    %c0_221 = arith.constant 0 : index
    %c60 = arith.constant 60 : index
    %659 = vector.load %arg7[%c0_221, %c60] : memref<8x81xf32, #tpu.memory_space<vmem>>, vector<8x1xf32>
    %660 = vector.broadcast %658 : vector<1x512xf32> to vector<8x512xf32>
    %661 = arith.mulf %657, %660 : vector<8x512xf32>
    %662 = vector.broadcast %659 : vector<8x1xf32> to vector<8x512xf32>
    %663 = arith.mulf %662, %661 : vector<8x512xf32>
    %664 = arith.addf %656, %663 : vector<8x512xf32>
    %665 = vector.extract_strided_slice %607 {offsets = [0, 72], sizes = [8, 512], strides = [1, 1]} : vector<8x768xf32> to vector<8x512xf32>
    %c7_222 = arith.constant 7 : index
    %c0_223 = arith.constant 0 : index
    %666 = vector.load %arg2[%c7_222, %c0_223] : memref<27x512xf32, #tpu.memory_space<vmem>>, vector<1x512xf32>
    %c0_224 = arith.constant 0 : index
    %c61 = arith.constant 61 : index
    %667 = vector.load %arg7[%c0_224, %c61] : memref<8x81xf32, #tpu.memory_space<vmem>>, vector<8x1xf32>
    %668 = vector.broadcast %666 : vector<1x512xf32> to vector<8x512xf32>
    %669 = arith.mulf %665, %668 : vector<8x512xf32>
    %670 = vector.broadcast %667 : vector<8x1xf32> to vector<8x512xf32>
    %671 = arith.mulf %670, %669 : vector<8x512xf32>
    %672 = arith.addf %664, %671 : vector<8x512xf32>
    %673 = vector.extract_strided_slice %607 {offsets = [0, 73], sizes = [8, 512], strides = [1, 1]} : vector<8x768xf32> to vector<8x512xf32>
    %c8_225 = arith.constant 8 : index
    %c0_226 = arith.constant 0 : index
    %674 = vector.load %arg2[%c8_225, %c0_226] : memref<27x512xf32, #tpu.memory_space<vmem>>, vector<1x512xf32>
    %c0_227 = arith.constant 0 : index
    %c62 = arith.constant 62 : index
    %675 = vector.load %arg7[%c0_227, %c62] : memref<8x81xf32, #tpu.memory_space<vmem>>, vector<8x1xf32>
    %676 = vector.broadcast %674 : vector<1x512xf32> to vector<8x512xf32>
    %677 = arith.mulf %673, %676 : vector<8x512xf32>
    %678 = vector.broadcast %675 : vector<8x1xf32> to vector<8x512xf32>
    %679 = arith.mulf %678, %677 : vector<8x512xf32>
    %680 = arith.addf %672, %679 : vector<8x512xf32>
    %681 = vector.extract_strided_slice %607 {offsets = [0, 119], sizes = [8, 512], strides = [1, 1]} : vector<8x768xf32> to vector<8x512xf32>
    %c9_228 = arith.constant 9 : index
    %c0_229 = arith.constant 0 : index
    %682 = vector.load %arg2[%c9_228, %c0_229] : memref<27x512xf32, #tpu.memory_space<vmem>>, vector<1x512xf32>
    %c0_230 = arith.constant 0 : index
    %c63 = arith.constant 63 : index
    %683 = vector.load %arg7[%c0_230, %c63] : memref<8x81xf32, #tpu.memory_space<vmem>>, vector<8x1xf32>
    %684 = vector.broadcast %682 : vector<1x512xf32> to vector<8x512xf32>
    %685 = arith.mulf %681, %684 : vector<8x512xf32>
    %686 = vector.broadcast %683 : vector<8x1xf32> to vector<8x512xf32>
    %687 = arith.mulf %686, %685 : vector<8x512xf32>
    %688 = arith.addf %680, %687 : vector<8x512xf32>
    %689 = vector.extract_strided_slice %607 {offsets = [0, 120], sizes = [8, 512], strides = [1, 1]} : vector<8x768xf32> to vector<8x512xf32>
    %c10_231 = arith.constant 10 : index
    %c0_232 = arith.constant 0 : index
    %690 = vector.load %arg2[%c10_231, %c0_232] : memref<27x512xf32, #tpu.memory_space<vmem>>, vector<1x512xf32>
    %c0_233 = arith.constant 0 : index
    %c64 = arith.constant 64 : index
    %691 = vector.load %arg7[%c0_233, %c64] : memref<8x81xf32, #tpu.memory_space<vmem>>, vector<8x1xf32>
    %692 = vector.broadcast %690 : vector<1x512xf32> to vector<8x512xf32>
    %693 = arith.mulf %689, %692 : vector<8x512xf32>
    %694 = vector.broadcast %691 : vector<8x1xf32> to vector<8x512xf32>
    %695 = arith.mulf %694, %693 : vector<8x512xf32>
    %696 = arith.addf %688, %695 : vector<8x512xf32>
    %697 = vector.extract_strided_slice %607 {offsets = [0, 121], sizes = [8, 512], strides = [1, 1]} : vector<8x768xf32> to vector<8x512xf32>
    %c11_234 = arith.constant 11 : index
    %c0_235 = arith.constant 0 : index
    %698 = vector.load %arg2[%c11_234, %c0_235] : memref<27x512xf32, #tpu.memory_space<vmem>>, vector<1x512xf32>
    %c0_236 = arith.constant 0 : index
    %c65 = arith.constant 65 : index
    %699 = vector.load %arg7[%c0_236, %c65] : memref<8x81xf32, #tpu.memory_space<vmem>>, vector<8x1xf32>
    %700 = vector.broadcast %698 : vector<1x512xf32> to vector<8x512xf32>
    %701 = arith.mulf %697, %700 : vector<8x512xf32>
    %702 = vector.broadcast %699 : vector<8x1xf32> to vector<8x512xf32>
    %703 = arith.mulf %702, %701 : vector<8x512xf32>
    %704 = arith.addf %696, %703 : vector<8x512xf32>
    %705 = vector.extract_strided_slice %607 {offsets = [0, 127], sizes = [8, 512], strides = [1, 1]} : vector<8x768xf32> to vector<8x512xf32>
    %c12_237 = arith.constant 12 : index
    %c0_238 = arith.constant 0 : index
    %706 = vector.load %arg2[%c12_237, %c0_238] : memref<27x512xf32, #tpu.memory_space<vmem>>, vector<1x512xf32>
    %c0_239 = arith.constant 0 : index
    %c66 = arith.constant 66 : index
    %707 = vector.load %arg7[%c0_239, %c66] : memref<8x81xf32, #tpu.memory_space<vmem>>, vector<8x1xf32>
    %708 = vector.broadcast %706 : vector<1x512xf32> to vector<8x512xf32>
    %709 = arith.mulf %705, %708 : vector<8x512xf32>
    %710 = vector.broadcast %707 : vector<8x1xf32> to vector<8x512xf32>
    %711 = arith.mulf %710, %709 : vector<8x512xf32>
    %712 = arith.addf %704, %711 : vector<8x512xf32>
    %713 = vector.extract_strided_slice %607 {offsets = [0, 128], sizes = [8, 512], strides = [1, 1]} : vector<8x768xf32> to vector<8x512xf32>
    %c13_240 = arith.constant 13 : index
    %c0_241 = arith.constant 0 : index
    %714 = vector.load %arg2[%c13_240, %c0_241] : memref<27x512xf32, #tpu.memory_space<vmem>>, vector<1x512xf32>
    %c0_242 = arith.constant 0 : index
    %c67 = arith.constant 67 : index
    %715 = vector.load %arg7[%c0_242, %c67] : memref<8x81xf32, #tpu.memory_space<vmem>>, vector<8x1xf32>
    %716 = vector.broadcast %714 : vector<1x512xf32> to vector<8x512xf32>
    %717 = arith.mulf %713, %716 : vector<8x512xf32>
    %718 = vector.broadcast %715 : vector<8x1xf32> to vector<8x512xf32>
    %719 = arith.mulf %718, %717 : vector<8x512xf32>
    %720 = arith.addf %712, %719 : vector<8x512xf32>
    %721 = vector.extract_strided_slice %607 {offsets = [0, 129], sizes = [8, 512], strides = [1, 1]} : vector<8x768xf32> to vector<8x512xf32>
    %c14_243 = arith.constant 14 : index
    %c0_244 = arith.constant 0 : index
    %722 = vector.load %arg2[%c14_243, %c0_244] : memref<27x512xf32, #tpu.memory_space<vmem>>, vector<1x512xf32>
    %c0_245 = arith.constant 0 : index
    %c68 = arith.constant 68 : index
    %723 = vector.load %arg7[%c0_245, %c68] : memref<8x81xf32, #tpu.memory_space<vmem>>, vector<8x1xf32>
    %724 = vector.broadcast %722 : vector<1x512xf32> to vector<8x512xf32>
    %725 = arith.mulf %721, %724 : vector<8x512xf32>
    %726 = vector.broadcast %723 : vector<8x1xf32> to vector<8x512xf32>
    %727 = arith.mulf %726, %725 : vector<8x512xf32>
    %728 = arith.addf %720, %727 : vector<8x512xf32>
    %729 = vector.extract_strided_slice %607 {offsets = [0, 135], sizes = [8, 512], strides = [1, 1]} : vector<8x768xf32> to vector<8x512xf32>
    %c15_246 = arith.constant 15 : index
    %c0_247 = arith.constant 0 : index
    %730 = vector.load %arg2[%c15_246, %c0_247] : memref<27x512xf32, #tpu.memory_space<vmem>>, vector<1x512xf32>
    %c0_248 = arith.constant 0 : index
    %c69 = arith.constant 69 : index
    %731 = vector.load %arg7[%c0_248, %c69] : memref<8x81xf32, #tpu.memory_space<vmem>>, vector<8x1xf32>
    %732 = vector.broadcast %730 : vector<1x512xf32> to vector<8x512xf32>
    %733 = arith.mulf %729, %732 : vector<8x512xf32>
    %734 = vector.broadcast %731 : vector<8x1xf32> to vector<8x512xf32>
    %735 = arith.mulf %734, %733 : vector<8x512xf32>
    %736 = arith.addf %728, %735 : vector<8x512xf32>
    %737 = vector.extract_strided_slice %607 {offsets = [0, 136], sizes = [8, 512], strides = [1, 1]} : vector<8x768xf32> to vector<8x512xf32>
    %c16_249 = arith.constant 16 : index
    %c0_250 = arith.constant 0 : index
    %738 = vector.load %arg2[%c16_249, %c0_250] : memref<27x512xf32, #tpu.memory_space<vmem>>, vector<1x512xf32>
    %c0_251 = arith.constant 0 : index
    %c70 = arith.constant 70 : index
    %739 = vector.load %arg7[%c0_251, %c70] : memref<8x81xf32, #tpu.memory_space<vmem>>, vector<8x1xf32>
    %740 = vector.broadcast %738 : vector<1x512xf32> to vector<8x512xf32>
    %741 = arith.mulf %737, %740 : vector<8x512xf32>
    %742 = vector.broadcast %739 : vector<8x1xf32> to vector<8x512xf32>
    %743 = arith.mulf %742, %741 : vector<8x512xf32>
    %744 = arith.addf %736, %743 : vector<8x512xf32>
    %745 = vector.extract_strided_slice %607 {offsets = [0, 137], sizes = [8, 512], strides = [1, 1]} : vector<8x768xf32> to vector<8x512xf32>
    %c17_252 = arith.constant 17 : index
    %c0_253 = arith.constant 0 : index
    %746 = vector.load %arg2[%c17_252, %c0_253] : memref<27x512xf32, #tpu.memory_space<vmem>>, vector<1x512xf32>
    %c0_254 = arith.constant 0 : index
    %c71 = arith.constant 71 : index
    %747 = vector.load %arg7[%c0_254, %c71] : memref<8x81xf32, #tpu.memory_space<vmem>>, vector<8x1xf32>
    %748 = vector.broadcast %746 : vector<1x512xf32> to vector<8x512xf32>
    %749 = arith.mulf %745, %748 : vector<8x512xf32>
    %750 = vector.broadcast %747 : vector<8x1xf32> to vector<8x512xf32>
    %751 = arith.mulf %750, %749 : vector<8x512xf32>
    %752 = arith.addf %744, %751 : vector<8x512xf32>
    %753 = vector.extract_strided_slice %607 {offsets = [0, 183], sizes = [8, 512], strides = [1, 1]} : vector<8x768xf32> to vector<8x512xf32>
    %c18_255 = arith.constant 18 : index
    %c0_256 = arith.constant 0 : index
    %754 = vector.load %arg2[%c18_255, %c0_256] : memref<27x512xf32, #tpu.memory_space<vmem>>, vector<1x512xf32>
    %c0_257 = arith.constant 0 : index
    %c72 = arith.constant 72 : index
    %755 = vector.load %arg7[%c0_257, %c72] : memref<8x81xf32, #tpu.memory_space<vmem>>, vector<8x1xf32>
    %756 = vector.broadcast %754 : vector<1x512xf32> to vector<8x512xf32>
    %757 = arith.mulf %753, %756 : vector<8x512xf32>
    %758 = vector.broadcast %755 : vector<8x1xf32> to vector<8x512xf32>
    %759 = arith.mulf %758, %757 : vector<8x512xf32>
    %760 = arith.addf %752, %759 : vector<8x512xf32>
    %761 = vector.extract_strided_slice %607 {offsets = [0, 184], sizes = [8, 512], strides = [1, 1]} : vector<8x768xf32> to vector<8x512xf32>
    %c19_258 = arith.constant 19 : index
    %c0_259 = arith.constant 0 : index
    %762 = vector.load %arg2[%c19_258, %c0_259] : memref<27x512xf32, #tpu.memory_space<vmem>>, vector<1x512xf32>
    %c0_260 = arith.constant 0 : index
    %c73 = arith.constant 73 : index
    %763 = vector.load %arg7[%c0_260, %c73] : memref<8x81xf32, #tpu.memory_space<vmem>>, vector<8x1xf32>
    %764 = vector.broadcast %762 : vector<1x512xf32> to vector<8x512xf32>
    %765 = arith.mulf %761, %764 : vector<8x512xf32>
    %766 = vector.broadcast %763 : vector<8x1xf32> to vector<8x512xf32>
    %767 = arith.mulf %766, %765 : vector<8x512xf32>
    %768 = arith.addf %760, %767 : vector<8x512xf32>
    %769 = vector.extract_strided_slice %607 {offsets = [0, 185], sizes = [8, 512], strides = [1, 1]} : vector<8x768xf32> to vector<8x512xf32>
    %c20_261 = arith.constant 20 : index
    %c0_262 = arith.constant 0 : index
    %770 = vector.load %arg2[%c20_261, %c0_262] : memref<27x512xf32, #tpu.memory_space<vmem>>, vector<1x512xf32>
    %c0_263 = arith.constant 0 : index
    %c74 = arith.constant 74 : index
    %771 = vector.load %arg7[%c0_263, %c74] : memref<8x81xf32, #tpu.memory_space<vmem>>, vector<8x1xf32>
    %772 = vector.broadcast %770 : vector<1x512xf32> to vector<8x512xf32>
    %773 = arith.mulf %769, %772 : vector<8x512xf32>
    %774 = vector.broadcast %771 : vector<8x1xf32> to vector<8x512xf32>
    %775 = arith.mulf %774, %773 : vector<8x512xf32>
    %776 = arith.addf %768, %775 : vector<8x512xf32>
    %777 = vector.extract_strided_slice %607 {offsets = [0, 191], sizes = [8, 512], strides = [1, 1]} : vector<8x768xf32> to vector<8x512xf32>
    %c21_264 = arith.constant 21 : index
    %c0_265 = arith.constant 0 : index
    %778 = vector.load %arg2[%c21_264, %c0_265] : memref<27x512xf32, #tpu.memory_space<vmem>>, vector<1x512xf32>
    %c0_266 = arith.constant 0 : index
    %c75 = arith.constant 75 : index
    %779 = vector.load %arg7[%c0_266, %c75] : memref<8x81xf32, #tpu.memory_space<vmem>>, vector<8x1xf32>
    %780 = vector.broadcast %778 : vector<1x512xf32> to vector<8x512xf32>
    %781 = arith.mulf %777, %780 : vector<8x512xf32>
    %782 = vector.broadcast %779 : vector<8x1xf32> to vector<8x512xf32>
    %783 = arith.mulf %782, %781 : vector<8x512xf32>
    %784 = arith.addf %776, %783 : vector<8x512xf32>
    %785 = vector.extract_strided_slice %607 {offsets = [0, 192], sizes = [8, 512], strides = [1, 1]} : vector<8x768xf32> to vector<8x512xf32>
    %c22_267 = arith.constant 22 : index
    %c0_268 = arith.constant 0 : index
    %786 = vector.load %arg2[%c22_267, %c0_268] : memref<27x512xf32, #tpu.memory_space<vmem>>, vector<1x512xf32>
    %c0_269 = arith.constant 0 : index
    %c76 = arith.constant 76 : index
    %787 = vector.load %arg7[%c0_269, %c76] : memref<8x81xf32, #tpu.memory_space<vmem>>, vector<8x1xf32>
    %788 = vector.broadcast %786 : vector<1x512xf32> to vector<8x512xf32>
    %789 = arith.mulf %785, %788 : vector<8x512xf32>
    %790 = vector.broadcast %787 : vector<8x1xf32> to vector<8x512xf32>
    %791 = arith.mulf %790, %789 : vector<8x512xf32>
    %792 = arith.addf %784, %791 : vector<8x512xf32>
    %793 = vector.extract_strided_slice %607 {offsets = [0, 193], sizes = [8, 512], strides = [1, 1]} : vector<8x768xf32> to vector<8x512xf32>
    %c23_270 = arith.constant 23 : index
    %c0_271 = arith.constant 0 : index
    %794 = vector.load %arg2[%c23_270, %c0_271] : memref<27x512xf32, #tpu.memory_space<vmem>>, vector<1x512xf32>
    %c0_272 = arith.constant 0 : index
    %c77 = arith.constant 77 : index
    %795 = vector.load %arg7[%c0_272, %c77] : memref<8x81xf32, #tpu.memory_space<vmem>>, vector<8x1xf32>
    %796 = vector.broadcast %794 : vector<1x512xf32> to vector<8x512xf32>
    %797 = arith.mulf %793, %796 : vector<8x512xf32>
    %798 = vector.broadcast %795 : vector<8x1xf32> to vector<8x512xf32>
    %799 = arith.mulf %798, %797 : vector<8x512xf32>
    %800 = arith.addf %792, %799 : vector<8x512xf32>
    %801 = vector.extract_strided_slice %607 {offsets = [0, 199], sizes = [8, 512], strides = [1, 1]} : vector<8x768xf32> to vector<8x512xf32>
    %c24_273 = arith.constant 24 : index
    %c0_274 = arith.constant 0 : index
    %802 = vector.load %arg2[%c24_273, %c0_274] : memref<27x512xf32, #tpu.memory_space<vmem>>, vector<1x512xf32>
    %c0_275 = arith.constant 0 : index
    %c78 = arith.constant 78 : index
    %803 = vector.load %arg7[%c0_275, %c78] : memref<8x81xf32, #tpu.memory_space<vmem>>, vector<8x1xf32>
    %804 = vector.broadcast %802 : vector<1x512xf32> to vector<8x512xf32>
    %805 = arith.mulf %801, %804 : vector<8x512xf32>
    %806 = vector.broadcast %803 : vector<8x1xf32> to vector<8x512xf32>
    %807 = arith.mulf %806, %805 : vector<8x512xf32>
    %808 = arith.addf %800, %807 : vector<8x512xf32>
    %809 = vector.extract_strided_slice %607 {offsets = [0, 200], sizes = [8, 512], strides = [1, 1]} : vector<8x768xf32> to vector<8x512xf32>
    %c25_276 = arith.constant 25 : index
    %c0_277 = arith.constant 0 : index
    %810 = vector.load %arg2[%c25_276, %c0_277] : memref<27x512xf32, #tpu.memory_space<vmem>>, vector<1x512xf32>
    %c0_278 = arith.constant 0 : index
    %c79 = arith.constant 79 : index
    %811 = vector.load %arg7[%c0_278, %c79] : memref<8x81xf32, #tpu.memory_space<vmem>>, vector<8x1xf32>
    %812 = vector.broadcast %810 : vector<1x512xf32> to vector<8x512xf32>
    %813 = arith.mulf %809, %812 : vector<8x512xf32>
    %814 = vector.broadcast %811 : vector<8x1xf32> to vector<8x512xf32>
    %815 = arith.mulf %814, %813 : vector<8x512xf32>
    %816 = arith.addf %808, %815 : vector<8x512xf32>
    %817 = vector.extract_strided_slice %607 {offsets = [0, 201], sizes = [8, 512], strides = [1, 1]} : vector<8x768xf32> to vector<8x512xf32>
    %c26_279 = arith.constant 26 : index
    %c0_280 = arith.constant 0 : index
    %818 = vector.load %arg2[%c26_279, %c0_280] : memref<27x512xf32, #tpu.memory_space<vmem>>, vector<1x512xf32>
    %c0_281 = arith.constant 0 : index
    %c80 = arith.constant 80 : index
    %819 = vector.load %arg7[%c0_281, %c80] : memref<8x81xf32, #tpu.memory_space<vmem>>, vector<8x1xf32>
    %820 = vector.broadcast %818 : vector<1x512xf32> to vector<8x512xf32>
    %821 = arith.mulf %817, %820 : vector<8x512xf32>
    %822 = vector.broadcast %819 : vector<8x1xf32> to vector<8x512xf32>
    %823 = arith.mulf %822, %821 : vector<8x512xf32>
    %824 = arith.addf %816, %823 : vector<8x512xf32>
    %c0_282 = arith.constant 0 : index
    %c5_283 = arith.constant 5 : index
    %825 = vector.load %arg8[%c0_282, %c5_283] : memref<8x6xf32, #tpu.memory_space<vmem>>, vector<8x1xf32>
    %826 = vector.broadcast %825 : vector<8x1xf32> to vector<8x512xf32>
    %827 = arith.mulf %824, %826 : vector<8x512xf32>
    %c0_284 = arith.constant 0 : index
    %c5_285 = arith.constant 5 : index
    %828 = vector.load %arg9[%c0_284, %c5_285] : memref<8x6xf32, #tpu.memory_space<vmem>>, vector<8x1xf32>
    %829 = vector.broadcast %828 : vector<8x1xf32> to vector<8x512xf32>
    %830 = arith.addf %827, %829 : vector<8x512xf32>
    %cst_286 = arith.constant 0.000000e+00 : f32
    %831 = vector.broadcast %cst_286 : f32 to vector<8x512xf32>
    %832 = arith.maximumf %830, %831 : vector<8x512xf32>
    %833 = arith.addf %605, %832 : vector<8x512xf32>
    %c0_287 = arith.constant 0 : index
    %c0_288 = arith.constant 0 : index
    %834 = vector.load %arg6[%c0_287, %c0_288] : memref<4x8xf32, #tpu.memory_space<vmem>>, vector<4x8xf32>
    %835 = vector.extract_strided_slice %834 {offsets = [0, 0], sizes = [4, 1], strides = [1, 1]} : vector<4x8xf32> to vector<4x1xf32>
    %836 = vector.extract_strided_slice %833 {offsets = [0, 0], sizes = [1, 512], strides = [1, 1]} : vector<8x512xf32> to vector<1x512xf32>
    %837 = vector.broadcast %835 : vector<4x1xf32> to vector<4x512xf32>
    %838 = vector.broadcast %836 : vector<1x512xf32> to vector<4x512xf32>
    %839 = arith.mulf %837, %838 : vector<4x512xf32>
    %840 = vector.extract_strided_slice %834 {offsets = [0, 1], sizes = [4, 1], strides = [1, 1]} : vector<4x8xf32> to vector<4x1xf32>
    %841 = vector.extract_strided_slice %833 {offsets = [1, 0], sizes = [1, 512], strides = [1, 1]} : vector<8x512xf32> to vector<1x512xf32>
    %842 = vector.broadcast %840 : vector<4x1xf32> to vector<4x512xf32>
    %843 = vector.broadcast %841 : vector<1x512xf32> to vector<4x512xf32>
    %844 = arith.mulf %842, %843 : vector<4x512xf32>
    %845 = arith.addf %839, %844 : vector<4x512xf32>
    %846 = vector.extract_strided_slice %834 {offsets = [0, 2], sizes = [4, 1], strides = [1, 1]} : vector<4x8xf32> to vector<4x1xf32>
    %847 = vector.extract_strided_slice %833 {offsets = [2, 0], sizes = [1, 512], strides = [1, 1]} : vector<8x512xf32> to vector<1x512xf32>
    %848 = vector.broadcast %846 : vector<4x1xf32> to vector<4x512xf32>
    %849 = vector.broadcast %847 : vector<1x512xf32> to vector<4x512xf32>
    %850 = arith.mulf %848, %849 : vector<4x512xf32>
    %851 = arith.addf %845, %850 : vector<4x512xf32>
    %852 = vector.extract_strided_slice %834 {offsets = [0, 3], sizes = [4, 1], strides = [1, 1]} : vector<4x8xf32> to vector<4x1xf32>
    %853 = vector.extract_strided_slice %833 {offsets = [3, 0], sizes = [1, 512], strides = [1, 1]} : vector<8x512xf32> to vector<1x512xf32>
    %854 = vector.broadcast %852 : vector<4x1xf32> to vector<4x512xf32>
    %855 = vector.broadcast %853 : vector<1x512xf32> to vector<4x512xf32>
    %856 = arith.mulf %854, %855 : vector<4x512xf32>
    %857 = arith.addf %851, %856 : vector<4x512xf32>
    %858 = vector.extract_strided_slice %834 {offsets = [0, 4], sizes = [4, 1], strides = [1, 1]} : vector<4x8xf32> to vector<4x1xf32>
    %859 = vector.extract_strided_slice %833 {offsets = [4, 0], sizes = [1, 512], strides = [1, 1]} : vector<8x512xf32> to vector<1x512xf32>
    %860 = vector.broadcast %858 : vector<4x1xf32> to vector<4x512xf32>
    %861 = vector.broadcast %859 : vector<1x512xf32> to vector<4x512xf32>
    %862 = arith.mulf %860, %861 : vector<4x512xf32>
    %863 = arith.addf %857, %862 : vector<4x512xf32>
    %864 = vector.extract_strided_slice %834 {offsets = [0, 5], sizes = [4, 1], strides = [1, 1]} : vector<4x8xf32> to vector<4x1xf32>
    %865 = vector.extract_strided_slice %833 {offsets = [5, 0], sizes = [1, 512], strides = [1, 1]} : vector<8x512xf32> to vector<1x512xf32>
    %866 = vector.broadcast %864 : vector<4x1xf32> to vector<4x512xf32>
    %867 = vector.broadcast %865 : vector<1x512xf32> to vector<4x512xf32>
    %868 = arith.mulf %866, %867 : vector<4x512xf32>
    %869 = arith.addf %863, %868 : vector<4x512xf32>
    %870 = vector.extract_strided_slice %834 {offsets = [0, 6], sizes = [4, 1], strides = [1, 1]} : vector<4x8xf32> to vector<4x1xf32>
    %871 = vector.extract_strided_slice %833 {offsets = [6, 0], sizes = [1, 512], strides = [1, 1]} : vector<8x512xf32> to vector<1x512xf32>
    %872 = vector.broadcast %870 : vector<4x1xf32> to vector<4x512xf32>
    %873 = vector.broadcast %871 : vector<1x512xf32> to vector<4x512xf32>
    %874 = arith.mulf %872, %873 : vector<4x512xf32>
    %875 = arith.addf %869, %874 : vector<4x512xf32>
    %876 = vector.extract_strided_slice %834 {offsets = [0, 7], sizes = [4, 1], strides = [1, 1]} : vector<4x8xf32> to vector<4x1xf32>
    %877 = vector.extract_strided_slice %833 {offsets = [7, 0], sizes = [1, 512], strides = [1, 1]} : vector<8x512xf32> to vector<1x512xf32>
    %878 = vector.broadcast %876 : vector<4x1xf32> to vector<4x512xf32>
    %879 = vector.broadcast %877 : vector<1x512xf32> to vector<4x512xf32>
    %880 = arith.mulf %878, %879 : vector<4x512xf32>
    %881 = arith.addf %875, %880 : vector<4x512xf32>
    %cst_289 = arith.constant 0.000000e+00 : f32
    %882 = vector.broadcast %cst_289 : f32 to vector<4x512xf32>
    %883 = arith.maximumf %881, %882 : vector<4x512xf32>
    %884 = arith.negf %883 : vector<4x512xf32>
    %885 = math.exp %884 : vector<4x512xf32>
    %cst_290 = arith.constant 1.000000e+00 : f32
    %886 = vector.broadcast %cst_290 : f32 to vector<4x512xf32>
    %887 = arith.addf %886, %885 : vector<4x512xf32>
    %888 = arith.divf %886, %887 : vector<4x512xf32>
    %889 = arith.mulf %1, %888 : vector<4x512xf32>
    %890 = arith.addf %1, %889 : vector<4x512xf32>
    %c0_291 = arith.constant 0 : index
    %c0_292 = arith.constant 0 : index
    %c0_293 = arith.constant 0 : index
    %891 = vector.load %arg10[%c0_291, %c0_292, %c0_293] : memref<1x4x512xf32, #tpu.memory_space<vmem>>, vector<1x4x512xf32>
    %892 = vector.shape_cast %891 : vector<1x4x512xf32> to vector<4x512xf32>
    %893 = vector.shape_cast %890 : vector<4x512xf32> to vector<1x4x512xf32>
    tpu.vector_store %arg10[%c0_291, %c0_292, %c0_293], %893 {strides = array<i32>} : memref<1x4x512xf32, #tpu.memory_space<vmem>>, vector<1x4x512xf32>,
    return
  }
  func.func @transform_0(%arg0: i32) -> (i32, i32, i32) {
    %c0_i32 = arith.constant 0 : i32
    %c0_i32_0 = arith.constant 0 : i32
    %c0_i32_1 = arith.constant 0 : i32
    return %arg0, %c0_i32, %c0_i32_0 : i32, i32, i32
  }
  func.func @transform_1(%arg0: i32) -> (i32, i32) {
    %c0_i32 = arith.constant 0 : i32
    %c0_i32_0 = arith.constant 0 : i32
    %c0_i32_1 = arith.constant 0 : i32
    return %c0_i32, %c0_i32_0 : i32, i32
  }
  func.func @transform_2(%arg0: i32) -> (i32, i32) {
    %c0_i32 = arith.constant 0 : i32
    %c0_i32_0 = arith.constant 0 : i32
    %c0_i32_1 = arith.constant 0 : i32
    return %c0_i32, %c0_i32_0 : i32, i32
  }
  func.func @transform_3(%arg0: i32) -> (i32, i32) {
    %c0_i32 = arith.constant 0 : i32
    %c0_i32_0 = arith.constant 0 : i32
    %c0_i32_1 = arith.constant 0 : i32
    return %c0_i32, %c0_i32_0 : i32, i32
  }
  func.func @transform_4(%arg0: i32) -> (i32, i32) {
    %c0_i32 = arith.constant 0 : i32
    %c0_i32_0 = arith.constant 0 : i32
    %c0_i32_1 = arith.constant 0 : i32
    return %c0_i32, %c0_i32_0 : i32, i32
  }
  func.func @transform_5(%arg0: i32) -> (i32, i32) {
    %c0_i32 = arith.constant 0 : i32
    %c0_i32_0 = arith.constant 0 : i32
    %c0_i32_1 = arith.constant 0 : i32
    return %c0_i32, %c0_i32_0 : i32, i32
  }
  func.func @transform_6(%arg0: i32) -> (i32, i32) {
    %c0_i32 = arith.constant 0 : i32
    %c0_i32_0 = arith.constant 0 : i32
    %c0_i32_1 = arith.constant 0 : i32
    return %c0_i32, %c0_i32_0 : i32, i32
  }
  func.func @transform_7(%arg0: i32) -> (i32, i32) {
    %c0_i32 = arith.constant 0 : i32
    %c0_i32_0 = arith.constant 0 : i32
    %c0_i32_1 = arith.constant 0 : i32
    return %c0_i32, %c0_i32_0 : i32, i32
  }
  func.func @transform_8(%arg0: i32) -> (i32, i32) {
    %c0_i32 = arith.constant 0 : i32
    %c0_i32_0 = arith.constant 0 : i32
    %c0_i32_1 = arith.constant 0 : i32
    return %c0_i32, %c0_i32_0 : i32, i32
  }
  func.func @transform_9(%arg0: i32) -> (i32, i32, i32) {
    %c0_i32 = arith.constant 0 : i32
    %c0_i32_0 = arith.constant 0 : i32
    %c0_i32_1 = arith.constant 0 : i32
    return %arg0, %c0_i32, %c0_i32_0 : i32, i32, i32
  }
}

</mosaic_0001>

<bundles_post_ra>
// kernel: conv_branch3d_forward.1
= control target key start
LH: loop header
LB: loop body
LE: loop exit
PB: predicated region body
PF: predicated region fallthrough
CT: control target
= control target key end

     0   :  { %s6249_s30 = smov 0   ;;  %s10248_s0 = inlined_call_operand.vmem [shape: f32[2,4,512], index: 0, kind: input, shape index: {}]   ;;  %s10249_s1 = inlined_call_operand.vmem [shape: f32[27,512], index: 1, kind: input, shape index: {}]   ;;  %s10250_s2 = inlined_call_operand.vmem [shape: f32[8,4], index: 2, kind: input, shape index: {}]   ;;  %s10251_s3 = inlined_call_operand.vmem [shape: f32[8,8], index: 3, kind: input, shape index: {}]   ;;  %s10252_s4 = inlined_call_operand.vmem [shape: f32[8,8], index: 4, kind: input, shape index: {}]   ;;  %s10253_s5 = inlined_call_operand.vmem [shape: f32[4,8], index: 5, kind: input, shape index: {}]   ;;  %s10254_s6 = inlined_call_operand.vmem [shape: f32[8,81], index: 6, kind: input, shape index: {}]   ;;  %s10255_s7 = inlined_call_operand.vmem [shape: f32[8,6], index: 7, kind: input, shape index: {}]   ;;  %s10256_s8 = inlined_call_operand.vmem [shape: f32[8,6], index: 8, kind: input, shape index: {}]   ;;  %s10257_s9 = inlined_call_operand.vmem [shape: f32[2,4,512], index: 9, kind: output, shape index: {}]  }
   0x1 LB: > { %s5758_s10 = sadd.s32 4294967295, %s6089_s30   ;;  %p5762_p0 = scmp.ge.s32.totalorder %s6089_s30, 1  ;;  %s6089_s30 = sphi %s6249_s30, %s19_s30  }
   0x2   : > { %p287_p1 = scmp.lt.s32.totalorder %s6089_s30, 3 }
   0x4   : > { %p288_p2 = pnand %p5762_p0, %p287_p1 }
   0x6   : > { %291 = sbr.rel (%p288_p2) target bundleno = 8775 (0x2247), region = 56 }
   0xd   : > { %v335_v0 = vld [vmem:[%s10250_s2] sm:$0xff]  ;;  %v10266_v1 = vmov 2   ;;  %v10272_v2 = vmov 1   ;;  %v343_v3 = vlaneseq  ;;  %v10268_v5 = vmov 3   ;;  %s10694_s19 = smov 55   ;;  %s10698_s24 = smov 56  }
   0xe   : > { %5923 = vset.pattern.permute.xlu1 %v10266_v1  ;;  %5921 = vset.pattern.permute.xlu0 %v10272_v2  ;;  %v10270_v6 = vmov 0   ;;  %v537_v8 = vld [vmem:[%s10256_s8] sm:$0xff]  ;;  %s6097_s27 = smov 57   ;;  %s10700_s11 = smov 63   ;;  %v10262_v46 = vmov 4   ;;  %v10260_v50 = vmov 5  }
   0xf   : > { %432 = vperm.xlu1 %5923, %v335_v0   ;;  %384 = vperm.xlu0 %5921, %v335_v0   ;;  %v6262_v4 = vshrl.u32 %v343_v3, 7  ;;  %v551_v9 = vld [vmem:[%s10249_s1] ss:$8 sm:$0xf]  ;;  %s6099_s14 = smov 64   ;;  %s6100_s17 = smov 65  }
  0x10   : > { %v527_v11 = vld [vmem:[%s10255_s7] sm:$0xff]  ;;  %s6101_s21 = smov 71   ;;  %s6103_s25 = smov 72   ;;  %v10264_v53 = vmov 6   ;;  %v10258_v56 = vmov 7   ;;  %vm10625_vm0 = vcmask 457728  }
  0x11   : > { %v6267_v7 = vsub.s32 2, %v6262_v4  ;;  %v6276_v10 = vsub.s32 0, %v6262_v4  ;;  %v6285_v14 = vsub.s32 1, %v6262_v4  ;;  %v6292_v15 = vld [vmem:[%s10254_s6] sm:$0xff]  ;;  %v6296_v17 = vsub.s32 3, %v6262_v4  ;;  %p323_p3 = scmp.lt.s32.totalorder %s5758_s10, 1 }
  0x12   : > { %v5767_v18 = vld [vmem:[%s10249_s1 + $0x1] ss:$8 sm:$0xf]  ;;  %v5768_v23 = vld [vmem:[%s10249_s1 + $0x2] ss:$8 sm:$0xf] }
  0x13   : > { %5924 = vset.pattern.permute.xlu1 %v10268_v5  ;;  %5922 = vset.pattern.permute.xlu0 %v10270_v6  ;;  %10743 = vst [vmem:[#allocation2_spill] sm:$0xff] %v6267_v7  ;;  %10744 = vst [vmem:[#allocation3_spill] sm:$0xff] %v6276_v10  ;;  %v565_v12 = vrot.slane %v551_v9, %v6267_v7  ;;  %v557_v13 = vrot.slane %v551_v9, %v6276_v10  ;;  %v5769_v27 = vld [vmem:[%s10249_s1 + $0x3] ss:$8 sm:$0xf]  ;;  %s11574_s10 = smov (!%p323_p3, %s5758_s10), 1 }
  0x14   : > { %480 = vperm.xlu1 %5924, %v335_v0   ;;  %338 = vperm.xlu0 %5922, %v335_v0   ;;  %10745 = vst [vmem:[#allocation4_spill] sm:$0xff] %v6285_v14  ;;  %v561_v16 = vrot.slane %v551_v9, %v6285_v14  ;;  %10746 = vst [vmem:[#allocation5_spill] sm:$0xff] %v6296_v17  ;;  %v617_v19 = vrot.slane %v5767_v18, %v6285_v14  ;;  %v5770_v32 = vld [vmem:[%s10249_s1 + $0x4] ss:$8 sm:$0xf]  ;;  %s10330_s26 = sshll.u32 %s11574_s10, 4 }
  0x15   : > { %v569_v20 = vrot.slane %v551_v9, %v6296_v17  ;;  %v625_v21 = vrot.slane %v5767_v18, %v6296_v17  ;;  %v613_v22 = vrot.slane %v5767_v18, %v6276_v10  ;;  %v697_v24 = vrot.slane %v5768_v23, %v6285_v14  ;;  %v5771_v36 = vld [vmem:[%s10249_s1 + $0x5] ss:$8 sm:$0xf]  ;;  %v5772_v40 = vld [vmem:[%s10249_s1 + $0x6] ss:$8 sm:$0xf]  ;;  %s6407_s12 = scalar_lea.vmem %s10248_s0, %s10330_s26 }
  0x16   : > { %v621_v25 = vrot.slane %v5767_v18, %v6267_v7  ;;  %v705_v26 = vrot.slane %v5768_v23, %v6296_v17  ;;  %v777_v28 = vrot.slane %v5769_v27, %v6285_v14  ;;  %v693_v29 = vrot.slane %v5768_v23, %v6276_v10  ;;  %v6367_v45 = vld [vmem:[%s10249_s1 + $0x7] ss:$8 sm:$0xf]  ;;  %s6107_s13 = smov 127   ;;  %s6108_s15 = smov 126  }
  0x17   : > { %v785_v30 = vrot.slane %v5769_v27, %v6296_v17  ;;  %v701_v31 = vrot.slane %v5768_v23, %v6267_v7  ;;  %v857_v33 = vrot.slane %v5770_v32, %v6285_v14  ;;  %v865_v34 = vrot.slane %v5770_v32, %v6296_v17  ;;  %v6410_v57 = vld [vmem:[%s6407_s12] sm:$0xff]  ;;  %v6419_v61 = vld [vmem:[%s6407_s12 + $0x8] sm:$0xff]  ;;  %s6109_s16 = smov 120   ;;  %s6110_s18 = smov 119  }
  0x18   : > { %5925 = vset.pattern.permute.xlu1 %v10270_v6  ;;  %540 = vperm.xlu0 %5922, %v537_v8   ;;  %v773_v35 = vrot.slane %v5769_v27, %v6276_v10  ;;  %v937_v37 = vrot.slane %v5771_v36, %v6285_v14  ;;  %v781_v38 = vrot.slane %v5769_v27, %v6267_v7  ;;  %vm714_vm1 = vcmask 465920   ;;  %s6111_s20 = smov 118   ;;  %s6112_s22 = smov 112  }
  0x19   : > { %530 = vperm.xlu1 %5925, %v527_v11   ;;  %v945_v39 = vrot.slane %v5771_v36, %v6296_v17  ;;  %v1017_v41 = vrot.slane %v5772_v40, %v6285_v14  ;;  %v853_v42 = vrot.slane %v5770_v32, %v6276_v10  ;;  %v1025_v43 = vrot.slane %v5772_v40, %v6296_v17  ;;  %s10444_s23 = smov 111   ;;  %s10349_s26 = smov 73  }
  0x1a   : > { %v861_v44 = vrot.slane %v5770_v32, %v6267_v7  ;;  %v1097_v47 = vrot.slane %v6367_v45, %v6285_v14  ;;  %v933_v48 = vrot.slane %v5771_v36, %v6276_v10  ;;  %v941_v49 = vrot.slane %v5771_v36, %v6267_v7  ;;  %s10385_s28 = smov 110   ;;  %s10962_s29 = smov 110  }
  0x1b   : > { %v1013_v51 = vrot.slane %v5772_v40, %v6276_v10  ;;  %v1021_v52 = vrot.slane %v5772_v40, %v6267_v7  ;;  %v1093_v54 = vrot.slane %v6367_v45, %v6276_v10  ;;  %v1101_v55 = vrot.slane %v6367_v45, %v6267_v7 }
  0x1c   : > { %574 = vrot.lane.b32.xlu0 %v565_v12, %s10694_s19  ;;  %v390_v58 = vrot.slane %v6410_v57, %v6285_v14  ;;  %v346_v59 = vrot.slane %v6410_v57, %v6276_v10  ;;  %v398_v63 = vrot.slane %v6419_v61, %v6285_v14  ;;  %v354_v0 = vrot.slane %v6419_v61, %v6276_v10 }
  0x1d   : > { %570 = vrot.lane.b32.xlu1 %v557_v13, %s10694_s19  ;;  %v438_v9 = vrot.slane %v6410_v57, %v6267_v7  ;;  %v446_v18 = vrot.slane %v6419_v61, %v6267_v7  ;;  %v486_v23 = vrot.slane %v6410_v57, %v6296_v17  ;;  %vm10720_vm2 = vcmask 515072  }
  0x1e   : > { %5926 = vset.pattern.permute.xlu1 %v10272_v2  ;;  %v410_v3 = vrot.slane %v390_v58, %v6285_v14  ;;  %v366_v8 = vrot.slane %v346_v59, %v6276_v10  ;;  %v418_v11 = vrot.slane %v398_v63, %v6285_v14  ;;  %vm10719_vm3 = vcmask 523264  }
  0x1f   : > { %v466_v27 = vrot.slane %v446_v18, %v6267_v7  ;;  %vm954_vm4 = vcmask 531456   ;;  %vm1034_vm5 = vcmask 580608   ;;  %vm1114_vm6 = vcmask 588800  }
  0x20   : > { %594 = vperm.xlu0 %5922, %v6292_v15   ;;  %vm10721_vm7 = vcmask 596992   ;;  %vm912_vm8 = vcmask 973824   ;;  %vm832_vm9 = vcmask 982016   ;;  %vm1430_vm10 = vcmask 990208  }
  0x21   : > { %572 = vrot.lane.b32.xlu1 %v561_v16, %s10694_s19  ;;  %v374_v16 = vrot.slane %v354_v0, %v6276_v10  ;;  %vm672_vm11 = vcmask 1039360   ;;  %vm1648_vm12 = vcmask 7168   ;;  %vm1728_vm13 = vcmask 56320  }
  0x22   : > { %vm1808_vm14 = vcmask 64512   ;;  %vm1888_vm15 = vcmask 72704  }
  0x24   : > { %628 = vrot.lane.b32.xlu0 %v617_v19, %s10698_s24 }
  0x25   : > { %576 = vrot.lane.b32.xlu1 %v569_v20, %s10694_s19 }
  0x28   : > { %632 = vrot.lane.b32.xlu0 %v625_v21, %s10698_s24  ;;  %v458_v21 = vrot.slane %v438_v9, %v6267_v7 }
  0x29   : > { %626 = vrot.lane.b32.xlu1 %v613_v22, %s10698_s24 }
  0x2c   : > { %708 = vrot.lane.b32.xlu0 %v697_v24, %s6097_s27 }
  0x2d   : > { %630 = vrot.lane.b32.xlu1 %v621_v25, %s10698_s24 }
  0x30   : > { %712 = vrot.lane.b32.xlu0 %v705_v26, %s6097_s27 }
  0x31   : > { %649 = vperm.xlu1 %5926, %v6292_v15  }
  0x34   : > { %788 = vrot.lane.b32.xlu0 %v777_v28, %s10700_s11  ;;  %v494_v28 = vrot.slane %v6419_v61, %v6296_v17 }
  0x35   : > { %706 = vrot.lane.b32.xlu1 %v693_v29, %s6097_s27 }
  0x36   : > { %5927 = vset.pattern.permute.xlu1 %v10266_v1  ;;  %v514_v36 = vrot.slane %v494_v28, %v6296_v17 }
  0x38   : > { %792 = vrot.lane.b32.xlu0 %v785_v30, %s10700_s11 }
  0x39   : > { %710 = vrot.lane.b32.xlu1 %v701_v31, %s6097_s27  ;;  %v506_v31 = vrot.slane %v486_v23, %v6296_v17 }
  0x3c   : > { %868 = vrot.lane.b32.xlu0 %v857_v33, %s6099_s14 }
  0x3d   : > { %729 = vperm.xlu1 %5927, %v6292_v15  }
  0x40   : > { %872 = vrot.lane.b32.xlu0 %v865_v34, %s6099_s14 }
  0x41   : > { %786 = vrot.lane.b32.xlu1 %v773_v35, %s10700_s11 }
  0x42   : > { %5928 = vset.pattern.permute.xlu1 %v10268_v5 }
  0x44   : > { %948 = vrot.lane.b32.xlu0 %v937_v37, %s6100_s17 }
  0x45   : > { %790 = vrot.lane.b32.xlu1 %v781_v38, %s10700_s11 }
  0x48   : > { %952 = vrot.lane.b32.xlu0 %v945_v39, %s6100_s17 }
  0x49   : > { %809 = vperm.xlu1 %5928, %v6292_v15  }
  0x4c   : > { %1028 = vrot.lane.b32.xlu0 %v1017_v41, %s6101_s21 }
  0x4d   : > { %866 = vrot.lane.b32.xlu1 %v853_v42, %s6099_s14 }
  0x4e   : > { %5929 = vset.pattern.permute.xlu1 %v10262_v46 }
  0x50   : > { %1032 = vrot.lane.b32.xlu0 %v1025_v43, %s6101_s21 }
  0x51   : > { %870 = vrot.lane.b32.xlu1 %v861_v44, %s6099_s14 }
  0x54   : > { %1108 = vrot.lane.b32.xlu0 %v1097_v47, %s6103_s25 }
  0x55   : > { %889 = vperm.xlu1 %5929, %v6292_v15  }
  0x59   : > { %946 = vrot.lane.b32.xlu1 %v933_v48, %s6100_s17 }
  0x5a   : > { %5930 = vset.pattern.permute.xlu1 %v10260_v50 }
  0x5d   : > { %950 = vrot.lane.b32.xlu1 %v941_v49, %s6100_s17 }
  0x61   : > { %969 = vperm.xlu1 %5930, %v6292_v15  }
  0x65   : > { %1026 = vrot.lane.b32.xlu1 %v1013_v51, %s6101_s21 }
  0x66   : > { %5931 = vset.pattern.permute.xlu1 %v10264_v53 }
  0x69   : > { %1030 = vrot.lane.b32.xlu1 %v1021_v52, %s6101_s21 }
  0x6d   : > { %1049 = vperm.xlu1 %5931, %v6292_v15  }
  0x71   : > { %1106 = vrot.lane.b32.xlu1 %v1093_v54, %s6103_s25 }
  0x72   : > { %5932 = vset.pattern.permute.xlu1 %v10258_v56 }
  0x75   : > { %1110 = vrot.lane.b32.xlu1 %v1101_v55, %s6103_s25 }
  0x8e   : > { %v6416_v60 = vpop.permute.xlu1 %432  ;;  %v6421_v62 = vpop.permute.xlu0 %384 }
  0x8f   : > { %v423_v19 = vmul.f32 %v410_v3, %v6421_v62  ;;  %v425_v22 = vmul.f32 %v418_v11, %v6421_v62  ;;  %v471_v30 = vmul.f32 %v458_v21, %v6416_v60  ;;  %v473_v35 = vmul.f32 %v466_v27, %v6416_v60 }
  0x93   : > { %v6432_v12 = vpop.permute.xlu1 %480  ;;  %v6434_v13 = vpop.permute.xlu0 %338 }
  0x94   : > { %v379_v20 = vmul.f32 %v366_v8, %v6434_v13  ;;  %v381_v24 = vmul.f32 %v374_v16, %v6434_v13  ;;  %v519_v38 = vmul.f32 %v506_v31, %v6432_v12  ;;  %v521_v41 = vmul.f32 %v514_v36, %v6432_v12 }
  0x96   : > { %v427_v29 = vadd.f32 %v423_v19, %v379_v20  ;;  %v429_v32 = vadd.f32 %v425_v22, %v381_v24 }
  0x97   : > { %v6446_v25 = vpop.permute.xlu0 %540 }
  0x98   : > { %v6448_v26 = vpop.permute.xlu1 %530  ;;  %v475_v37 = vadd.f32 %v471_v30, %v427_v29  ;;  %v477_v39 = vadd.f32 %v473_v35, %v429_v32 }
  0x9a   : > { %v523_v42 = vadd.f32 %v519_v38, %v475_v37  ;;  %v525_v44 = vadd.f32 %v521_v41, %v477_v39 }
  0x9b   : > { %v6455_v33 = vpop.permute.xlu0 %574 }
  0x9c   : > { %v6457_v34 = vpop.permute.xlu1 %570  ;;  %v533_v48 = vmul.f32 %v6448_v26, %v523_v42  ;;  %v535_v49 = vmul.f32 %v6448_v26, %v525_v44 }
  0x9e   : > { %v543_v54 = vadd.f32 %v6446_v25, %v533_v48  ;;  %v545_v55 = vadd.f32 %v6446_v25, %v535_v49 }
  0x9f   : > { %v6465_v43 = vpop.permute.xlu0 %594 }
  0xa0   : > { %v6462_v40 = vpop.permute.xlu1 %572  ;;  %v6481_v63 = vmax.f32 %v543_v54, 0.0  ;;  %v6490_v8 = vmax.f32 %v545_v55, 0.0  ;;  %v6556_v54 = vsub.s32 4, %v6262_v4 }
  0xa2   : > { %10760 = vst [vmem:[#allocation19_spill] sm:$0xff] %v6556_v54 }
  0xa3   : > { %v6471_v51 = vpop.permute.xlu0 %628 }
  0xa4   : > { %v6467_v47 = vpop.permute.xlu1 %576 }
  0xa5   : > { %10747 = vst [vmem:[#allocation6_spill] sm:$0xff] %v6467_v47 }
  0xa7   : > { %v6483_v0 = vpop.permute.xlu0 %632 }
  0xa8   : > { %v627_v52 = vpop.permute.xlu1 %626  ;;  %10749 = vst [vmem:[#allocation8_spill] sm:$0xff] %v6483_v0 }
  0xa9   : > { %v6477_v58 = vsel %vm10625_vm0, %v627_v52, %v6471_v51  ;;  %v6492_v9 = vmul.f32 0.0, %v627_v52  ;;  %v6553_v52 = vsub.s32 5, %v6262_v4 }
  0xaa   : > { %10748 = vst [vmem:[#allocation7_spill] sm:$0xff] %v6477_v58  ;;  %v644_v11 = vmul.f32 %v6477_v58, %v6481_v63 }
  0xab   : > { %10751 = vst [vmem:[#allocation10_spill] sm:$0xff] %v6492_v9  ;;  %v6503_v21 = vpop.permute.xlu0 %708  ;;  %10759 = vst [vmem:[#allocation18_spill] sm:$0xff] %v6553_v52 }
  0xac   : > { %v6479_v59 = vpop.permute.xlu1 %630 }
  0xad   : > { %v6488_v3 = vsel %vm10625_vm0, %v6479_v59, %v6483_v0 }
  0xae   : > { %10750 = vst [vmem:[#allocation9_spill] sm:$0xff] %v6488_v3  ;;  %v646_v18 = vmul.f32 %v6488_v3, %v6490_v8 }
  0xaf   : > { %v6515_v28 = vpop.permute.xlu0 %712 }
  0xb0   : > { %v6496_v16 = vpop.permute.xlu1 %649  ;;  %10753 = vst [vmem:[#allocation12_spill] sm:$0xff] %v6515_v28 }
  0xb1   : > { %v652_v19 = vmul.f32 %v6496_v16, %v6492_v9  ;;  %v653_v20 = vmul.f32 %v6496_v16, %v644_v11  ;;  %v655_v23 = vmul.f32 %v6496_v16, %v646_v18 }
  0xb3   : > { %662 = vrot.lane.b32.xlu0 %v652_v19, %s6107_s13  ;;  %664 = vrot.lane.b32.xlu1 %v653_v20, %s6107_s13  ;;  %v6533_v38 = vpop.permute.xlu0 %788 }
  0xb4   : > { %v707_v22 = vpop.permute.xlu1 %706 }
  0xb5   : > { %v6511_v24 = vsel %vm714_vm1, %v707_v22, %v6503_v21  ;;  %v6522_v30 = vmul.f32 0.0, %v707_v22 }
  0xb6   : > { %10752 = vst [vmem:[#allocation11_spill] sm:$0xff] %v6511_v24  ;;  %v724_v31 = vmul.f32 %v6511_v24, %v6481_v63 }
  0xb7   : > { %668 = vrot.lane.b32.xlu1 %v655_v23, %s6107_s13  ;;  %10755 = vst [vmem:[#allocation14_spill] sm:$0xff] %v6522_v30  ;;  %v6545_v48 = vpop.permute.xlu0 %792  ;;  %v394_v23 = vrot.slane %v6410_v57, %v6553_v52 }
  0xb8   : > { %v6513_v27 = vpop.permute.xlu1 %710  ;;  %10757 = vst [vmem:[#allocation16_spill] sm:$0xff] %v6545_v48 }
  0xb9   : > { %v6520_v29 = vsel %vm714_vm1, %v6513_v27, %v6515_v28 }
  0xba   : > { %10754 = vst [vmem:[#allocation13_spill] sm:$0xff] %v6520_v29  ;;  %v726_v35 = vmul.f32 %v6520_v29, %v6490_v8 }
  0xbc   : > { %v6526_v32 = vpop.permute.xlu1 %729 }
  0xbd   : > { %v732_v36 = vmul.f32 %v6526_v32, %v6522_v30  ;;  %v733_v37 = vmul.f32 %v6526_v32, %v724_v31  ;;  %v735_v41 = vmul.f32 %v6526_v32, %v726_v35  ;;  %v350_v31 = vrot.slane %v6410_v57, %v6556_v54  ;;  %v6573_v35 = vpop.permute.xlu0 %868 }
  0xbf   : > { %742 = vrot.lane.b32.xlu0 %v732_v36, %s6108_s15  ;;  %744 = vrot.lane.b32.xlu1 %v733_v37, %s6108_s15  ;;  %v6578_v36 = vsub.s32 6, %v6262_v4 }
  0xc0   : > { %v787_v39 = vpop.permute.xlu1 %786 }
  0xc1   : > { %v6541_v42 = vsel %vm10720_vm2, %v787_v39, %v6533_v38  ;;  %v6558_v55 = vmul.f32 0.0, %v787_v39  ;;  %10762 = vst [vmem:[#allocation21_spill] sm:$0xff] %v6578_v36  ;;  %v442_v56 = vrot.slane %v6410_v57, %v6578_v36 }
  0xc2   : > { %10756 = vst [vmem:[#allocation15_spill] sm:$0xff] %v6541_v42  ;;  %v804_v11 = vmul.f32 %v6541_v42, %v6481_v63 }
  0xc3   : > { %748 = vrot.lane.b32.xlu1 %v735_v41, %s6108_s15  ;;  %10761 = vst [vmem:[#allocation20_spill] sm:$0xff] %v6558_v55  ;;  %v414_v41 = vrot.slane %v394_v23, %v6285_v14  ;;  %v6597_v23 = vsub.s32 7, %v6262_v4  ;;  %v462_v6 = vrot.slane %v442_v56, %v6267_v7  ;;  %v450_v56 = vrot.slane %v6419_v61, %v6578_v36 }
  0xc4   : > { %v6543_v44 = vpop.permute.xlu1 %790 }
  0xc5   : > { %v6550_v49 = vsel %vm10720_vm2, %v6543_v44, %v6545_v48  ;;  %10764 = vst [vmem:[#allocation23_spill] sm:$0xff] %v6597_v23  ;;  %v424_v46 = vmul.f32 %v414_v41, %v6421_v62 }
  0xc6   : > { %10758 = vst [vmem:[#allocation17_spill] sm:$0xff] %v6550_v49  ;;  %v806_v19 = vmul.f32 %v6550_v49, %v6490_v8 }
  0xc8   : > { %v6562_v18 = vpop.permute.xlu1 %809 }
  0xc9   : > { %v812_v20 = vmul.f32 %v6562_v18, %v6558_v55  ;;  %v813_v22 = vmul.f32 %v6562_v18, %v804_v11  ;;  %v815_v39 = vmul.f32 %v6562_v18, %v806_v19  ;;  %v370_v11 = vrot.slane %v350_v31, %v6276_v10  ;;  %v6599_v31 = vpop.permute.xlu0 %872 }
  0xca   : > { %10765 = vst [vmem:[#allocation24_spill] sm:$0xff] %v6599_v31  ;;  %v490_v55 = vrot.slane %v6410_v57, %v6597_v23 }
  0xcb   : > { %822 = vrot.lane.b32.xlu0 %v812_v20, %s6109_s16  ;;  %824 = vrot.lane.b32.xlu1 %v813_v22, %s6109_s16  ;;  %v402_v20 = vrot.slane %v6419_v61, %v6553_v52  ;;  %v358_v22 = vrot.slane %v6419_v61, %v6556_v54  ;;  %v380_v53 = vmul.f32 %v370_v11, %v6434_v13 }
  0xcc   : > { %v867_v37 = vpop.permute.xlu1 %866 }
  0xcd   : > { %v6592_v50 = vsel %vm10719_vm3, %v867_v37, %v6573_v35  ;;  %v6608_v1 = vmul.f32 0.0, %v867_v37  ;;  %v422_v4 = vrot.slane %v402_v20, %v6285_v14  ;;  %v378_v2 = vrot.slane %v358_v22, %v6276_v10  ;;  %v6626_v20 = vpop.permute.xlu0 %948 }
  0xce   : > { %10763 = vst [vmem:[#allocation22_spill] sm:$0xff] %v6592_v50  ;;  %v884_v5 = vmul.f32 %v6592_v50, %v6481_v63  ;;  %v428_v50 = vadd.f32 %v424_v46, %v380_v53  ;;  %v470_v46 = vrot.slane %v450_v56, %v6267_v7  ;;  %v498_v53 = vrot.slane %v6419_v61, %v6597_v23 }
  0xcf   : > { %828 = vrot.lane.b32.xlu1 %v815_v39, %s6109_s16  ;;  %10767 = vst [vmem:[#allocation26_spill] sm:$0xff] %v6608_v1  ;;  %v426_v57 = vmul.f32 %v422_v4, %v6421_v62  ;;  %v382_v22 = vmul.f32 %v378_v2, %v6434_v13 }
  0xd0   : > { %v6594_v19 = vpop.permute.xlu1 %870  ;;  %v518_v4 = vrot.slane %v498_v53, %v6296_v17 }
  0xd1   : > { %v6604_v39 = vsel %vm10719_vm3, %v6594_v19, %v6599_v31  ;;  %v6646_v13 = vpop.permute.xlu0 %952 }
  0xd2   : > { %10766 = vst [vmem:[#allocation25_spill] sm:$0xff] %v6604_v39  ;;  %v886_v41 = vmul.f32 %v6604_v39, %v6490_v8  ;;  %10769 = vst [vmem:[#allocation28_spill] sm:$0xff] %v6646_v13 }
  0xd4   : > { %v6615_v49 = vpop.permute.xlu1 %889 }
  0xd5   : > { %v892_v37 = vmul.f32 %v6615_v49, %v6608_v1  ;;  %v893_v11 = vmul.f32 %v6615_v49, %v884_v5  ;;  %v472_v1 = vmul.f32 %v462_v6, %v6416_v60  ;;  %v510_v5 = vrot.slane %v490_v55, %v6296_v17 }
  0xd6   : > { %v895_v42 = vmul.f32 %v6615_v49, %v886_v41  ;;  %v474_v55 = vmul.f32 %v470_v46, %v6416_v60 }
  0xd7   : > { %902 = vrot.lane.b32.xlu0 %v892_v37, %s6110_s18  ;;  %904 = vrot.lane.b32.xlu1 %v893_v11, %s6110_s18  ;;  %v476_v37 = vadd.f32 %v472_v1, %v428_v50  ;;  %v430_v11 = vadd.f32 %v426_v57, %v382_v22  ;;  %v520_v6 = vmul.f32 %v510_v5, %v6432_v12 }
  0xd8   : > { %v947_v39 = vpop.permute.xlu1 %946  ;;  %v522_v5 = vmul.f32 %v518_v4, %v6432_v12 }
  0xd9   : > { %v6641_v2 = vsel %vm954_vm4, %v947_v39, %v6626_v20  ;;  %v524_v50 = vadd.f32 %v520_v6, %v476_v37  ;;  %v6655_v61 = vmul.f32 0.0, %v947_v39  ;;  %v478_v41 = vadd.f32 %v474_v55, %v430_v11  ;;  %v1029_v39 = vpop.permute.xlu0 %1028 }
  0xda   : > { %10768 = vst [vmem:[#allocation27_spill] sm:$0xff] %v6641_v2 }
  0xdb   : > { %908 = vrot.lane.b32.xlu1 %v895_v42, %s6110_s18  ;;  %10771 = vst [vmem:[#allocation30_spill] sm:$0xff] %v6655_v61  ;;  %v964_v42 = vmul.f32 %v6641_v2, %v6481_v63  ;;  %v534_v46 = vmul.f32 %v6448_v26, %v524_v50  ;;  %v526_v53 = vadd.f32 %v522_v5, %v478_v41 }
  0xdc   : > { %v6643_v62 = vpop.permute.xlu1 %950 }
  0xdd   : > { %v6653_v1 = vsel %vm954_vm4, %v6643_v62, %v6646_v13  ;;  %v544_v6 = vadd.f32 %v6446_v25, %v534_v46  ;;  %v536_v55 = vmul.f32 %v6448_v26, %v526_v53  ;;  %v6677_v50 = vpop.permute.xlu0 %1032 }
  0xde   : > { %10770 = vst [vmem:[#allocation29_spill] sm:$0xff] %v6653_v1  ;;  %v966_v57 = vmul.f32 %v6653_v1, %v6490_v8  ;;  %10773 = vst [vmem:[#allocation32_spill] sm:$0xff] %v6677_v50 }
  0xe0   : > { %v6659_v56 = vpop.permute.xlu1 %969 }
  0xe1   : > { %v972_v60 = vmul.f32 %v6659_v56, %v6655_v61  ;;  %v973_v22 = vmul.f32 %v6659_v56, %v964_v42  ;;  %v975_v11 = vmul.f32 %v6659_v56, %v966_v57  ;;  %v6682_v42 = vsel %vm10625_vm0, %v6471_v51, %v6479_v59 }
  0xe2   : > { %10774 = vst [vmem:[#allocation33_spill] sm:$0xff] %v6682_v42  ;;  %v6688_v57 = vmax.f32 %v544_v6, 0.0  ;;  %v6708_v6 = vsel %vm714_vm1, %v6503_v21, %v6513_v27  ;;  %v6723_v21 = vsel %vm10720_vm2, %v6533_v38, %v6543_v44 }
  0xe3   : > { %982 = vrot.lane.b32.xlu0 %v972_v60, %s6111_s20  ;;  %984 = vrot.lane.b32.xlu1 %v973_v22, %s6111_s20  ;;  %v546_v22 = vadd.f32 %v6446_v25, %v536_v55  ;;  %10777 = vst [vmem:[#allocation36_spill] sm:$0xff] %v6708_v6  ;;  %10778 = vst [vmem:[#allocation37_spill] sm:$0xff] %v6723_v21 }
  0xe4   : > { %v1027_v37 = vpop.permute.xlu1 %1026  ;;  %v645_v46 = vmul.f32 %v6682_v42, %v6688_v57 }
  0xe5   : > { %v6675_v12 = vsel %vm1034_vm5, %v1027_v37, %v1029_v39  ;;  %v6690_v60 = vmul.f32 0.0, %v1027_v37  ;;  %v6702_v37 = vmax.f32 %v546_v22, 0.0 }
  0xe6   : > { %10772 = vst [vmem:[#allocation31_spill] sm:$0xff] %v6675_v12  ;;  %v1044_v26 = vmul.f32 %v6675_v12, %v6481_v63 }
  0xe7   : > { %988 = vrot.lane.b32.xlu1 %v975_v11, %s6111_s20  ;;  %10776 = vst [vmem:[#allocation35_spill] sm:$0xff] %v6690_v60  ;;  %v654_v11 = vmul.f32 %v6496_v16, %v645_v46  ;;  %v647_v55 = vmul.f32 %v6483_v0, %v6702_v37  ;;  %v727_v27 = vmul.f32 %v6515_v28, %v6702_v37 }
  0xe8   : > { %v1031_v4 = vpop.permute.xlu1 %1030  ;;  %v807_v38 = vmul.f32 %v6545_v48, %v6702_v37 }
  0xe9   : > { %v6686_v41 = vsel %vm1034_vm5, %v1031_v4, %v6677_v50  ;;  %v656_v22 = vmul.f32 %v6496_v16, %v647_v55  ;;  %v736_v16 = vmul.f32 %v6526_v32, %v727_v27  ;;  %v6113_v27 = vmov 8  }
  0xea   : > { %10775 = vst [vmem:[#allocation34_spill] sm:$0xff] %v6686_v41  ;;  %v1046_v51 = vmul.f32 %v6686_v41, %v6490_v8 }
  0xec   : > { %v1050_v5 = vpop.permute.xlu1 %1049 }
  0xed   : > { %v1052_v59 = vmul.f32 %v1050_v5, %v6690_v60  ;;  %v1053_v53 = vmul.f32 %v1050_v5, %v1044_v26  ;;  %v1055_v25 = vmul.f32 %v1050_v5, %v1046_v51  ;;  %v725_v26 = vmul.f32 %v6708_v6, %v6688_v57 }
  0xee   : > { %v805_v51 = vmul.f32 %v6723_v21, %v6688_v57 }
  0xef   : > { %1062 = vrot.lane.b32.xlu0 %v1052_v59, %s6112_s22  ;;  %1064 = vrot.lane.b32.xlu1 %v1053_v53, %s6112_s22  ;;  %v734_v46 = vmul.f32 %v6526_v32, %v725_v26  ;;  %v6736_v53 = vsel %vm10719_vm3, %v6573_v35, %v6594_v19  ;;  %v887_v35 = vmul.f32 %v6599_v31, %v6702_v37 }
  0xf0   : > { %v814_v59 = vmul.f32 %v6562_v18, %v805_v51  ;;  %10779 = vst [vmem:[#allocation38_spill] sm:$0xff] %v6736_v53  ;;  %v885_v44 = vmul.f32 %v6736_v53, %v6688_v57  ;;  %v6760_v26 = vsel %vm1034_vm5, %v1029_v39, %v1031_v4  ;;  %v1105_v4 = vrot.slane %v6367_v45, %v6296_v17  ;;  %v1107_v51 = vpop.permute.xlu1 %1106 }
  0xf1   : > { %v896_v55 = vmul.f32 %v6615_v49, %v887_v35  ;;  %10781 = vst [vmem:[#allocation40_spill] sm:$0xff] %v6760_v26  ;;  %v6823_v12 = vmul.f32 0.0, %v1107_v51 }
  0xf2   : > { %v894_v32 = vmul.f32 %v6615_v49, %v885_v44  ;;  %v1109_v44 = vpop.permute.xlu0 %1108 }
  0xf3   : > { %666 = vrot.lane.b32.xlu0 %v654_v11, %s6107_s13  ;;  %1068 = vrot.lane.b32.xlu1 %v1055_v25, %s6112_s22  ;;  %v816_v11 = vmul.f32 %v6562_v18, %v807_v38  ;;  %v6749_v25 = vsel %vm954_vm4, %v6626_v20, %v6643_v62  ;;  %v967_v20 = vmul.f32 %v6646_v13, %v6702_v37 }
  0xf4   : > { %10780 = vst [vmem:[#allocation39_spill] sm:$0xff] %v6749_v25  ;;  %v965_v19 = vmul.f32 %v6749_v25, %v6688_v57  ;;  %v1045_v62 = vmul.f32 %v6760_v26, %v6688_v57  ;;  %v6819_v41 = vsel %vm1114_vm6, %v1107_v51, %v1109_v44  ;;  %10783 = vst [vmem:[#allocation42_spill] sm:$0xff] %v6823_v12 }
  0xf5   : > { %10782 = vst [vmem:[#allocation41_spill] sm:$0xff] %v6819_v41  ;;  %v1124_v13 = vmul.f32 %v6819_v41, %v6481_v63 }
  0xf6   : > { %v974_v18 = vmul.f32 %v6659_v56, %v965_v19  ;;  %v1054_v49 = vmul.f32 %v1050_v5, %v1045_v62 }
  0xf7   : > { %670 = vrot.lane.b32.xlu0 %v656_v22, %s6107_s13  ;;  %1129 = vperm.xlu1 %5932, %v6292_v15   ;;  %v976_v22 = vmul.f32 %v6659_v56, %v967_v20  ;;  %v1111_v56 = vpop.permute.xlu1 %1110 }
  0xf8   : > { %v6830_v1 = vsel %vm1114_vm6, %v1109_v44, %v1111_v56 }
  0xf9   : > { %10784 = vst [vmem:[#allocation43_spill] sm:$0xff] %v6830_v1  ;;  %v1125_v53 = vmul.f32 %v6830_v1, %v6688_v57 }
  0xfb   : > { %746 = vrot.lane.b32.xlu0 %v734_v46, %s6108_s15  ;;  %v1047_v46 = vmul.f32 %v6677_v50, %v6702_v37  ;;  %5933 = vset.pattern.permute.xlu1 %v6113_v27 }
  0xfd   : > { %v1056_v39 = vmul.f32 %v1050_v5, %v1047_v46 }
  0xff   : > { %750 = vrot.lane.b32.xlu0 %v736_v16, %s6108_s15 }
 0x103   : > { %826 = vrot.lane.b32.xlu0 %v814_v59, %s6109_s16 }
 0x107   : > { %830 = vrot.lane.b32.xlu0 %v816_v11, %s6109_s16 }
 0x10b   : > { %906 = vrot.lane.b32.xlu0 %v894_v32, %s6110_s18 }
 0x10f   : > { %910 = vrot.lane.b32.xlu0 %v896_v55, %s6110_s18 }
 0x113   : > { %986 = vrot.lane.b32.xlu0 %v974_v18, %s6111_s20 }
 0x117   : > { %990 = vrot.lane.b32.xlu0 %v976_v22, %s6111_s20 }
 0x11b   : > { %1066 = vrot.lane.b32.xlu0 %v1054_v49, %s6112_s22 }
 0x11f   : > { %1070 = vrot.lane.b32.xlu0 %v1056_v39, %s6112_s22 }
 0x123   : > { %1112 = vrot.lane.b32.xlu0 %v1105_v4, %s6103_s25 }
 0x125   : > { %v6776_v16 = vpop.permute.xlu1 %664  ;;  %v6784_v5 = vpop.permute.xlu0 %662 }
 0x129   : > { %v6778_v59 = vpop.permute.xlu1 %668 }
 0x131   : > { %v6780_v38 = vpop.permute.xlu1 %744  ;;  %v6788_v45 = vpop.permute.xlu0 %742 }
 0x135   : > { %v6782_v11 = vpop.permute.xlu1 %748 }
 0x13d   : > { %v6786_v32 = vpop.permute.xlu1 %824  ;;  %v6792_v19 = vpop.permute.xlu0 %822 }
 0x141   : > { %v6790_v35 = vpop.permute.xlu1 %828 }
 0x149   : > { %v6794_v55 = vpop.permute.xlu1 %904  ;;  %v6796_v18 = vpop.permute.xlu0 %902 }
 0x14d   : > { %v6800_v62 = vpop.permute.xlu1 %908 }
 0x155   : > { %v6798_v20 = vpop.permute.xlu0 %982  ;;  %v6804_v49 = vpop.permute.xlu1 %984 }
 0x159   : > { %v6808_v39 = vpop.permute.xlu1 %988 }
 0x161   : > { %v6802_v22 = vpop.permute.xlu0 %1062  ;;  %v6812_v27 = vpop.permute.xlu1 %1064 }
 0x165   : > { %v6806_v46 = vpop.permute.xlu0 %666  ;;  %v6821_v60 = vpop.permute.xlu1 %1068 }
 0x169   : > { %v6810_v4 = vpop.permute.xlu0 %670 }
 0x16d   : > { %v6814_v50 = vpop.permute.xlu0 %746 }
 0x171   : > { %v6816_v26 = vpop.permute.xlu0 %750 }
 0x175   : > { %v6827_v25 = vpop.permute.xlu0 %826 }
 0x176   : > { %v1130_v61 = vpop.permute.xlu1 %1129 }
 0x177   : > { %v1133_v2 = vmul.f32 %v1130_v61, %v1124_v13  ;;  %v1132_v31 = vmul.f32 %v1130_v61, %v6823_v12  ;;  %v1134_v51 = vmul.f32 %v1130_v61, %v1125_v53 }
 0x179   : > { %v6835_v48 = vpop.permute.xlu0 %830  ;;  %1144 = vrot.lane.b32.xlu1 %v1133_v2, %s10444_s23  ;;  %1142 = vrot.lane.b32.xlu0 %v1132_v31, %s10444_s23 }
 0x17d   : > { %v6839_v41 = vpop.permute.xlu0 %906  ;;  %1146 = vrot.lane.b32.xlu0 %v1134_v51, %s10444_s23  ;;  %v5774_v51 = vld [vmem:[%s10249_s1 + $0x20] ss:$8 sm:$0xf] }
 0x17e   : > { %v1177_v30 = vrot.slane %v5774_v51, %v6285_v14  ;;  %v1173_v24 = vrot.slane %v5774_v51, %v6276_v10 }
 0x181   : > { %v6842_v44 = vpop.permute.xlu0 %910 }
 0x185   : > { %v6844_v13 = vpop.permute.xlu0 %986 }
 0x189   : > { %v6846_v12 = vpop.permute.xlu0 %990 }
 0x18d   : > { %v6848_v21 = vpop.permute.xlu0 %1066 }
 0x191   : > { %v6850_v1 = vpop.permute.xlu0 %1070 }
 0x195   : > { %v6852_v28 = vpop.permute.xlu0 %1112 }
 0x196   : > { %10785 = vst [vmem:[#allocation44_spill] sm:$0xff] %v6852_v28  ;;  %v1127_v31 = vmul.f32 %v6852_v28, %v6702_v37  ;;  %v6858_v2 = vsel %vm1114_vm6, %v1111_v56, %v6852_v28  ;;  %v1185_v56 = vrot.slane %v5774_v51, %v6296_v17  ;;  %v1181_v28 = vrot.slane %v5774_v51, %v6267_v7 }
 0x197   : > { %10786 = vst [vmem:[#allocation45_spill] sm:$0xff] %v6858_v2  ;;  %v1126_v53 = vmul.f32 %v6858_v2, %v6490_v8 }
 0x198   : > { %v1136_v6 = vmul.f32 %v1130_v61, %v1127_v31 }
 0x199   : > { %v1135_v29 = vmul.f32 %v1130_v61, %v1126_v53  ;;  %v6116_v61 = vmov 9  }
 0x19a   : > { %1150 = vrot.lane.b32.xlu0 %v1136_v6, %s10444_s23 }
 0x19b   : > { %1148 = vrot.lane.b32.xlu1 %v1135_v29, %s10444_s23  ;;  %s6128_s23 = smov 7  }
 0x19e   : > { %1188 = vrot.lane.b32.xlu0 %v1177_v30, %s10349_s26 }
 0x19f   : > { %1186 = vrot.lane.b32.xlu1 %v1173_v24, %s10349_s26 }
 0x1a2   : > { %1192 = vrot.lane.b32.xlu0 %v1185_v56, %s10349_s26 }
 0x1a3   : > { %1190 = vrot.lane.b32.xlu1 %v1181_v28, %s10349_s26  ;;  %s10957_s26 = smov 73  }
 0x1a7   : > { %1209 = vperm.xlu1 %5933, %v6292_v15  }
 0x1ab   : > { %5934 = vset.pattern.permute.xlu1 %v6116_v61 }
 0x1eb   : > { %v6876_v29 = vpop.permute.xlu0 %1142  ;;  %v6878_v6 = vpop.permute.xlu1 %1144 }
 0x1ef   : > { %v6880_v31 = vpop.permute.xlu0 %1146 }
 0x20c   : > { %v6884_v53 = vpop.permute.xlu0 %1150 }
 0x20d   : > { %v6882_v30 = vpop.permute.xlu1 %1148 }
 0x210   : > { %v1189_v51 = vpop.permute.xlu0 %1188 }
 0x211   : > { %v1187_v24 = vpop.permute.xlu1 %1186 }
 0x212   : > { %v6887_v56 = vsel %vm10721_vm7, %v1187_v24, %v1189_v51  ;;  %v6891_v61 = vmul.f32 0.0, %v1187_v24 }
 0x213   : > { %10787 = vst [vmem:[#allocation46_spill] sm:$0xff] %v6887_v56  ;;  %v1204_v0 = vmul.f32 %v6887_v56, %v6481_v63 }
 0x214   : > { %v6889_v2 = vpop.permute.xlu0 %1192  ;;  %10789 = vst [vmem:[#allocation48_spill] sm:$0xff] %v6891_v61 }
 0x215   : > { %v1191_v28 = vpop.permute.xlu1 %1190  ;;  %10788 = vst [vmem:[#allocation47_spill] sm:$0xff] %v6889_v2 }
 0x216   : > { %v6896_v42 = vsel %vm10721_vm7, %v1189_v51, %v1191_v28  ;;  %v6900_v3 = vsel %vm10721_vm7, %v1191_v28, %v6889_v2  ;;  %v5775_v51 = vld [vmem:[%s10249_s1 + $0x21] ss:$8 sm:$0xf] }
 0x217   : > { %10790 = vst [vmem:[#allocation49_spill] sm:$0xff] %v6896_v42  ;;  %10791 = vst [vmem:[#allocation50_spill] sm:$0xff] %v6900_v3  ;;  %v1205_v52 = vmul.f32 %v6896_v42, %v6688_v57  ;;  %v1206_v24 = vmul.f32 %v6900_v3, %v6490_v8  ;;  %v1253_v42 = vrot.slane %v5775_v51, %v6276_v10 }
 0x226   : > { %v1210_v9 = vpop.permute.xlu1 %1209 }
 0x227   : > { %v1212_v58 = vmul.f32 %v1210_v9, %v6891_v61  ;;  %v1213_v23 = vmul.f32 %v1210_v9, %v1204_v0  ;;  %v1214_v28 = vmul.f32 %v1210_v9, %v1205_v52  ;;  %v1215_v56 = vmul.f32 %v1210_v9, %v1206_v24 }
 0x228   : > { %v1207_v0 = vmul.f32 %v6889_v2, %v6702_v37  ;;  %v1265_v52 = vrot.slane %v5775_v51, %v6296_v17 }
 0x229   : > { %1222 = vrot.lane.b32.xlu0 %v1212_v58, %s10385_s28  ;;  %1224 = vrot.lane.b32.xlu1 %v1213_v23, %s10385_s28  ;;  %v1257_v58 = vrot.slane %v5775_v51, %v6285_v14  ;;  %v1261_v23 = vrot.slane %v5775_v51, %v6267_v7 }
 0x22a   : > { %v1216_v3 = vmul.f32 %v1210_v9, %v1207_v0 }
 0x22d   : > { %1226 = vrot.lane.b32.xlu0 %v1214_v28, %s10385_s28  ;;  %1228 = vrot.lane.b32.xlu1 %v1215_v56, %s10385_s28  ;;  %v6118_v56 = vmov 10  }
 0x231   : > { %1230 = vrot.lane.b32.xlu0 %v1216_v3, %s10385_s28  ;;  %1266 = vrot.lane.b32.xlu1 %v1253_v42, %s6110_s18  ;;  %s6120_s28 = smov 121  }
 0x235   : > { %1268 = vrot.lane.b32.xlu0 %v1257_v58, %s6110_s18  ;;  %1270 = vrot.lane.b32.xlu1 %v1261_v23, %s6110_s18 }
 0x239   : > { %1272 = vrot.lane.b32.xlu0 %v1265_v52, %s6110_s18  ;;  %1288 = vperm.xlu1 %5934, %v6292_v15  }
 0x23d   : > { %5935 = vset.pattern.permute.xlu1 %v6118_v56 }
 0x29b   : > { %v6926_v9 = vpop.permute.xlu0 %1222  ;;  %v6928_v3 = vpop.permute.xlu1 %1224 }
 0x29c   : > { %10792 = vst [vmem:[#allocation51_spill] sm:$0xff] %v6926_v9  ;;  %10793 = vst [vmem:[#allocation52_spill] sm:$0xff] %v6928_v3 }
 0x29f   : > { %v6930_v42 = vpop.permute.xlu0 %1226  ;;  %v6932_v24 = vpop.permute.xlu1 %1228 }
 0x2a0   : > { %10794 = vst [vmem:[#allocation53_spill] sm:$0xff] %v6930_v42  ;;  %10795 = vst [vmem:[#allocation54_spill] sm:$0xff] %v6932_v24 }
 0x2a3   : > { %v6934_v28 = vpop.permute.xlu0 %1230  ;;  %v1267_v0 = vpop.permute.xlu1 %1266 }
 0x2a4   : > { %10796 = vst [vmem:[#allocation55_spill] sm:$0xff] %v6934_v28  ;;  %v6941_v56 = vmul.f32 0.0, %v1267_v0 }
 0x2a6   : > { %10799 = vst [vmem:[#allocation58_spill] sm:$0xff] %v6941_v56 }
 0x2a7   : > { %v1269_v58 = vpop.permute.xlu0 %1268  ;;  %v1271_v51 = vpop.permute.xlu1 %1270 }
 0x2a8   : > { %v6937_v23 = vsel %vm912_vm8, %v1267_v0, %v1269_v58  ;;  %v6946_v61 = vsel %vm912_vm8, %v1269_v58, %v1271_v51  ;;  %v5776_v58 = vld [vmem:[%s10249_s1 + $0x22] ss:$8 sm:$0xf] }
 0x2a9   : > { %10797 = vst [vmem:[#allocation56_spill] sm:$0xff] %v6937_v23  ;;  %v1283_v2 = vmul.f32 %v6937_v23, %v6481_v63  ;;  %10800 = vst [vmem:[#allocation59_spill] sm:$0xff] %v6946_v61  ;;  %v1284_v42 = vmul.f32 %v6946_v61, %v6688_v57  ;;  %v1339_v61 = vrot.slane %v5776_v58, %v6267_v7 }
 0x2ab   : > { %v6939_v52 = vpop.permute.xlu0 %1272 }
 0x2ac   : > { %10798 = vst [vmem:[#allocation57_spill] sm:$0xff] %v6939_v52  ;;  %v6950_v36 = vsel %vm912_vm8, %v1271_v51, %v6939_v52 }
 0x2ad   : > { %10801 = vst [vmem:[#allocation60_spill] sm:$0xff] %v6950_v36  ;;  %v1285_v0 = vmul.f32 %v6950_v36, %v6490_v8 }
 0x2b8   : > { %v1289_v54 = vpop.permute.xlu1 %1288 }
 0x2b9   : > { %v1291_v28 = vmul.f32 %v1289_v54, %v6941_v56  ;;  %v1292_v24 = vmul.f32 %v1289_v54, %v1283_v2  ;;  %v1293_v51 = vmul.f32 %v1289_v54, %v1284_v42  ;;  %v1294_v23 = vmul.f32 %v1289_v54, %v1285_v0 }
 0x2ba   : > { %v1286_v56 = vmul.f32 %v6939_v52, %v6702_v37  ;;  %v1331_v2 = vrot.slane %v5776_v58, %v6276_v10  ;;  %v1343_v42 = vrot.slane %v5776_v58, %v6296_v17 }
 0x2bb   : > { %1301 = vrot.lane.b32.xlu0 %v1291_v28, %s6099_s14  ;;  %1303 = vrot.lane.b32.xlu1 %v1292_v24, %s6099_s14  ;;  %v1335_v24 = vrot.slane %v5776_v58, %v6285_v14 }
 0x2bc   : > { %v1295_v28 = vmul.f32 %v1289_v54, %v1286_v56 }
 0x2bf   : > { %1305 = vrot.lane.b32.xlu0 %v1293_v51, %s6099_s14  ;;  %1307 = vrot.lane.b32.xlu1 %v1294_v23, %s6099_s14  ;;  %v6119_v23 = vmov 11  }
 0x2c3   : > { %1309 = vrot.lane.b32.xlu0 %v1295_v28, %s6099_s14  ;;  %1344 = vrot.lane.b32.xlu1 %v1331_v2, %s6109_s16 }
 0x2c7   : > { %1346 = vrot.lane.b32.xlu0 %v1335_v24, %s6109_s16  ;;  %1348 = vrot.lane.b32.xlu1 %v1339_v61, %s6109_s16 }
 0x2cb   : > { %1350 = vrot.lane.b32.xlu0 %v1343_v42, %s6109_s16  ;;  %1366 = vperm.xlu1 %5935, %v6292_v15  }
 0x2cf   : > { %5936 = vset.pattern.permute.xlu1 %v6119_v23 }
 0x32d   : > { %v6976_v54 = vpop.permute.xlu0 %1301  ;;  %v6978_v56 = vpop.permute.xlu1 %1303 }
 0x32e   : > { %10802 = vst [vmem:[#allocation61_spill] sm:$0xff] %v6976_v54  ;;  %10803 = vst [vmem:[#allocation62_spill] sm:$0xff] %v6978_v56 }
 0x331   : > { %v6980_v0 = vpop.permute.xlu0 %1305  ;;  %v6982_v51 = vpop.permute.xlu1 %1307 }
 0x332   : > { %10804 = vst [vmem:[#allocation63_spill] sm:$0xff] %v6980_v0  ;;  %10805 = vst [vmem:[#allocation64_spill] sm:$0xff] %v6982_v51 }
 0x335   : > { %v6984_v2 = vpop.permute.xlu0 %1309  ;;  %v1345_v28 = vpop.permute.xlu1 %1344 }
 0x336   : > { %10806 = vst [vmem:[#allocation65_spill] sm:$0xff] %v6984_v2  ;;  %v6991_v42 = vmul.f32 0.0, %v1345_v28 }
 0x338   : > { %10809 = vst [vmem:[#allocation68_spill] sm:$0xff] %v6991_v42 }
 0x339   : > { %v1347_v61 = vpop.permute.xlu0 %1346  ;;  %v1349_v58 = vpop.permute.xlu1 %1348 }
 0x33a   : > { %v6987_v24 = vsel %vm832_vm9, %v1345_v28, %v1347_v61  ;;  %v6996_v52 = vsel %vm832_vm9, %v1347_v61, %v1349_v58  ;;  %v5777_v61 = vld [vmem:[%s10249_s1 + $0x23] ss:$8 sm:$0xf] }
 0x33b   : > { %10807 = vst [vmem:[#allocation66_spill] sm:$0xff] %v6987_v24  ;;  %v1361_v23 = vmul.f32 %v6987_v24, %v6481_v63  ;;  %10810 = vst [vmem:[#allocation69_spill] sm:$0xff] %v6996_v52  ;;  %v1362_v54 = vmul.f32 %v6996_v52, %v6688_v57  ;;  %v1417_v52 = vrot.slane %v5777_v61, %v6267_v7 }
 0x33d   : > { %v6989_v15 = vpop.permute.xlu0 %1350 }
 0x33e   : > { %10808 = vst [vmem:[#allocation67_spill] sm:$0xff] %v6989_v15  ;;  %v7000_v36 = vsel %vm832_vm9, %v1349_v58, %v6989_v15 }
 0x33f   : > { %10811 = vst [vmem:[#allocation70_spill] sm:$0xff] %v7000_v36  ;;  %v1363_v28 = vmul.f32 %v7000_v36, %v6490_v8 }
 0x34a   : > { %v1367_v2 = vpop.permute.xlu1 %1366 }
 0x34b   : > { %v1369_v51 = vmul.f32 %v1367_v2, %v6991_v42  ;;  %v1370_v0 = vmul.f32 %v1367_v2, %v1361_v23  ;;  %v1371_v58 = vmul.f32 %v1367_v2, %v1362_v54  ;;  %v1372_v24 = vmul.f32 %v1367_v2, %v1363_v28 }
 0x34c   : > { %v1364_v42 = vmul.f32 %v6989_v15, %v6702_v37  ;;  %v1421_v54 = vrot.slane %v5777_v61, %v6296_v17 }
 0x34d   : > { %1379 = vrot.lane.b32.xlu0 %v1369_v51, %s10700_s11  ;;  %1381 = vrot.lane.b32.xlu1 %v1370_v0, %s10700_s11  ;;  %v1409_v51 = vrot.slane %v5777_v61, %v6276_v10  ;;  %v1413_v0 = vrot.slane %v5777_v61, %v6285_v14 }
 0x34e   : > { %v1373_v23 = vmul.f32 %v1367_v2, %v1364_v42  ;;  %v6121_v2 = vmov 12  }
 0x351   : > { %1383 = vrot.lane.b32.xlu0 %v1371_v58, %s10700_s11  ;;  %1385 = vrot.lane.b32.xlu1 %v1372_v24, %s10700_s11  ;;  %v7024_v24 = vld [vmem:[%s10254_s6] sm:$0xff] }
 0x355   : > { %1387 = vrot.lane.b32.xlu0 %v1373_v23, %s10700_s11  ;;  %1422 = vrot.lane.b32.xlu1 %v1409_v51, %s6120_s28 }
 0x359   : > { %1424 = vrot.lane.b32.xlu0 %v1413_v0, %s6120_s28  ;;  %1426 = vrot.lane.b32.xlu1 %v1417_v52, %s6120_s28 }
 0x35d   : > { %1428 = vrot.lane.b32.xlu0 %v1421_v54, %s6120_s28  ;;  %1445 = vperm.xlu1 %5936, %v7024_v24   ;;  %s10427_s28 = smov 62  }
 0x361   : > { %5937 = vset.pattern.permute.xlu1 %v6121_v2 }
 0x3bf   : > { %v7027_v42 = vpop.permute.xlu0 %1379  ;;  %v7029_v28 = vpop.permute.xlu1 %1381 }
 0x3c0   : > { %10812 = vst [vmem:[#allocation71_spill] sm:$0xff] %v7027_v42  ;;  %10813 = vst [vmem:[#allocation72_spill] sm:$0xff] %v7029_v28 }
 0x3c3   : > { %v7031_v58 = vpop.permute.xlu0 %1383  ;;  %v7033_v51 = vpop.permute.xlu1 %1385 }
 0x3c4   : > { %10814 = vst [vmem:[#allocation73_spill] sm:$0xff] %v7031_v58  ;;  %10815 = vst [vmem:[#allocation74_spill] sm:$0xff] %v7033_v51 }
 0x3c7   : > { %v7035_v52 = vpop.permute.xlu0 %1387  ;;  %v1423_v61 = vpop.permute.xlu1 %1422 }
 0x3c8   : > { %10816 = vst [vmem:[#allocation75_spill] sm:$0xff] %v7035_v52  ;;  %v7041_v36 = vmul.f32 0.0, %v1423_v61 }
 0x3ca   : > { %10819 = vst [vmem:[#allocation78_spill] sm:$0xff] %v7041_v36 }
 0x3cb   : > { %v1425_v23 = vpop.permute.xlu0 %1424  ;;  %v1427_v0 = vpop.permute.xlu1 %1426 }
 0x3cc   : > { %v7037_v54 = vsel %vm1430_vm10, %v1423_v61, %v1425_v23  ;;  %v7045_v42 = vsel %vm1430_vm10, %v1425_v23, %v1427_v0  ;;  %v5778_v23 = vld [vmem:[%s10249_s1 + $0x24] ss:$8 sm:$0xf] }
 0x3cd   : > { %10817 = vst [vmem:[#allocation76_spill] sm:$0xff] %v7037_v54  ;;  %v1440_v2 = vmul.f32 %v7037_v54, %v6481_v63  ;;  %10820 = vst [vmem:[#allocation79_spill] sm:$0xff] %v7045_v42  ;;  %v1441_v56 = vmul.f32 %v7045_v42, %v6688_v57 }
 0x3cf   : > { %v7039_v15 = vpop.permute.xlu0 %1428 }
 0x3d0   : > { %10818 = vst [vmem:[#allocation77_spill] sm:$0xff] %v7039_v15  ;;  %v7048_v58 = vsel %vm1430_vm10, %v1427_v0, %v7039_v15  ;;  %vm1152_vm10 = vcmask 908288  }
 0x3d1   : > { %10821 = vst [vmem:[#allocation80_spill] sm:$0xff] %v7048_v58  ;;  %v1442_v61 = vmul.f32 %v7048_v58, %v6490_v8  ;;  %v1497_v58 = vrot.slane %v5778_v23, %v6267_v7 }
 0x3dc   : > { %v1446_v51 = vpop.permute.xlu1 %1445 }
 0x3dd   : > { %v1448_v52 = vmul.f32 %v1446_v51, %v7041_v36  ;;  %v1449_v28 = vmul.f32 %v1446_v51, %v1440_v2  ;;  %v1450_v0 = vmul.f32 %v1446_v51, %v1441_v56  ;;  %v1451_v54 = vmul.f32 %v1446_v51, %v1442_v61 }
 0x3de   : > { %v1443_v2 = vmul.f32 %v7039_v15, %v6702_v37  ;;  %v1501_v56 = vrot.slane %v5778_v23, %v6296_v17 }
 0x3df   : > { %1458 = vrot.lane.b32.xlu0 %v1448_v52, %s10427_s28  ;;  %1460 = vrot.lane.b32.xlu1 %v1449_v28, %s10427_s28  ;;  %v1489_v52 = vrot.slane %v5778_v23, %v6276_v10  ;;  %v1493_v28 = vrot.slane %v5778_v23, %v6285_v14 }
 0x3e0   : > { %v1452_v42 = vmul.f32 %v1446_v51, %v1443_v2 }
 0x3e3   : > { %1462 = vrot.lane.b32.xlu0 %v1450_v0, %s10427_s28  ;;  %1464 = vrot.lane.b32.xlu1 %v1451_v54, %s10427_s28  ;;  %v6123_v54 = vmov 13  }
 0x3e7   : > { %1466 = vrot.lane.b32.xlu0 %v1452_v42, %s10427_s28  ;;  %1502 = vrot.lane.b32.xlu1 %v1489_v52, %s6107_s13  ;;  %s6125_s28 = smov 1  }
 0x3eb   : > { %1504 = vrot.lane.b32.xlu0 %v1493_v28, %s6107_s13  ;;  %1506 = vrot.lane.b32.xlu1 %v1497_v58, %s6107_s13 }
 0x3ef   : > { %1508 = vrot.lane.b32.xlu0 %v1501_v56, %s6107_s13  ;;  %1524 = vperm.xlu1 %5937, %v7024_v24  }
 0x3f3   : > { %5938 = vset.pattern.permute.xlu1 %v6123_v54 }
 0x451   : > { %v7074_v51 = vpop.permute.xlu0 %1458  ;;  %v7076_v42 = vpop.permute.xlu1 %1460 }
 0x452   : > { %10822 = vst [vmem:[#allocation81_spill] sm:$0xff] %v7074_v51  ;;  %10823 = vst [vmem:[#allocation82_spill] sm:$0xff] %v7076_v42 }
 0x455   : > { %v7078_v61 = vpop.permute.xlu0 %1462  ;;  %v7080_v0 = vpop.permute.xlu1 %1464 }
 0x456   : > { %10824 = vst [vmem:[#allocation83_spill] sm:$0xff] %v7078_v61  ;;  %10825 = vst [vmem:[#allocation84_spill] sm:$0xff] %v7080_v0 }
 0x459   : > { %v7082_v2 = vpop.permute.xlu0 %1466  ;;  %v1503_v52 = vpop.permute.xlu1 %1502 }
 0x45a   : > { %10826 = vst [vmem:[#allocation85_spill] sm:$0xff] %v7082_v2  ;;  %v7089_v54 = vmul.f32 0.0, %v1503_v52 }
 0x45c   : > { %10829 = vst [vmem:[#allocation88_spill] sm:$0xff] %v7089_v54 }
 0x45d   : > { %v1505_v58 = vpop.permute.xlu0 %1504  ;;  %v1507_v23 = vpop.permute.xlu1 %1506 }
 0x45e   : > { %v7085_v28 = vsel %vm672_vm11, %v1503_v52, %v1505_v58  ;;  %v7094_v36 = vsel %vm672_vm11, %v1505_v58, %v1507_v23 }
 0x45f   : > { %10827 = vst [vmem:[#allocation86_spill] sm:$0xff] %v7085_v28  ;;  %v1519_v15 = vmul.f32 %v7085_v28, %v6481_v63  ;;  %10830 = vst [vmem:[#allocation89_spill] sm:$0xff] %v7094_v36  ;;  %v1520_v42 = vmul.f32 %v7094_v36, %v6688_v57 }
 0x461   : > { %v7087_v56 = vpop.permute.xlu0 %1508 }
 0x462   : > { %10828 = vst [vmem:[#allocation87_spill] sm:$0xff] %v7087_v56  ;;  %v7098_v2 = vsel %vm672_vm11, %v1507_v23, %v7087_v56  ;;  %v1522_v23 = vmul.f32 %v7087_v56, %v6702_v37 }
 0x463   : > { %10831 = vst [vmem:[#allocation90_spill] sm:$0xff] %v7098_v2  ;;  %v1521_v52 = vmul.f32 %v7098_v2, %v6490_v8 }
 0x46e   : > { %v1525_v0 = vpop.permute.xlu1 %1524 }
 0x46f   : > { %v1527_v61 = vmul.f32 %v1525_v0, %v7089_v54  ;;  %v1528_v51 = vmul.f32 %v1525_v0, %v1519_v15  ;;  %v1529_v58 = vmul.f32 %v1525_v0, %v1520_v42  ;;  %v1530_v28 = vmul.f32 %v1525_v0, %v1521_v52  ;;  %v5779_v42 = vld [vmem:[%s10249_s1 + $0x25] ss:$8 sm:$0xf] }
 0x470   : > { %v1531_v15 = vmul.f32 %v1525_v0, %v1522_v23  ;;  %v7119_v52 = vrot.slane %v5779_v42, %v6285_v14 }
 0x471   : > { %1537 = vrot.lane.b32.xlu0 %v1527_v61, %s10698_s24  ;;  %1539 = vrot.lane.b32.xlu1 %v1528_v51, %s10698_s24  ;;  %v6124_v61 = vmov 14  }
 0x472   : > { %5939 = vset.pattern.permute.xlu0 %v6124_v61  ;;  %10833 = vst [vmem:[#allocation92_spill] sm:$0xff] %v7119_v52  ;;  %v1585_v0 = vmul.f32 %v7119_v52, %v6688_v57  ;;  %v7134_v61 = vrot.slane %v5779_v42, %v6267_v7 }
 0x474   : > { %10837 = vst [vmem:[#allocation96_spill] sm:$0xff] %v7134_v61  ;;  %v1586_v52 = vmul.f32 %v7134_v61, %v6490_v8 }
 0x475   : > { %1541 = vrot.lane.b32.xlu0 %v1529_v58, %s10698_s24  ;;  %1543 = vrot.lane.b32.xlu1 %v1530_v28, %s10698_s24  ;;  %v7122_v58 = vrot.slane %v5779_v42, %v6276_v10 }
 0x477   : > { %10834 = vst [vmem:[#allocation93_spill] sm:$0xff] %v7122_v58  ;;  %v1584_v23 = vmul.f32 %v7122_v58, %v6481_v63  ;;  %v5780_v58 = vld [vmem:[%s10249_s1 + $0x26] ss:$8 sm:$0xf] }
 0x479   : > { %1545 = vrot.lane.b32.xlu0 %v1531_v15, %s10698_s24  ;;  %1589 = vperm.xlu1 %5938, %v7024_v24   ;;  %v7131_v15 = vrot.slane %v5779_v42, %v6296_v17 }
 0x47b   : > { %10836 = vst [vmem:[#allocation95_spill] sm:$0xff] %v7131_v15  ;;  %v1587_v54 = vmul.f32 %v7131_v15, %v6702_v37 }
 0x4e3   : > { %v7113_v51 = vpop.permute.xlu1 %1539 }
 0x4e4   : > { %10832 = vst [vmem:[#allocation91_spill] sm:$0xff] %v7113_v51 }
 0x4e7   : > { %v7124_v28 = vpop.permute.xlu1 %1543 }
 0x4e8   : > { %10835 = vst [vmem:[#allocation94_spill] sm:$0xff] %v7124_v28 }
 0x4f8   : > { %v1590_v56 = vpop.permute.xlu1 %1589 }
 0x4f9   : > { %v1593_v36 = vmul.f32 %v1590_v56, %v1585_v0  ;;  %v1592_v2 = vmul.f32 %v1590_v56, %v1584_v23  ;;  %v1595_v28 = vmul.f32 %v1590_v56, %v1587_v54  ;;  %v1594_v42 = vmul.f32 %v1590_v56, %v1586_v52  ;;  %v7152_v54 = vpop.permute.xlu0 %1537 }
 0x4fa   : > { %v1639_v0 = vrot.slane %v5780_v58, %v6296_v17  ;;  %v1635_v23 = vrot.slane %v5780_v58, %v6267_v7  ;;  %v6126_v56 = vmov 15   ;;  %10838 = vst [vmem:[#allocation97_spill] sm:$0xff] %v7152_v54 }
 0x4fb   : > { %1602 = vrot.lane.b32.xlu1 %v1593_v36, %s10694_s19  ;;  %1600 = vrot.lane.b32.xlu0 %v1592_v2, %s10694_s19  ;;  %v1631_v36 = vrot.slane %v5780_v58, %v6285_v14  ;;  %v1627_v2 = vrot.slane %v5780_v58, %v6276_v10 }
 0x4fc   : > { %5940 = vset.pattern.permute.xlu1 %v6126_v56 }
 0x4fd   : > { %v7154_v52 = vpop.permute.xlu0 %1541 }
 0x4fe   : > { %10839 = vst [vmem:[#allocation98_spill] sm:$0xff] %v7154_v52 }
 0x4ff   : > { %1606 = vrot.lane.b32.xlu1 %v1595_v28, %s10694_s19  ;;  %1604 = vrot.lane.b32.xlu0 %v1594_v42, %s10694_s19 }
 0x501   : > { %v7156_v28 = vpop.permute.xlu0 %1545 }
 0x502   : > { %10840 = vst [vmem:[#allocation99_spill] sm:$0xff] %v7156_v28 }
 0x503   : > { %1642 = vrot.lane.b32.xlu1 %v1631_v36, %s6125_s28  ;;  %1640 = vrot.lane.b32.xlu0 %v1627_v2, %s6125_s28 }
 0x507   : > { %1646 = vrot.lane.b32.xlu1 %v1639_v0, %s6125_s28  ;;  %1644 = vrot.lane.b32.xlu0 %v1635_v23, %s6125_s28  ;;  %s10460_s28 = smov 54  }
 0x50b   : > { %1663 = vperm.xlu0 %5939, %v7024_v24  }
 0x56d   : > { %v7158_v42 = vpop.permute.xlu0 %1600  ;;  %v7162_v2 = vpop.permute.xlu1 %1602 }
 0x56e   : > { %10841 = vst [vmem:[#allocation100_spill] sm:$0xff] %v7158_v42  ;;  %10843 = vst [vmem:[#allocation102_spill] sm:$0xff] %v7162_v2 }
 0x571   : > { %v7160_v36 = vpop.permute.xlu0 %1604  ;;  %v7166_v58 = vpop.permute.xlu1 %1606 }
 0x572   : > { %10842 = vst [vmem:[#allocation101_spill] sm:$0xff] %v7160_v36  ;;  %10845 = vst [vmem:[#allocation104_spill] sm:$0xff] %v7166_v58 }
 0x575   : > { %v7164_v61 = vpop.permute.xlu0 %1640  ;;  %v1643_v23 = vpop.permute.xlu1 %1642 }
 0x576   : > { %10844 = vst [vmem:[#allocation103_spill] sm:$0xff] %v7164_v61  ;;  %v1657_v15 = vmul.f32 %v7164_v61, %v6481_v63  ;;  %v7175_v36 = vsel %vm1648_vm12, %v7164_v61, %v1643_v23 }
 0x577   : > { %10847 = vst [vmem:[#allocation106_spill] sm:$0xff] %v7175_v36  ;;  %v1658_v51 = vmul.f32 %v7175_v36, %v6688_v57 }
 0x579   : > { %v1645_v0 = vpop.permute.xlu0 %1644  ;;  %v1647_v42 = vpop.permute.xlu1 %1646 }
 0x57a   : > { %v7168_v56 = vsel %vm1648_vm12, %v1643_v23, %v1645_v0  ;;  %v7177_v52 = vmul.f32 0.0, %v1647_v42  ;;  %v7183_v9 = vsel %vm1648_vm12, %v1645_v0, %v1647_v42  ;;  %v5781_v23 = vld [vmem:[%s10249_s1 + $0x27] ss:$8 sm:$0xf]  ;;  %vm1232_vm12 = vcmask 900096  }
 0x57b   : > { %10846 = vst [vmem:[#allocation105_spill] sm:$0xff] %v7168_v56  ;;  %v1659_v28 = vmul.f32 %v7168_v56, %v6490_v8  ;;  %10849 = vst [vmem:[#allocation108_spill] sm:$0xff] %v7183_v9  ;;  %v1707_v42 = vrot.slane %v5781_v23, %v6276_v10 }
 0x57c   : > { %10848 = vst [vmem:[#allocation107_spill] sm:$0xff] %v7177_v52 }
 0x58a   : > { %v1664_v2 = vpop.permute.xlu0 %1663 }
 0x58b   : > { %v1668_v54 = vmul.f32 %v1664_v2, %v1659_v28  ;;  %v1666_v58 = vmul.f32 %v1664_v2, %v1657_v15  ;;  %v1670_v61 = vmul.f32 %v1664_v2, %v7177_v52  ;;  %v1667_v56 = vmul.f32 %v1664_v2, %v1658_v51 }
 0x58c   : > { %v1660_v15 = vmul.f32 %v7183_v9, %v6702_v37  ;;  %v1715_v51 = vrot.slane %v5781_v23, %v6267_v7 }
 0x58d   : > { %1680 = vrot.lane.b32.xlu0 %v1668_v54, %s10460_s28  ;;  %1676 = vrot.lane.b32.xlu1 %v1666_v58, %s10460_s28  ;;  %v1711_v54 = vrot.slane %v5781_v23, %v6285_v14  ;;  %v1719_v58 = vrot.slane %v5781_v23, %v6296_v17 }
 0x58e   : > { %v1669_v28 = vmul.f32 %v1664_v2, %v1660_v15 }
 0x591   : > { %1684 = vrot.lane.b32.xlu0 %v1670_v61, %s10460_s28  ;;  %1678 = vrot.lane.b32.xlu1 %v1667_v56, %s10460_s28  ;;  %v6129_v61 = vmov 16  }
 0x595   : > { %1682 = vrot.lane.b32.xlu1 %v1669_v28, %s10460_s28  ;;  %1722 = vrot.lane.b32.xlu0 %v1711_v54, %s6128_s23  ;;  %s6131_s28 = smov 8  }
 0x599   : > { %1720 = vrot.lane.b32.xlu1 %v1707_v42, %s6128_s23  ;;  %1726 = vrot.lane.b32.xlu0 %v1719_v58, %s6128_s23 }
 0x59d   : > { %1724 = vrot.lane.b32.xlu1 %v1715_v51, %s6128_s23  ;;  %s10476_s23 = smov 48  }
 0x5a1   : > { %1743 = vperm.xlu1 %5940, %v7024_v24  }
 0x5a5   : > { %5941 = vset.pattern.permute.xlu1 %v6129_v61 }
 0x5ff   : > { %v7199_v0 = vpop.permute.xlu1 %1676  ;;  %v7203_v56 = vpop.permute.xlu0 %1680 }
 0x600   : > { %10850 = vst [vmem:[#allocation109_spill] sm:$0xff] %v7199_v0  ;;  %10852 = vst [vmem:[#allocation111_spill] sm:$0xff] %v7203_v56 }
 0x603   : > { %v7201_v2 = vpop.permute.xlu1 %1678  ;;  %v7207_v54 = vpop.permute.xlu0 %1684 }
 0x604   : > { %10851 = vst [vmem:[#allocation110_spill] sm:$0xff] %v7201_v2  ;;  %10854 = vst [vmem:[#allocation113_spill] sm:$0xff] %v7207_v54 }
 0x607   : > { %v7205_v15 = vpop.permute.xlu1 %1682  ;;  %v1723_v42 = vpop.permute.xlu0 %1722 }
 0x608   : > { %10853 = vst [vmem:[#allocation112_spill] sm:$0xff] %v7205_v15 }
 0x60b   : > { %v7209_v28 = vpop.permute.xlu1 %1720  ;;  %v1727_v51 = vpop.permute.xlu0 %1726 }
 0x60c   : > { %10855 = vst [vmem:[#allocation114_spill] sm:$0xff] %v7209_v28  ;;  %v7212_v23 = vsel %vm1728_vm13, %v7209_v28, %v1723_v42  ;;  %v1737_v61 = vmul.f32 %v7209_v28, %v6481_v63 }
 0x60d   : > { %10856 = vst [vmem:[#allocation115_spill] sm:$0xff] %v7212_v23  ;;  %v1738_v9 = vmul.f32 %v7212_v23, %v6688_v57 }
 0x60f   : > { %v1725_v58 = vpop.permute.xlu1 %1724 }
 0x610   : > { %v7218_v52 = vsel %vm1728_vm13, %v1723_v42, %v1725_v58  ;;  %v7220_v36 = vsel %vm1728_vm13, %v1725_v58, %v1727_v51  ;;  %v5782_v42 = vld [vmem:[%s10249_s1 + $0x40] ss:$8 sm:$0xf]  ;;  %v7231_v58 = vmul.f32 0.0, %v1727_v51  ;;  %vm10722_vm13 = vcmask 506880  }
 0x611   : > { %10857 = vst [vmem:[#allocation116_spill] sm:$0xff] %v7218_v52  ;;  %10858 = vst [vmem:[#allocation117_spill] sm:$0xff] %v7220_v36  ;;  %v1739_v0 = vmul.f32 %v7218_v52, %v6490_v8  ;;  %v1740_v2 = vmul.f32 %v7220_v36, %v6702_v37 }
 0x612   : > { %10859 = vst [vmem:[#allocation118_spill] sm:$0xff] %v7231_v58 }
 0x620   : > { %v1744_v54 = vpop.permute.xlu1 %1743 }
 0x621   : > { %v1747_v15 = vmul.f32 %v1744_v54, %v1738_v9  ;;  %v1746_v56 = vmul.f32 %v1744_v54, %v1737_v61  ;;  %v1749_v28 = vmul.f32 %v1744_v54, %v1740_v2  ;;  %v1748_v9 = vmul.f32 %v1744_v54, %v1739_v0 }
 0x622   : > { %v1787_v61 = vrot.slane %v5782_v42, %v6276_v10  ;;  %v1750_v52 = vmul.f32 %v1744_v54, %v7231_v58  ;;  %v1799_v0 = vrot.slane %v5782_v42, %v6296_v17  ;;  %v6132_v2 = vmov 17  }
 0x623   : > { %1758 = vrot.lane.b32.xlu1 %v1747_v15, %s10476_s23  ;;  %1756 = vrot.lane.b32.xlu0 %v1746_v56, %s10476_s23  ;;  %v1795_v56 = vrot.slane %v5782_v42, %v6267_v7  ;;  %v1791_v15 = vrot.slane %v5782_v42, %v6285_v14 }
 0x627   : > { %1762 = vrot.lane.b32.xlu1 %v1749_v28, %s10476_s23  ;;  %1760 = vrot.lane.b32.xlu0 %v1748_v9, %s10476_s23 }
 0x62b   : > { %1800 = vrot.lane.b32.xlu1 %v1787_v61, %s6131_s28  ;;  %1764 = vrot.lane.b32.xlu0 %v1750_v52, %s10476_s23  ;;  %s6134_s23 = smov 9  }
 0x62f   : > { %1804 = vrot.lane.b32.xlu1 %v1795_v56, %s6131_s28  ;;  %1802 = vrot.lane.b32.xlu0 %v1791_v15, %s6131_s28 }
 0x633   : > { %1823 = vperm.xlu1 %5941, %v7024_v24   ;;  %1806 = vrot.lane.b32.xlu0 %v1799_v0, %s6131_s28  ;;  %s10692_s28 = smov 47  }
 0x637   : > { %5942 = vset.pattern.permute.xlu1 %v6132_v2 }
 0x695   : > { %v7242_v28 = vpop.permute.xlu0 %1756  ;;  %v7244_v54 = vpop.permute.xlu1 %1758 }
 0x696   : > { %10860 = vst [vmem:[#allocation119_spill] sm:$0xff] %v7242_v28  ;;  %10861 = vst [vmem:[#allocation120_spill] sm:$0xff] %v7244_v54 }
 0x699   : > { %v7246_v51 = vpop.permute.xlu0 %1760  ;;  %v7248_v52 = vpop.permute.xlu1 %1762 }
 0x69a   : > { %10862 = vst [vmem:[#allocation121_spill] sm:$0xff] %v7246_v51  ;;  %10863 = vst [vmem:[#allocation122_spill] sm:$0xff] %v7248_v52 }
 0x69d   : > { %v7250_v9 = vpop.permute.xlu0 %1764  ;;  %v7252_v61 = vpop.permute.xlu1 %1800 }
 0x69e   : > { %10864 = vst [vmem:[#allocation123_spill] sm:$0xff] %v7250_v9  ;;  %10865 = vst [vmem:[#allocation124_spill] sm:$0xff] %v7252_v61  ;;  %v1817_v2 = vmul.f32 %v7252_v61, %v6481_v63 }
 0x6a1   : > { %v1803_v56 = vpop.permute.xlu0 %1802  ;;  %v1805_v42 = vpop.permute.xlu1 %1804 }
 0x6a2   : > { %v7255_v15 = vsel %vm1808_vm14, %v7252_v61, %v1803_v56  ;;  %v7261_v36 = vsel %vm1808_vm14, %v1803_v56, %v1805_v42  ;;  %v5783_v56 = vld [vmem:[%s10249_s1 + $0x41] ss:$8 sm:$0xf] }
 0x6a3   : > { %10866 = vst [vmem:[#allocation125_spill] sm:$0xff] %v7255_v15  ;;  %v1818_v58 = vmul.f32 %v7255_v15, %v6688_v57  ;;  %10867 = vst [vmem:[#allocation126_spill] sm:$0xff] %v7261_v36  ;;  %v1819_v28 = vmul.f32 %v7261_v36, %v6490_v8 }
 0x6a5   : > { %v1807_v0 = vpop.permute.xlu0 %1806 }
 0x6a6   : > { %v7263_v23 = vsel %vm1808_vm14, %v1805_v42, %v1807_v0  ;;  %v7274_v42 = vmul.f32 0.0, %v1807_v0  ;;  %vm1686_vm14 = vcmask 441344  }
 0x6a7   : > { %10868 = vst [vmem:[#allocation127_spill] sm:$0xff] %v7263_v23  ;;  %v1820_v54 = vmul.f32 %v7263_v23, %v6702_v37 }
 0x6a8   : > { %10869 = vst [vmem:[#allocation128_spill] sm:$0xff] %v7274_v42 }
 0x6b2   : > { %v1824_v9 = vpop.permute.xlu1 %1823 }
 0x6b3   : > { %v1826_v52 = vmul.f32 %v1824_v9, %v1817_v2  ;;  %v1827_v51 = vmul.f32 %v1824_v9, %v1818_v58  ;;  %v1828_v61 = vmul.f32 %v1824_v9, %v1819_v28  ;;  %v1829_v2 = vmul.f32 %v1824_v9, %v1820_v54 }
 0x6b4   : > { %v1867_v58 = vrot.slane %v5783_v56, %v6276_v10  ;;  %v1830_v36 = vmul.f32 %v1824_v9, %v7274_v42  ;;  %v1879_v28 = vrot.slane %v5783_v56, %v6296_v17  ;;  %v6135_v54 = vmov 18  }
 0x6b5   : > { %1836 = vrot.lane.b32.xlu0 %v1826_v52, %s10692_s28  ;;  %1838 = vrot.lane.b32.xlu1 %v1827_v51, %s10692_s28  ;;  %v1871_v51 = vrot.slane %v5783_v56, %v6285_v14  ;;  %v1875_v52 = vrot.slane %v5783_v56, %v6267_v7 }
 0x6b9   : > { %1840 = vrot.lane.b32.xlu0 %v1828_v61, %s10692_s28  ;;  %1842 = vrot.lane.b32.xlu1 %v1829_v2, %s10692_s28  ;;  %v6136_v61 = vmov 19  }
 0x6ba   : > { %5944 = vset.pattern.permute.xlu0 %v6136_v61 }
 0x6bd   : > { %1844 = vrot.lane.b32.xlu0 %v1830_v36, %s10692_s28  ;;  %1880 = vrot.lane.b32.xlu1 %v1867_v58, %s6134_s23 }
 0x6c1   : > { %1882 = vrot.lane.b32.xlu0 %v1871_v51, %s6134_s23  ;;  %1884 = vrot.lane.b32.xlu1 %v1875_v52, %s6134_s23 }
 0x6c5   : > { %1886 = vrot.lane.b32.xlu0 %v1879_v28, %s6134_s23  ;;  %1903 = vperm.xlu1 %5942, %v7024_v24   ;;  %s10615_s23 = smov 46  }
 0x6c9   : > { %5943 = vset.pattern.permute.xlu1 %v6135_v54 }
 0x727   : > { %v7285_v9 = vpop.permute.xlu0 %1836  ;;  %v7287_v36 = vpop.permute.xlu1 %1838 }
 0x728   : > { %10870 = vst [vmem:[#allocation129_spill] sm:$0xff] %v7285_v9  ;;  %10871 = vst [vmem:[#allocation130_spill] sm:$0xff] %v7287_v36 }
 0x72b   : > { %v7289_v0 = vpop.permute.xlu0 %1840  ;;  %v7291_v2 = vpop.permute.xlu1 %1842 }
 0x72c   : > { %10872 = vst [vmem:[#allocation131_spill] sm:$0xff] %v7289_v0  ;;  %10873 = vst [vmem:[#allocation132_spill] sm:$0xff] %v7291_v2 }
 0x72f   : > { %v7293_v58 = vpop.permute.xlu0 %1844  ;;  %v7295_v51 = vpop.permute.xlu1 %1880 }
 0x730   : > { %10874 = vst [vmem:[#allocation133_spill] sm:$0xff] %v7293_v58  ;;  %10875 = vst [vmem:[#allocation134_spill] sm:$0xff] %v7295_v51  ;;  %v1897_v61 = vmul.f32 %v7295_v51, %v6481_v63 }
 0x733   : > { %v1883_v56 = vpop.permute.xlu0 %1882  ;;  %v1885_v52 = vpop.permute.xlu1 %1884 }
 0x734   : > { %v7298_v28 = vsel %vm1888_vm15, %v7295_v51, %v1883_v56  ;;  %v7304_v23 = vsel %vm1888_vm15, %v1883_v56, %v1885_v52  ;;  %v5784_v56 = vld [vmem:[%s10249_s1 + $0x42] ss:$8 sm:$0xf] }
 0x735   : > { %10876 = vst [vmem:[#allocation135_spill] sm:$0xff] %v7298_v28  ;;  %v1898_v42 = vmul.f32 %v7298_v28, %v6688_v57  ;;  %10877 = vst [vmem:[#allocation136_spill] sm:$0xff] %v7304_v23  ;;  %v1899_v9 = vmul.f32 %v7304_v23, %v6490_v8 }
 0x737   : > { %v1887_v54 = vpop.permute.xlu0 %1886 }
 0x738   : > { %v7306_v15 = vsel %vm1888_vm15, %v1885_v52, %v1887_v54  ;;  %v7317_v52 = vmul.f32 0.0, %v1887_v54  ;;  %vm1766_vm15 = vcmask 392192  }
 0x739   : > { %10878 = vst [vmem:[#allocation137_spill] sm:$0xff] %v7306_v15  ;;  %v1900_v36 = vmul.f32 %v7306_v15, %v6702_v37 }
 0x73a   : > { %10879 = vst [vmem:[#allocation138_spill] sm:$0xff] %v7317_v52 }
 0x744   : > { %v1904_v58 = vpop.permute.xlu1 %1903 }
 0x745   : > { %v1906_v2 = vmul.f32 %v1904_v58, %v1897_v61  ;;  %v1907_v0 = vmul.f32 %v1904_v58, %v1898_v42  ;;  %v1908_v51 = vmul.f32 %v1904_v58, %v1899_v9  ;;  %v1909_v61 = vmul.f32 %v1904_v58, %v1900_v36  ;;  %v5785_v36 = vld [vmem:[%s10249_s1 + $0x43] ss:$8 sm:$0xf] }
 0x746   : > { %v1947_v42 = vrot.slane %v5784_v56, %v6276_v10  ;;  %v1910_v23 = vmul.f32 %v1904_v58, %v7317_v52  ;;  %v1959_v9 = vrot.slane %v5784_v56, %v6296_v17  ;;  %v2005_v58 = vrot.slane %v5785_v36, %v6285_v14 }
 0x747   : > { %1916 = vrot.lane.b32.xlu0 %v1906_v2, %s10615_s23  ;;  %1918 = vrot.lane.b32.xlu1 %v1907_v0, %s10615_s23  ;;  %v1951_v0 = vrot.slane %v5784_v56, %v6285_v14  ;;  %v1955_v2 = vrot.slane %v5784_v56, %v6267_v7  ;;  %v2013_v54 = vrot.slane %v5785_v36, %v6296_v17  ;;  %v10880_v56 = vmov 1  }
 0x74b   : > { %1920 = vrot.lane.b32.xlu0 %v1908_v51, %s10615_s23  ;;  %1922 = vrot.lane.b32.xlu1 %v1909_v61, %s10615_s23  ;;  %v2009_v51 = vrot.slane %v5785_v36, %v6267_v7  ;;  %v6138_v61 = vmov 20  }
 0x74f   : > { %1924 = vrot.lane.b32.xlu0 %v1910_v23, %s10615_s23  ;;  %1960 = vrot.lane.b32.xlu1 %v1947_v42, %s10694_s19  ;;  %v2001_v23 = vrot.slane %v5785_v36, %v6276_v10  ;;  %s11129_s23 = smov 62  }
 0x753   : > { %1962 = vrot.lane.b32.xlu0 %v1951_v0, %s10694_s19  ;;  %1964 = vrot.lane.b32.xlu1 %v1955_v2, %s10694_s19 }
 0x757   : > { %1966 = vrot.lane.b32.xlu0 %v1959_v9, %s10694_s19  ;;  %1982 = vperm.xlu1 %5943, %v7024_v24  }
 0x75b   : > { %2014 = vrot.lane.b32.xlu0 %v2001_v23, %s10698_s24  ;;  %2016 = vrot.lane.b32.xlu1 %v2005_v58, %s10698_s24 }
 0x75c   : > { %5945 = vset.pattern.permute.xlu1 %v6138_v61 }
 0x75f   : > { %2018 = vrot.lane.b32.xlu0 %v2009_v51, %s10698_s24  ;;  %2020 = vrot.lane.b32.xlu1 %v2013_v54, %s10698_s24 }
 0x763   : > { %2036 = vperm.xlu0 %5944, %v7024_v24  }
 0x767   : > { %5953 = vset.pattern.permute.xlu0 %v10880_v56 }
 0x7b9   : > { %v7345_v42 = vpop.permute.xlu0 %1916  ;;  %v7349_v2 = vpop.permute.xlu1 %1918 }
 0x7ba   : > { %10881 = vst [vmem:[#allocation139_spill] sm:$0xff] %v7345_v42  ;;  %10883 = vst [vmem:[#allocation141_spill] sm:$0xff] %v7349_v2 }
 0x7bd   : > { %v7347_v0 = vpop.permute.xlu0 %1920  ;;  %v7353_v23 = vpop.permute.xlu1 %1922 }
 0x7be   : > { %10882 = vst [vmem:[#allocation140_spill] sm:$0xff] %v7347_v0  ;;  %10885 = vst [vmem:[#allocation143_spill] sm:$0xff] %v7353_v23 }
 0x7c1   : > { %v7351_v9 = vpop.permute.xlu0 %1924  ;;  %v7357_v58 = vpop.permute.xlu1 %1960 }
 0x7c2   : > { %10884 = vst [vmem:[#allocation142_spill] sm:$0xff] %v7351_v9  ;;  %10887 = vst [vmem:[#allocation145_spill] sm:$0xff] %v7357_v58 }
 0x7c5   : > { %v7355_v36 = vpop.permute.xlu0 %1962  ;;  %v7361_v54 = vpop.permute.xlu1 %1964 }
 0x7c6   : > { %10886 = vst [vmem:[#allocation144_spill] sm:$0xff] %v7355_v36  ;;  %10889 = vst [vmem:[#allocation147_spill] sm:$0xff] %v7361_v54 }
 0x7c9   : > { %v7359_v51 = vpop.permute.xlu0 %1966 }
 0x7ca   : > { %10888 = vst [vmem:[#allocation146_spill] sm:$0xff] %v7359_v51 }
 0x7cd   : > { %v7365_v61 = vpop.permute.xlu0 %2014 }
 0x7ce   : > { %10891 = vst [vmem:[#allocation149_spill] sm:$0xff] %v7365_v61  ;;  %v2030_v42 = vmul.f32 %v7365_v61, %v6481_v63 }
 0x7d1   : > { %v2019_v28 = vpop.permute.xlu0 %2018 }
 0x7d6   : > { %v7363_v52 = vpop.permute.xlu1 %1982 }
 0x7d7   : > { %10890 = vst [vmem:[#allocation148_spill] sm:$0xff] %v7363_v52 }
 0x7da   : > { %v2017_v15 = vpop.permute.xlu1 %2016 }
 0x7db   : > { %v7368_v0 = vsel %vm10625_vm0, %v2017_v15, %v2019_v28  ;;  %v7376_v9 = vsel %vm10625_vm0, %v7365_v61, %v2017_v15  ;;  %v5786_v15 = vld [vmem:[%s10249_s1 + $0x44] ss:$8 sm:$0xf] }
 0x7dc   : > { %10892 = vst [vmem:[#allocation150_spill] sm:$0xff] %v7368_v0  ;;  %v2032_v2 = vmul.f32 %v7368_v0, %v6490_v8  ;;  %10893 = vst [vmem:[#allocation151_spill] sm:$0xff] %v7376_v9  ;;  %v2031_v3 = vmul.f32 %v7376_v9, %v6688_v57 }
 0x7de   : > { %v2021_v23 = vpop.permute.xlu1 %2020 }
 0x7df   : > { %v7378_v52 = vmul.f32 0.0, %v2021_v23  ;;  %v7381_v36 = vsel %vm10625_vm0, %v2019_v28, %v2021_v23  ;;  %v2083_v28 = vrot.slane %v5786_v15, %v6285_v14 }
 0x7e0   : > { %10895 = vst [vmem:[#allocation153_spill] sm:$0xff] %v7381_v36  ;;  %v2033_v61 = vmul.f32 %v7381_v36, %v6702_v37 }
 0x7e1   : > { %10894 = vst [vmem:[#allocation152_spill] sm:$0xff] %v7378_v52 }
 0x7e2   : > { %v2037_v51 = vpop.permute.xlu0 %2036 }
 0x7e3   : > { %v2041_v54 = vmul.f32 %v2037_v51, %v2032_v2  ;;  %v2039_v58 = vmul.f32 %v2037_v51, %v2030_v42  ;;  %v2043_v2 = vmul.f32 %v2037_v51, %v7378_v52  ;;  %v2040_v42 = vmul.f32 %v2037_v51, %v2031_v3 }
 0x7e4   : > { %v2042_v23 = vmul.f32 %v2037_v51, %v2033_v61  ;;  %v2087_v3 = vrot.slane %v5786_v15, %v6267_v7 }
 0x7e5   : > { %2053 = vrot.lane.b32.xlu0 %v2041_v54, %s6107_s13  ;;  %2049 = vrot.lane.b32.xlu1 %v2039_v58, %s6107_s13  ;;  %v2079_v58 = vrot.slane %v5786_v15, %v6276_v10  ;;  %v2091_v54 = vrot.slane %v5786_v15, %v6296_v17 }
 0x7e9   : > { %2057 = vrot.lane.b32.xlu0 %v2043_v2, %s6107_s13  ;;  %2051 = vrot.lane.b32.xlu1 %v2040_v42, %s6107_s13  ;;  %v6139_v2 = vmov 21  }
 0x7ed   : > { %2055 = vrot.lane.b32.xlu1 %v2042_v23, %s6107_s13  ;;  %2094 = vrot.lane.b32.xlu0 %v2083_v28, %s6097_s27 }
 0x7f1   : > { %2092 = vrot.lane.b32.xlu1 %v2079_v58, %s6097_s27  ;;  %2098 = vrot.lane.b32.xlu0 %v2091_v54, %s6097_s27 }
 0x7f5   : > { %2096 = vrot.lane.b32.xlu1 %v2087_v3, %s6097_s27  ;;  %s11174_s27 = smov 48  }
 0x7f9   : > { %2114 = vperm.xlu1 %5945, %v7024_v24  }
 0x7fd   : > { %5946 = vset.pattern.permute.xlu1 %v6139_v2 }
 0x857   : > { %v7405_v51 = vpop.permute.xlu1 %2049  ;;  %v7409_v42 = vpop.permute.xlu0 %2053 }
 0x858   : > { %10896 = vst [vmem:[#allocation154_spill] sm:$0xff] %v7405_v51  ;;  %10898 = vst [vmem:[#allocation156_spill] sm:$0xff] %v7409_v42 }
 0x85b   : > { %v7407_v61 = vpop.permute.xlu1 %2051  ;;  %v7413_v23 = vpop.permute.xlu0 %2057 }
 0x85c   : > { %10897 = vst [vmem:[#allocation155_spill] sm:$0xff] %v7407_v61  ;;  %10900 = vst [vmem:[#allocation158_spill] sm:$0xff] %v7413_v23 }
 0x85f   : > { %v7411_v28 = vpop.permute.xlu1 %2055  ;;  %v2095_v54 = vpop.permute.xlu0 %2094 }
 0x860   : > { %10899 = vst [vmem:[#allocation157_spill] sm:$0xff] %v7411_v28 }
 0x863   : > { %v7415_v58 = vpop.permute.xlu1 %2092  ;;  %v2099_v36 = vpop.permute.xlu0 %2098 }
 0x864   : > { %10901 = vst [vmem:[#allocation159_spill] sm:$0xff] %v7415_v58  ;;  %v7419_v15 = vsel %vm714_vm1, %v7415_v58, %v2095_v54  ;;  %v2108_v2 = vmul.f32 %v7415_v58, %v6481_v63  ;;  %v7440_v58 = vmul.f32 0.0, %v2099_v36 }
 0x865   : > { %10902 = vst [vmem:[#allocation160_spill] sm:$0xff] %v7419_v15  ;;  %v2109_v52 = vmul.f32 %v7419_v15, %v6688_v57 }
 0x866   : > { %10905 = vst [vmem:[#allocation163_spill] sm:$0xff] %v7440_v58 }
 0x867   : > { %v2097_v3 = vpop.permute.xlu1 %2096 }
 0x868   : > { %v7426_v9 = vsel %vm714_vm1, %v2095_v54, %v2097_v3  ;;  %v7429_v0 = vsel %vm714_vm1, %v2097_v3, %v2099_v36  ;;  %v5787_v54 = vld [vmem:[%s10249_s1 + $0x45] ss:$8 sm:$0xf]  ;;  %vm578_vm1 = vcmask 449536  }
 0x869   : > { %10903 = vst [vmem:[#allocation161_spill] sm:$0xff] %v7426_v9  ;;  %10904 = vst [vmem:[#allocation162_spill] sm:$0xff] %v7429_v0  ;;  %v2110_v51 = vmul.f32 %v7426_v9, %v6490_v8  ;;  %v2111_v61 = vmul.f32 %v7429_v0, %v6702_v37  ;;  %v2169_v36 = vrot.slane %v5787_v54, %v6296_v17 }
 0x878   : > { %v2115_v23 = vpop.permute.xlu1 %2114 }
 0x879   : > { %v2118_v28 = vmul.f32 %v2115_v23, %v2109_v52  ;;  %v2117_v42 = vmul.f32 %v2115_v23, %v2108_v2  ;;  %v2120_v3 = vmul.f32 %v2115_v23, %v2111_v61  ;;  %v2119_v15 = vmul.f32 %v2115_v23, %v2110_v51 }
 0x87a   : > { %v2157_v52 = vrot.slane %v5787_v54, %v6276_v10  ;;  %v2121_v2 = vmul.f32 %v2115_v23, %v7440_v58  ;;  %v6140_v51 = vmov 22  }
 0x87b   : > { %2129 = vrot.lane.b32.xlu1 %v2118_v28, %s6108_s15  ;;  %2127 = vrot.lane.b32.xlu0 %v2117_v42, %s6108_s15  ;;  %v2165_v42 = vrot.slane %v5787_v54, %v6267_v7  ;;  %v2161_v28 = vrot.slane %v5787_v54, %v6285_v14 }
 0x87f   : > { %2133 = vrot.lane.b32.xlu1 %v2120_v3, %s6108_s15  ;;  %2131 = vrot.lane.b32.xlu0 %v2119_v15, %s6108_s15 }
 0x883   : > { %2170 = vrot.lane.b32.xlu1 %v2157_v52, %s10700_s11  ;;  %2135 = vrot.lane.b32.xlu0 %v2121_v2, %s6108_s15 }
 0x887   : > { %2174 = vrot.lane.b32.xlu1 %v2165_v42, %s10700_s11  ;;  %2172 = vrot.lane.b32.xlu0 %v2161_v28, %s10700_s11 }
 0x88b   : > { %2192 = vperm.xlu1 %5946, %v7024_v24   ;;  %2176 = vrot.lane.b32.xlu0 %v2169_v36, %s10700_s11 }
 0x88f   : > { %5947 = vset.pattern.permute.xlu1 %v6140_v51 }
 0x8ed   : > { %v7455_v61 = vpop.permute.xlu0 %2127  ;;  %v7457_v23 = vpop.permute.xlu1 %2129 }
 0x8ee   : > { %10906 = vst [vmem:[#allocation164_spill] sm:$0xff] %v7455_v61  ;;  %10907 = vst [vmem:[#allocation165_spill] sm:$0xff] %v7457_v23 }
 0x8f1   : > { %v7459_v15 = vpop.permute.xlu0 %2131  ;;  %v7461_v3 = vpop.permute.xlu1 %2133 }
 0x8f2   : > { %10908 = vst [vmem:[#allocation166_spill] sm:$0xff] %v7459_v15  ;;  %10909 = vst [vmem:[#allocation167_spill] sm:$0xff] %v7461_v3 }
 0x8f5   : > { %v7463_v52 = vpop.permute.xlu0 %2135  ;;  %v7465_v2 = vpop.permute.xlu1 %2170 }
 0x8f6   : > { %10910 = vst [vmem:[#allocation168_spill] sm:$0xff] %v7463_v52  ;;  %10911 = vst [vmem:[#allocation169_spill] sm:$0xff] %v7465_v2  ;;  %v2186_v51 = vmul.f32 %v7465_v2, %v6481_v63 }
 0x8f9   : > { %v2173_v42 = vpop.permute.xlu0 %2172  ;;  %v2175_v54 = vpop.permute.xlu1 %2174 }
 0x8fa   : > { %v7469_v28 = vsel %vm10720_vm2, %v7465_v2, %v2173_v42  ;;  %v7476_v9 = vsel %vm10720_vm2, %v2173_v42, %v2175_v54  ;;  %v5788_v42 = vld [vmem:[%s10249_s1 + $0x46] ss:$8 sm:$0xf] }
 0x8fb   : > { %10912 = vst [vmem:[#allocation170_spill] sm:$0xff] %v7469_v28  ;;  %v2187_v58 = vmul.f32 %v7469_v28, %v6688_v57  ;;  %10913 = vst [vmem:[#allocation171_spill] sm:$0xff] %v7476_v9  ;;  %v2188_v61 = vmul.f32 %v7476_v9, %v6490_v8 }
 0x8fd   : > { %v2177_v36 = vpop.permute.xlu0 %2176 }
 0x8fe   : > { %v7479_v0 = vsel %vm10720_vm2, %v2175_v54, %v2177_v36  ;;  %v7490_v2 = vmul.f32 0.0, %v2177_v36 }
 0x8ff   : > { %10914 = vst [vmem:[#allocation172_spill] sm:$0xff] %v7479_v0  ;;  %v2189_v23 = vmul.f32 %v7479_v0, %v6702_v37 }
 0x900   : > { %10915 = vst [vmem:[#allocation173_spill] sm:$0xff] %v7490_v2 }
 0x90a   : > { %v2193_v52 = vpop.permute.xlu1 %2192 }
 0x90b   : > { %v2195_v3 = vmul.f32 %v2193_v52, %v2186_v51  ;;  %v2196_v15 = vmul.f32 %v2193_v52, %v2187_v58  ;;  %v2197_v54 = vmul.f32 %v2193_v52, %v2188_v61  ;;  %v2198_v28 = vmul.f32 %v2193_v52, %v2189_v23 }
 0x90c   : > { %v2235_v58 = vrot.slane %v5788_v42, %v6276_v10  ;;  %v2199_v51 = vmul.f32 %v2193_v52, %v7490_v2  ;;  %v2247_v61 = vrot.slane %v5788_v42, %v6296_v17  ;;  %v6141_v23 = vmov 23  }
 0x90d   : > { %2205 = vrot.lane.b32.xlu0 %v2195_v3, %s6109_s16  ;;  %2207 = vrot.lane.b32.xlu1 %v2196_v15, %s6109_s16  ;;  %v2239_v15 = vrot.slane %v5788_v42, %v6285_v14  ;;  %v2243_v3 = vrot.slane %v5788_v42, %v6267_v7 }
 0x911   : > { %2209 = vrot.lane.b32.xlu0 %v2197_v54, %s6109_s16  ;;  %2211 = vrot.lane.b32.xlu1 %v2198_v28, %s6109_s16 }
 0x915   : > { %2213 = vrot.lane.b32.xlu0 %v2199_v51, %s6109_s16  ;;  %2248 = vrot.lane.b32.xlu1 %v2235_v58, %s6099_s14 }
 0x919   : > { %2250 = vrot.lane.b32.xlu0 %v2239_v15, %s6099_s14  ;;  %2252 = vrot.lane.b32.xlu1 %v2243_v3, %s6099_s14 }
 0x91d   : > { %2254 = vrot.lane.b32.xlu0 %v2247_v61, %s6099_s14  ;;  %2270 = vperm.xlu1 %5947, %v7024_v24  }
 0x921   : > { %5948 = vset.pattern.permute.xlu1 %v6141_v23 }
 0x97f   : > { %v7505_v52 = vpop.permute.xlu0 %2205  ;;  %v7507_v28 = vpop.permute.xlu1 %2207 }
 0x980   : > { %10916 = vst [vmem:[#allocation174_spill] sm:$0xff] %v7505_v52  ;;  %10917 = vst [vmem:[#allocation175_spill] sm:$0xff] %v7507_v28 }
 0x983   : > { %v7509_v36 = vpop.permute.xlu0 %2209  ;;  %v7511_v54 = vpop.permute.xlu1 %2211 }
 0x984   : > { %10918 = vst [vmem:[#allocation176_spill] sm:$0xff] %v7509_v36  ;;  %10919 = vst [vmem:[#allocation177_spill] sm:$0xff] %v7511_v54 }
 0x987   : > { %v7513_v58 = vpop.permute.xlu0 %2213  ;;  %v7515_v51 = vpop.permute.xlu1 %2248 }
 0x988   : > { %10920 = vst [vmem:[#allocation178_spill] sm:$0xff] %v7513_v58  ;;  %10921 = vst [vmem:[#allocation179_spill] sm:$0xff] %v7515_v51  ;;  %v2264_v23 = vmul.f32 %v7515_v51, %v6481_v63 }
 0x98b   : > { %v2251_v15 = vpop.permute.xlu0 %2250  ;;  %v2253_v42 = vpop.permute.xlu1 %2252 }
 0x98c   : > { %v7519_v3 = vsel %vm10719_vm3, %v7515_v51, %v2251_v15  ;;  %v7526_v9 = vsel %vm10719_vm3, %v2251_v15, %v2253_v42  ;;  %v5789_v15 = vld [vmem:[%s10249_s1 + $0x47] ss:$8 sm:$0xf] }
 0x98d   : > { %10922 = vst [vmem:[#allocation180_spill] sm:$0xff] %v7519_v3  ;;  %v2265_v2 = vmul.f32 %v7519_v3, %v6688_v57  ;;  %10923 = vst [vmem:[#allocation181_spill] sm:$0xff] %v7526_v9  ;;  %v2266_v52 = vmul.f32 %v7526_v9, %v6490_v8 }
 0x98f   : > { %v2255_v61 = vpop.permute.xlu0 %2254 }
 0x990   : > { %v7529_v0 = vsel %vm10719_vm3, %v2253_v42, %v2255_v61  ;;  %v7540_v51 = vmul.f32 0.0, %v2255_v61 }
 0x991   : > { %10924 = vst [vmem:[#allocation182_spill] sm:$0xff] %v7529_v0  ;;  %v2267_v28 = vmul.f32 %v7529_v0, %v6702_v37 }
 0x992   : > { %10925 = vst [vmem:[#allocation183_spill] sm:$0xff] %v7540_v51 }
 0x99c   : > { %v2271_v58 = vpop.permute.xlu1 %2270 }
 0x99d   : > { %v2273_v54 = vmul.f32 %v2271_v58, %v2264_v23  ;;  %v2274_v36 = vmul.f32 %v2271_v58, %v2265_v2  ;;  %v2275_v42 = vmul.f32 %v2271_v58, %v2266_v52  ;;  %v2276_v3 = vmul.f32 %v2271_v58, %v2267_v28 }
 0x99e   : > { %v2313_v2 = vrot.slane %v5789_v15, %v6276_v10  ;;  %v2277_v23 = vmul.f32 %v2271_v58, %v7540_v51  ;;  %v2325_v52 = vrot.slane %v5789_v15, %v6296_v17  ;;  %v6142_v28 = vmov 24  }
 0x99f   : > { %2283 = vrot.lane.b32.xlu0 %v2273_v54, %s6110_s18  ;;  %2285 = vrot.lane.b32.xlu1 %v2274_v36, %s6110_s18  ;;  %v2317_v36 = vrot.slane %v5789_v15, %v6285_v14  ;;  %v2321_v54 = vrot.slane %v5789_v15, %v6267_v7 }
 0x9a3   : > { %2287 = vrot.lane.b32.xlu0 %v2275_v42, %s6110_s18  ;;  %2289 = vrot.lane.b32.xlu1 %v2276_v3, %s6110_s18 }
 0x9a7   : > { %2291 = vrot.lane.b32.xlu0 %v2277_v23, %s6110_s18  ;;  %2326 = vrot.lane.b32.xlu1 %v2313_v2, %s6100_s17 }
 0x9ab   : > { %2328 = vrot.lane.b32.xlu0 %v2317_v36, %s6100_s17  ;;  %2330 = vrot.lane.b32.xlu1 %v2321_v54, %s6100_s17 }
 0x9af   : > { %2332 = vrot.lane.b32.xlu0 %v2325_v52, %s6100_s17  ;;  %2348 = vperm.xlu1 %5948, %v7024_v24   ;;  %s11163_s17 = smov 54  }
 0x9b3   : > { %5949 = vset.pattern.permute.xlu1 %v6142_v28 }
 0xa11   : > { %v7555_v58 = vpop.permute.xlu0 %2283  ;;  %v7557_v3 = vpop.permute.xlu1 %2285 }
 0xa12   : > { %10926 = vst [vmem:[#allocation184_spill] sm:$0xff] %v7555_v58  ;;  %10927 = vst [vmem:[#allocation185_spill] sm:$0xff] %v7557_v3 }
 0xa15   : > { %v7559_v61 = vpop.permute.xlu0 %2287  ;;  %v7561_v42 = vpop.permute.xlu1 %2289 }
 0xa16   : > { %10928 = vst [vmem:[#allocation186_spill] sm:$0xff] %v7559_v61  ;;  %10929 = vst [vmem:[#allocation187_spill] sm:$0xff] %v7561_v42 }
 0xa19   : > { %v7563_v2 = vpop.permute.xlu0 %2291  ;;  %v7565_v23 = vpop.permute.xlu1 %2326 }
 0xa1a   : > { %10930 = vst [vmem:[#allocation188_spill] sm:$0xff] %v7563_v2  ;;  %10931 = vst [vmem:[#allocation189_spill] sm:$0xff] %v7565_v23  ;;  %v2342_v28 = vmul.f32 %v7565_v23, %v6481_v63 }
 0xa1d   : > { %v2329_v36 = vpop.permute.xlu0 %2328  ;;  %v2331_v15 = vpop.permute.xlu1 %2330 }
 0xa1e   : > { %v7569_v54 = vsel %vm954_vm4, %v7565_v23, %v2329_v36  ;;  %v7576_v9 = vsel %vm954_vm4, %v2329_v36, %v2331_v15  ;;  %v5790_v36 = vld [vmem:[%s10249_s1 + $0x60] ss:$8 sm:$0xf] }
 0xa1f   : > { %10932 = vst [vmem:[#allocation190_spill] sm:$0xff] %v7569_v54  ;;  %v2343_v51 = vmul.f32 %v7569_v54, %v6688_v57  ;;  %10933 = vst [vmem:[#allocation191_spill] sm:$0xff] %v7576_v9  ;;  %v2344_v58 = vmul.f32 %v7576_v9, %v6490_v8 }
 0xa21   : > { %v2333_v52 = vpop.permute.xlu0 %2332 }
 0xa22   : > { %v7579_v0 = vsel %vm954_vm4, %v2331_v15, %v2333_v52  ;;  %v7590_v23 = vmul.f32 0.0, %v2333_v52  ;;  %vm752_vm4 = vcmask 1031168  }
 0xa23   : > { %10934 = vst [vmem:[#allocation192_spill] sm:$0xff] %v7579_v0  ;;  %v2345_v3 = vmul.f32 %v7579_v0, %v6702_v37 }
 0xa24   : > { %10935 = vst [vmem:[#allocation193_spill] sm:$0xff] %v7590_v23 }
 0xa2e   : > { %v2349_v2 = vpop.permute.xlu1 %2348 }
 0xa2f   : > { %v2351_v61 = vmul.f32 %v2349_v2, %v2342_v28  ;;  %v2352_v42 = vmul.f32 %v2349_v2, %v2343_v51  ;;  %v2353_v15 = vmul.f32 %v2349_v2, %v2344_v58  ;;  %v2354_v54 = vmul.f32 %v2349_v2, %v2345_v3 }
 0xa30   : > { %v2391_v51 = vrot.slane %v5790_v36, %v6276_v10  ;;  %v2355_v28 = vmul.f32 %v2349_v2, %v7590_v23  ;;  %v2403_v58 = vrot.slane %v5790_v36, %v6296_v17  ;;  %v6143_v3 = vmov 25  }
 0xa31   : > { %2361 = vrot.lane.b32.xlu0 %v2351_v61, %s6111_s20  ;;  %2363 = vrot.lane.b32.xlu1 %v2352_v42, %s6111_s20  ;;  %v2395_v61 = vrot.slane %v5790_v36, %v6285_v14  ;;  %v2399_v42 = vrot.slane %v5790_v36, %v6267_v7 }
 0xa35   : > { %2365 = vrot.lane.b32.xlu0 %v2353_v15, %s6111_s20  ;;  %2367 = vrot.lane.b32.xlu1 %v2354_v54, %s6111_s20 }
 0xa39   : > { %2369 = vrot.lane.b32.xlu0 %v2355_v28, %s6111_s20  ;;  %2404 = vrot.lane.b32.xlu1 %v2391_v51, %s6101_s21 }
 0xa3d   : > { %2406 = vrot.lane.b32.xlu0 %v2395_v61, %s6101_s21  ;;  %2408 = vrot.lane.b32.xlu1 %v2399_v42, %s6101_s21 }
 0xa41   : > { %2410 = vrot.lane.b32.xlu0 %v2403_v58, %s6101_s21  ;;  %2426 = vperm.xlu1 %5949, %v7024_v24   ;;  %s11189_s21 = smov 46  }
 0xa45   : > { %5950 = vset.pattern.permute.xlu1 %v6143_v3 }
 0xaa3   : > { %v7605_v2 = vpop.permute.xlu0 %2361  ;;  %v7607_v54 = vpop.permute.xlu1 %2363 }
 0xaa4   : > { %10936 = vst [vmem:[#allocation194_spill] sm:$0xff] %v7605_v2  ;;  %10937 = vst [vmem:[#allocation195_spill] sm:$0xff] %v7607_v54 }
 0xaa7   : > { %v7609_v52 = vpop.permute.xlu0 %2365  ;;  %v7611_v15 = vpop.permute.xlu1 %2367 }
 0xaa8   : > { %10938 = vst [vmem:[#allocation196_spill] sm:$0xff] %v7609_v52  ;;  %10939 = vst [vmem:[#allocation197_spill] sm:$0xff] %v7611_v15 }
 0xaab   : > { %v7613_v51 = vpop.permute.xlu0 %2369  ;;  %v7615_v28 = vpop.permute.xlu1 %2404 }
 0xaac   : > { %10940 = vst [vmem:[#allocation198_spill] sm:$0xff] %v7613_v51  ;;  %10941 = vst [vmem:[#allocation199_spill] sm:$0xff] %v7615_v28  ;;  %v2420_v58 = vmul.f32 %v7615_v28, %v6481_v63 }
 0xaaf   : > { %v2407_v61 = vpop.permute.xlu0 %2406  ;;  %v2409_v36 = vpop.permute.xlu1 %2408 }
 0xab0   : > { %v7619_v42 = vsel %vm1034_vm5, %v7615_v28, %v2407_v61  ;;  %v7626_v23 = vsel %vm1034_vm5, %v2407_v61, %v2409_v36  ;;  %v5791_v61 = vld [vmem:[%s10249_s1 + $0x61] ss:$8 sm:$0xf] }
 0xab1   : > { %10942 = vst [vmem:[#allocation200_spill] sm:$0xff] %v7619_v42  ;;  %v2421_v3 = vmul.f32 %v7619_v42, %v6688_v57  ;;  %10943 = vst [vmem:[#allocation201_spill] sm:$0xff] %v7626_v23  ;;  %v2422_v15 = vmul.f32 %v7626_v23, %v6490_v8 }
 0xab3   : > { %v2411_v24 = vpop.permute.xlu0 %2410 }
 0xab4   : > { %v7629_v9 = vsel %vm1034_vm5, %v2409_v36, %v2411_v24  ;;  %v7640_v28 = vmul.f32 0.0, %v2411_v24  ;;  %vm992_vm5 = vcmask 965632  }
 0xab5   : > { %10944 = vst [vmem:[#allocation202_spill] sm:$0xff] %v7629_v9  ;;  %v2423_v2 = vmul.f32 %v7629_v9, %v6702_v37 }
 0xab6   : > { %10945 = vst [vmem:[#allocation203_spill] sm:$0xff] %v7640_v28 }
 0xac0   : > { %v2427_v0 = vpop.permute.xlu1 %2426 }
 0xac1   : > { %v2429_v51 = vmul.f32 %v2427_v0, %v2420_v58  ;;  %v2430_v52 = vmul.f32 %v2427_v0, %v2421_v3  ;;  %v2431_v36 = vmul.f32 %v2427_v0, %v2422_v15  ;;  %v2432_v42 = vmul.f32 %v2427_v0, %v2423_v2 }
 0xac2   : > { %v2469_v58 = vrot.slane %v5791_v61, %v6276_v10  ;;  %v2433_v3 = vmul.f32 %v2427_v0, %v7640_v28  ;;  %v2481_v2 = vrot.slane %v5791_v61, %v6296_v17  ;;  %v7657_v0 = vld [vmem:[%s10254_s6] sm:$0xff]  ;;  %v6144_v15 = vmov 26  }
 0xac3   : > { %2439 = vrot.lane.b32.xlu0 %v2429_v51, %s6112_s22  ;;  %2441 = vrot.lane.b32.xlu1 %v2430_v52, %s6112_s22  ;;  %v2473_v52 = vrot.slane %v5791_v61, %v6285_v14  ;;  %v2477_v51 = vrot.slane %v5791_v61, %v6267_v7 }
 0xac7   : > { %2443 = vrot.lane.b32.xlu0 %v2431_v36, %s6112_s22  ;;  %2445 = vrot.lane.b32.xlu1 %v2432_v42, %s6112_s22 }
 0xacb   : > { %2447 = vrot.lane.b32.xlu0 %v2433_v3, %s6112_s22  ;;  %2482 = vrot.lane.b32.xlu1 %v2469_v58, %s6103_s25 }
 0xacf   : > { %2484 = vrot.lane.b32.xlu0 %v2473_v52, %s6103_s25  ;;  %2486 = vrot.lane.b32.xlu1 %v2477_v51, %s6103_s25 }
 0xad3   : > { %2488 = vrot.lane.b32.xlu0 %v2481_v2, %s6103_s25  ;;  %2504 = vperm.xlu1 %5950, %v7657_v0   ;;  %s10955_s25 = smov 111  }
 0xad7   : > { %5951 = vset.pattern.permute.xlu1 %v6144_v15 }
 0xb35   : > { %v7660_v42 = vpop.permute.xlu0 %2439  ;;  %v7662_v24 = vpop.permute.xlu1 %2441 }
 0xb36   : > { %10946 = vst [vmem:[#allocation204_spill] sm:$0xff] %v7660_v42  ;;  %10947 = vst [vmem:[#allocation205_spill] sm:$0xff] %v7662_v24 }
 0xb39   : > { %v7664_v36 = vpop.permute.xlu0 %2443  ;;  %v7666_v58 = vpop.permute.xlu1 %2445 }
 0xb3a   : > { %10948 = vst [vmem:[#allocation206_spill] sm:$0xff] %v7664_v36  ;;  %10949 = vst [vmem:[#allocation207_spill] sm:$0xff] %v7666_v58 }
 0xb3d   : > { %v7668_v61 = vpop.permute.xlu0 %2447  ;;  %v7670_v3 = vpop.permute.xlu1 %2482 }
 0xb3e   : > { %10950 = vst [vmem:[#allocation208_spill] sm:$0xff] %v7668_v61  ;;  %10951 = vst [vmem:[#allocation209_spill] sm:$0xff] %v7670_v3  ;;  %v2498_v15 = vmul.f32 %v7670_v3, %v6481_v63 }
 0xb41   : > { %v2485_v52 = vpop.permute.xlu0 %2484  ;;  %v2487_v51 = vpop.permute.xlu1 %2486 }
 0xb42   : > { %v7674_v2 = vsel %vm1114_vm6, %v7670_v3, %v2485_v52  ;;  %v7681_v9 = vsel %vm1114_vm6, %v2485_v52, %v2487_v51  ;;  %v5792_v52 = vld [vmem:[%s10249_s1 + $0x62] ss:$8 sm:$0xf] }
 0xb43   : > { %10952 = vst [vmem:[#allocation210_spill] sm:$0xff] %v7674_v2  ;;  %v2499_v23 = vmul.f32 %v7674_v2, %v6688_v57  ;;  %10953 = vst [vmem:[#allocation211_spill] sm:$0xff] %v7681_v9  ;;  %v2500_v24 = vmul.f32 %v7681_v9, %v6490_v8 }
 0xb45   : > { %v2489_v28 = vpop.permute.xlu0 %2488 }
 0xb46   : > { %v7684_v61 = vsel %vm1114_vm6, %v2487_v51, %v2489_v28  ;;  %v7695_v3 = vmul.f32 0.0, %v2489_v28  ;;  %vm1072_vm6 = vcmask 916480  }
 0xb47   : > { %10954 = vst [vmem:[#allocation212_spill] sm:$0xff] %v7684_v61  ;;  %v2501_v54 = vmul.f32 %v7684_v61, %v6702_v37 }
 0xb48   : > { %10956 = vst [vmem:[#allocation213_spill] sm:$0xff] %v7695_v3 }
 0xb52   : > { %v2505_v36 = vpop.permute.xlu1 %2504 }
 0xb53   : > { %v2507_v58 = vmul.f32 %v2505_v36, %v2498_v15  ;;  %v2508_v42 = vmul.f32 %v2505_v36, %v2499_v23  ;;  %v2509_v51 = vmul.f32 %v2505_v36, %v2500_v24  ;;  %v2510_v2 = vmul.f32 %v2505_v36, %v2501_v54 }
 0xb54   : > { %v2547_v23 = vrot.slane %v5792_v52, %v6276_v10  ;;  %v2511_v15 = vmul.f32 %v2505_v36, %v7695_v3  ;;  %v2559_v54 = vrot.slane %v5792_v52, %v6296_v17 }
 0xb55   : > { %2517 = vrot.lane.b32.xlu0 %v2507_v58, %s10955_s25  ;;  %2519 = vrot.lane.b32.xlu1 %v2508_v42, %s10955_s25  ;;  %v2551_v42 = vrot.slane %v5792_v52, %v6285_v14  ;;  %v2555_v58 = vrot.slane %v5792_v52, %v6267_v7 }
 0xb59   : > { %2521 = vrot.lane.b32.xlu0 %v2509_v51, %s10955_s25  ;;  %2523 = vrot.lane.b32.xlu1 %v2510_v2, %s10955_s25 }
 0xb5d   : > { %2525 = vrot.lane.b32.xlu0 %v2511_v15, %s10955_s25  ;;  %2560 = vrot.lane.b32.xlu1 %v2547_v23, %s10957_s26 }
 0xb61   : > { %2562 = vrot.lane.b32.xlu0 %v2551_v42, %s10957_s26  ;;  %2564 = vrot.lane.b32.xlu1 %v2555_v58, %s10957_s26 }
 0xb65   : > { %2566 = vrot.lane.b32.xlu0 %v2559_v54, %s10957_s26  ;;  %2582 = vperm.xlu1 %5951, %v7657_v0  }
 0xb69   : > { %5952 = vset.pattern.permute.xlu1 %v10880_v56 }
 0xbc7   : > { %v7711_v28 = vpop.permute.xlu0 %2517  ;;  %v7713_v24 = vpop.permute.xlu1 %2519 }
 0xbcb   : > { %v7715_v36 = vpop.permute.xlu0 %2521  ;;  %v7717_v2 = vpop.permute.xlu1 %2523 }
 0xbcf   : > { %v7719_v51 = vpop.permute.xlu0 %2525  ;;  %v7721_v23 = vpop.permute.xlu1 %2560 }
 0xbd0   : > { %10958 = vst [vmem:[#allocation214_spill] sm:$0xff] %v7721_v23  ;;  %v2576_v54 = vmul.f32 %v7721_v23, %v6481_v63 }
 0xbd3   : > { %v2563_v15 = vpop.permute.xlu0 %2562  ;;  %v2565_v52 = vpop.permute.xlu1 %2564 }
 0xbd4   : > { %v7725_v42 = vsel %vm10721_vm7, %v7721_v23, %v2563_v15  ;;  %v7732_v3 = vsel %vm10721_vm7, %v2563_v15, %v2565_v52 }
 0xbd5   : > { %10959 = vst [vmem:[#allocation215_spill] sm:$0xff] %v7725_v42  ;;  %v2577_v56 = vmul.f32 %v7725_v42, %v6688_v57  ;;  %10960 = vst [vmem:[#allocation216_spill] sm:$0xff] %v7732_v3  ;;  %v2578_v14 = vmul.f32 %v7732_v3, %v6490_v8 }
 0xbd7   : > { %v2567_v58 = vpop.permute.xlu0 %2566 }
 0xbd8   : > { %v7735_v9 = vsel %vm10721_vm7, %v2565_v52, %v2567_v58  ;;  %v7743_v23 = vmul.f32 0.0, %v2567_v58  ;;  %v7752_v52 = vld [vmem:[%s10255_s7] sm:$0xff] }
 0xbd9   : > { %10961 = vst [vmem:[#allocation217_spill] sm:$0xff] %v7735_v9  ;;  %v2579_v10 = vmul.f32 %v7735_v9, %v6702_v37 }
 0xbda   : > { %10963 = vst [vmem:[#allocation218_spill] sm:$0xff] %v7743_v23 }
 0xbe4   : > { %v2583_v61 = vpop.permute.xlu1 %2582 }
 0xbe5   : > { %v2585_v7 = vmul.f32 %v2583_v61, %v2576_v54  ;;  %v2586_v17 = vmul.f32 %v2583_v61, %v2577_v56  ;;  %v2587_v15 = vmul.f32 %v2583_v61, %v2578_v14  ;;  %v2588_v42 = vmul.f32 %v2583_v61, %v2579_v10 }
 0xbe6   : > { %v2589_v56 = vmul.f32 %v2583_v61, %v7743_v23  ;;  %v10964_v10 = vmov 0   ;;  %v7763_v14 = vmul.f32 0.0, %v6457_v34  ;;  %v7773_v61 = vsel %vm578_vm1, %v6462_v40, %v6455_v33 }
 0xbe7   : > { %2595 = vrot.lane.b32.xlu0 %v2585_v7, %s10962_s29  ;;  %2597 = vrot.lane.b32.xlu1 %v2586_v17, %s10962_s29  ;;  %v7758_v7 = vld [vmem:[%s10256_s8] sm:$0xff]  ;;  %v7768_v17 = vsel %vm578_vm1, %v6457_v34, %v6462_v40  ;;  %10967 = vst [vmem:[#allocation221_spill] sm:$0xff] %v7773_v61  ;;  %v589_v54 = vmul.f32 %v7773_v61, %v6688_v57 }
 0xbe8   : > { %10965 = vst [vmem:[#allocation219_spill] sm:$0xff] %v7763_v14  ;;  %10966 = vst [vmem:[#allocation220_spill] sm:$0xff] %v7768_v17  ;;  %v588_v58 = vmul.f32 %v7768_v17, %v6481_v63  ;;  %v673_v34 = vsel %vm672_vm11, %v6784_v5, %v6776_v16  ;;  %v597_v40 = vmul.f32 %v6465_v43, %v7763_v14 }
 0xbe9   : > { %v833_v61 = vsel %vm832_vm9, %v6792_v19, %v6786_v32  ;;  %v674_v14 = vsel %vm672_vm11, %v6776_v16, %v6806_v46  ;;  %v676_v19 = vsel %vm672_vm11, %v6778_v59, %v6810_v4 }
 0xbea   : > { %v682_v17 = vadd.f32 %v673_v34, %v597_v40  ;;  %v598_v5 = vmul.f32 %v6465_v43, %v588_v58  ;;  %v754_v58 = vsel %vm752_vm4, %v6780_v38, %v6814_v50 }
 0xbeb   : > { %2599 = vrot.lane.b32.xlu0 %v2587_v15, %s10962_s29  ;;  %2601 = vrot.lane.b32.xlu1 %v2588_v42, %s10962_s29  ;;  %v7778_v42 = vsel %vm578_vm1, %v6455_v33, %v6467_v47  ;;  %v753_v33 = vsel %vm752_vm4, %v6788_v45, %v6780_v38  ;;  %v675_v45 = vsel %vm672_vm11, %v6806_v46, %v6778_v59 }
 0xbec   : > { %10968 = vst [vmem:[#allocation222_spill] sm:$0xff] %v7778_v42  ;;  %v590_v15 = vmul.f32 %v7778_v42, %v6490_v8  ;;  %v762_v42 = vadd.f32 %v753_v33, %v682_v17  ;;  %v913_v17 = vsel %vm912_vm8, %v6796_v18, %v6794_v55  ;;  %v755_v46 = vsel %vm752_vm4, %v6814_v50, %v6782_v11 }
 0xbed   : > { %v756_v59 = vsel %vm752_vm4, %v6782_v11, %v6816_v26  ;;  %v834_v38 = vsel %vm832_vm9, %v6786_v32, %v6827_v25  ;;  %v835_v50 = vsel %vm832_vm9, %v6827_v25, %v6790_v35  ;;  %v914_v11 = vsel %vm912_vm8, %v6794_v55, %v6839_v41 }
 0xbee   : > { %v600_v34 = vmul.f32 %v6465_v43, %v590_v15  ;;  %v842_v16 = vadd.f32 %v833_v61, %v762_v42 }
 0xbef   : > { %2603 = vrot.lane.b32.xlu0 %v2589_v56, %s10962_s29  ;;  %2620 = vperm.xlu1 %5952, %v7752_v52   ;;  %v591_v56 = vmul.f32 %v6467_v47, %v6702_v37 }
 0xbf0   : > { %v685_v61 = vadd.f32 %v676_v19, %v600_v34  ;;  %v922_v42 = vadd.f32 %v913_v17, %v842_v16 }
 0xbf1   : > { %v601_v40 = vmul.f32 %v6465_v43, %v591_v56 }
 0xbf3   : > { %2629 = vperm.xlu0 %5953, %v7758_v7   ;;  %5954 = vset.pattern.permute.xlu1 %v10964_v10  ;;  %v599_v10 = vmul.f32 %v6465_v43, %v589_v54  ;;  %v683_v54 = vadd.f32 %v674_v14, %v598_v5  ;;  %v993_v43 = vsel %vm992_vm5, %v6798_v20, %v6804_v49 }
 0xbf4   : > { %v686_v18 = vadd.f32 %v6810_v4, %v601_v40  ;;  %v836_v20 = vsel %vm832_vm9, %v6790_v35, %v6835_v48  ;;  %v915_v4 = vsel %vm912_vm8, %v6839_v41, %v6800_v62  ;;  %v1002_v5 = vadd.f32 %v993_v43, %v922_v42  ;;  %v10972_v42 = vld [vmem:[#allocation54_spill] sm:$0xff] }
 0xbf5   : > { %v684_v15 = vadd.f32 %v675_v45, %v599_v10  ;;  %v763_v14 = vadd.f32 %v754_v58, %v683_v54  ;;  %v765_v10 = vadd.f32 %v756_v59, %v685_v61  ;;  %v916_v45 = vsel %vm912_vm8, %v6800_v62, %v6842_v44 }
 0xbf6   : > { %v766_v32 = vadd.f32 %v6816_v26, %v686_v18  ;;  %v994_v35 = vsel %vm992_vm5, %v6804_v49, %v6844_v13  ;;  %v995_v26 = vsel %vm992_vm5, %v6844_v13, %v6808_v39  ;;  %v1073_v41 = vsel %vm1072_vm6, %v6802_v22, %v6812_v27 }
 0xbf7   : > { %v764_v33 = vadd.f32 %v755_v46, %v684_v15  ;;  %v843_v56 = vadd.f32 %v834_v38, %v763_v14  ;;  %v845_v34 = vadd.f32 %v836_v20, %v765_v10  ;;  %v996_v62 = vsel %vm992_vm5, %v6808_v39, %v6846_v12  ;;  %v10969_v38 = vld [vmem:[#allocation52_spill] sm:$0xff]  ;;  %v10971_v14 = vld [vmem:[#allocation53_spill] sm:$0xff] }
 0xbf8   : > { %v846_v55 = vadd.f32 %v6835_v48, %v766_v32  ;;  %v1074_v48 = vsel %vm1072_vm6, %v6812_v27, %v6848_v21  ;;  %v1075_v13 = vsel %vm1072_vm6, %v6848_v21, %v6821_v60  ;;  %v1076_v22 = vsel %vm1072_vm6, %v6821_v60, %v6850_v1  ;;  %v10974_v32 = vld [vmem:[#allocation62_spill] sm:$0xff] }
 0xbf9   : > { %v844_v25 = vadd.f32 %v835_v50, %v764_v33  ;;  %v923_v40 = vadd.f32 %v914_v11, %v843_v56  ;;  %v925_v58 = vadd.f32 %v916_v45, %v845_v34  ;;  %v1154_v27 = vsel %vm1152_vm10, %v6878_v6, %v6880_v31  ;;  %v10973_v11 = vld [vmem:[#allocation55_spill] sm:$0xff]  ;;  %v10975_v56 = vld [vmem:[#allocation61_spill] sm:$0xff]  ;;  %v10977_v45 = vld [vmem:[#allocation64_spill] sm:$0xff] }
 0xbfa   : > { %v926_v49 = vadd.f32 %v6842_v44, %v846_v55  ;;  %v1153_v44 = vsel %vm1152_vm10, %v6876_v29, %v6878_v6  ;;  %v1082_v46 = vadd.f32 %v1073_v41, %v1002_v5  ;;  %v1155_v21 = vsel %vm1152_vm10, %v6880_v31, %v6882_v30  ;;  %v10970_v29 = vld [vmem:[#allocation51_spill] sm:$0xff] }
 0xbfb   : > { %v924_v19 = vadd.f32 %v915_v4, %v844_v25  ;;  %v1003_v16 = vadd.f32 %v994_v35, %v923_v40  ;;  %v1005_v39 = vadd.f32 %v996_v62, %v925_v58  ;;  %v1156_v60 = vsel %vm1152_vm10, %v6882_v30, %v6884_v53  ;;  %v10976_v5 = vld [vmem:[#allocation63_spill] sm:$0xff] }
 0xbfc   : > { %v1006_v54 = vadd.f32 %v6846_v12, %v926_v49  ;;  %v1233_v61 = vsel %vm1232_vm12, %v10970_v29, %v10969_v38  ;;  %v1162_v18 = vadd.f32 %v1153_v44, %v1082_v46  ;;  %v1234_v50 = vsel %vm1232_vm12, %v10969_v38, %v10971_v14  ;;  %v10980_v62 = vld [vmem:[#allocation71_spill] sm:$0xff]  ;;  %v10981_v49 = vld [vmem:[#allocation73_spill] sm:$0xff]  ;;  %v10984_v46 = vld [vmem:[#allocation82_spill] sm:$0xff] }
 0xbfd   : > { %v1004_v17 = vadd.f32 %v995_v26, %v924_v19  ;;  %v1083_v43 = vadd.f32 %v1074_v48, %v1003_v16  ;;  %v1085_v12 = vadd.f32 %v1076_v22, %v1005_v39  ;;  %v1235_v31 = vsel %vm1232_vm12, %v10971_v14, %v10972_v42  ;;  %v10978_v26 = vld [vmem:[#allocation65_spill] sm:$0xff]  ;;  %v10979_v19 = vld [vmem:[#allocation72_spill] sm:$0xff]  ;;  %v10982_v22 = vld [vmem:[#allocation74_spill] sm:$0xff] }
 0xbfe   : > { %v1086_v59 = vadd.f32 %v6850_v1, %v1006_v54  ;;  %v1236_v1 = vsel %vm1232_vm12, %v10972_v42, %v10973_v11  ;;  %v1242_v10 = vadd.f32 %v1233_v61, %v1162_v18  ;;  %v1311_v4 = vsel %vm10719_vm3, %v10975_v56, %v10974_v32  ;;  %v10983_v44 = vld [vmem:[#allocation75_spill] sm:$0xff]  ;;  %v10987_v29 = vld [vmem:[#allocation84_spill] sm:$0xff]  ;;  %v10988_v14 = vld [vmem:[#allocation85_spill] sm:$0xff] }
 0xbff   : > { %v1084_v15 = vadd.f32 %v1075_v13, %v1004_v17  ;;  %v1163_v6 = vadd.f32 %v1154_v27, %v1083_v43  ;;  %v1165_v20 = vadd.f32 %v1156_v60, %v1085_v12  ;;  %v1312_v25 = vsel %vm10719_vm3, %v10974_v32, %v10976_v5  ;;  %v10985_v43 = vld [vmem:[#allocation81_spill] sm:$0xff]  ;;  %v10986_v60 = vld [vmem:[#allocation83_spill] sm:$0xff] }
 0xc00   : > { %v1166_v30 = vadd.f32 %v6884_v53, %v1086_v59  ;;  %v1313_v35 = vsel %vm10719_vm3, %v10976_v5, %v10977_v45  ;;  %v1314_v41 = vsel %vm10719_vm3, %v10977_v45, %v10978_v26  ;;  %v1389_v58 = vsel %vm10720_vm2, %v10980_v62, %v10979_v19  ;;  %v10989_v42 = vld [vmem:[#allocation91_spill] sm:$0xff] }
 0xc01   : > { %v1164_v33 = vadd.f32 %v1155_v21, %v1084_v15  ;;  %v1243_v53 = vadd.f32 %v1234_v50, %v1163_v6  ;;  %v1245_v40 = vadd.f32 %v1236_v1, %v1165_v20  ;;  %v1390_v16 = vsel %vm10720_vm2, %v10979_v19, %v10981_v49  ;;  %v10991_v1 = vld [vmem:[#allocation98_spill] sm:$0xff]  ;;  %v10996_v19 = vld [vmem:[#allocation101_spill] sm:$0xff] }
 0xc02   : > { %v1246_v55 = vadd.f32 %v10973_v11, %v1166_v30  ;;  %v1320_v48 = vadd.f32 %v1311_v4, %v1242_v10  ;;  %v1391_v39 = vsel %vm10720_vm2, %v10981_v49, %v10982_v22  ;;  %v1392_v27 = vsel %vm10720_vm2, %v10982_v22, %v10983_v44  ;;  %v10992_v4 = vld [vmem:[#allocation94_spill] sm:$0xff] }
 0xc03   : > { %v1244_v34 = vadd.f32 %v1235_v31, %v1164_v33  ;;  %v1321_v17 = vadd.f32 %v1312_v25, %v1243_v53  ;;  %v1469_v21 = vsel %vm10722_vm13, %v10985_v43, %v10984_v46  ;;  %v1470_v15 = vsel %vm10722_vm13, %v10984_v46, %v10986_v60  ;;  %v10990_v31 = vld [vmem:[#allocation97_spill] sm:$0xff]  ;;  %v10993_v25 = vld [vmem:[#allocation99_spill] sm:$0xff] }
 0xc04   : > { %v1324_v54 = vadd.f32 %v10978_v26, %v1246_v55  ;;  %v1323_v12 = vadd.f32 %v1314_v41, %v1245_v40  ;;  %v1398_v59 = vadd.f32 %v1389_v58, %v1320_v48  ;;  %v1471_v61 = vsel %vm10722_vm13, %v10986_v60, %v10987_v29  ;;  %v10995_v55 = vld [vmem:[#allocation100_spill] sm:$0xff] }
 0xc05   : > { %v1322_v13 = vadd.f32 %v1313_v35, %v1244_v34  ;;  %v1399_v38 = vadd.f32 %v1390_v16, %v1321_v17  ;;  %v1472_v50 = vsel %vm10722_vm13, %v10987_v29, %v10988_v14  ;;  %v1547_v30 = vsel %vm10625_vm0, %v10990_v31, %v10989_v42  ;;  %v10994_v34 = vld [vmem:[#allocation102_spill] sm:$0xff]  ;;  %v10997_v58 = vld [vmem:[#allocation104_spill] sm:$0xff] }
 0xc06   : > { %v1402_v6 = vadd.f32 %v10983_v44, %v1324_v54  ;;  %v1401_v33 = vadd.f32 %v1392_v27, %v1323_v12  ;;  %v1478_v20 = vadd.f32 %v1469_v21, %v1398_v59  ;;  %v1548_v10 = vsel %vm10625_vm0, %v10989_v42, %v10991_v1  ;;  %v10999_v54 = vld [vmem:[#allocation109_spill] sm:$0xff]  ;;  %v11000_v27 = vld [vmem:[#allocation111_spill] sm:$0xff]  ;;  %v11001_v60 = vld [vmem:[#allocation112_spill] sm:$0xff] }
 0xc07   : > { %v1400_v18 = vadd.f32 %v1391_v39, %v1322_v13  ;;  %v1479_v11 = vadd.f32 %v1470_v15, %v1399_v38  ;;  %v1549_v5 = vsel %vm10625_vm0, %v10991_v1, %v10992_v4  ;;  %v1550_v45 = vsel %vm10625_vm0, %v10992_v4, %v10993_v25  ;;  %v10998_v39 = vld [vmem:[#allocation110_spill] sm:$0xff]  ;;  %v11002_v12 = vld [vmem:[#allocation113_spill] sm:$0xff]  ;;  %v11003_v29 = vld [vmem:[#allocation120_spill] sm:$0xff] }
 0xc08   : > { %v1482_v56 = vadd.f32 %v10988_v14, %v1402_v6  ;;  %v1481_v35 = vadd.f32 %v1472_v50, %v1401_v33  ;;  %v1556_v53 = vadd.f32 %v1547_v30, %v1478_v20  ;;  %v1608_v40 = vsel %vm578_vm1, %v10995_v55, %v10994_v34  ;;  %v11005_v6 = vld [vmem:[#allocation121_spill] sm:$0xff]  ;;  %v11006_v31 = vld [vmem:[#allocation122_spill] sm:$0xff]  ;;  %v11007_v33 = vld [vmem:[#allocation123_spill] sm:$0xff] }
 0xc09   : > { %v1480_v32 = vadd.f32 %v1471_v61, %v1400_v18  ;;  %v1557_v26 = vadd.f32 %v1548_v10, %v1479_v11  ;;  %v1609_v62 = vsel %vm578_vm1, %v10994_v34, %v10996_v19  ;;  %v1610_v49 = vsel %vm578_vm1, %v10996_v19, %v10997_v58  ;;  %v11004_v61 = vld [vmem:[#allocation119_spill] sm:$0xff]  ;;  %v11008_v4 = vld [vmem:[#allocation130_spill] sm:$0xff] }
 0xc0a   : > { %v1560_v41 = vadd.f32 %v10993_v25, %v1482_v56  ;;  %v1559_v48 = vadd.f32 %v1550_v45, %v1481_v35  ;;  %v1616_v17 = vadd.f32 %v10995_v55, %v1556_v53  ;;  %v1687_v44 = vsel %vm1686_vm14, %v10999_v54, %v10998_v39  ;;  %v11010_v45 = vld [vmem:[#allocation131_spill] sm:$0xff]  ;;  %v11011_v55 = vld [vmem:[#allocation132_spill] sm:$0xff] }
 0xc0b   : > { %v1558_v16 = vadd.f32 %v1549_v5, %v1480_v32  ;;  %v1617_v13 = vadd.f32 %v1608_v40, %v1557_v26  ;;  %v1688_v46 = vsel %vm1686_vm14, %v10998_v39, %v11000_v27  ;;  %v1689_v15 = vsel %vm1686_vm14, %v11000_v27, %v11001_v60  ;;  %v11009_v5 = vld [vmem:[#allocation129_spill] sm:$0xff] }
 0xc0c   : > { %v1620_v22 = vadd.f32 %v10997_v58, %v1560_v41  ;;  %v1619_v21 = vadd.f32 %v1610_v49, %v1559_v48  ;;  %v1690_v59 = vsel %vm1686_vm14, %v11001_v60, %v11002_v12  ;;  %v1696_v38 = vadd.f32 %v10999_v54, %v1616_v17  ;;  %v11012_v26 = vld [vmem:[#allocation133_spill] sm:$0xff]  ;;  %v11018_v17 = vld [vmem:[#allocation146_spill] sm:$0xff] }
 0xc0d   : > { %v1618_v43 = vadd.f32 %v1609_v62, %v1558_v16  ;;  %v1767_v18 = vsel %vm1766_vm15, %v11004_v61, %v11003_v29  ;;  %v1768_v14 = vsel %vm1766_vm15, %v11003_v29, %v11005_v6  ;;  %vm10626_vm0 = vcmask 384000   ;;  %v11013_v62 = vld [vmem:[#allocation144_spill] sm:$0xff]  ;;  %v11014_v58 = vld [vmem:[#allocation145_spill] sm:$0xff]  ;;  %v11016_v16 = vld [vmem:[#allocation147_spill] sm:$0xff] }
 0xc0e   : > { %v1697_v50 = vadd.f32 %v1687_v44, %v1617_v13  ;;  %v1769_v30 = vsel %vm1766_vm15, %v11005_v6, %v11006_v31  ;;  %v1770_v20 = vsel %vm1766_vm15, %v11006_v31, %v11007_v33  ;;  %v1699_v11 = vadd.f32 %v1689_v15, %v1619_v21  ;;  %v11022_v21 = vld [vmem:[#allocation143_spill] sm:$0xff] }
 0xc0f   : > { %v1698_v42 = vadd.f32 %v1688_v46, %v1618_v43  ;;  %v1700_v1 = vadd.f32 %v1690_v59, %v1620_v22  ;;  %v1776_v10 = vadd.f32 %v11004_v61, %v1696_v38  ;;  %v1847_v25 = vsel %vm10626_vm0, %v11009_v5, %v11008_v4  ;;  %v11021_v43 = vld [vmem:[#allocation142_spill] sm:$0xff]  ;;  %v11023_v38 = vld [vmem:[#allocation148_spill] sm:$0xff]  ;;  %v11024_v61 = vld [vmem:[#allocation141_spill] sm:$0xff] }
 0xc10   : > { %v1777_v32 = vadd.f32 %v1767_v18, %v1697_v50  ;;  %v1848_v35 = vsel %vm10626_vm0, %v11008_v4, %v11010_v45  ;;  %v1779_v53 = vadd.f32 %v1769_v30, %v1699_v11  ;;  %v1849_v40 = vsel %vm10626_vm0, %v11010_v45, %v11011_v55  ;;  %v11025_v18 = vld [vmem:[#allocation139_spill] sm:$0xff]  ;;  %v11028_v45 = vld [vmem:[#allocation154_spill] sm:$0xff] }
 0xc11   : > { %v1778_v56 = vadd.f32 %v1768_v14, %v1698_v42  ;;  %v1780_v34 = vadd.f32 %v1770_v20, %v1700_v1  ;;  %v1850_v41 = vsel %vm10626_vm0, %v11011_v55, %v11012_v26  ;;  %v1856_v19 = vadd.f32 %v11009_v5, %v1776_v10  ;;  %v11026_v14 = vld [vmem:[#allocation140_spill] sm:$0xff]  ;;  %v11030_v55 = vld [vmem:[#allocation157_spill] sm:$0xff] }
 0xc12   : > { %v8003_v49 = vsel %vm578_vm1, %v11014_v58, %v11013_v62  ;;  %v8008_v48 = vsel %vm578_vm1, %v11013_v62, %v11016_v16  ;;  %v8013_v13 = vsel %vm578_vm1, %v11016_v16, %v11018_v17  ;;  %v1857_v22 = vadd.f32 %v1847_v25, %v1777_v32  ;;  %v11027_v25 = vld [vmem:[#allocation155_spill] sm:$0xff]  ;;  %v11031_v62 = vld [vmem:[#allocation158_spill] sm:$0xff] }
 0xc13   : > { %11015 = vst [vmem:[#allocation52_spill] sm:$0xff] %v8003_v49  ;;  %11017 = vst [vmem:[#allocation51_spill] sm:$0xff] %v8008_v48  ;;  %v1858_v39 = vadd.f32 %v1848_v35, %v1778_v56  ;;  %vm1926_vm0 = vcmask 375808   ;;  %v8016_v54 = vmul.f32 0.0, %v11018_v17  ;;  %v1859_v44 = vadd.f32 %v1849_v40, %v1779_v53  ;;  %v11029_v53 = vld [vmem:[#allocation156_spill] sm:$0xff] }
 0xc14   : > { %11019 = vst [vmem:[#allocation53_spill] sm:$0xff] %v8013_v13  ;;  %v1860_v27 = vadd.f32 %v1850_v41, %v1780_v34  ;;  %v1976_v46 = vmul.f32 %v11014_v58, %v6481_v63  ;;  %v1930_v60 = vsel %vm1926_vm0, %v11022_v21, %v11021_v43  ;;  %v1977_v15 = vmul.f32 %v8003_v49, %v6688_v57  ;;  %v11035_v43 = vld [vmem:[#allocation167_spill] sm:$0xff] }
 0xc15   : > { %11020 = vst [vmem:[#allocation54_spill] sm:$0xff] %v8016_v54  ;;  %v1978_v12 = vmul.f32 %v8008_v48, %v6490_v8  ;;  %v1979_v59 = vmul.f32 %v8013_v13, %v6702_v37  ;;  %v1989_v29 = vmul.f32 %v11023_v38, %v8016_v54  ;;  %v1927_v6 = vsel %vm1926_vm0, %v11025_v18, %v11024_v61 }
 0xc16   : > { %v1928_v50 = vsel %vm1926_vm0, %v11024_v61, %v11026_v14  ;;  %v1929_v42 = vsel %vm1926_vm0, %v11026_v14, %v11022_v21  ;;  %v1985_v31 = vmul.f32 %v11023_v38, %v1976_v46  ;;  %v1940_v30 = vadd.f32 %v1930_v60, %v1860_v27  ;;  %v11034_v27 = vld [vmem:[#allocation166_spill] sm:$0xff]  ;;  %v11037_v61 = vld [vmem:[#allocation175_spill] sm:$0xff]  ;;  %v11039_v14 = vld [vmem:[#allocation176_spill] sm:$0xff] }
 0xc17   : > { %v1986_v33 = vmul.f32 %v11023_v38, %v1977_v15  ;;  %v1987_v20 = vmul.f32 %v11023_v38, %v1978_v12  ;;  %v1988_v11 = vmul.f32 %v11023_v38, %v1979_v59  ;;  %v1936_v1 = vadd.f32 %v11025_v18, %v1856_v19  ;;  %v11036_v59 = vld [vmem:[#allocation168_spill] sm:$0xff]  ;;  %v11038_v18 = vld [vmem:[#allocation174_spill] sm:$0xff] }
 0xc18   : > { %v1937_v10 = vadd.f32 %v1927_v6, %v1857_v22  ;;  %v1938_v32 = vadd.f32 %v1928_v50, %v1858_v39  ;;  %v1939_v56 = vadd.f32 %v1929_v42, %v1859_v44  ;;  %v1994_v4 = vadd.f32 %v1989_v29, %v1940_v30  ;;  %v11032_v22 = vld [vmem:[#allocation165_spill] sm:$0xff]  ;;  %v11033_v39 = vld [vmem:[#allocation164_spill] sm:$0xff] }
 0xc19   : > { %v1990_v5 = vadd.f32 %v1985_v31, %v1936_v1  ;;  %v2059_v35 = vsel %vm672_vm11, %v11028_v45, %v11027_v25  ;;  %v2060_v34 = vsel %vm672_vm11, %v11027_v25, %v11029_v53  ;;  %v2061_v40 = vsel %vm672_vm11, %v11029_v53, %v11030_v55  ;;  %v11040_v42 = vld [vmem:[#allocation177_spill] sm:$0xff]  ;;  %v11043_v25 = vld [vmem:[#allocation184_spill] sm:$0xff]  ;;  %v11045_v53 = vld [vmem:[#allocation186_spill] sm:$0xff] }
 0xc1a   : > { %v1991_v26 = vadd.f32 %v1986_v33, %v1937_v10  ;;  %v1992_v41 = vadd.f32 %v1987_v20, %v1938_v32  ;;  %v1993_v19 = vadd.f32 %v1988_v11, %v1939_v56  ;;  %v2062_v16 = vsel %vm672_vm11, %v11030_v55, %v11031_v62  ;;  %v11041_v56 = vld [vmem:[#allocation178_spill] sm:$0xff] }
 0xc1b   : > { %v2072_v17 = vadd.f32 %v11031_v62, %v1994_v4  ;;  %v2137_v44 = vsel %vm752_vm4, %v11033_v39, %v11032_v22  ;;  %v2138_v46 = vsel %vm752_vm4, %v11032_v22, %v11034_v27  ;;  %v2139_v21 = vsel %vm752_vm4, %v11034_v27, %v11035_v43  ;;  %v11046_v62 = vld [vmem:[#allocation188_spill] sm:$0xff]  ;;  %v11048_v22 = vld [vmem:[#allocation194_spill] sm:$0xff] }
 0xc1c   : > { %v2068_v60 = vadd.f32 %v2059_v35, %v1990_v5  ;;  %v2069_v15 = vadd.f32 %v2060_v34, %v1991_v26  ;;  %v2070_v12 = vadd.f32 %v2061_v40, %v1992_v41  ;;  %v2140_v38 = vsel %vm752_vm4, %v11035_v43, %v11036_v59  ;;  %v11042_v5 = vld [vmem:[#allocation185_spill] sm:$0xff]  ;;  %v11044_v35 = vld [vmem:[#allocation187_spill] sm:$0xff]  ;;  %v11050_v27 = vld [vmem:[#allocation196_spill] sm:$0xff] }
 0xc1d   : > { %v2071_v29 = vadd.f32 %v2062_v16, %v1993_v19  ;;  %v2215_v6 = vsel %vm832_vm9, %v11038_v18, %v11037_v61  ;;  %v2216_v50 = vsel %vm832_vm9, %v11037_v61, %v11039_v14  ;;  %v2217_v31 = vsel %vm832_vm9, %v11039_v14, %v11040_v42  ;;  %v11053_v18 = vld [vmem:[#allocation207_spill] sm:$0xff] }
 0xc1e   : > { %v2146_v33 = vadd.f32 %v2137_v44, %v2068_v60  ;;  %v2147_v20 = vadd.f32 %v2138_v46, %v2069_v15  ;;  %v2148_v11 = vadd.f32 %v2139_v21, %v2070_v12  ;;  %v2150_v1 = vadd.f32 %v11036_v59, %v2072_v17  ;;  %v11047_v17 = vld [vmem:[#allocation195_spill] sm:$0xff]  ;;  %v11049_v44 = vld [vmem:[#allocation197_spill] sm:$0xff] }
 0xc1f   : > { %v2149_v32 = vadd.f32 %v2140_v38, %v2071_v29  ;;  %v2218_v4 = vsel %vm832_vm9, %v11040_v42, %v11041_v56  ;;  %v2293_v45 = vsel %vm912_vm8, %v11043_v25, %v11042_v5  ;;  %v2295_v34 = vsel %vm912_vm8, %v11045_v53, %v11044_v35  ;;  %v11051_v38 = vld [vmem:[#allocation205_spill] sm:$0xff]  ;;  %v11052_v29 = vld [vmem:[#allocation204_spill] sm:$0xff] }
 0xc20   : > { %v2224_v55 = vadd.f32 %v2215_v6, %v2146_v33  ;;  %v2225_v40 = vadd.f32 %v2216_v50, %v2147_v20  ;;  %v2226_v26 = vadd.f32 %v2217_v31, %v2148_v11  ;;  %v2294_v41 = vsel %vm912_vm8, %v11042_v5, %v11045_v53  ;;  %v11054_v6 = vld [vmem:[#allocation206_spill] sm:$0xff] }
 0xc21   : > { %v2228_v19 = vadd.f32 %v11041_v56, %v2150_v1  ;;  %v2296_v16 = vsel %vm912_vm8, %v11044_v35, %v11046_v62  ;;  %v2371_v39 = vsel %vm992_vm5, %v11048_v22, %v11047_v17  ;;  %v2373_v46 = vsel %vm992_vm5, %v11050_v27, %v11049_v44 }
 0xc22   : > { %v2227_v43 = vadd.f32 %v2218_v4, %v2149_v32  ;;  %v2302_v21 = vadd.f32 %v2293_v45, %v2224_v55  ;;  %v2304_v60 = vadd.f32 %v2295_v34, %v2226_v26  ;;  %v2372_v15 = vsel %vm992_vm5, %v11047_v17, %v11050_v27  ;;  %v11055_v32 = vld [vmem:[#allocation198_spill] sm:$0xff]  ;;  %v11056_v55 = vld [vmem:[#allocation208_spill] sm:$0xff] }
 0xc23   : > { %v2303_v12 = vadd.f32 %v2294_v41, %v2225_v40  ;;  %v2306_v59 = vadd.f32 %v11046_v62, %v2228_v19  ;;  %v2449_v61 = vsel %vm1072_vm6, %v11052_v29, %v11051_v38  ;;  %v2451_v14 = vsel %vm1072_vm6, %v11054_v6, %v11053_v18 }
 0xc24   : > { %v2305_v42 = vadd.f32 %v2296_v16, %v2227_v43  ;;  %v2380_v31 = vadd.f32 %v2371_v39, %v2302_v21  ;;  %v2382_v33 = vadd.f32 %v2373_v46, %v2304_v60  ;;  %v2450_v20 = vsel %vm1072_vm6, %v11051_v38, %v11054_v6 }
 0xc25   : > { %v2381_v1 = vadd.f32 %v2372_v15, %v2303_v12  ;;  %v2374_v56 = vsel %vm992_vm5, %v11049_v44, %v11055_v32  ;;  %v2527_v4 = vsel %vm1152_vm10, %v7711_v28, %v7713_v24  ;;  %v2529_v5 = vsel %vm1152_vm10, %v7715_v36, %v7717_v2 }
 0xc26   : > { %v2384_v25 = vadd.f32 %v11055_v32, %v2306_v59  ;;  %v2458_v45 = vadd.f32 %v2449_v61, %v2380_v31  ;;  %v2460_v35 = vadd.f32 %v2451_v14, %v2382_v33  ;;  %v2528_v53 = vsel %vm1152_vm10, %v7713_v24, %v7715_v36 }
 0xc27   : > { %v2459_v34 = vadd.f32 %v2450_v20, %v2381_v1  ;;  %v2452_v40 = vsel %vm1072_vm6, %v11053_v18, %v11056_v55  ;;  %v2383_v17 = vadd.f32 %v2374_v56, %v2305_v42  ;;  %v2530_v24 = vsel %vm1152_vm10, %v7717_v2, %v7719_v51 }
 0xc28   : > { %v2462_v41 = vadd.f32 %v11056_v55, %v2384_v25  ;;  %v2536_v19 = vadd.f32 %v2527_v4, %v2458_v45  ;;  %v2538_v62 = vadd.f32 %v2529_v5, %v2460_v35  ;;  %v11057_v32 = vmov 3  }
 0xc29   : > { %v2537_v22 = vadd.f32 %v2528_v53, %v2459_v34  ;;  %v2461_v46 = vadd.f32 %v2452_v40, %v2383_v17  ;;  %v11058_v56 = vmov 2   ;;  %v11059_v4 = vmov 6  }
 0xc2a   : > { %v2540_v36 = vadd.f32 %v7719_v51, %v2462_v41  ;;  %v11060_v5 = vmov 4   ;;  %v11061_v25 = vmov 5   ;;  %v11062_v45 = vmov 7  }
 0xc2b   : > { %v6145_v35 = vmov 27   ;;  %v6146_v53 = vmov 28   ;;  %v6147_v34 = vmov 29  }
 0xc59   : > { %v2596_v30 = vpop.permute.xlu0 %2595  ;;  %v2598_v10 = vpop.permute.xlu1 %2597 }
 0xc5a   : > { %v2605_v26 = vsel %vm1232_vm12, %v2596_v30, %v2598_v10 }
 0xc5b   : > { %v2614_v27 = vadd.f32 %v2605_v26, %v2536_v19 }
 0xc5d   : > { %v2600_v50 = vpop.permute.xlu0 %2599  ;;  %v2602_v11 = vpop.permute.xlu1 %2601 }
 0xc5e   : > { %v2607_v28 = vsel %vm1232_vm12, %v2600_v50, %v2602_v11  ;;  %v2606_v16 = vsel %vm1232_vm12, %v2598_v10, %v2600_v50  ;;  %v2539_v10 = vadd.f32 %v2530_v24, %v2461_v46 }
 0xc5f   : > { %v2616_v30 = vadd.f32 %v2607_v28, %v2538_v62  ;;  %v2615_v43 = vadd.f32 %v2606_v16, %v2537_v22 }
 0xc61   : > { %v2604_v39 = vpop.permute.xlu0 %2603 }
 0xc62   : > { %v2608_v21 = vsel %vm1232_vm12, %v2602_v11, %v2604_v39  ;;  %v2618_v60 = vadd.f32 %v2604_v39, %v2540_v36  ;;  %v2669_v11 = vld [vmem:[%s10251_s3] sm:$0xff] }
 0xc63   : > { %v2617_v6 = vadd.f32 %v2608_v21, %v2539_v10  ;;  %v11065_v10 = vld [vmem:[#allocation5_spill] sm:$0xff] }
 0xc6e   : > { %v2621_v44 = vpop.permute.xlu1 %2620 }
 0xc6f   : > { %v2625_v15 = vmul.f32 %v2621_v44, %v2616_v30  ;;  %v2623_v12 = vmul.f32 %v2621_v44, %v2614_v27  ;;  %v2627_v61 = vmul.f32 %v2621_v44, %v2618_v60  ;;  %v2624_v18 = vmul.f32 %v2621_v44, %v2615_v43  ;;  %v11064_v27 = vld [vmem:[#allocation4_spill] sm:$0xff] }
 0xc70   : > { %v2626_v42 = vmul.f32 %v2621_v44, %v2617_v6  ;;  %v11063_v44 = vld [vmem:[#allocation3_spill] sm:$0xff] }
 0xc72   : > { %v2630_v59 = vpop.permute.xlu0 %2629 }
 0xc73   : > { %v2634_v38 = vadd.f32 %v2630_v59, %v2625_v15  ;;  %v2632_v29 = vadd.f32 %v2630_v59, %v2623_v12  ;;  %v2636_v50 = vadd.f32 %v2630_v59, %v2627_v61  ;;  %v2633_v51 = vadd.f32 %v2630_v59, %v2624_v18 }
 0xc74   : > { %v2635_v20 = vadd.f32 %v2630_v59, %v2626_v42 }
 0xc75   : > { %v2639_v14 = vmax.f32 %v2634_v38, 0.0  ;;  %v2637_v2 = vmax.f32 %v2632_v29, 0.0  ;;  %v2641_v31 = vmax.f32 %v2636_v50, 0.0  ;;  %v2638_v33 = vmax.f32 %v2633_v51, 0.0  ;;  %v11066_v29 = vld [vmem:[#allocation2_spill] sm:$0xff] }
 0xc76   : > { %v2640_v1 = vmax.f32 %v2635_v20, 0.0 }
 0xc77   : > { %2651 = vrot.lane.b32.xlu0 %v2639_v14, %s10957_s26  ;;  %2647 = vrot.lane.b32.xlu1 %v2637_v2, %s10957_s26 }
 0xc7b   : > { %2655 = vrot.lane.b32.xlu0 %v2641_v31, %s10957_s26  ;;  %2649 = vrot.lane.b32.xlu1 %v2638_v33, %s10957_s26 }
 0xc7f   : > { %2696 = vperm.xlu0 %5953, %v2669_v11   ;;  %2653 = vrot.lane.b32.xlu1 %v2640_v1, %s10957_s26 }
 0xc83   : > { %5956 = vset.pattern.permute.xlu0 %v11057_v32  ;;  %2672 = vperm.xlu1 %5954, %v2669_v11  }
 0xc84   : > { %2752 = vperm.xlu0 %5956, %v2669_v11  }
 0xc87   : > { %5955 = vset.pattern.permute.xlu1 %v11058_v56 }
 0xc88   : > { %5959 = vset.pattern.permute.xlu0 %v11059_v4  ;;  %2724 = vperm.xlu1 %5955, %v2669_v11  }
 0xc89   : > { %2836 = vperm.xlu0 %5959, %v2669_v11  }
 0xc8c   : > { %5957 = vset.pattern.permute.xlu1 %v11060_v5 }
 0xc8d   : > { %2780 = vperm.xlu1 %5957, %v2669_v11   ;;  %5962 = vset.pattern.permute.xlu0 %v11058_v56 }
 0xc8e   : > { %2900 = vperm.xlu0 %5962, %v7758_v7  }
 0xc91   : > { %5958 = vset.pattern.permute.xlu1 %v11061_v25  ;;  %v11144_v25 = vld [vmem:[#allocation95_spill] sm:$0xff] }
 0xc92   : > { %2808 = vperm.xlu1 %5958, %v2669_v11  }
 0xc96   : > { %5960 = vset.pattern.permute.xlu1 %v11062_v45 }
 0xc97   : > { %2864 = vperm.xlu1 %5960, %v2669_v11  }
 0xc9b   : > { %5961 = vset.pattern.permute.xlu1 %v11058_v56  ;;  %v11145_v56 = vld [vmem:[#allocation96_spill] sm:$0xff] }
 0xc9c   : > { %2892 = vperm.xlu1 %5961, %v7752_v52  }
 0xca0   : > { %5963 = vset.pattern.permute.xlu1 %v6145_v35 }
 0xca1   : > { %2916 = vperm.xlu1 %5963, %v7657_v0  }
 0xca5   : > { %5964 = vset.pattern.permute.xlu1 %v6146_v53 }
 0xca6   : > { %2934 = vperm.xlu1 %5964, %v7657_v0  }
 0xcaa   : > { %5965 = vset.pattern.permute.xlu1 %v6147_v34 }
 0xce9   : > { %v2648_v7 = vpop.permute.xlu1 %2647  ;;  %v2652_v40 = vpop.permute.xlu0 %2651 }
 0xced   : > { %v2650_v55 = vpop.permute.xlu1 %2649  ;;  %v2656_v28 = vpop.permute.xlu0 %2655 }
 0xcee   : > { %v2657_v41 = vsel %vm10721_vm7, %v2648_v7, %v2650_v55  ;;  %v2658_v19 = vsel %vm10721_vm7, %v2650_v55, %v2652_v40 }
 0xcef   : > { %v8165_v16 = vadd.f32 %v2657_v41, %v6481_v63  ;;  %v8168_v0 = vadd.f32 %v2658_v19, %v6688_v57 }
 0xcf1   : > { %v2654_v26 = vpop.permute.xlu1 %2653  ;;  %v2678_v24 = vrot.slane %v8165_v16, %v11063_v44  ;;  %v2682_v36 = vrot.slane %v8168_v0, %v11063_v44  ;;  %v2758_v59 = vrot.slane %v8165_v16, %v11065_v10  ;;  %v2762_v38 = vrot.slane %v8168_v0, %v11065_v10 }
 0xcf2   : > { %v2659_v52 = vsel %vm10721_vm7, %v2652_v40, %v2654_v26  ;;  %v2660_v62 = vsel %vm10721_vm7, %v2654_v26, %v2656_v28  ;;  %v2730_v61 = vrot.slane %v8165_v16, %v11066_v29  ;;  %v2734_v18 = vrot.slane %v8168_v0, %v11066_v29 }
 0xcf3   : > { %v8171_v17 = vadd.f32 %v2659_v52, %v6490_v8  ;;  %v8174_v22 = vadd.f32 %v2660_v62, %v6702_v37  ;;  %v2702_v8 = vrot.slane %v8165_v16, %v11064_v27  ;;  %v2706_v37 = vrot.slane %v8168_v0, %v11064_v27 }
 0xcf5   : > { %v2686_v63 = vrot.slane %v8171_v17, %v11063_v44  ;;  %v2690_v57 = vrot.slane %v8174_v22, %v11063_v44  ;;  %v2710_v30 = vrot.slane %v8171_v17, %v11064_v27  ;;  %v2714_v46 = vrot.slane %v8174_v22, %v11064_v27 }
 0xcf6   : > { %v2766_v42 = vrot.slane %v8171_v17, %v11065_v10  ;;  %v2770_v31 = vrot.slane %v8174_v22, %v11065_v10  ;;  %v2738_v33 = vrot.slane %v8171_v17, %v11066_v29  ;;  %v2742_v20 = vrot.slane %v8174_v22, %v11066_v29  ;;  %v11143_v10 = vld [vmem:[#allocation93_spill] sm:$0xff] }
 0xcfe   : > { %v2697_v39 = vpop.permute.xlu0 %2696 }
 0xcff   : > { %v2715_v6 = vmul.f32 %v2702_v8, %v2697_v39  ;;  %v2716_v14 = vmul.f32 %v2706_v37, %v2697_v39  ;;  %v2717_v2 = vmul.f32 %v2710_v30, %v2697_v39  ;;  %v2718_v50 = vmul.f32 %v2714_v46, %v2697_v39 }
 0xd02   : > { %v2673_v43 = vpop.permute.xlu1 %2672 }
 0xd03   : > { %v2691_v21 = vmul.f32 %v2678_v24, %v2673_v43  ;;  %v2692_v60 = vmul.f32 %v2682_v36, %v2673_v43  ;;  %v2693_v15 = vmul.f32 %v2686_v63, %v2673_v43  ;;  %v2694_v12 = vmul.f32 %v2690_v57, %v2673_v43  ;;  %v2753_v51 = vpop.permute.xlu0 %2752  ;;  %v11067_v63 = vld [vmem:[#allocation19_spill] sm:$0xff] }
 0xd04   : > { %v2771_v28 = vmul.f32 %v2758_v59, %v2753_v51  ;;  %v2772_v41 = vmul.f32 %v2762_v38, %v2753_v51  ;;  %v2773_v19 = vmul.f32 %v2766_v42, %v2753_v51  ;;  %v2774_v52 = vmul.f32 %v2770_v31, %v2753_v51  ;;  %v11069_v51 = vld [vmem:[#allocation18_spill] sm:$0xff] }
 0xd05   : > { %v2719_v11 = vadd.f32 %v2715_v6, %v2691_v21  ;;  %v2720_v1 = vadd.f32 %v2716_v14, %v2692_v60  ;;  %v2721_v35 = vadd.f32 %v2717_v2, %v2693_v15  ;;  %v2722_v53 = vadd.f32 %v2718_v50, %v2694_v12 }
 0xd06   : > { %v2786_v57 = vrot.slane %v8165_v16, %v11067_v63  ;;  %v2790_v8 = vrot.slane %v8168_v0, %v11067_v63  ;;  %v2794_v37 = vrot.slane %v8171_v17, %v11067_v63  ;;  %v2798_v30 = vrot.slane %v8174_v22, %v11067_v63 }
 0xd07   : > { %v2725_v34 = vpop.permute.xlu1 %2724  ;;  %v2814_v42 = vrot.slane %v8165_v16, %v11069_v51  ;;  %v2818_v31 = vrot.slane %v8168_v0, %v11069_v51 }
 0xd08   : > { %v2743_v7 = vmul.f32 %v2730_v61, %v2725_v34  ;;  %v2744_v55 = vmul.f32 %v2734_v18, %v2725_v34  ;;  %v2745_v40 = vmul.f32 %v2738_v33, %v2725_v34  ;;  %v2746_v26 = vmul.f32 %v2742_v20, %v2725_v34  ;;  %v11068_v18 = vld [vmem:[#allocation21_spill] sm:$0xff]  ;;  %v2837_v50 = vpop.permute.xlu0 %2836 }
 0xd09   : > { %v2842_v6 = vrot.slane %v8165_v16, %v11068_v18  ;;  %v2846_v14 = vrot.slane %v8168_v0, %v11068_v18  ;;  %v2850_v2 = vrot.slane %v8171_v17, %v11068_v18  ;;  %v2822_v33 = vrot.slane %v8171_v17, %v11069_v51 }
 0xd0a   : > { %v2747_v62 = vadd.f32 %v2743_v7, %v2719_v11  ;;  %v2748_v39 = vadd.f32 %v2744_v55, %v2720_v1  ;;  %v2749_v24 = vadd.f32 %v2745_v40, %v2721_v35  ;;  %v2750_v36 = vadd.f32 %v2746_v26, %v2722_v53 }
 0xd0b   : > { %v2826_v20 = vrot.slane %v8174_v22, %v11069_v51 }
 0xd0c   : > { %v2775_v46 = vadd.f32 %v2771_v28, %v2747_v62  ;;  %v2776_v43 = vadd.f32 %v2772_v41, %v2748_v39  ;;  %v2777_v21 = vadd.f32 %v2773_v19, %v2749_v24  ;;  %v2778_v60 = vadd.f32 %v2774_v52, %v2750_v36  ;;  %v2781_v15 = vpop.permute.xlu1 %2780 }
 0xd0d   : > { %v2799_v12 = vmul.f32 %v2786_v57, %v2781_v15  ;;  %v2800_v59 = vmul.f32 %v2790_v8, %v2781_v15  ;;  %v2801_v38 = vmul.f32 %v2794_v37, %v2781_v15  ;;  %v2802_v61 = vmul.f32 %v2798_v30, %v2781_v15  ;;  %v11070_v57 = vld [vmem:[#allocation23_spill] sm:$0xff] }
 0xd0e   : > { %v2854_v28 = vrot.slane %v8174_v22, %v11068_v18  ;;  %v2855_v41 = vmul.f32 %v2842_v6, %v2837_v50  ;;  %v2856_v19 = vmul.f32 %v2846_v14, %v2837_v50  ;;  %v2857_v52 = vmul.f32 %v2850_v2, %v2837_v50 }
 0xd0f   : > { %v2803_v11 = vadd.f32 %v2799_v12, %v2775_v46  ;;  %v2804_v1 = vadd.f32 %v2800_v59, %v2776_v43  ;;  %v2805_v35 = vadd.f32 %v2801_v38, %v2777_v21  ;;  %v2806_v53 = vadd.f32 %v2802_v61, %v2778_v60 }
 0xd10   : > { %v2870_v8 = vrot.slane %v8165_v16, %v11070_v57  ;;  %v2874_v37 = vrot.slane %v8168_v0, %v11070_v57  ;;  %v2878_v30 = vrot.slane %v8171_v17, %v11070_v57  ;;  %v2882_v46 = vrot.slane %v8174_v22, %v11070_v57  ;;  %v11142_v57 = vld [vmem:[#allocation92_spill] sm:$0xff] }
 0xd11   : > { %v2809_v34 = vpop.permute.xlu1 %2808  ;;  %v2858_v43 = vmul.f32 %v2854_v28, %v2837_v50 }
 0xd12   : > { %v2827_v7 = vmul.f32 %v2814_v42, %v2809_v34  ;;  %v2828_v55 = vmul.f32 %v2818_v31, %v2809_v34  ;;  %v2829_v40 = vmul.f32 %v2822_v33, %v2809_v34  ;;  %v2830_v26 = vmul.f32 %v2826_v20, %v2809_v34  ;;  %v2901_v31 = vpop.permute.xlu0 %2900 }
 0xd14   : > { %v2831_v62 = vadd.f32 %v2827_v7, %v2803_v11  ;;  %v2832_v39 = vadd.f32 %v2828_v55, %v2804_v1  ;;  %v2833_v24 = vadd.f32 %v2829_v40, %v2805_v35  ;;  %v2834_v36 = vadd.f32 %v2830_v26, %v2806_v53  ;;  %v11072_v26 = vld [vmem:[#allocation7_spill] sm:$0xff] }
 0xd16   : > { %v2865_v21 = vpop.permute.xlu1 %2864  ;;  %v2859_v60 = vadd.f32 %v2855_v41, %v2831_v62  ;;  %v2860_v15 = vadd.f32 %v2856_v19, %v2832_v39  ;;  %v2861_v12 = vadd.f32 %v2857_v52, %v2833_v24  ;;  %v2862_v14 = vadd.f32 %v2858_v43, %v2834_v36  ;;  %v11073_v52 = vld [vmem:[#allocation10_spill] sm:$0xff]  ;;  %v11074_v24 = vld [vmem:[#allocation9_spill] sm:$0xff]  ;;  %v11076_v43 = vld [vmem:[#allocation8_spill] sm:$0xff] }
 0xd17   : > { %v2883_v59 = vmul.f32 %v2870_v8, %v2865_v21  ;;  %v2884_v38 = vmul.f32 %v2874_v37, %v2865_v21  ;;  %v2885_v61 = vmul.f32 %v2878_v30, %v2865_v21  ;;  %v2886_v6 = vmul.f32 %v2882_v46, %v2865_v21  ;;  %v11075_v8 = vld [vmem:[#allocation33_spill] sm:$0xff] }
 0xd19   : > { %v2887_v16 = vadd.f32 %v2883_v59, %v2859_v60  ;;  %v2888_v2 = vadd.f32 %v2884_v38, %v2860_v15  ;;  %v2889_v42 = vadd.f32 %v2885_v61, %v2861_v12  ;;  %v2890_v33 = vadd.f32 %v2886_v6, %v2862_v14  ;;  %v8266_v15 = vld [vmem:[%s10254_s6] sm:$0xff]  ;;  %v11077_v61 = vld [vmem:[#allocation11_spill] sm:$0xff] }
 0xd1a   : > { %v6148_v12 = vmov 30  }
 0xd1b   : > { %v2893_v0 = vpop.permute.xlu1 %2892 }
 0xd1c   : > { %v2895_v17 = vmul.f32 %v2893_v0, %v2887_v16  ;;  %v2896_v20 = vmul.f32 %v2893_v0, %v2888_v2  ;;  %v2897_v11 = vmul.f32 %v2893_v0, %v2889_v42  ;;  %v2898_v50 = vmul.f32 %v2893_v0, %v2890_v33  ;;  %v11078_v2 = vld [vmem:[#allocation14_spill] sm:$0xff]  ;;  %v11079_v0 = vld [vmem:[#allocation13_spill] sm:$0xff]  ;;  %v11080_v33 = vld [vmem:[#allocation36_spill] sm:$0xff] }
 0xd1e   : > { %v2903_v22 = vadd.f32 %v2901_v31, %v2895_v17  ;;  %v2904_v1 = vadd.f32 %v2901_v31, %v2896_v20  ;;  %v2905_v35 = vadd.f32 %v2901_v31, %v2897_v11  ;;  %v2906_v7 = vadd.f32 %v2901_v31, %v2898_v50 }
 0xd20   : > { %v8240_v53 = vmax.f32 %v2903_v22, 0.0  ;;  %v8242_v34 = vpop.permute.xlu1 %2916  ;;  %v8244_v55 = vmax.f32 %v2904_v1, 0.0  ;;  %v8246_v40 = vmax.f32 %v2905_v35, 0.0  ;;  %v8251_v39 = vmax.f32 %v2906_v7, 0.0  ;;  %v11081_v22 = vld [vmem:[#allocation12_spill] sm:$0xff] }
 0xd21   : > { %v6149_v35 = vmov 31  }
 0xd22   : > { %11071 = vst [vmem:[#allocation55_spill] sm:$0xff] %v8240_v53  ;;  %v2929_v28 = vmul.f32 %v8240_v53, %v11072_v26  ;;  %v2931_v36 = vmul.f32 %v8246_v40, %v11074_v24  ;;  %v2930_v37 = vmul.f32 %v8244_v55, %v11075_v8  ;;  %v2932_v21 = vmul.f32 %v8251_v39, %v11076_v43 }
 0xd23   : > { %v2971_v6 = vmul.f32 %v8240_v53, %v11077_v61  ;;  %v2973_v31 = vmul.f32 %v8246_v40, %v11079_v0  ;;  %v2972_v17 = vmul.f32 %v8244_v55, %v11080_v33  ;;  %v2974_v50 = vmul.f32 %v8251_v39, %v11081_v22 }
 0xd24   : > { %v3434_v51 = vmul.f32 %v8244_v55, %v11142_v57  ;;  %v3433_v63 = vmul.f32 %v8240_v53, %v11143_v10  ;;  %v3436_v45 = vmul.f32 %v8251_v39, %v11144_v25  ;;  %v3435_v5 = vmul.f32 %v8246_v40, %v11145_v56 }
 0xd25   : > { %v2935_v41 = vpop.permute.xlu1 %2934 }
 0xd26   : > { %v2938_v19 = vmul.f32 %v2935_v41, %v2929_v28  ;;  %v2937_v62 = vmul.f32 %v2935_v41, %v11073_v52  ;;  %v2940_v30 = vmul.f32 %v2935_v41, %v2931_v36  ;;  %v2939_v46 = vmul.f32 %v2935_v41, %v2930_v37  ;;  %v11083_v37 = vld [vmem:[#allocation20_spill] sm:$0xff] }
 0xd27   : > { %v2941_v60 = vmul.f32 %v2935_v41, %v2932_v21  ;;  %v11082_v41 = vld [vmem:[#allocation15_spill] sm:$0xff] }
 0xd28   : > { %2949 = vrot.lane.b32.xlu1 %v2938_v19, %s6107_s13  ;;  %2947 = vrot.lane.b32.xlu0 %v2937_v62, %s6107_s13  ;;  %v3013_v19 = vmul.f32 %v8240_v53, %v11082_v41 }
 0xd2c   : > { %2953 = vrot.lane.b32.xlu1 %v2940_v30, %s6107_s13  ;;  %2951 = vrot.lane.b32.xlu0 %v2939_v46, %s6107_s13  ;;  %v11084_v46 = vld [vmem:[#allocation17_spill] sm:$0xff] }
 0xd2d   : > { %v3015_v21 = vmul.f32 %v8246_v40, %v11084_v46 }
 0xd30   : > { %2976 = vperm.xlu1 %5965, %v8266_v15   ;;  %2955 = vrot.lane.b32.xlu0 %v2941_v60, %s6107_s13  ;;  %v11085_v60 = vld [vmem:[#allocation37_spill] sm:$0xff] }
 0xd34   : > { %5966 = vset.pattern.permute.xlu1 %v6148_v12  ;;  %v3014_v12 = vmul.f32 %v8244_v55, %v11085_v60 }
 0xd9a   : > { %v8270_v59 = vpop.permute.xlu1 %2949 }
 0xd9e   : > { %v8272_v38 = vpop.permute.xlu1 %2953 }
 0xdaf   : > { %v2977_v14 = vpop.permute.xlu1 %2976 }
 0xdb0   : > { %v2980_v16 = vmul.f32 %v2977_v14, %v2971_v6  ;;  %v2979_v42 = vmul.f32 %v2977_v14, %v11078_v2  ;;  %v2982_v20 = vmul.f32 %v2977_v14, %v2973_v31  ;;  %v2981_v11 = vmul.f32 %v2977_v14, %v2972_v17 }
 0xdb1   : > { %v2983_v1 = vmul.f32 %v2977_v14, %v2974_v50  ;;  %v6150_v17 = vmov 32   ;;  %v11087_v50 = vld [vmem:[#allocation22_spill] sm:$0xff] }
 0xdb2   : > { %2991 = vrot.lane.b32.xlu1 %v2980_v16, %s6108_s15  ;;  %2989 = vrot.lane.b32.xlu0 %v2979_v42, %s6108_s15  ;;  %v11086_v16 = vld [vmem:[#allocation16_spill] sm:$0xff] }
 0xdb3   : > { %v3016_v42 = vmul.f32 %v8251_v39, %v11086_v16 }
 0xdb6   : > { %2995 = vrot.lane.b32.xlu1 %v2982_v20, %s6108_s15  ;;  %2993 = vrot.lane.b32.xlu0 %v2981_v11, %s6108_s15 }
 0xdba   : > { %3018 = vperm.xlu1 %5966, %v8266_v15   ;;  %2997 = vrot.lane.b32.xlu0 %v2983_v1, %s6108_s15  ;;  %v3055_v1 = vmul.f32 %v8240_v53, %v11087_v50 }
 0xdbe   : > { %5967 = vset.pattern.permute.xlu1 %v6149_v35 }
 0xe24   : > { %v8289_v7 = vpop.permute.xlu1 %2991 }
 0xe28   : > { %v8291_v28 = vpop.permute.xlu1 %2995 }
 0xe39   : > { %v3019_v62 = vpop.permute.xlu1 %3018 }
 0xe3a   : > { %v3022_v36 = vmul.f32 %v3019_v62, %v3013_v19  ;;  %v3021_v30 = vmul.f32 %v3019_v62, %v11083_v37  ;;  %v3024_v6 = vmul.f32 %v3019_v62, %v3015_v21  ;;  %v3023_v14 = vmul.f32 %v3019_v62, %v3014_v12  ;;  %v11090_v12 = vld [vmem:[#allocation38_spill] sm:$0xff] }
 0xe3b   : > { %v3025_v31 = vmul.f32 %v3019_v62, %v3016_v42  ;;  %v11089_v62 = vld [vmem:[#allocation25_spill] sm:$0xff] }
 0xe3c   : > { %3033 = vrot.lane.b32.xlu1 %v3022_v36, %s6109_s16  ;;  %3031 = vrot.lane.b32.xlu0 %v3021_v30, %s6109_s16  ;;  %v11088_v36 = vld [vmem:[#allocation26_spill] sm:$0xff]  ;;  %v3057_v21 = vmul.f32 %v8246_v40, %v11089_v62 }
 0xe40   : > { %3037 = vrot.lane.b32.xlu1 %v3024_v6, %s6109_s16  ;;  %3035 = vrot.lane.b32.xlu0 %v3023_v14, %s6109_s16  ;;  %v3056_v6 = vmul.f32 %v8244_v55, %v11090_v12 }
 0xe44   : > { %3060 = vperm.xlu1 %5967, %v8266_v15   ;;  %3039 = vrot.lane.b32.xlu0 %v3025_v31, %s6109_s16  ;;  %v11091_v31 = vld [vmem:[#allocation24_spill] sm:$0xff] }
 0xe48   : > { %5968 = vset.pattern.permute.xlu1 %v6150_v17  ;;  %v3058_v17 = vmul.f32 %v8251_v39, %v11091_v31 }
 0xeae   : > { %v8308_v20 = vpop.permute.xlu1 %3033 }
 0xeb2   : > { %v8310_v11 = vpop.permute.xlu1 %3037 }
 0xec3   : > { %v3061_v35 = vpop.permute.xlu1 %3060 }
 0xec4   : > { %v3064_v19 = vmul.f32 %v3061_v35, %v3055_v1  ;;  %v3063_v30 = vmul.f32 %v3061_v35, %v11088_v36  ;;  %v3066_v14 = vmul.f32 %v3061_v35, %v3057_v21  ;;  %v3065_v42 = vmul.f32 %v3061_v35, %v3056_v6  ;;  %v11092_v21 = vld [vmem:[#allocation27_spill] sm:$0xff] }
 0xec5   : > { %v3067_v1 = vmul.f32 %v3061_v35, %v3058_v17  ;;  %v3097_v6 = vmul.f32 %v8240_v53, %v11092_v21  ;;  %v11094_v35 = vld [vmem:[#allocation29_spill] sm:$0xff]  ;;  %v11096_v21 = vld [vmem:[#allocation28_spill] sm:$0xff] }
 0xec6   : > { %3075 = vrot.lane.b32.xlu1 %v3064_v19, %s6110_s18  ;;  %3073 = vrot.lane.b32.xlu0 %v3063_v30, %s6110_s18  ;;  %v6151_v19 = vmov 33   ;;  %v3099_v17 = vmul.f32 %v8246_v40, %v11094_v35 }
 0xeca   : > { %3079 = vrot.lane.b32.xlu1 %v3066_v14, %s6110_s18  ;;  %3077 = vrot.lane.b32.xlu0 %v3065_v42, %s6110_s18  ;;  %v11093_v42 = vld [vmem:[#allocation30_spill] sm:$0xff] }
 0xece   : > { %3102 = vperm.xlu1 %5968, %v8266_v15   ;;  %3081 = vrot.lane.b32.xlu0 %v3067_v1, %s6110_s18  ;;  %v11095_v1 = vld [vmem:[#allocation39_spill] sm:$0xff] }
 0xed2   : > { %5969 = vset.pattern.permute.xlu1 %v6151_v19  ;;  %v3098_v19 = vmul.f32 %v8244_v55, %v11095_v1 }
 0xf38   : > { %v8327_v30 = vpop.permute.xlu1 %3075 }
 0xf3c   : > { %v8329_v62 = vpop.permute.xlu1 %3079 }
 0xf4d   : > { %v3103_v14 = vpop.permute.xlu1 %3102 }
 0xf4e   : > { %v3106_v12 = vmul.f32 %v3103_v14, %v3097_v6  ;;  %v3105_v36 = vmul.f32 %v3103_v14, %v11093_v42  ;;  %v3108_v31 = vmul.f32 %v3103_v14, %v3099_v17  ;;  %v3107_v50 = vmul.f32 %v3103_v14, %v3098_v19  ;;  %v11097_v17 = vld [vmem:[#allocation31_spill] sm:$0xff] }
 0xf4f   : > { %v3100_v6 = vmul.f32 %v8251_v39, %v11096_v21  ;;  %v3139_v19 = vmul.f32 %v8240_v53, %v11097_v17  ;;  %v11101_v17 = vld [vmem:[#allocation32_spill] sm:$0xff] }
 0xf50   : > { %3117 = vrot.lane.b32.xlu1 %v3106_v12, %s6111_s20  ;;  %3115 = vrot.lane.b32.xlu0 %v3105_v36, %s6111_s20  ;;  %v6152_v36 = vmov 34  }
 0xf51   : > { %v3109_v42 = vmul.f32 %v3103_v14, %v3100_v6  ;;  %v11099_v14 = vld [vmem:[#allocation34_spill] sm:$0xff]  ;;  %v11100_v6 = vld [vmem:[#allocation40_spill] sm:$0xff] }
 0xf54   : > { %3121 = vrot.lane.b32.xlu1 %v3108_v31, %s6111_s20  ;;  %3119 = vrot.lane.b32.xlu0 %v3107_v50, %s6111_s20  ;;  %v11098_v50 = vld [vmem:[#allocation35_spill] sm:$0xff] }
 0xf58   : > { %3144 = vperm.xlu1 %5969, %v8266_v15   ;;  %3123 = vrot.lane.b32.xlu0 %v3109_v42, %s6111_s20  ;;  %v3141_v42 = vmul.f32 %v8246_v40, %v11099_v14 }
 0xf5c   : > { %5970 = vset.pattern.permute.xlu1 %v6152_v36  ;;  %v3140_v36 = vmul.f32 %v8244_v55, %v11100_v6 }
 0xfc2   : > { %v8346_v12 = vpop.permute.xlu1 %3117 }
 0xfc6   : > { %v8348_v35 = vpop.permute.xlu1 %3121 }
 0xfd7   : > { %v3145_v31 = vpop.permute.xlu1 %3144 }
 0xfd8   : > { %v3148_v1 = vmul.f32 %v3145_v31, %v3139_v19  ;;  %v3147_v16 = vmul.f32 %v3145_v31, %v11098_v50  ;;  %v3150_v21 = vmul.f32 %v3145_v31, %v3141_v42  ;;  %v3149_v60 = vmul.f32 %v3145_v31, %v3140_v36  ;;  %v11102_v42 = vld [vmem:[#allocation41_spill] sm:$0xff] }
 0xfd9   : > { %v3142_v19 = vmul.f32 %v8251_v39, %v11101_v17  ;;  %v3181_v36 = vmul.f32 %v8240_v53, %v11102_v42  ;;  %v11106_v42 = vld [vmem:[#allocation44_spill] sm:$0xff] }
 0xfda   : > { %3159 = vrot.lane.b32.xlu1 %v3148_v1, %s6112_s22  ;;  %3157 = vrot.lane.b32.xlu0 %v3147_v16, %s6112_s22  ;;  %v6153_v16 = vmov 35  }
 0xfdb   : > { %v3151_v50 = vmul.f32 %v3145_v31, %v3142_v19  ;;  %v11104_v31 = vld [vmem:[#allocation45_spill] sm:$0xff]  ;;  %v11105_v19 = vld [vmem:[#allocation43_spill] sm:$0xff] }
 0xfde   : > { %3163 = vrot.lane.b32.xlu1 %v3150_v21, %s6112_s22  ;;  %3161 = vrot.lane.b32.xlu0 %v3149_v60, %s6112_s22  ;;  %v11103_v60 = vld [vmem:[#allocation42_spill] sm:$0xff] }
 0xfe2   : > { %3186 = vperm.xlu1 %5970, %v8266_v15   ;;  %3165 = vrot.lane.b32.xlu0 %v3151_v50, %s6112_s22  ;;  %v3183_v50 = vmul.f32 %v8246_v40, %v11104_v31 }
 0xfe6   : > { %5971 = vset.pattern.permute.xlu1 %v6153_v16  ;;  %v3182_v16 = vmul.f32 %v8244_v55, %v11105_v19 }
0x104c   : > { %v8365_v1 = vpop.permute.xlu1 %3159 }
0x1050   : > { %v8367_v14 = vpop.permute.xlu1 %3163 }
0x1061   : > { %v3187_v21 = vpop.permute.xlu1 %3186 }
0x1062   : > { %v3190_v6 = vmul.f32 %v3187_v21, %v3181_v36  ;;  %v3189_v46 = vmul.f32 %v3187_v21, %v11103_v60  ;;  %v3192_v17 = vmul.f32 %v3187_v21, %v3183_v50  ;;  %v3191_v37 = vmul.f32 %v3187_v21, %v3182_v16  ;;  %v11107_v50 = vld [vmem:[#allocation46_spill] sm:$0xff] }
0x1063   : > { %v3184_v36 = vmul.f32 %v8251_v39, %v11106_v42  ;;  %v3223_v16 = vmul.f32 %v8240_v53, %v11107_v50  ;;  %v11111_v50 = vld [vmem:[#allocation47_spill] sm:$0xff] }
0x1064   : > { %3201 = vrot.lane.b32.xlu1 %v3190_v6, %s10955_s25  ;;  %3199 = vrot.lane.b32.xlu0 %v3189_v46, %s10955_s25  ;;  %v6154_v46 = vmov 36  }
0x1065   : > { %v3193_v60 = vmul.f32 %v3187_v21, %v3184_v36  ;;  %v11109_v21 = vld [vmem:[#allocation50_spill] sm:$0xff]  ;;  %v11110_v36 = vld [vmem:[#allocation49_spill] sm:$0xff] }
0x1068   : > { %3205 = vrot.lane.b32.xlu1 %v3192_v17, %s10955_s25  ;;  %3203 = vrot.lane.b32.xlu0 %v3191_v37, %s10955_s25  ;;  %v11108_v37 = vld [vmem:[#allocation48_spill] sm:$0xff] }
0x106c   : > { %3228 = vperm.xlu1 %5971, %v8266_v15   ;;  %3207 = vrot.lane.b32.xlu0 %v3193_v60, %s10955_s25  ;;  %v3225_v60 = vmul.f32 %v8246_v40, %v11109_v21 }
0x1070   : > { %5972 = vset.pattern.permute.xlu1 %v6154_v46  ;;  %v3224_v46 = vmul.f32 %v8244_v55, %v11110_v36 }
0x10d6   : > { %v8384_v6 = vpop.permute.xlu1 %3201 }
0x10da   : > { %v8386_v31 = vpop.permute.xlu1 %3205 }
0x10eb   : > { %v3229_v17 = vpop.permute.xlu1 %3228 }
0x10ec   : > { %v3232_v19 = vmul.f32 %v3229_v17, %v3223_v16  ;;  %v3231_v41 = vmul.f32 %v3229_v17, %v11108_v37  ;;  %v3234_v42 = vmul.f32 %v3229_v17, %v3225_v60  ;;  %v3233_v0 = vmul.f32 %v3229_v17, %v3224_v46  ;;  %v11113_v60 = vld [vmem:[#allocation56_spill] sm:$0xff] }
0x10ed   : > { %v3226_v16 = vmul.f32 %v8251_v39, %v11111_v50  ;;  %v3265_v46 = vmul.f32 %v8240_v53, %v11113_v60  ;;  %v11117_v60 = vld [vmem:[#allocation57_spill] sm:$0xff] }
0x10ee   : > { %3243 = vrot.lane.b32.xlu1 %v3232_v19, %s10962_s29  ;;  %3241 = vrot.lane.b32.xlu0 %v3231_v41, %s10962_s29  ;;  %v6155_v41 = vmov 37  }
0x10ef   : > { %v3235_v37 = vmul.f32 %v3229_v17, %v3226_v16  ;;  %v11115_v17 = vld [vmem:[#allocation60_spill] sm:$0xff]  ;;  %v11116_v16 = vld [vmem:[#allocation59_spill] sm:$0xff] }
0x10f2   : > { %3247 = vrot.lane.b32.xlu1 %v3234_v42, %s10962_s29  ;;  %3245 = vrot.lane.b32.xlu0 %v3233_v0, %s10962_s29  ;;  %v11114_v0 = vld [vmem:[#allocation58_spill] sm:$0xff] }
0x10f6   : > { %3270 = vperm.xlu1 %5972, %v8266_v15   ;;  %3249 = vrot.lane.b32.xlu0 %v3235_v37, %s10962_s29  ;;  %v3267_v37 = vmul.f32 %v8246_v40, %v11115_v17 }
0x10fa   : > { %5973 = vset.pattern.permute.xlu1 %v6155_v41  ;;  %v3266_v41 = vmul.f32 %v8244_v55, %v11116_v16 }
0x1160   : > { %v8403_v19 = vpop.permute.xlu1 %3243 }
0x1164   : > { %v8405_v21 = vpop.permute.xlu1 %3247 }
0x1165   : > { %11112 = vst [vmem:[#allocation62_spill] sm:$0xff] %v8405_v21 }
0x1175   : > { %v3271_v42 = vpop.permute.xlu1 %3270 }
0x1176   : > { %v3274_v36 = vmul.f32 %v3271_v42, %v3265_v46  ;;  %v3273_v61 = vmul.f32 %v3271_v42, %v11114_v0  ;;  %v3276_v50 = vmul.f32 %v3271_v42, %v3267_v37  ;;  %v3275_v22 = vmul.f32 %v3271_v42, %v3266_v41  ;;  %v11120_v37 = vld [vmem:[#allocation66_spill] sm:$0xff] }
0x1177   : > { %v3268_v46 = vmul.f32 %v8251_v39, %v11117_v60  ;;  %v3307_v41 = vmul.f32 %v8240_v53, %v11120_v37  ;;  %v11124_v37 = vld [vmem:[#allocation67_spill] sm:$0xff] }
0x1178   : > { %3285 = vrot.lane.b32.xlu1 %v3274_v36, %s6099_s14  ;;  %3283 = vrot.lane.b32.xlu0 %v3273_v61, %s6099_s14  ;;  %v6156_v61 = vmov 38  }
0x1179   : > { %v3277_v0 = vmul.f32 %v3271_v42, %v3268_v46  ;;  %v11122_v42 = vld [vmem:[#allocation70_spill] sm:$0xff]  ;;  %v11123_v46 = vld [vmem:[#allocation69_spill] sm:$0xff] }
0x117c   : > { %3289 = vrot.lane.b32.xlu1 %v3276_v50, %s6099_s14  ;;  %3287 = vrot.lane.b32.xlu0 %v3275_v22, %s6099_s14  ;;  %v11121_v22 = vld [vmem:[#allocation68_spill] sm:$0xff] }
0x1180   : > { %3312 = vperm.xlu1 %5973, %v8266_v15   ;;  %3291 = vrot.lane.b32.xlu0 %v3277_v0, %s6099_s14  ;;  %v3309_v0 = vmul.f32 %v8246_v40, %v11122_v42 }
0x1184   : > { %5974 = vset.pattern.permute.xlu1 %v6156_v61  ;;  %v3308_v61 = vmul.f32 %v8244_v55, %v11123_v46 }
0x11ea   : > { %v8422_v36 = vpop.permute.xlu1 %3285 }
0x11eb   : > { %11118 = vst [vmem:[#allocation61_spill] sm:$0xff] %v8422_v36 }
0x11ee   : > { %v8424_v17 = vpop.permute.xlu1 %3289 }
0x11ef   : > { %11119 = vst [vmem:[#allocation63_spill] sm:$0xff] %v8424_v17 }
0x11ff   : > { %v3313_v50 = vpop.permute.xlu1 %3312 }
0x1200   : > { %v3316_v16 = vmul.f32 %v3313_v50, %v3307_v41  ;;  %v3315_v2 = vmul.f32 %v3313_v50, %v11121_v22  ;;  %v3318_v60 = vmul.f32 %v3313_v50, %v3309_v0  ;;  %v3317_v33 = vmul.f32 %v3313_v50, %v3308_v61  ;;  %v11127_v0 = vld [vmem:[#allocation76_spill] sm:$0xff] }
0x1201   : > { %v3310_v41 = vmul.f32 %v8251_v39, %v11124_v37  ;;  %v3349_v61 = vmul.f32 %v8240_v53, %v11127_v0  ;;  %v11132_v0 = vld [vmem:[#allocation77_spill] sm:$0xff] }
0x1202   : > { %3327 = vrot.lane.b32.xlu1 %v3316_v16, %s10700_s11  ;;  %3325 = vrot.lane.b32.xlu0 %v3315_v2, %s10700_s11  ;;  %v6157_v2 = vmov 39  }
0x1203   : > { %v3319_v22 = vmul.f32 %v3313_v50, %v3310_v41  ;;  %v11130_v50 = vld [vmem:[#allocation80_spill] sm:$0xff]  ;;  %v11131_v41 = vld [vmem:[#allocation79_spill] sm:$0xff] }
0x1206   : > { %3331 = vrot.lane.b32.xlu1 %v3318_v60, %s10700_s11  ;;  %3329 = vrot.lane.b32.xlu0 %v3317_v33, %s10700_s11  ;;  %v11128_v33 = vld [vmem:[#allocation78_spill] sm:$0xff] }
0x120a   : > { %3354 = vperm.xlu1 %5974, %v8266_v15   ;;  %3333 = vrot.lane.b32.xlu0 %v3319_v22, %s10700_s11  ;;  %v3351_v22 = vmul.f32 %v8246_v40, %v11130_v50 }
0x120e   : > { %5975 = vset.pattern.permute.xlu1 %v6157_v2  ;;  %v3350_v2 = vmul.f32 %v8244_v55, %v11131_v41 }
0x1274   : > { %v8441_v16 = vpop.permute.xlu1 %3327 }
0x1275   : > { %11125 = vst [vmem:[#allocation64_spill] sm:$0xff] %v8441_v16 }
0x1278   : > { %v8443_v42 = vpop.permute.xlu1 %3331 }
0x1279   : > { %11126 = vst [vmem:[#allocation65_spill] sm:$0xff] %v8443_v42 }
0x1289   : > { %v3355_v60 = vpop.permute.xlu1 %3354 }
0x128a   : > { %v3358_v46 = vmul.f32 %v3355_v60, %v3349_v61  ;;  %v3357_v43 = vmul.f32 %v3355_v60, %v11128_v33  ;;  %v3360_v37 = vmul.f32 %v3355_v60, %v3351_v22  ;;  %v3359_v24 = vmul.f32 %v3355_v60, %v3350_v2  ;;  %v11135_v22 = vld [vmem:[#allocation86_spill] sm:$0xff] }
0x128b   : > { %v3352_v61 = vmul.f32 %v8251_v39, %v11132_v0  ;;  %v3391_v2 = vmul.f32 %v8240_v53, %v11135_v22  ;;  %v11139_v22 = vld [vmem:[#allocation87_spill] sm:$0xff] }
0x128c   : > { %3369 = vrot.lane.b32.xlu1 %v3358_v46, %s11129_s23  ;;  %3367 = vrot.lane.b32.xlu0 %v3357_v43, %s11129_s23  ;;  %v6158_v43 = vmov 40  }
0x128d   : > { %v3361_v33 = vmul.f32 %v3355_v60, %v3352_v61  ;;  %v11137_v60 = vld [vmem:[#allocation90_spill] sm:$0xff]  ;;  %v11138_v61 = vld [vmem:[#allocation89_spill] sm:$0xff] }
0x1290   : > { %3373 = vrot.lane.b32.xlu1 %v3360_v37, %s11129_s23  ;;  %3371 = vrot.lane.b32.xlu0 %v3359_v24, %s11129_s23  ;;  %v11136_v24 = vld [vmem:[#allocation88_spill] sm:$0xff] }
0x1294   : > { %3396 = vperm.xlu1 %5975, %v8266_v15   ;;  %3375 = vrot.lane.b32.xlu0 %v3361_v33, %s11129_s23  ;;  %v3393_v33 = vmul.f32 %v8246_v40, %v11137_v60 }
0x1298   : > { %5976 = vset.pattern.permute.xlu1 %v6158_v43  ;;  %v3392_v43 = vmul.f32 %v8244_v55, %v11138_v61 }
0x12fe   : > { %v8460_v46 = vpop.permute.xlu1 %3369 }
0x12ff   : > { %11133 = vst [vmem:[#allocation72_spill] sm:$0xff] %v8460_v46 }
0x1302   : > { %v8462_v50 = vpop.permute.xlu1 %3373 }
0x1303   : > { %11134 = vst [vmem:[#allocation71_spill] sm:$0xff] %v8462_v50 }
0x1313   : > { %v3397_v37 = vpop.permute.xlu1 %3396 }
0x1314   : > { %v3400_v41 = vmul.f32 %v3397_v37, %v3391_v2  ;;  %v3399_v8 = vmul.f32 %v3397_v37, %v11136_v24  ;;  %v3402_v0 = vmul.f32 %v3397_v37, %v3393_v33  ;;  %v3401_v26 = vmul.f32 %v3397_v37, %v3392_v43 }
0x1315   : > { %v3394_v2 = vmul.f32 %v8251_v39, %v11139_v22 }
0x1316   : > { %3411 = vrot.lane.b32.xlu1 %v3400_v41, %s10698_s24  ;;  %3409 = vrot.lane.b32.xlu0 %v3399_v8, %s10698_s24  ;;  %v6159_v8 = vmov 41   ;;  %v8479_v41 = vpop.permute.xlu0 %2947 }
0x1317   : > { %v3403_v24 = vmul.f32 %v3397_v37, %v3394_v2  ;;  %5977 = vset.pattern.permute.xlu0 %v6159_v8 }
0x131a   : > { %3415 = vrot.lane.b32.xlu1 %v3402_v0, %s10698_s24  ;;  %3413 = vrot.lane.b32.xlu0 %v3401_v26, %s10698_s24  ;;  %v8481_v60 = vpop.permute.xlu0 %2951 }
0x131e   : > { %3438 = vperm.xlu1 %5976, %v8266_v15   ;;  %3417 = vrot.lane.b32.xlu0 %v3403_v24, %s10698_s24  ;;  %v8483_v33 = vpop.permute.xlu0 %2955  ;;  %s11441_s24 = smov 56  }
0x1322   : > { %v8485_v43 = vpop.permute.xlu0 %2989 }
0x1326   : > { %v8487_v0 = vpop.permute.xlu0 %2993 }
0x132a   : > { %v8489_v26 = vpop.permute.xlu0 %2997 }
0x132e   : > { %v8491_v22 = vpop.permute.xlu0 %3031 }
0x1332   : > { %v8493_v37 = vpop.permute.xlu0 %3035 }
0x1336   : > { %v8495_v2 = vpop.permute.xlu0 %3039 }
0x133a   : > { %v8497_v24 = vpop.permute.xlu0 %3073 }
0x133e   : > { %v8499_v8 = vpop.permute.xlu0 %3077 }
0x1342   : > { %v8503_v52 = vpop.permute.xlu0 %3081 }
0x1346   : > { %v8511_v29 = vpop.permute.xlu0 %3115 }
0x134a   : > { %v8519_v13 = vpop.permute.xlu0 %3119 }
0x1388   : > { %v8501_v61 = vpop.permute.xlu1 %3411 }
0x1389   : > { %11140 = vst [vmem:[#allocation73_spill] sm:$0xff] %v8501_v61 }
0x138c   : > { %v8505_v18 = vpop.permute.xlu1 %3415 }
0x138d   : > { %11141 = vst [vmem:[#allocation74_spill] sm:$0xff] %v8505_v18 }
0x139d   : > { %v3439_v44 = vpop.permute.xlu1 %3438 }
0x139e   : > { %v3442_v27 = vmul.f32 %v3439_v44, %v3434_v51  ;;  %v3441_v4 = vmul.f32 %v3439_v44, %v3433_v63  ;;  %v3444_v54 = vmul.f32 %v3439_v44, %v3436_v45  ;;  %v3443_v57 = vmul.f32 %v3439_v44, %v3435_v5  ;;  %v8524_v63 = vpop.permute.xlu0 %3123 }
0x139f   : > { %v6160_v51 = vmov 42  }
0x13a0   : > { %3451 = vrot.lane.b32.xlu1 %v3442_v27, %s10694_s19  ;;  %3449 = vrot.lane.b32.xlu0 %v3441_v4, %s10694_s19 }
0x13a1   : > { %5978 = vset.pattern.permute.xlu1 %v6160_v51 }
0x13a2   : > { %v8526_v27 = vpop.permute.xlu0 %3157 }
0x13a4   : > { %3455 = vrot.lane.b32.xlu1 %v3444_v54, %s10694_s19  ;;  %3453 = vrot.lane.b32.xlu0 %v3443_v57, %s10694_s19 }
0x13a6   : > { %v8528_v4 = vpop.permute.xlu0 %3161 }
0x13a8   : > { %3475 = vperm.xlu0 %5977, %v8266_v15  }
0x13aa   : > { %v8530_v25 = vpop.permute.xlu0 %3165 }
0x13ae   : > { %v8532_v45 = vpop.permute.xlu0 %3199 }
0x13b2   : > { %v8534_v5 = vpop.permute.xlu0 %3203 }
0x13b6   : > { %v8536_v44 = vpop.permute.xlu0 %3207 }
0x13ba   : > { %v8538_v54 = vpop.permute.xlu0 %3241 }
0x13be   : > { %v8540_v57 = vpop.permute.xlu0 %3245 }
0x13c2   : > { %v8542_v56 = vpop.permute.xlu0 %3249 }
0x13c3   : > { %11146 = vst [vmem:[#allocation75_spill] sm:$0xff] %v8542_v56 }
0x13c6   : > { %v8544_v10 = vpop.permute.xlu0 %3283 }
0x13c7   : > { %11147 = vst [vmem:[#allocation82_spill] sm:$0xff] %v8544_v10 }
0x13ca   : > { %v8546_v48 = vpop.permute.xlu0 %3287 }
0x13cb   : > { %11148 = vst [vmem:[#allocation81_spill] sm:$0xff] %v8546_v48 }
0x13ce   : > { %v8548_v18 = vpop.permute.xlu0 %3291 }
0x13cf   : > { %11149 = vst [vmem:[#allocation83_spill] sm:$0xff] %v8548_v18 }
0x13d2   : > { %v8550_v51 = vpop.permute.xlu0 %3325 }
0x13d3   : > { %11150 = vst [vmem:[#allocation84_spill] sm:$0xff] %v8550_v51  ;;  %v11161_v51 = vld [vmem:[#allocation105_spill] sm:$0xff] }
0x13d6   : > { %v8552_v61 = vpop.permute.xlu0 %3329 }
0x13d7   : > { %11151 = vst [vmem:[#allocation85_spill] sm:$0xff] %v8552_v61  ;;  %v3472_v61 = vmul.f32 %v8246_v40, %v11161_v51  ;;  %v11166_v51 = vld [vmem:[#allocation108_spill] sm:$0xff] }
0x13da   : > { %v8554_v50 = vpop.permute.xlu0 %3333 }
0x13db   : > { %11152 = vst [vmem:[#allocation91_spill] sm:$0xff] %v8554_v50  ;;  %v11162_v50 = vld [vmem:[#allocation103_spill] sm:$0xff] }
0x13de   : > { %v8556_v46 = vpop.permute.xlu0 %3367 }
0x13df   : > { %11153 = vst [vmem:[#allocation97_spill] sm:$0xff] %v8556_v46  ;;  %v3470_v46 = vmul.f32 %v8240_v53, %v11162_v50  ;;  %v3473_v50 = vmul.f32 %v8251_v39, %v11166_v51 }
0x13e2   : > { %v8558_v42 = vpop.permute.xlu0 %3371 }
0x13e3   : > { %11154 = vst [vmem:[#allocation98_spill] sm:$0xff] %v8558_v42 }
0x13e6   : > { %v8560_v16 = vpop.permute.xlu0 %3375 }
0x13e7   : > { %11155 = vst [vmem:[#allocation94_spill] sm:$0xff] %v8560_v16 }
0x13ea   : > { %v8562_v17 = vpop.permute.xlu0 %3409 }
0x13eb   : > { %11156 = vst [vmem:[#allocation99_spill] sm:$0xff] %v8562_v17  ;;  %v11165_v17 = vld [vmem:[#allocation107_spill] sm:$0xff] }
0x13ee   : > { %v8564_v36 = vpop.permute.xlu0 %3413 }
0x13ef   : > { %11157 = vst [vmem:[#allocation102_spill] sm:$0xff] %v8564_v36  ;;  %v11164_v36 = vld [vmem:[#allocation106_spill] sm:$0xff] }
0x13f2   : > { %v8566_v10 = vpop.permute.xlu0 %3417 }
0x13f3   : > { %11158 = vst [vmem:[#allocation100_spill] sm:$0xff] %v8566_v10  ;;  %v3471_v10 = vmul.f32 %v8244_v55, %v11164_v36 }
0x1412   : > { %v8568_v48 = vpop.permute.xlu0 %3449 }
0x1413   : > { %11159 = vst [vmem:[#allocation101_spill] sm:$0xff] %v8568_v48 }
0x1416   : > { %v8570_v18 = vpop.permute.xlu0 %3453 }
0x1417   : > { %11160 = vst [vmem:[#allocation104_spill] sm:$0xff] %v8570_v18 }
0x1427   : > { %v3476_v56 = vpop.permute.xlu0 %3475 }
0x1428   : > { %v3480_v42 = vmul.f32 %v3476_v56, %v3472_v61  ;;  %v3478_v21 = vmul.f32 %v3476_v56, %v3470_v46  ;;  %v3482_v48 = vmul.f32 %v3476_v56, %v11165_v17  ;;  %v3479_v16 = vmul.f32 %v3476_v56, %v3471_v10 }
0x1429   : > { %v3481_v18 = vmul.f32 %v3476_v56, %v3473_v50  ;;  %v11173_v56 = vld [vmem:[#allocation114_spill] sm:$0xff] }
0x142a   : > { %3492 = vrot.lane.b32.xlu0 %v3480_v42, %s11163_s17  ;;  %3488 = vrot.lane.b32.xlu1 %v3478_v21, %s11163_s17  ;;  %v6161_v42 = vmov 43   ;;  %v8587_v21 = vpop.permute.xlu1 %3451 }
0x142b   : > { %11167 = vst [vmem:[#allocation110_spill] sm:$0xff] %v8587_v21 }
0x142e   : > { %3496 = vrot.lane.b32.xlu0 %v3482_v48, %s11163_s17  ;;  %3490 = vrot.lane.b32.xlu1 %v3479_v16, %s11163_s17  ;;  %v8589_v46 = vpop.permute.xlu1 %3455  ;;  %v11172_v16 = vld [vmem:[#allocation115_spill] sm:$0xff] }
0x142f   : > { %11168 = vst [vmem:[#allocation109_spill] sm:$0xff] %v8589_v46  ;;  %v3513_v17 = vmul.f32 %v8244_v55, %v11172_v16  ;;  %v11176_v46 = vld [vmem:[#allocation116_spill] sm:$0xff]  ;;  %v11177_v16 = vld [vmem:[#allocation118_spill] sm:$0xff] }
0x1432   : > { %3494 = vrot.lane.b32.xlu1 %v3481_v18, %s11163_s17  ;;  %v3512_v18 = vmul.f32 %v8240_v53, %v11173_v56 }
0x1436   : > { %3517 = vperm.xlu1 %5978, %v8266_v15  }
0x143a   : > { %5979 = vset.pattern.permute.xlu1 %v6161_v42  ;;  %v11175_v42 = vld [vmem:[#allocation117_spill] sm:$0xff] }
0x149c   : > { %v8591_v61 = vpop.permute.xlu1 %3488 }
0x149d   : > { %11169 = vst [vmem:[#allocation111_spill] sm:$0xff] %v8591_v61  ;;  %v3515_v61 = vmul.f32 %v8251_v39, %v11175_v42 }
0x14a0   : > { %v8593_v10 = vpop.permute.xlu1 %3490 }
0x14a1   : > { %11170 = vst [vmem:[#allocation112_spill] sm:$0xff] %v8593_v10  ;;  %v3514_v10 = vmul.f32 %v8246_v40, %v11176_v46 }
0x14a4   : > { %v8595_v48 = vpop.permute.xlu1 %3494 }
0x14a5   : > { %11171 = vst [vmem:[#allocation113_spill] sm:$0xff] %v8595_v48 }
0x14b5   : > { %v3518_v50 = vpop.permute.xlu1 %3517 }
0x14b6   : > { %v3521_v51 = vmul.f32 %v3518_v50, %v3513_v17  ;;  %v3520_v36 = vmul.f32 %v3518_v50, %v3512_v18  ;;  %v3523_v48 = vmul.f32 %v3518_v50, %v3515_v61  ;;  %v3522_v21 = vmul.f32 %v3518_v50, %v3514_v10  ;;  %v11180_v18 = vld [vmem:[#allocation125_spill] sm:$0xff]  ;;  %v11181_v10 = vld [vmem:[#allocation124_spill] sm:$0xff] }
0x14b7   : > { %v3524_v56 = vmul.f32 %v3518_v50, %v11177_v16  ;;  %v6162_v17 = vmov 44   ;;  %v3555_v61 = vmul.f32 %v8244_v55, %v11180_v18 }
0x14b8   : > { %3532 = vrot.lane.b32.xlu1 %v3521_v51, %s11174_s27  ;;  %3530 = vrot.lane.b32.xlu0 %v3520_v36, %s11174_s27 }
0x14bc   : > { %3536 = vrot.lane.b32.xlu1 %v3523_v48, %s11174_s27  ;;  %3534 = vrot.lane.b32.xlu0 %v3522_v21, %s11174_s27  ;;  %v3554_v48 = vmul.f32 %v8240_v53, %v11181_v10  ;;  %v11184_v10 = vld [vmem:[#allocation128_spill] sm:$0xff] }
0x14c0   : > { %3559 = vperm.xlu1 %5979, %v8266_v15   ;;  %3538 = vrot.lane.b32.xlu0 %v3524_v56, %s11174_s27  ;;  %v11182_v56 = vld [vmem:[#allocation127_spill] sm:$0xff] }
0x14c1   : > { %v3557_v50 = vmul.f32 %v8251_v39, %v11182_v56 }
0x14c4   : > { %5980 = vset.pattern.permute.xlu1 %v6162_v17  ;;  %v11183_v17 = vld [vmem:[#allocation126_spill] sm:$0xff] }
0x14c5   : > { %v3556_v16 = vmul.f32 %v8246_v40, %v11183_v17 }
0x152a   : > { %v8612_v36 = vpop.permute.xlu1 %3532 }
0x152b   : > { %11178 = vst [vmem:[#allocation120_spill] sm:$0xff] %v8612_v36 }
0x152e   : > { %v8614_v51 = vpop.permute.xlu1 %3536 }
0x152f   : > { %11179 = vst [vmem:[#allocation119_spill] sm:$0xff] %v8614_v51 }
0x153f   : > { %v3560_v42 = vpop.permute.xlu1 %3559 }
0x1540   : > { %v3563_v21 = vmul.f32 %v3560_v42, %v3555_v61  ;;  %v3562_v46 = vmul.f32 %v3560_v42, %v3554_v48  ;;  %v3565_v51 = vmul.f32 %v3560_v42, %v3557_v50  ;;  %v3564_v36 = vmul.f32 %v3560_v42, %v3556_v16  ;;  %v11187_v50 = vld [vmem:[#allocation135_spill] sm:$0xff] }
0x1541   : > { %v3566_v18 = vmul.f32 %v3560_v42, %v11184_v10  ;;  %v6163_v61 = vmov 45   ;;  %v3597_v16 = vmul.f32 %v8244_v55, %v11187_v50  ;;  %v11192_v50 = vld [vmem:[#allocation138_spill] sm:$0xff] }
0x1542   : > { %3574 = vrot.lane.b32.xlu1 %v3563_v21, %s10692_s28  ;;  %3572 = vrot.lane.b32.xlu0 %v3562_v46, %s10692_s28  ;;  %v6164_v46 = vmov 46  }
0x1543   : > { %5982 = vset.pattern.permute.xlu0 %v6164_v46  ;;  %v11191_v46 = vld [vmem:[#allocation136_spill] sm:$0xff] }
0x1544   : > { %v3598_v56 = vmul.f32 %v8246_v40, %v11191_v46 }
0x1546   : > { %3578 = vrot.lane.b32.xlu1 %v3565_v51, %s10692_s28  ;;  %3576 = vrot.lane.b32.xlu0 %v3564_v36, %s10692_s28  ;;  %v11188_v51 = vld [vmem:[#allocation134_spill] sm:$0xff] }
0x1547   : > { %v3596_v36 = vmul.f32 %v8240_v53, %v11188_v51 }
0x154a   : > { %3601 = vperm.xlu1 %5980, %v8266_v15   ;;  %3580 = vrot.lane.b32.xlu0 %v3566_v18, %s10692_s28  ;;  %v11190_v18 = vld [vmem:[#allocation137_spill] sm:$0xff] }
0x154e   : > { %5981 = vset.pattern.permute.xlu1 %v6163_v61  ;;  %v3599_v61 = vmul.f32 %v8251_v39, %v11190_v18  ;;  %v11204_v18 = vld [vmem:[#allocation150_spill] sm:$0xff] }
0x154f   : > { %v3658_v46 = vmul.f32 %v8246_v40, %v11204_v18  ;;  %v11208_v18 = vld [vmem:[#allocation153_spill] sm:$0xff] }
0x15b4   : > { %v8631_v48 = vpop.permute.xlu1 %3574 }
0x15b5   : > { %11185 = vst [vmem:[#allocation121_spill] sm:$0xff] %v8631_v48 }
0x15b8   : > { %v8633_v21 = vpop.permute.xlu1 %3578 }
0x15b9   : > { %11186 = vst [vmem:[#allocation122_spill] sm:$0xff] %v8633_v21 }
0x15c9   : > { %v3602_v17 = vpop.permute.xlu1 %3601 }
0x15ca   : > { %v3605_v42 = vmul.f32 %v3602_v17, %v3597_v16  ;;  %v3604_v10 = vmul.f32 %v3602_v17, %v3596_v36  ;;  %v3607_v21 = vmul.f32 %v3602_v17, %v3599_v61  ;;  %v3606_v48 = vmul.f32 %v3602_v17, %v3598_v56  ;;  %v8652_v16 = vpop.permute.xlu0 %3492 }
0x15cb   : > { %v3608_v51 = vmul.f32 %v3602_v17, %v11192_v50  ;;  %11193 = vst [vmem:[#allocation123_spill] sm:$0xff] %v8652_v16 }
0x15cc   : > { %3616 = vrot.lane.b32.xlu1 %v3605_v42, %s11189_s21  ;;  %3614 = vrot.lane.b32.xlu0 %v3604_v10, %s11189_s21  ;;  %v6165_v10 = vmov 47  }
0x15ce   : > { %v8654_v36 = vpop.permute.xlu0 %3496 }
0x15cf   : > { %11194 = vst [vmem:[#allocation130_spill] sm:$0xff] %v8654_v36 }
0x15d0   : > { %3620 = vrot.lane.b32.xlu1 %v3607_v21, %s11189_s21  ;;  %3618 = vrot.lane.b32.xlu0 %v3606_v48, %s11189_s21 }
0x15d2   : > { %v8656_v56 = vpop.permute.xlu0 %3530 }
0x15d3   : > { %11195 = vst [vmem:[#allocation129_spill] sm:$0xff] %v8656_v56  ;;  %v11205_v56 = vld [vmem:[#allocation149_spill] sm:$0xff] }
0x15d4   : > { %3643 = vperm.xlu1 %5981, %v8266_v15   ;;  %3622 = vrot.lane.b32.xlu0 %v3608_v51, %s11189_s21 }
0x15d6   : > { %v8658_v21 = vpop.permute.xlu0 %3534 }
0x15d7   : > { %11196 = vst [vmem:[#allocation131_spill] sm:$0xff] %v8658_v21  ;;  %v3656_v21 = vmul.f32 %v8240_v53, %v11205_v56  ;;  %v3659_v56 = vmul.f32 %v8251_v39, %v11208_v18 }
0x15d8   : > { %3661 = vperm.xlu0 %5982, %v8266_v15   ;;  %5983 = vset.pattern.permute.xlu1 %v6165_v10 }
0x15da   : > { %v8660_v48 = vpop.permute.xlu0 %3538 }
0x15db   : > { %11197 = vst [vmem:[#allocation132_spill] sm:$0xff] %v8660_v48 }
0x15dc   : > { %5991 = vset.pattern.permute.xlu0 %v11057_v32 }
0x15de   : > { %v8662_v17 = vpop.permute.xlu0 %3572 }
0x15df   : > { %11198 = vst [vmem:[#allocation133_spill] sm:$0xff] %v8662_v17 }
0x15e2   : > { %v8664_v42 = vpop.permute.xlu0 %3576 }
0x15e3   : > { %11199 = vst [vmem:[#allocation144_spill] sm:$0xff] %v8664_v42  ;;  %v11207_v42 = vld [vmem:[#allocation152_spill] sm:$0xff] }
0x15e6   : > { %v8666_v51 = vpop.permute.xlu0 %3580 }
0x15e7   : > { %11200 = vst [vmem:[#allocation147_spill] sm:$0xff] %v8666_v51  ;;  %v11206_v51 = vld [vmem:[#allocation151_spill] sm:$0xff] }
0x163e   : > { %v8668_v61 = vpop.permute.xlu0 %3614 }
0x163f   : > { %11201 = vst [vmem:[#allocation146_spill] sm:$0xff] %v8668_v61  ;;  %v3657_v61 = vmul.f32 %v8244_v55, %v11206_v51 }
0x1642   : > { %v8670_v50 = vpop.permute.xlu0 %3618 }
0x1643   : > { %11202 = vst [vmem:[#allocation142_spill] sm:$0xff] %v8670_v50 }
0x1646   : > { %v8672_v10 = vpop.permute.xlu0 %3622 }
0x1647   : > { %11203 = vst [vmem:[#allocation143_spill] sm:$0xff] %v8672_v10 }
0x1657   : > { %v3662_v36 = vpop.permute.xlu0 %3661 }
0x1658   : > { %v3666_v48 = vmul.f32 %v3662_v36, %v3658_v46  ;;  %v3664_v16 = vmul.f32 %v3662_v36, %v3656_v21  ;;  %v3668_v50 = vmul.f32 %v3662_v36, %v11207_v42  ;;  %v3665_v17 = vmul.f32 %v3662_v36, %v3657_v61  ;;  %v11215_v42 = vld [vmem:[#allocation160_spill] sm:$0xff] }
0x1659   : > { %v3667_v10 = vmul.f32 %v3662_v36, %v3659_v56  ;;  %v6166_v46 = vmov 48   ;;  %v3699_v36 = vmul.f32 %v8244_v55, %v11215_v42  ;;  %v11216_v56 = vld [vmem:[#allocation159_spill] sm:$0xff] }
0x165a   : > { %3678 = vrot.lane.b32.xlu0 %v3666_v48, %s6107_s13  ;;  %3674 = vrot.lane.b32.xlu1 %v3664_v16, %s6107_s13  ;;  %v8689_v16 = vpop.permute.xlu1 %3616  ;;  %v11219_v42 = vld [vmem:[#allocation163_spill] sm:$0xff] }
0x165b   : > { %11209 = vst [vmem:[#allocation148_spill] sm:$0xff] %v8689_v16  ;;  %v11217_v16 = vld [vmem:[#allocation162_spill] sm:$0xff] }
0x165e   : > { %3682 = vrot.lane.b32.xlu0 %v3668_v50, %s6107_s13  ;;  %3676 = vrot.lane.b32.xlu1 %v3665_v17, %s6107_s13  ;;  %v8691_v21 = vpop.permute.xlu1 %3620 }
0x165f   : > { %11210 = vst [vmem:[#allocation141_spill] sm:$0xff] %v8691_v21 }
0x1662   : > { %3680 = vrot.lane.b32.xlu1 %v3667_v10, %s6107_s13  ;;  %v8693_v48 = vpop.permute.xlu1 %3643  ;;  %v3698_v10 = vmul.f32 %v8240_v53, %v11216_v56 }
0x1663   : > { %11211 = vst [vmem:[#allocation139_spill] sm:$0xff] %v8693_v48  ;;  %v11218_v48 = vld [vmem:[#allocation161_spill] sm:$0xff] }
0x1666   : > { %3703 = vperm.xlu1 %5983, %v8266_v15  }
0x166a   : > { %5984 = vset.pattern.permute.xlu1 %v6166_v46 }
0x16cc   : > { %v8695_v61 = vpop.permute.xlu1 %3674 }
0x16cd   : > { %11212 = vst [vmem:[#allocation140_spill] sm:$0xff] %v8695_v61  ;;  %v3701_v61 = vmul.f32 %v8251_v39, %v11217_v16 }
0x16d0   : > { %v8697_v50 = vpop.permute.xlu1 %3676 }
0x16d1   : > { %11213 = vst [vmem:[#allocation155_spill] sm:$0xff] %v8697_v50  ;;  %v3700_v50 = vmul.f32 %v8246_v40, %v11218_v48 }
0x16d4   : > { %v8699_v17 = vpop.permute.xlu1 %3680 }
0x16d5   : > { %11214 = vst [vmem:[#allocation154_spill] sm:$0xff] %v8699_v17 }
0x16e5   : > { %v3704_v18 = vpop.permute.xlu1 %3703 }
0x16e6   : > { %v3707_v46 = vmul.f32 %v3704_v18, %v3699_v36  ;;  %v3706_v51 = vmul.f32 %v3704_v18, %v3698_v10  ;;  %v3709_v17 = vmul.f32 %v3704_v18, %v3701_v61  ;;  %v3708_v21 = vmul.f32 %v3704_v18, %v3700_v50  ;;  %v11223_v50 = vld [vmem:[#allocation169_spill] sm:$0xff] }
0x16e7   : > { %v3710_v56 = vmul.f32 %v3704_v18, %v11219_v42  ;;  %v6167_v36 = vmov 49   ;;  %v11224_v18 = vld [vmem:[#allocation172_spill] sm:$0xff] }
0x16e8   : > { %3718 = vrot.lane.b32.xlu1 %v3707_v46, %s6108_s15  ;;  %3716 = vrot.lane.b32.xlu0 %v3706_v51, %s6108_s15  ;;  %v11222_v46 = vld [vmem:[#allocation170_spill] sm:$0xff] }
0x16e9   : > { %v3741_v61 = vmul.f32 %v8244_v55, %v11222_v46  ;;  %v11226_v46 = vld [vmem:[#allocation173_spill] sm:$0xff] }
0x16ec   : > { %3722 = vrot.lane.b32.xlu1 %v3709_v17, %s6108_s15  ;;  %3720 = vrot.lane.b32.xlu0 %v3708_v21, %s6108_s15  ;;  %v3740_v17 = vmul.f32 %v8240_v53, %v11223_v50 }
0x16f0   : > { %3745 = vperm.xlu1 %5984, %v8266_v15   ;;  %3724 = vrot.lane.b32.xlu0 %v3710_v56, %s6108_s15  ;;  %v3743_v56 = vmul.f32 %v8251_v39, %v11224_v18 }
0x16f4   : > { %5985 = vset.pattern.permute.xlu1 %v6167_v36  ;;  %v11225_v36 = vld [vmem:[#allocation171_spill] sm:$0xff] }
0x16f5   : > { %v3742_v42 = vmul.f32 %v8246_v40, %v11225_v36 }
0x175a   : > { %v8716_v51 = vpop.permute.xlu1 %3718 }
0x175b   : > { %11220 = vst [vmem:[#allocation156_spill] sm:$0xff] %v8716_v51 }
0x175e   : > { %v8718_v10 = vpop.permute.xlu1 %3722 }
0x175f   : > { %11221 = vst [vmem:[#allocation157_spill] sm:$0xff] %v8718_v10 }
0x176f   : > { %v3746_v16 = vpop.permute.xlu1 %3745 }
0x1770   : > { %v3749_v21 = vmul.f32 %v3746_v16, %v3741_v61  ;;  %v3748_v48 = vmul.f32 %v3746_v16, %v3740_v17  ;;  %v3751_v10 = vmul.f32 %v3746_v16, %v3743_v56  ;;  %v3750_v51 = vmul.f32 %v3746_v16, %v3742_v42  ;;  %v11230_v42 = vld [vmem:[#allocation179_spill] sm:$0xff] }
0x1771   : > { %v3752_v50 = vmul.f32 %v3746_v16, %v11226_v46  ;;  %v6168_v61 = vmov 50   ;;  %v11231_v16 = vld [vmem:[#allocation182_spill] sm:$0xff] }
0x1772   : > { %3760 = vrot.lane.b32.xlu1 %v3749_v21, %s6109_s16  ;;  %3758 = vrot.lane.b32.xlu0 %v3748_v48, %s6109_s16  ;;  %v11229_v21 = vld [vmem:[#allocation180_spill] sm:$0xff] }
0x1773   : > { %v3783_v56 = vmul.f32 %v8244_v55, %v11229_v21  ;;  %v11233_v21 = vld [vmem:[#allocation183_spill] sm:$0xff] }
0x1776   : > { %3764 = vrot.lane.b32.xlu1 %v3751_v10, %s6109_s16  ;;  %3762 = vrot.lane.b32.xlu0 %v3750_v51, %s6109_s16  ;;  %v3782_v10 = vmul.f32 %v8240_v53, %v11230_v42 }
0x177a   : > { %3787 = vperm.xlu1 %5985, %v8266_v15   ;;  %3766 = vrot.lane.b32.xlu0 %v3752_v50, %s6109_s16  ;;  %v3785_v50 = vmul.f32 %v8251_v39, %v11231_v16 }
0x177e   : > { %5986 = vset.pattern.permute.xlu1 %v6168_v61  ;;  %v11232_v61 = vld [vmem:[#allocation181_spill] sm:$0xff] }
0x177f   : > { %v3784_v46 = vmul.f32 %v8246_v40, %v11232_v61 }
0x17e4   : > { %v8735_v48 = vpop.permute.xlu1 %3760 }
0x17e5   : > { %11227 = vst [vmem:[#allocation158_spill] sm:$0xff] %v8735_v48 }
0x17e8   : > { %v8737_v17 = vpop.permute.xlu1 %3764 }
0x17e9   : > { %11228 = vst [vmem:[#allocation165_spill] sm:$0xff] %v8737_v17 }
0x17f9   : > { %v3788_v18 = vpop.permute.xlu1 %3787 }
0x17fa   : > { %v3791_v51 = vmul.f32 %v3788_v18, %v3783_v56  ;;  %v3790_v36 = vmul.f32 %v3788_v18, %v3782_v10  ;;  %v3793_v17 = vmul.f32 %v3788_v18, %v3785_v50  ;;  %v3792_v48 = vmul.f32 %v3788_v18, %v3784_v46  ;;  %v11237_v46 = vld [vmem:[#allocation189_spill] sm:$0xff] }
0x17fb   : > { %v3794_v42 = vmul.f32 %v3788_v18, %v11233_v21  ;;  %v6169_v56 = vmov 51   ;;  %v11238_v18 = vld [vmem:[#allocation192_spill] sm:$0xff] }
0x17fc   : > { %3802 = vrot.lane.b32.xlu1 %v3791_v51, %s6110_s18  ;;  %3800 = vrot.lane.b32.xlu0 %v3790_v36, %s6110_s18  ;;  %v11236_v51 = vld [vmem:[#allocation190_spill] sm:$0xff] }
0x17fd   : > { %v3825_v50 = vmul.f32 %v8244_v55, %v11236_v51 }
0x1800   : > { %3806 = vrot.lane.b32.xlu1 %v3793_v17, %s6110_s18  ;;  %3804 = vrot.lane.b32.xlu0 %v3792_v48, %s6110_s18  ;;  %v3824_v17 = vmul.f32 %v8240_v53, %v11237_v46  ;;  %v11240_v46 = vld [vmem:[#allocation193_spill] sm:$0xff] }
0x1804   : > { %3829 = vperm.xlu1 %5986, %v8266_v15   ;;  %3808 = vrot.lane.b32.xlu0 %v3794_v42, %s6110_s18  ;;  %v3827_v42 = vmul.f32 %v8251_v39, %v11238_v18 }
0x1808   : > { %5987 = vset.pattern.permute.xlu1 %v6169_v56  ;;  %v11239_v56 = vld [vmem:[#allocation191_spill] sm:$0xff] }
0x1809   : > { %v3826_v21 = vmul.f32 %v8246_v40, %v11239_v56 }
0x186e   : > { %v8754_v36 = vpop.permute.xlu1 %3802 }
0x186f   : > { %11234 = vst [vmem:[#allocation164_spill] sm:$0xff] %v8754_v36 }
0x1872   : > { %v8756_v10 = vpop.permute.xlu1 %3806 }
0x1873   : > { %11235 = vst [vmem:[#allocation166_spill] sm:$0xff] %v8756_v10 }
0x1883   : > { %v3830_v16 = vpop.permute.xlu1 %3829 }
0x1884   : > { %v3833_v48 = vmul.f32 %v3830_v16, %v3825_v50  ;;  %v3832_v61 = vmul.f32 %v3830_v16, %v3824_v17  ;;  %v3835_v10 = vmul.f32 %v3830_v16, %v3827_v42  ;;  %v3834_v36 = vmul.f32 %v3830_v16, %v3826_v21  ;;  %v11244_v21 = vld [vmem:[#allocation199_spill] sm:$0xff] }
0x1885   : > { %v3836_v51 = vmul.f32 %v3830_v16, %v11240_v46  ;;  %v6170_v50 = vmov 52   ;;  %v11245_v16 = vld [vmem:[#allocation202_spill] sm:$0xff] }
0x1886   : > { %3844 = vrot.lane.b32.xlu1 %v3833_v48, %s6111_s20  ;;  %3842 = vrot.lane.b32.xlu0 %v3832_v61, %s6111_s20  ;;  %v11243_v48 = vld [vmem:[#allocation200_spill] sm:$0xff] }
0x1887   : > { %v3867_v42 = vmul.f32 %v8244_v55, %v11243_v48  ;;  %v11247_v48 = vld [vmem:[#allocation203_spill] sm:$0xff] }
0x188a   : > { %3848 = vrot.lane.b32.xlu1 %v3835_v10, %s6111_s20  ;;  %3846 = vrot.lane.b32.xlu0 %v3834_v36, %s6111_s20  ;;  %v3866_v10 = vmul.f32 %v8240_v53, %v11244_v21 }
0x188e   : > { %3871 = vperm.xlu1 %5987, %v8266_v15   ;;  %3850 = vrot.lane.b32.xlu0 %v3836_v51, %s6111_s20  ;;  %v3869_v51 = vmul.f32 %v8251_v39, %v11245_v16 }
0x1892   : > { %5988 = vset.pattern.permute.xlu1 %v6170_v50  ;;  %v11246_v50 = vld [vmem:[#allocation201_spill] sm:$0xff] }
0x1893   : > { %v3868_v46 = vmul.f32 %v8246_v40, %v11246_v50 }
0x18f8   : > { %v8773_v61 = vpop.permute.xlu1 %3844 }
0x18f9   : > { %11241 = vst [vmem:[#allocation167_spill] sm:$0xff] %v8773_v61 }
0x18fc   : > { %v8775_v17 = vpop.permute.xlu1 %3848 }
0x18fd   : > { %11242 = vst [vmem:[#allocation168_spill] sm:$0xff] %v8775_v17 }
0x190d   : > { %v3872_v56 = vpop.permute.xlu1 %3871 }
0x190e   : > { %v3875_v36 = vmul.f32 %v3872_v56, %v3867_v42  ;;  %v3874_v18 = vmul.f32 %v3872_v56, %v3866_v10  ;;  %v3877_v17 = vmul.f32 %v3872_v56, %v3869_v51  ;;  %v3876_v61 = vmul.f32 %v3872_v56, %v3868_v46  ;;  %v11251_v46 = vld [vmem:[#allocation209_spill] sm:$0xff] }
0x190f   : > { %v3878_v21 = vmul.f32 %v3872_v56, %v11247_v48  ;;  %v6171_v42 = vmov 53  }
0x1910   : > { %3886 = vrot.lane.b32.xlu1 %v3875_v36, %s6112_s22  ;;  %3884 = vrot.lane.b32.xlu0 %v3874_v18, %s6112_s22  ;;  %v11250_v36 = vld [vmem:[#allocation210_spill] sm:$0xff] }
0x1911   : > { %v3909_v51 = vmul.f32 %v8244_v55, %v11250_v36  ;;  %v11254_v36 = vld [vmem:[#allocation213_spill] sm:$0xff] }
0x1914   : > { %3890 = vrot.lane.b32.xlu1 %v3877_v17, %s6112_s22  ;;  %3888 = vrot.lane.b32.xlu0 %v3876_v61, %s6112_s22  ;;  %v3908_v17 = vmul.f32 %v8240_v53, %v11251_v46 }
0x1918   : > { %3913 = vperm.xlu1 %5988, %v8266_v15   ;;  %3892 = vrot.lane.b32.xlu0 %v3878_v21, %s6112_s22  ;;  %v11252_v15 = vld [vmem:[#allocation212_spill] sm:$0xff]  ;;  %v11253_v21 = vld [vmem:[#allocation211_spill] sm:$0xff] }
0x1919   : > { %v3911_v56 = vmul.f32 %v8251_v39, %v11252_v15  ;;  %v3952_v15 = vmul.f32 %v8246_v40, %v7732_v3 }
0x191c   : > { %5989 = vset.pattern.permute.xlu1 %v6171_v42  ;;  %v3910_v42 = vmul.f32 %v8246_v40, %v11253_v21 }
0x1982   : > { %v8792_v18 = vpop.permute.xlu1 %3886 }
0x1983   : > { %11248 = vst [vmem:[#allocation175_spill] sm:$0xff] %v8792_v18  ;;  %v2914_v18 = vmul.f32 %v8251_v39, %v6467_v47  ;;  %v2959_v47 = vsel %vm672_vm11, %v8481_v60, %v8272_v38 }
0x1986   : > { %v8794_v10 = vpop.permute.xlu1 %3890 }
0x1987   : > { %11249 = vst [vmem:[#allocation174_spill] sm:$0xff] %v8794_v10 }
0x1997   : > { %v3914_v16 = vpop.permute.xlu1 %3913 }
0x1998   : > { %v3917_v61 = vmul.f32 %v3914_v16, %v3909_v51  ;;  %v3916_v50 = vmul.f32 %v3914_v16, %v3908_v17  ;;  %v3919_v48 = vmul.f32 %v3914_v16, %v3911_v56  ;;  %v3918_v10 = vmul.f32 %v3914_v16, %v3910_v42  ;;  %v8812_v51 = vld [vmem:[%s10254_s6] sm:$0xff] }
0x1999   : > { %v3920_v46 = vmul.f32 %v3914_v16, %v11254_v36  ;;  %11255 = vst [vmem:[#allocation176_spill] sm:$0xff] %v8812_v51 }
0x199a   : > { %3928 = vrot.lane.b32.xlu1 %v3917_v61, %s10955_s25  ;;  %3926 = vrot.lane.b32.xlu0 %v3916_v50, %s10955_s25  ;;  %v11259_v61 = vld [vmem:[#allocation214_spill] sm:$0xff] }
0x199b   : > { %v3950_v16 = vmul.f32 %v8240_v53, %v11259_v61 }
0x199e   : > { %3932 = vrot.lane.b32.xlu1 %v3919_v48, %s10955_s25  ;;  %3930 = vrot.lane.b32.xlu0 %v3918_v10, %s10955_s25  ;;  %v11258_v48 = vld [vmem:[#allocation215_spill] sm:$0xff] }
0x199f   : > { %v3951_v10 = vmul.f32 %v8244_v55, %v11258_v48 }
0x19a2   : > { %3955 = vperm.xlu1 %5989, %v8812_v51   ;;  %3934 = vrot.lane.b32.xlu0 %v3920_v46, %s10955_s25  ;;  %v3953_v46 = vmul.f32 %v8251_v39, %v7735_v9 }
0x19a6   : > { %5990 = vset.pattern.permute.xlu1 %v11057_v32 }
0x1a0c   : > { %v8817_v50 = vpop.permute.xlu1 %3928 }
0x1a0d   : > { %11256 = vst [vmem:[#allocation177_spill] sm:$0xff] %v8817_v50 }
0x1a10   : > { %v8819_v17 = vpop.permute.xlu1 %3932 }
0x1a11   : > { %11257 = vst [vmem:[#allocation178_spill] sm:$0xff] %v8819_v17  ;;  %v11271_v17 = vld [vmem:[#allocation222_spill] sm:$0xff] }
0x1a12   : > { %v2913_v50 = vmul.f32 %v8246_v40, %v11271_v17  ;;  %v2958_v17 = vsel %vm672_vm11, %v8270_v59, %v8481_v60  ;;  %v8914_v60 = vmul.f32 %v8244_v55, %v8003_v49 }
0x1a21   : > { %v3956_v56 = vpop.permute.xlu1 %3955 }
0x1a22   : > { %v3959_v42 = vmul.f32 %v3956_v56, %v3951_v10  ;;  %v3958_v36 = vmul.f32 %v3956_v56, %v3950_v16  ;;  %v3961_v21 = vmul.f32 %v3956_v56, %v3953_v46  ;;  %v3960_v51 = vmul.f32 %v3956_v56, %v3952_v15  ;;  %v8837_v10 = vld [vmem:[%s10255_s7] sm:$0xff] }
0x1a23   : > { %v3962_v48 = vmul.f32 %v3956_v56, %v7743_v23  ;;  %11260 = vst [vmem:[#allocation185_spill] sm:$0xff] %v8837_v10  ;;  %v11262_v15 = vmov 0  }
0x1a24   : > { %3970 = vrot.lane.b32.xlu1 %v3959_v42, %s10962_s29  ;;  %3968 = vrot.lane.b32.xlu0 %v3958_v36, %s10962_s29  ;;  %v8844_v36 = vld [vmem:[%s10256_s8] sm:$0xff] }
0x1a25   : > { %11261 = vst [vmem:[#allocation184_spill] sm:$0xff] %v8844_v36 }
0x1a28   : > { %3974 = vrot.lane.b32.xlu1 %v3961_v21, %s10962_s29  ;;  %3972 = vrot.lane.b32.xlu0 %v3960_v51, %s10962_s29  ;;  %v11263_v21 = vmov 1   ;;  %v8849_v51 = vpop.permute.xlu0 %3678 }
0x1a2c   : > { %3993 = vperm.xlu1 %5990, %v8837_v10   ;;  %3976 = vrot.lane.b32.xlu0 %v3962_v48, %s10962_s29  ;;  %v8851_v16 = vpop.permute.xlu0 %3682  ;;  %v11270_v10 = vld [vmem:[#allocation221_spill] sm:$0xff] }
0x1a2d   : > { %v2912_v32 = vmul.f32 %v8244_v55, %v11270_v10  ;;  %v2922_v10 = vmul.f32 %v8242_v34, %v2913_v50 }
0x1a30   : > { %4002 = vperm.xlu0 %5991, %v8844_v36   ;;  %5992 = vset.pattern.permute.xlu1 %v11262_v15  ;;  %v8853_v56 = vpop.permute.xlu0 %3716 }
0x1a34   : > { %5993 = vset.pattern.permute.xlu0 %v11263_v21  ;;  %v8855_v42 = vpop.permute.xlu0 %3720  ;;  %v11269_v21 = vld [vmem:[#allocation220_spill] sm:$0xff] }
0x1a35   : > { %v2911_v36 = vmul.f32 %v8240_v53, %v11269_v21  ;;  %v2957_v21 = vsel %vm672_vm11, %v8479_v41, %v8270_v59  ;;  %v8901_v41 = vmul.f32 %v8240_v53, %v11014_v58  ;;  %v3000_v59 = vsel %vm752_vm4, %v8289_v7, %v8487_v0 }
0x1a36   : > { %v3002_v58 = vsel %vm752_vm4, %v8291_v28, %v8489_v26 }
0x1a38   : > { %v8857_v48 = vpop.permute.xlu0 %3724 }
0x1a3c   : > { %v8859_v46 = vpop.permute.xlu0 %3758 }
0x1a40   : > { %v8861_v23 = vpop.permute.xlu0 %3762 }
0x1a41   : > { %11264 = vst [vmem:[#allocation187_spill] sm:$0xff] %v8861_v23 }
0x1a44   : > { %v8863_v9 = vpop.permute.xlu0 %3766 }
0x1a45   : > { %11265 = vst [vmem:[#allocation186_spill] sm:$0xff] %v8863_v9  ;;  %v11272_v9 = vld [vmem:[#allocation219_spill] sm:$0xff] }
0x1a48   : > { %v8865_v3 = vpop.permute.xlu0 %3800 }
0x1a49   : > { %11266 = vst [vmem:[#allocation188_spill] sm:$0xff] %v8865_v3  ;;  %v2919_v3 = vmul.f32 %v8242_v34, %v11272_v9  ;;  %v2923_v9 = vmul.f32 %v8242_v34, %v2914_v18 }
0x1a4b   : > { %v2970_v53 = vadd.f32 %v8483_v33, %v2923_v9 }
0x1a4c   : > { %v8867_v15 = vpop.permute.xlu0 %3804 }
0x1a4d   : > { %11267 = vst [vmem:[#allocation195_spill] sm:$0xff] %v8867_v15  ;;  %v2920_v15 = vmul.f32 %v8242_v34, %v2911_v36  ;;  %v2960_v36 = vsel %vm672_vm11, %v8272_v38, %v8483_v33  ;;  %v2966_v38 = vadd.f32 %v2957_v21, %v2919_v3  ;;  %v3012_v9 = vadd.f32 %v8489_v26, %v2970_v53 }
0x1a4e   : > { %v3125_v26 = vsel %vm992_vm5, %v8511_v29, %v8346_v12 }
0x1a4f   : > { %v2967_v18 = vadd.f32 %v2958_v17, %v2920_v15  ;;  %v3084_v15 = vsel %vm912_vm8, %v8327_v30, %v8499_v8  ;;  %v3054_v53 = vadd.f32 %v8495_v2, %v3012_v9 }
0x1a50   : > { %v8869_v61 = vpop.permute.xlu0 %3808 }
0x1a51   : > { %11268 = vst [vmem:[#allocation194_spill] sm:$0xff] %v8869_v61  ;;  %v2921_v61 = vmul.f32 %v8242_v34, %v2912_v32  ;;  %v2999_v32 = vsel %vm752_vm4, %v8485_v43, %v8289_v7  ;;  %v3001_v34 = vsel %vm752_vm4, %v8487_v0, %v8291_v28  ;;  %v2969_v43 = vadd.f32 %v2960_v36, %v2922_v10 }
0x1a52   : > { %v3041_v7 = vsel %vm832_vm9, %v8491_v22, %v8308_v20  ;;  %v3042_v0 = vsel %vm832_vm9, %v8308_v20, %v8493_v37  ;;  %v3008_v3 = vadd.f32 %v2999_v32, %v2966_v38  ;;  %v3009_v17 = vadd.f32 %v3000_v59, %v2967_v18 }
0x1a53   : > { %v2968_v50 = vadd.f32 %v2959_v47, %v2921_v61  ;;  %v3043_v28 = vsel %vm832_vm9, %v8493_v37, %v8310_v11  ;;  %v3011_v61 = vadd.f32 %v3002_v58, %v2969_v43  ;;  %v3044_v22 = vsel %vm832_vm9, %v8310_v11, %v8495_v2 }
0x1a54   : > { %v8879_v23 = vpop.permute.xlu0 %3842  ;;  %v3083_v20 = vsel %vm912_vm8, %v8497_v24, %v8327_v30  ;;  %v3050_v33 = vadd.f32 %v3041_v7, %v3008_v3  ;;  %v3051_v10 = vadd.f32 %v3042_v0, %v3009_v17  ;;  %v3085_v58 = vsel %vm912_vm8, %v8499_v8, %v8329_v62 }
0x1a55   : > { %v3010_v47 = vadd.f32 %v3001_v34, %v2968_v50  ;;  %v3086_v11 = vsel %vm912_vm8, %v8329_v62, %v8503_v52  ;;  %v3053_v24 = vadd.f32 %v3044_v22, %v3011_v61  ;;  %v3126_v30 = vsel %vm992_vm5, %v8346_v12, %v8519_v13  ;;  %v11273_v61 = vld [vmem:[#allocation62_spill] sm:$0xff] }
0x1a56   : > { %v3092_v21 = vadd.f32 %v3083_v20, %v3050_v33  ;;  %v3127_v8 = vsel %vm992_vm5, %v8519_v13, %v8348_v35  ;;  %v3093_v36 = vadd.f32 %v3084_v15, %v3051_v10  ;;  %v3096_v32 = vadd.f32 %v8503_v52, %v3054_v53  ;;  %v11274_v33 = vld [vmem:[#allocation75_spill] sm:$0xff]  ;;  %v11276_v15 = vld [vmem:[#allocation82_spill] sm:$0xff] }
0x1a57   : > { %v3052_v37 = vadd.f32 %v3043_v28, %v3010_v47  ;;  %v3128_v62 = vsel %vm992_vm5, %v8348_v35, %v8524_v63  ;;  %v3095_v29 = vadd.f32 %v3086_v11, %v3053_v24  ;;  %v3167_v12 = vsel %vm1072_vm6, %v8526_v27, %v8365_v1  ;;  %v11278_v53 = vld [vmem:[#allocation63_spill] sm:$0xff] }
0x1a58   : > { %v8926_v49 = vpop.permute.xlu0 %3846  ;;  %v3134_v34 = vadd.f32 %v3125_v26, %v3092_v21  ;;  %v3168_v13 = vsel %vm1072_vm6, %v8365_v1, %v8528_v4  ;;  %v3135_v38 = vadd.f32 %v3126_v30, %v3093_v36  ;;  %v3169_v52 = vsel %vm1072_vm6, %v8528_v4, %v8367_v14  ;;  %v11279_v24 = vld [vmem:[#allocation83_spill] sm:$0xff]  ;;  %v11281_v36 = vld [vmem:[#allocation84_spill] sm:$0xff] }
0x1a59   : > { %v3094_v2 = vadd.f32 %v3085_v58, %v3052_v37  ;;  %v3170_v35 = vsel %vm1072_vm6, %v8367_v14, %v8530_v25  ;;  %v3137_v50 = vadd.f32 %v3128_v62, %v3095_v29  ;;  %v3138_v43 = vadd.f32 %v8524_v63, %v3096_v32  ;;  %v11277_v37 = vld [vmem:[#allocation81_spill] sm:$0xff] }
0x1a5a   : > { %v3209_v27 = vsel %vm1152_vm10, %v8532_v45, %v8384_v6  ;;  %v3210_v1 = vsel %vm1152_vm10, %v8384_v6, %v8534_v5  ;;  %v3176_v7 = vadd.f32 %v3167_v12, %v3134_v34  ;;  %v3177_v0 = vadd.f32 %v3168_v13, %v3135_v38  ;;  %v11282_v32 = vld [vmem:[#allocation85_spill] sm:$0xff] }
0x1a5b   : > { %v3136_v18 = vadd.f32 %v3127_v8, %v3094_v2  ;;  %v3211_v4 = vsel %vm1152_vm10, %v8534_v5, %v8386_v31  ;;  %v3212_v14 = vsel %vm1152_vm10, %v8386_v31, %v8536_v44  ;;  %v3179_v17 = vadd.f32 %v3170_v35, %v3137_v50  ;;  %v11280_v8 = vld [vmem:[#allocation64_spill] sm:$0xff]  ;;  %v11283_v29 = vld [vmem:[#allocation65_spill] sm:$0xff]  ;;  %v11284_v50 = vld [vmem:[#allocation91_spill] sm:$0xff] }
0x1a5c   : > { %v8961_v59 = vpop.permute.xlu0 %3850  ;;  %v3180_v45 = vadd.f32 %v8530_v25, %v3138_v43  ;;  %v3251_v6 = vsel %vm1232_vm12, %v8538_v54, %v8403_v19  ;;  %v3218_v47 = vadd.f32 %v3209_v27, %v3176_v7  ;;  %v3219_v28 = vadd.f32 %v3210_v1, %v3177_v0  ;;  %v11275_v54 = vld [vmem:[#allocation61_spill] sm:$0xff]  ;;  %v11285_v27 = vld [vmem:[#allocation72_spill] sm:$0xff]  ;;  %v11287_v0 = vld [vmem:[#allocation98_spill] sm:$0xff] }
0x1a5d   : > { %v3178_v63 = vadd.f32 %v3169_v52, %v3136_v18  ;;  %v3252_v5 = vsel %vm1232_vm12, %v8403_v19, %v8540_v57  ;;  %v3253_v31 = vsel %vm1232_vm12, %v8540_v57, %v11273_v61  ;;  %v3221_v22 = vadd.f32 %v3212_v14, %v3179_v17  ;;  %v11286_v1 = vld [vmem:[#allocation97_spill] sm:$0xff] }
0x1a5e   : > { %v3222_v20 = vadd.f32 %v8536_v44, %v3180_v45  ;;  %v3254_v25 = vsel %vm1232_vm12, %v11273_v61, %v11274_v33  ;;  %v3260_v10 = vadd.f32 %v3251_v6, %v3218_v47  ;;  %v3293_v58 = vsel %vm10719_vm3, %v11276_v15, %v11275_v54  ;;  %v11288_v45 = vld [vmem:[#allocation71_spill] sm:$0xff]  ;;  %v11290_v61 = vld [vmem:[#allocation73_spill] sm:$0xff] }
0x1a5f   : > { %v3220_v9 = vadd.f32 %v3211_v4, %v3178_v63  ;;  %v3294_v19 = vsel %vm10719_vm3, %v11275_v54, %v11277_v37  ;;  %v3295_v57 = vsel %vm10719_vm3, %v11277_v37, %v11278_v53  ;;  %v3261_v11 = vadd.f32 %v3252_v5, %v3219_v28  ;;  %v11289_v28 = vld [vmem:[#allocation94_spill] sm:$0xff] }
0x1a60   : > { %v8988_v3 = vpop.permute.xlu0 %3884  ;;  %v3264_v44 = vadd.f32 %v11274_v33, %v3222_v20  ;;  %v3296_v21 = vsel %vm10719_vm3, %v11278_v53, %v11279_v24  ;;  %v3263_v30 = vadd.f32 %v3254_v25, %v3221_v22  ;;  %v3335_v2 = vsel %vm10720_vm2, %v11281_v36, %v11280_v8  ;;  %v11293_v22 = vld [vmem:[#allocation102_spill] sm:$0xff] }
0x1a61   : > { %v3262_v26 = vadd.f32 %v3253_v31, %v3220_v9  ;;  %v3336_v62 = vsel %vm10720_vm2, %v11280_v8, %v11282_v32  ;;  %v3337_v34 = vsel %vm10720_vm2, %v11282_v32, %v11283_v29  ;;  %v3302_v13 = vadd.f32 %v3293_v58, %v3260_v10  ;;  %v11291_v31 = vld [vmem:[#allocation99_spill] sm:$0xff]  ;;  %v11295_v54 = vld [vmem:[#allocation74_spill] sm:$0xff]  ;;  %v11301_v8 = vld [vmem:[#allocation104_spill] sm:$0xff] }
0x1a62   : > { %v3303_v38 = vadd.f32 %v3294_v19, %v3261_v11  ;;  %v3306_v52 = vadd.f32 %v11279_v24, %v3264_v44  ;;  %v3305_v35 = vadd.f32 %v3296_v21, %v3263_v30  ;;  %v3338_v43 = vsel %vm10720_vm2, %v11283_v29, %v11284_v50  ;;  %v11297_v19 = vld [vmem:[#allocation100_spill] sm:$0xff]  ;;  %v11300_v11 = vld [vmem:[#allocation101_spill] sm:$0xff] }
0x1a63   : > { %v3304_v18 = vadd.f32 %v3295_v57, %v3262_v26  ;;  %v3377_v7 = vsel %vm10722_vm13, %v11286_v1, %v11285_v27  ;;  %v3378_v4 = vsel %vm10722_vm13, %v11285_v27, %v11287_v0  ;;  %v3344_v14 = vadd.f32 %v3335_v2, %v3302_v13  ;;  %v11299_v57 = vld [vmem:[#allocation110_spill] sm:$0xff]  ;;  %v11304_v13 = vld [vmem:[#allocation111_spill] sm:$0xff] }
0x1a64   : > { %v9026_v12 = vpop.permute.xlu0 %3888  ;;  %v3345_v63 = vadd.f32 %v3336_v62, %v3303_v38  ;;  %v3379_v6 = vsel %vm10722_vm13, %v11287_v0, %v11288_v45  ;;  %v3348_v47 = vadd.f32 %v11284_v50, %v3306_v52  ;;  %v3380_v5 = vsel %vm10722_vm13, %v11288_v45, %v11289_v28  ;;  %v11302_v62 = vld [vmem:[#allocation109_spill] sm:$0xff]  ;;  %v11305_v50 = vld [vmem:[#allocation123_spill] sm:$0xff] }
0x1a65   : > { %v3346_v17 = vadd.f32 %v3337_v34, %v3304_v18  ;;  %vm11292_vm3 = vcmask 457728   ;;  %v3347_v33 = vadd.f32 %v3338_v43, %v3305_v35  ;;  %v3386_v25 = vadd.f32 %v3377_v7, %v3344_v14  ;;  %v11303_v34 = vld [vmem:[#allocation112_spill] sm:$0xff]  ;;  %v11306_v7 = vld [vmem:[#allocation113_spill] sm:$0xff] }
0x1a66   : > { %v3419_v9 = vsel %vm11292_vm3, %v11291_v31, %v11290_v61  ;;  %vm11294_vm2 = vmmov %vm11292_vm3  ;;  %v3387_v10 = vadd.f32 %v3378_v4, %v3345_v63  ;;  %v3390_v37 = vadd.f32 %v11289_v28, %v3348_v47  ;;  %v3457_v26 = vsel %vm578_vm1, %v11300_v11, %v11299_v57  ;;  %v11307_v4 = vld [vmem:[#allocation130_spill] sm:$0xff]  ;;  %v11308_v47 = vld [vmem:[#allocation120_spill] sm:$0xff] }
0x1a67   : > { %v3420_v20 = vsel %vm11294_vm2, %v11290_v61, %v11293_v22  ;;  %vm11296_vm7 = vmmov %vm11294_vm2  ;;  %v3388_v58 = vadd.f32 %v3379_v6, %v3346_v17  ;;  %v3389_v24 = vadd.f32 %v3380_v5, %v3347_v33  ;;  %v3428_v21 = vadd.f32 %v3419_v9, %v3386_v25  ;;  %v11309_v28 = vld [vmem:[#allocation129_spill] sm:$0xff]  ;;  %v11310_v31 = vld [vmem:[#allocation131_spill] sm:$0xff] }
0x1a68   : > { %v3421_v15 = vsel %vm11296_vm7, %v11293_v22, %v11295_v54  ;;  %vm11298_vm13 = vmmov %vm11294_vm2  ;;  %v9061_v44 = vpop.permute.xlu0 %3892  ;;  %v3429_v30 = vadd.f32 %v3420_v20, %v3387_v10  ;;  %v3458_v36 = vsel %vm578_vm1, %v11299_v57, %v11301_v8  ;;  %v3432_v32 = vadd.f32 %v11297_v19, %v3390_v37  ;;  %v11311_v22 = vld [vmem:[#allocation119_spill] sm:$0xff]  ;;  %v11312_v33 = vld [vmem:[#allocation132_spill] sm:$0xff] }
0x1a69   : > { %v3422_v53 = vsel %vm11298_vm13, %v11295_v54, %v11297_v19  ;;  %v3430_v2 = vadd.f32 %v3421_v15, %v3388_v58  ;;  %v3459_v29 = vsel %vm578_vm1, %v11301_v8, %v11302_v62  ;;  %v3498_v38 = vsel %vm1686_vm14, %v11304_v13, %v11303_v34  ;;  %v11313_v58 = vld [vmem:[#allocation121_spill] sm:$0xff]  ;;  %v11316_v57 = vld [vmem:[#allocation144_spill] sm:$0xff] }
0x1a6a   : > { %v3431_v18 = vadd.f32 %v3422_v53, %v3389_v24  ;;  %v3465_v52 = vadd.f32 %v11300_v11, %v3428_v21  ;;  %v3466_v35 = vadd.f32 %v3457_v26, %v3429_v30  ;;  %v3499_v43 = vsel %vm1686_vm14, %v11303_v34, %v11305_v50  ;;  %v11314_v37 = vld [vmem:[#allocation133_spill] sm:$0xff]  ;;  %v11318_v26 = vld [vmem:[#allocation122_spill] sm:$0xff]  ;;  %v11320_v21 = vld [vmem:[#allocation147_spill] sm:$0xff] }
0x1a6b   : > { %v3469_v27 = vadd.f32 %v11302_v62, %v3432_v32  ;;  %v3467_v1 = vadd.f32 %v3458_v36, %v3430_v2  ;;  %v3500_v0 = vsel %vm1686_vm14, %v11305_v50, %v11306_v7  ;;  %v3501_v14 = vsel %vm1686_vm14, %v11306_v7, %v11307_v4  ;;  %v11322_v32 = vld [vmem:[#allocation51_spill] sm:$0xff]  ;;  %v11326_v7 = vld [vmem:[#allocation54_spill] sm:$0xff] }
0x1a6c   : > { %v9084_v63 = vpop.permute.xlu0 %3926  ;;  %v3468_v17 = vadd.f32 %v3459_v29, %v3431_v18  ;;  %v3507_v45 = vadd.f32 %v11304_v13, %v3465_v52  ;;  %v3508_v6 = vadd.f32 %v3498_v38, %v3466_v35  ;;  %v3540_v5 = vsel %vm1766_vm15, %v11309_v28, %v11308_v47  ;;  %v11323_v13 = vld [vmem:[#allocation143_spill] sm:$0xff]  ;;  %v11324_v38 = vld [vmem:[#allocation141_spill] sm:$0xff] }
0x1a6d   : > { %v3509_v61 = vadd.f32 %v3499_v43, %v3467_v1  ;;  %v3541_v9 = vsel %vm1766_vm15, %v11308_v47, %v11310_v31  ;;  %v3542_v20 = vsel %vm1766_vm15, %v11310_v31, %v11311_v22  ;;  %v3543_v25 = vsel %vm1766_vm15, %v11311_v22, %v11312_v33  ;;  %v11325_v52 = vld [vmem:[#allocation53_spill] sm:$0xff] }
0x1a6e   : > { %v3510_v10 = vadd.f32 %v3500_v0, %v3468_v17  ;;  %v3511_v54 = vadd.f32 %v3501_v14, %v3469_v27  ;;  %v3549_v15 = vadd.f32 %v11309_v28, %v3507_v45  ;;  %vm11315_vm2 = vcmask 384000   ;;  %v11327_v0 = vld [vmem:[#allocation139_spill] sm:$0xff]  ;;  %v11328_v14 = vld [vmem:[#allocation148_spill] sm:$0xff]  ;;  %v11329_v17 = vld [vmem:[#allocation146_spill] sm:$0xff] }
0x1a6f   : > { %v3582_v19 = vsel %vm11315_vm2, %v11314_v37, %v11313_v58  ;;  %v3550_v53 = vadd.f32 %v3540_v5, %v3508_v6  ;;  %vm11317_vm3 = vmmov %vm11315_vm2  ;;  %v3551_v8 = vadd.f32 %v3541_v9, %v3509_v61  ;;  %v3640_v62 = vmul.f32 %v8246_v40, %v11322_v32  ;;  %v11330_v6 = vld [vmem:[#allocation142_spill] sm:$0xff] }
0x1a70   : > { %v3583_v11 = vsel %vm11317_vm3, %v11313_v58, %v11316_v57  ;;  %vm11319_vm7 = vmmov %vm11315_vm2  ;;  %v3552_v36 = vadd.f32 %v3542_v20, %v3510_v10  ;;  %v3553_v2 = vadd.f32 %v3543_v25, %v3511_v54  ;;  %v3591_v29 = vadd.f32 %v11314_v37, %v3549_v15  ;;  %v9120_v50 = vpop.permute.xlu0 %3930  ;;  %v11331_v58 = vld [vmem:[#allocation155_spill] sm:$0xff]  ;;  %v11332_v37 = vld [vmem:[#allocation140_spill] sm:$0xff] }
0x1a71   : > { %v3584_v24 = vsel %vm11319_vm7, %v11316_v57, %v11318_v26  ;;  %vm11321_vm13 = vmmov %vm11315_vm2  ;;  %v3592_v34 = vadd.f32 %v3582_v19, %v3550_v53  ;;  %v3627_v18 = vsel %vm1926_vm0, %v11324_v38, %v11323_v13  ;;  %v3641_v35 = vmul.f32 %v8251_v39, %v11325_v52 }
0x1a72   : > { %v3585_v30 = vsel %vm11321_vm13, %v11318_v26, %v11320_v21  ;;  %v3593_v43 = vadd.f32 %v3583_v11, %v3551_v8  ;;  %v3594_v27 = vadd.f32 %v3584_v24, %v3552_v36  ;;  %v3650_v4 = vmul.f32 %v11327_v0, %v11326_v7  ;;  %v11334_v8 = vld [vmem:[#allocation156_spill] sm:$0xff]  ;;  %v11432_v7 = vld [vmem:[#allocation69_spill] sm:$0xff] }
0x1a73   : > { %v3595_v1 = vadd.f32 %v3585_v30, %v3553_v2  ;;  %v3624_v45 = vsel %vm1926_vm0, %v11329_v17, %v11328_v14  ;;  %v3625_v47 = vsel %vm1926_vm0, %v11328_v14, %v11330_v6  ;;  %v3626_v28 = vsel %vm1926_vm0, %v11330_v6, %v11324_v38 }
0x1a74   : > { %v3646_v5 = vmul.f32 %v11327_v0, %v8901_v41  ;;  %v3647_v31 = vmul.f32 %v11327_v0, %v8914_v60  ;;  %v3648_v9 = vmul.f32 %v11327_v0, %v3640_v62  ;;  %v3649_v22 = vmul.f32 %v11327_v0, %v3641_v35  ;;  %v11333_v60 = vld [vmem:[#allocation154_spill] sm:$0xff]  ;;  %v9149_v57 = vpop.permute.xlu0 %3934  ;;  %v11337_v35 = vld [vmem:[#allocation187_spill] sm:$0xff] }
0x1a75   : > { %v3637_v61 = vadd.f32 %v3627_v18, %v3595_v1  ;;  %v3633_v20 = vadd.f32 %v11329_v17, %v3591_v29  ;;  %v3634_v33 = vadd.f32 %v3624_v45, %v3592_v34  ;;  %v3635_v25 = vadd.f32 %v3625_v47, %v3593_v43  ;;  %v11336_v18 = vld [vmem:[#allocation158_spill] sm:$0xff] }
0x1a76   : > { %v3636_v10 = vadd.f32 %v3626_v28, %v3594_v27  ;;  %v3684_v19 = vsel %vm672_vm11, %v11332_v37, %v11331_v58  ;;  %v3685_v41 = vsel %vm672_vm11, %v11331_v58, %v8849_v51  ;;  %v3686_v53 = vsel %vm672_vm11, %v8849_v51, %v11333_v60  ;;  %v11335_v51 = vld [vmem:[#allocation157_spill] sm:$0xff]  ;;  %v11339_v47 = vld [vmem:[#allocation186_spill] sm:$0xff]  ;;  %v11340_v28 = vld [vmem:[#allocation164_spill] sm:$0xff] }
0x1a77   : > { %v3655_v54 = vadd.f32 %v3650_v4, %v3637_v61  ;;  %v3651_v15 = vadd.f32 %v3646_v5, %v3633_v20  ;;  %v3652_v11 = vadd.f32 %v3647_v31, %v3634_v33  ;;  %v3653_v26 = vadd.f32 %v3648_v9, %v3635_v25  ;;  %v11338_v27 = vld [vmem:[#allocation165_spill] sm:$0xff]  ;;  %v11341_v5 = vld [vmem:[#allocation188_spill] sm:$0xff]  ;;  %v11342_v31 = vld [vmem:[#allocation166_spill] sm:$0xff] }
0x1a78   : > { %v3654_v24 = vadd.f32 %v3649_v22, %v3636_v10  ;;  %v3687_v21 = vsel %vm672_vm11, %v11333_v60, %v8851_v16  ;;  %v3726_v36 = vsel %vm752_vm4, %v8853_v56, %v11334_v8  ;;  %v3727_v2 = vsel %vm752_vm4, %v11334_v8, %v8855_v42  ;;  %v11343_v9 = vld [vmem:[#allocation195_spill] sm:$0xff] }
0x1a79   : > { %v3697_v30 = vadd.f32 %v8851_v16, %v3655_v54  ;;  %v3728_v62 = vsel %vm752_vm4, %v8855_v42, %v11335_v51  ;;  %v3693_v29 = vadd.f32 %v3684_v19, %v3651_v15  ;;  %v3694_v34 = vadd.f32 %v3685_v41, %v3652_v11  ;;  %v11344_v54 = vld [vmem:[#allocation194_spill] sm:$0xff]  ;;  %v11345_v58 = vld [vmem:[#allocation167_spill] sm:$0xff]  ;;  %v11346_v19 = vld [vmem:[#allocation168_spill] sm:$0xff] }
0x1a7a   : > { %v3695_v13 = vadd.f32 %v3686_v53, %v3653_v26  ;;  %v3729_v38 = vsel %vm752_vm4, %v11335_v51, %v8857_v48  ;;  %v3696_v16 = vadd.f32 %v3687_v21, %v3654_v24  ;;  %v3768_v56 = vsel %vm832_vm9, %v8859_v46, %v11336_v18 }
0x1a7b   : > { %v3769_v43 = vsel %vm832_vm9, %v11336_v18, %v11337_v35  ;;  %v3770_v42 = vsel %vm832_vm9, %v11337_v35, %v11338_v27  ;;  %v3735_v0 = vadd.f32 %v3726_v36, %v3693_v29  ;;  %v3736_v4 = vadd.f32 %v3727_v2, %v3694_v34  ;;  %v11348_v36 = vld [vmem:[#allocation174_spill] sm:$0xff] }
0x1a7c   : > { %v3737_v14 = vadd.f32 %v3728_v62, %v3695_v13  ;;  %v3739_v17 = vadd.f32 %v8857_v48, %v3697_v30  ;;  %v3738_v6 = vadd.f32 %v3729_v38, %v3696_v16  ;;  %v3771_v46 = vsel %vm832_vm9, %v11338_v27, %v11339_v47  ;;  %v11347_v30 = vld [vmem:[#allocation175_spill] sm:$0xff]  ;;  %v11349_v16 = vld [vmem:[#allocation177_spill] sm:$0xff]  ;;  %v11350_v18 = vld [vmem:[#allocation178_spill] sm:$0xff] }
0x1a7d   : > { %v3810_v61 = vsel %vm912_vm8, %v11341_v5, %v11340_v28  ;;  %v3812_v22 = vsel %vm912_vm8, %v11343_v9, %v11342_v31  ;;  %v3777_v20 = vadd.f32 %v3768_v56, %v3735_v0  ;;  %v3778_v33 = vadd.f32 %v3769_v43, %v3736_v4 }
0x1a7e   : > { %v3779_v25 = vadd.f32 %v3770_v42, %v3737_v14  ;;  %v3811_v48 = vsel %vm912_vm8, %v11340_v28, %v11343_v9  ;;  %v3781_v10 = vadd.f32 %v11339_v47, %v3739_v17  ;;  %v3813_v15 = vsel %vm912_vm8, %v11342_v31, %v11344_v54 }
0x1a7f   : > { %v3852_v37 = vsel %vm992_vm5, %v8879_v23, %v11345_v58  ;;  %v3854_v41 = vsel %vm992_vm5, %v8926_v49, %v11346_v19  ;;  %v3780_v60 = vadd.f32 %v3771_v46, %v3738_v6  ;;  %v3819_v53 = vadd.f32 %v3810_v61, %v3777_v20 }
0x1a80   : > { %v3821_v11 = vadd.f32 %v3812_v22, %v3779_v25  ;;  %v3853_v26 = vsel %vm992_vm5, %v11345_v58, %v8926_v49  ;;  %v3820_v24 = vadd.f32 %v3811_v48, %v3778_v33  ;;  %v3823_v21 = vadd.f32 %v11344_v54, %v3781_v10 }
0x1a81   : > { %v3894_v8 = vsel %vm1072_vm6, %v8988_v3, %v11347_v30  ;;  %v3896_v23 = vsel %vm1072_vm6, %v9026_v12, %v11348_v36  ;;  %v3822_v51 = vadd.f32 %v3813_v15, %v3780_v60  ;;  %v3861_v62 = vadd.f32 %v3852_v37, %v3819_v53 }
0x1a82   : > { %v3863_v29 = vadd.f32 %v3854_v41, %v3821_v11  ;;  %v3895_v34 = vsel %vm1072_vm6, %v11347_v30, %v9026_v12  ;;  %v3862_v13 = vadd.f32 %v3853_v26, %v3820_v24  ;;  %v3855_v38 = vsel %vm992_vm5, %v11346_v19, %v8961_v59 }
0x1a83   : > { %v3936_v3 = vsel %vm1152_vm10, %v9084_v63, %v11349_v16  ;;  %v3938_v56 = vsel %vm1152_vm10, %v9120_v50, %v11350_v18  ;;  %v3865_v35 = vadd.f32 %v8961_v59, %v3823_v21  ;;  %v3903_v43 = vadd.f32 %v3894_v8, %v3861_v62  ;;  %v4042_v21 = vld [vmem:[%s10252_s4] sm:$0xff]  ;;  %v11355_v62 = vld [vmem:[#allocation176_spill] sm:$0xff] }
0x1a84   : > { %v3905_v27 = vadd.f32 %v3896_v23, %v3863_v29  ;;  %v3937_v12 = vsel %vm1152_vm10, %v11349_v16, %v9120_v50  ;;  %v3904_v42 = vadd.f32 %v3895_v34, %v3862_v13  ;;  %v3897_v0 = vsel %vm1072_vm6, %v11348_v36, %v9061_v44  ;;  %v11359_v13 = vld [vmem:[#allocation184_spill] sm:$0xff] }
0x1a85   : > { %v3907_v14 = vadd.f32 %v9061_v44, %v3865_v35  ;;  %v3945_v17 = vadd.f32 %v3936_v3, %v3903_v43  ;;  %v3864_v47 = vadd.f32 %v3855_v38, %v3822_v51  ;;  %v3939_v50 = vsel %vm1152_vm10, %v11350_v18, %v9149_v57 }
0x1a86   : > { %v3947_v6 = vadd.f32 %v3938_v56, %v3905_v27  ;;  %v3946_v46 = vadd.f32 %v3937_v12, %v3904_v42  ;;  %v11351_v8 = vmov 4   ;;  %v11352_v36 = vmov 2  }
0x1a87   : > { %v3949_v61 = vadd.f32 %v9149_v57, %v3907_v14  ;;  %v3906_v9 = vadd.f32 %v3897_v0, %v3864_v47  ;;  %v11353_v23 = vmov 7   ;;  %v6172_v51 = vmov 54   ;;  %v11365_v47 = vld [vmem:[#allocation4_spill] sm:$0xff] }
0x1a88   : > { %v11356_v29 = vmov 5   ;;  %v11357_v34 = vmov 6   ;;  %v6173_v38 = vmov 55   ;;  %v6174_v16 = vmov 56  }
0x1a89   : > { %vm11360_vm2 = vcmask 596992  }
0x1a8a   : > { %vm11361_vm3 = vmmov %vm11360_vm2 }
0x1a8b   : > { %vm11362_vm7 = vmmov %vm11360_vm2 }
0x1a8c   : > { %vm11363_vm13 = vmmov %vm11360_vm2 }
0x1a96   : > { %v3969_v1 = vpop.permute.xlu0 %3968  ;;  %v3971_v45 = vpop.permute.xlu1 %3970 }
0x1a97   : > { %v3978_v4 = vsel %vm1232_vm12, %v3969_v1, %v3971_v45 }
0x1a98   : > { %v3987_v31 = vadd.f32 %v3978_v4, %v3945_v17  ;;  %v11364_v4 = vld [vmem:[#allocation55_spill] sm:$0xff] }
0x1a9a   : > { %v3973_v2 = vpop.permute.xlu0 %3972  ;;  %v3975_v49 = vpop.permute.xlu1 %3974 }
0x1a9b   : > { %v3980_v63 = vsel %vm1232_vm12, %v3973_v2, %v3975_v49  ;;  %v3979_v59 = vsel %vm1232_vm12, %v3971_v45, %v3973_v2  ;;  %v3948_v45 = vadd.f32 %v3939_v50, %v3906_v9  ;;  %v11354_v2 = vmov 3  }
0x1a9c   : > { %v3989_v1 = vadd.f32 %v3980_v63, %v3947_v6  ;;  %v3988_v22 = vadd.f32 %v3979_v59, %v3946_v46 }
0x1a9e   : > { %v3977_v28 = vpop.permute.xlu0 %3976 }
0x1a9f   : > { %v3981_v44 = vsel %vm1232_vm12, %v3975_v49, %v3977_v28  ;;  %v3991_v20 = vadd.f32 %v3977_v28, %v3949_v61  ;;  %v11358_v49 = vld [vmem:[#allocation185_spill] sm:$0xff] }
0x1aa0   : > { %v3990_v37 = vadd.f32 %v3981_v44, %v3948_v45 }
0x1aab   : > { %v3994_v5 = vpop.permute.xlu1 %3993 }
0x1aac   : > { %v3998_v33 = vmul.f32 %v3994_v5, %v3989_v1  ;;  %v3996_v25 = vmul.f32 %v3994_v5, %v3987_v31  ;;  %v4000_v15 = vmul.f32 %v3994_v5, %v3991_v20  ;;  %v3997_v58 = vmul.f32 %v3994_v5, %v3988_v22  ;;  %v11367_v31 = vld [vmem:[#allocation2_spill] sm:$0xff] }
0x1aad   : > { %v3999_v53 = vmul.f32 %v3994_v5, %v3990_v37  ;;  %v11366_v5 = vld [vmem:[#allocation3_spill] sm:$0xff] }
0x1aaf   : > { %v4003_v48 = vpop.permute.xlu0 %4002 }
0x1ab0   : > { %v4007_v10 = vadd.f32 %v4003_v48, %v3998_v33  ;;  %v4005_v54 = vadd.f32 %v4003_v48, %v3996_v25  ;;  %v4009_v60 = vadd.f32 %v4003_v48, %v4000_v15  ;;  %v4006_v57 = vadd.f32 %v4003_v48, %v3997_v58 }
0x1ab1   : > { %v4008_v24 = vadd.f32 %v4003_v48, %v3999_v53 }
0x1ab2   : > { %v4012_v19 = vmax.f32 %v4007_v10, 0.0  ;;  %v4010_v41 = vmax.f32 %v4005_v54, 0.0  ;;  %v4014_v11 = vmax.f32 %v4009_v60, 0.0  ;;  %v4011_v26 = vmax.f32 %v4006_v57, 0.0 }
0x1ab3   : > { %v4013_v30 = vmax.f32 %v4008_v24, 0.0 }
0x1ab4   : > { %4024 = vrot.lane.b32.xlu0 %v4012_v19, %s10957_s26  ;;  %4020 = vrot.lane.b32.xlu1 %v4010_v41, %s10957_s26 }
0x1ab8   : > { %4028 = vrot.lane.b32.xlu0 %v4014_v11, %s10957_s26  ;;  %4022 = vrot.lane.b32.xlu1 %v4011_v26, %s10957_s26  ;;  %v11368_v11 = vld [vmem:[#allocation19_spill] sm:$0xff] }
0x1abc   : > { %4069 = vperm.xlu0 %5993, %v4042_v21   ;;  %4026 = vrot.lane.b32.xlu1 %v4013_v30, %s10957_s26 }
0x1ac0   : > { %5996 = vset.pattern.permute.xlu0 %v11351_v8  ;;  %4045 = vperm.xlu1 %5992, %v4042_v21  }
0x1ac1   : > { %4153 = vperm.xlu0 %5996, %v4042_v21  }
0x1ac4   : > { %5994 = vset.pattern.permute.xlu1 %v11352_v36 }
0x1ac5   : > { %5999 = vset.pattern.permute.xlu0 %v11353_v23  ;;  %4097 = vperm.xlu1 %5994, %v4042_v21  }
0x1ac6   : > { %4237 = vperm.xlu0 %5999, %v4042_v21  }
0x1ac9   : > { %5995 = vset.pattern.permute.xlu1 %v11354_v2 }
0x1aca   : > { %6001 = vset.pattern.permute.xlu0 %v6172_v51  ;;  %4125 = vperm.xlu1 %5995, %v4042_v21  }
0x1acb   : > { %4313 = vperm.xlu0 %6001, %v11355_v62  }
0x1ace   : > { %5997 = vset.pattern.permute.xlu1 %v11356_v29 }
0x1acf   : > { %4181 = vperm.xlu1 %5997, %v4042_v21   ;;  %6003 = vset.pattern.permute.xlu0 %v6174_v16 }
0x1ad3   : > { %5998 = vset.pattern.permute.xlu1 %v11357_v34 }
0x1ad4   : > { %4209 = vperm.xlu1 %5998, %v4042_v21   ;;  %v11369_v21 = vld [vmem:[#allocation5_spill] sm:$0xff] }
0x1ad8   : > { %6000 = vset.pattern.permute.xlu1 %v11351_v8  ;;  %v11431_v8 = vld [vmem:[#allocation70_spill] sm:$0xff] }
0x1ad9   : > { %4265 = vperm.xlu1 %6000, %v11358_v49  }
0x1add   : > { %4273 = vperm.xlu1 %6000, %v11359_v13  }
0x1ae1   : > { %6002 = vset.pattern.permute.xlu1 %v6173_v38 }
0x1ae2   : > { %4331 = vperm.xlu1 %6002, %v11355_v62  }
0x1b26   : > { %v4021_v3 = vpop.permute.xlu1 %4020  ;;  %v4025_v56 = vpop.permute.xlu0 %4024 }
0x1b2a   : > { %v4023_v18 = vpop.permute.xlu1 %4022  ;;  %v4029_v43 = vpop.permute.xlu0 %4028 }
0x1b2b   : > { %v4030_v27 = vsel %vm11360_vm2, %v4021_v3, %v4023_v18  ;;  %v4031_v12 = vsel %vm11361_vm3, %v4023_v18, %v4025_v56  ;;  %vm11505_vm2 = vcmask 515072  }
0x1b2c   : > { %v9261_v63 = vadd.f32 %v4030_v27, %v11364_v4  ;;  %v9264_v14 = vadd.f32 %v4031_v12, %v8244_v55  ;;  %vm11506_vm3 = vmmov %vm11505_vm2 }
0x1b2e   : > { %v4027_v35 = vpop.permute.xlu1 %4026  ;;  %v4075_v46 = vrot.slane %v9261_v63, %v11365_v47  ;;  %v4079_v28 = vrot.slane %v9264_v14, %v11365_v47  ;;  %v4051_v50 = vrot.slane %v9261_v63, %v11366_v5  ;;  %v4055_v55 = vrot.slane %v9264_v14, %v11366_v5 }
0x1b2f   : > { %v4032_v42 = vsel %vm11362_vm7, %v4025_v56, %v4027_v35  ;;  %v4033_v0 = vsel %vm11363_vm13, %v4027_v35, %v4029_v43  ;;  %v4103_v1 = vrot.slane %v9261_v63, %v11367_v31  ;;  %v4107_v9 = vrot.slane %v9264_v14, %v11367_v31  ;;  %vm11507_vm7 = vmmov %vm11505_vm2 }
0x1b30   : > { %v9267_v17 = vadd.f32 %v4032_v42, %v8246_v40  ;;  %v9270_v6 = vadd.f32 %v4033_v0, %v8251_v39  ;;  %v4159_v26 = vrot.slane %v9261_v63, %v11368_v11  ;;  %v4163_v24 = vrot.slane %v9264_v14, %v11368_v11 }
0x1b31   : > { %v4131_v30 = vrot.slane %v9261_v63, %v11369_v21  ;;  %v4135_v51 = vrot.slane %v9264_v14, %v11369_v21  ;;  %vm11513_vm13 = vcmask 523264  }
0x1b32   : > { %v4059_v40 = vrot.slane %v9267_v17, %v11366_v5  ;;  %v4063_v39 = vrot.slane %v9270_v6, %v11366_v5  ;;  %v4083_v22 = vrot.slane %v9267_v17, %v11365_v47  ;;  %v4087_v44 = vrot.slane %v9270_v6, %v11365_v47  ;;  %v11428_v47 = vld [vmem:[#allocation68_spill] sm:$0xff] }
0x1b33   : > { %v4111_v20 = vrot.slane %v9267_v17, %v11367_v31  ;;  %v4115_v33 = vrot.slane %v9270_v6, %v11367_v31  ;;  %v4167_v18 = vrot.slane %v9267_v17, %v11368_v11  ;;  %v4171_v56 = vrot.slane %v9270_v6, %v11368_v11 }
0x1b34   : > { %v4139_v35 = vrot.slane %v9267_v17, %v11369_v21  ;;  %v4143_v43 = vrot.slane %v9270_v6, %v11369_v21 }
0x1b3b   : > { %v4070_v61 = vpop.permute.xlu0 %4069 }
0x1b3c   : > { %v4088_v54 = vmul.f32 %v4075_v46, %v4070_v61  ;;  %v4089_v15 = vmul.f32 %v4079_v28, %v4070_v61  ;;  %v4090_v58 = vmul.f32 %v4083_v22, %v4070_v61  ;;  %v4091_v37 = vmul.f32 %v4087_v44, %v4070_v61 }
0x1b3f   : > { %v4046_v59 = vpop.permute.xlu1 %4045 }
0x1b40   : > { %v4064_v25 = vmul.f32 %v4051_v50, %v4046_v59  ;;  %v4065_v45 = vmul.f32 %v4055_v55, %v4046_v59  ;;  %v4066_v48 = vmul.f32 %v4059_v40, %v4046_v59  ;;  %v4067_v10 = vmul.f32 %v4063_v39, %v4046_v59  ;;  %v4154_v3 = vpop.permute.xlu0 %4153 }
0x1b41   : > { %v4172_v55 = vmul.f32 %v4159_v26, %v4154_v3  ;;  %v4173_v61 = vmul.f32 %v4163_v24, %v4154_v3  ;;  %v4174_v40 = vmul.f32 %v4167_v18, %v4154_v3  ;;  %v4175_v39 = vmul.f32 %v4171_v56, %v4154_v3 }
0x1b42   : > { %v4092_v49 = vadd.f32 %v4088_v54, %v4064_v25  ;;  %v4093_v13 = vadd.f32 %v4089_v15, %v4065_v45  ;;  %v4094_v38 = vadd.f32 %v4090_v58, %v4066_v48  ;;  %v4095_v16 = vadd.f32 %v4091_v37, %v4067_v10 }
0x1b44   : > { %v4098_v19 = vpop.permute.xlu1 %4097 }
0x1b45   : > { %v4116_v41 = vmul.f32 %v4103_v1, %v4098_v19  ;;  %v4117_v60 = vmul.f32 %v4107_v9, %v4098_v19  ;;  %v4118_v57 = vmul.f32 %v4111_v20, %v4098_v19  ;;  %v4119_v53 = vmul.f32 %v4115_v33, %v4098_v19  ;;  %v11370_v20 = vld [vmem:[#allocation18_spill] sm:$0xff] }
0x1b46   : > { %v4187_v33 = vrot.slane %v9261_v63, %v11370_v20  ;;  %v4191_v25 = vrot.slane %v9264_v14, %v11370_v20  ;;  %v4195_v45 = vrot.slane %v9267_v17, %v11370_v20  ;;  %v4199_v48 = vrot.slane %v9270_v6, %v11370_v20 }
0x1b47   : > { %v4120_v27 = vadd.f32 %v4116_v41, %v4092_v49  ;;  %v4121_v12 = vadd.f32 %v4117_v60, %v4093_v13  ;;  %v4122_v42 = vadd.f32 %v4118_v57, %v4094_v38  ;;  %v4123_v0 = vadd.f32 %v4119_v53, %v4095_v16  ;;  %v11371_v53 = vld [vmem:[#allocation23_spill] sm:$0xff]  ;;  %v4238_v49 = vpop.permute.xlu0 %4237  ;;  %v11372_v13 = vld [vmem:[#allocation21_spill] sm:$0xff] }
0x1b48   : > { %v4243_v26 = vrot.slane %v9261_v63, %v11371_v53  ;;  %v4247_v24 = vrot.slane %v9264_v14, %v11371_v53  ;;  %v4215_v38 = vrot.slane %v9261_v63, %v11372_v13  ;;  %v4219_v16 = vrot.slane %v9264_v14, %v11372_v13 }
0x1b49   : > { %v4126_v4 = vpop.permute.xlu1 %4125  ;;  %v4223_v3 = vrot.slane %v9267_v17, %v11372_v13  ;;  %v4227_v18 = vrot.slane %v9270_v6, %v11372_v13  ;;  %v11427_v13 = vld [vmem:[#allocation66_spill] sm:$0xff] }
0x1b4a   : > { %v4144_v59 = vmul.f32 %v4131_v30, %v4126_v4  ;;  %v4145_v46 = vmul.f32 %v4135_v51, %v4126_v4  ;;  %v4146_v28 = vmul.f32 %v4139_v35, %v4126_v4  ;;  %v4147_v50 = vmul.f32 %v4143_v43, %v4126_v4 }
0x1b4b   : > { %v4251_v30 = vrot.slane %v9267_v17, %v11371_v53  ;;  %v4255_v51 = vrot.slane %v9270_v6, %v11371_v53  ;;  %v4257_v63 = vmul.f32 %v4247_v24, %v4238_v49 }
0x1b4c   : > { %v4148_v1 = vadd.f32 %v4144_v59, %v4120_v27  ;;  %v4149_v9 = vadd.f32 %v4145_v46, %v4121_v12  ;;  %v4150_v22 = vadd.f32 %v4146_v28, %v4122_v42  ;;  %v4151_v44 = vadd.f32 %v4147_v50, %v4123_v0 }
0x1b4d   : > { %v4256_v46 = vmul.f32 %v4243_v26, %v4238_v49  ;;  %v4258_v28 = vmul.f32 %v4251_v30, %v4238_v49  ;;  %v4259_v50 = vmul.f32 %v4255_v51, %v4238_v49 }
0x1b4e   : > { %v4176_v10 = vadd.f32 %v4172_v55, %v4148_v1  ;;  %v4177_v54 = vadd.f32 %v4173_v61, %v4149_v9  ;;  %v4178_v15 = vadd.f32 %v4174_v40, %v4150_v22  ;;  %v4179_v58 = vadd.f32 %v4175_v39, %v4151_v44  ;;  %v4182_v37 = vpop.permute.xlu1 %4181 }
0x1b4f   : > { %v4200_v19 = vmul.f32 %v4187_v33, %v4182_v37  ;;  %v4201_v41 = vmul.f32 %v4191_v25, %v4182_v37  ;;  %v4202_v60 = vmul.f32 %v4195_v45, %v4182_v37  ;;  %v4203_v57 = vmul.f32 %v4199_v48, %v4182_v37 }
0x1b51   : > { %v4204_v56 = vadd.f32 %v4200_v19, %v4176_v10  ;;  %v4205_v35 = vadd.f32 %v4201_v41, %v4177_v54  ;;  %v4206_v43 = vadd.f32 %v4202_v60, %v4178_v15  ;;  %v4207_v27 = vadd.f32 %v4203_v57, %v4179_v58  ;;  %v11373_v57 = vld [vmem:[#allocation10_spill] sm:$0xff] }
0x1b53   : > { %v4210_v12 = vpop.permute.xlu1 %4209 }
0x1b54   : > { %v4228_v42 = vmul.f32 %v4215_v38, %v4210_v12  ;;  %v4229_v0 = vmul.f32 %v4219_v16, %v4210_v12  ;;  %v4230_v4 = vmul.f32 %v4223_v3, %v4210_v12  ;;  %v4231_v59 = vmul.f32 %v4227_v18, %v4210_v12 }
0x1b56   : > { %v4232_v14 = vadd.f32 %v4228_v42, %v4204_v56  ;;  %v4233_v55 = vadd.f32 %v4229_v0, %v4205_v35  ;;  %v4234_v61 = vadd.f32 %v4230_v4, %v4206_v43  ;;  %v4235_v17 = vadd.f32 %v4231_v59, %v4207_v27  ;;  %v11374_v4 = vld [vmem:[#allocation7_spill] sm:$0xff] }
0x1b58   : > { %v4260_v40 = vadd.f32 %v4256_v46, %v4232_v14  ;;  %v4261_v39 = vadd.f32 %v4257_v63, %v4233_v55  ;;  %v4262_v6 = vadd.f32 %v4258_v28, %v4234_v61  ;;  %v4263_v1 = vadd.f32 %v4259_v50, %v4235_v17  ;;  %v4266_v9 = vpop.permute.xlu1 %4265  ;;  %v11376_v63 = vld [vmem:[#allocation33_spill] sm:$0xff]  ;;  %v11378_v17 = vld [vmem:[#allocation8_spill] sm:$0xff] }
0x1b59   : > { %v11377_v14 = vld [vmem:[#allocation9_spill] sm:$0xff] }
0x1b5a   : > { %v4268_v22 = vmul.f32 %v4266_v9, %v4260_v40  ;;  %v4269_v44 = vmul.f32 %v4266_v9, %v4261_v39  ;;  %v4270_v33 = vmul.f32 %v4266_v9, %v4262_v6  ;;  %v4271_v25 = vmul.f32 %v4266_v9, %v4263_v1  ;;  %v9359_v9 = vpop.permute.xlu0 %4313 }
0x1b5b   : > { %v6175_v1 = vmov 57  }
0x1b5c   : > { %v4274_v45 = vpop.permute.xlu1 %4273  ;;  %6004 = vset.pattern.permute.xlu1 %v6175_v1 }
0x1b5d   : > { %v4276_v48 = vadd.f32 %v4274_v45, %v4268_v22  ;;  %v4277_v10 = vadd.f32 %v4274_v45, %v4269_v44  ;;  %v4278_v54 = vadd.f32 %v4274_v45, %v4270_v33  ;;  %v4279_v15 = vadd.f32 %v4274_v45, %v4271_v25  ;;  %v11379_v33 = vld [vmem:[#allocation36_spill] sm:$0xff] }
0x1b5f   : > { %v5793_v58 = vmul.f32 -1.442695, %v4276_v48  ;;  %v5794_v37 = vmul.f32 -1.442695, %v4277_v10  ;;  %v5795_v19 = vmul.f32 -1.442695, %v4278_v54 }
0x1b60   : > { %v5796_v41 = vmul.f32 -1.442695, %v4279_v15 }
0x1b61   : > { %6038 = vpow2.f32 %v5793_v58  ;;  %v4332_v60 = vpop.permute.xlu1 %4331  ;;  %v11382_v58 = vld [vmem:[#allocation11_spill] sm:$0xff] }
0x1b62   : > { %6040 = vpow2.f32 %v5794_v37  ;;  %v4334_v26 = vmul.f32 %v4332_v60, %v11373_v57 }
0x1b63   : > { %6042 = vpow2.f32 %v5795_v19 }
0x1b64   : > { %6044 = vpow2.f32 %v5796_v41  ;;  %4344 = vrot.lane.b32.xlu1 %v4334_v26, %s6107_s13 }
0x1b6b   : > { %v6039_v24 = vpop.eup %6038 }
0x1b6c   : > { %v6041_v30 = vpop.eup %6040  ;;  %v4292_v51 = vadd.f32 1.0, %v6039_v24  ;;  %v9382_v24 = vld [vmem:[%s10254_s6] sm:$0xff] }
0x1b6d   : > { %v6043_v49 = vpop.eup %6042  ;;  %v4293_v38 = vadd.f32 1.0, %v6041_v30  ;;  %v6176_v30 = vmov 58  }
0x1b6e   : > { %v6045_v16 = vpop.eup %6044  ;;  %v4294_v3 = vadd.f32 1.0, %v6043_v49  ;;  %6046 = vrcp.f32 %v4292_v51 }
0x1b6f   : > { %v4295_v18 = vadd.f32 1.0, %v6045_v16  ;;  %6048 = vrcp.f32 %v4293_v38 }
0x1b70   : > { %6050 = vrcp.f32 %v4294_v3 }
0x1b71   : > { %6052 = vrcp.f32 %v4295_v18 }
0x1b78   : > { %v6047_v56 = vpop.eup %6046 }
0x1b79   : > { %v6049_v35 = vpop.eup %6048  ;;  %v9338_v43 = vmul.f32 %v6047_v56, %v4276_v48  ;;  %v11384_v56 = vld [vmem:[#allocation15_spill] sm:$0xff] }
0x1b7a   : > { %v6051_v27 = vpop.eup %6050  ;;  %v9340_v12 = vmul.f32 %v6049_v35, %v4277_v10  ;;  %v11380_v10 = vld [vmem:[#allocation14_spill] sm:$0xff] }
0x1b7b   : > { %v6053_v42 = vpop.eup %6052  ;;  %v9342_v0 = vmul.f32 %v6051_v27, %v4278_v54  ;;  %v4326_v59 = vmul.f32 %v9338_v43, %v11374_v4  ;;  %v4368_v37 = vmul.f32 %v9338_v43, %v11382_v58  ;;  %v4410_v35 = vmul.f32 %v9338_v43, %v11384_v56  ;;  %v11385_v4 = vld [vmem:[#allocation20_spill] sm:$0xff] }
0x1b7c   : > { %v9346_v46 = vmul.f32 %v6053_v42, %v4279_v15  ;;  %v4327_v28 = vmul.f32 %v9340_v12, %v11376_v63  ;;  %v4369_v25 = vmul.f32 %v9340_v12, %v11379_v33  ;;  %v11386_v63 = vld [vmem:[#allocation17_spill] sm:$0xff]  ;;  %v6178_v56 = vmov 60  }
0x1b7d   : > { %v4335_v50 = vmul.f32 %v4332_v60, %v4326_v59  ;;  %v4328_v55 = vmul.f32 %v9342_v0, %v11377_v14  ;;  %v4704_v11 = vmul.f32 %v9338_v43, %v11427_v13  ;;  %v4706_v34 = vmul.f32 %v9342_v0, %v11431_v8  ;;  %v11434_v13 = vld [vmem:[#allocation78_spill] sm:$0xff]  ;;  %v11435_v8 = vld [vmem:[#allocation79_spill] sm:$0xff] }
0x1b7e   : > { %11375 = vst [vmem:[#allocation197_spill] sm:$0xff] %v9346_v46  ;;  %v4336_v61 = vmul.f32 %v4332_v60, %v4327_v28  ;;  %v4329_v40 = vmul.f32 %v9346_v46, %v11378_v17  ;;  %v4412_v28 = vmul.f32 %v9342_v0, %v11386_v63  ;;  %v11388_v17 = vld [vmem:[#allocation16_spill] sm:$0xff]  ;;  %v4705_v52 = vmul.f32 %v9340_v12, %v11432_v7 }
0x1b7f   : > { %4346 = vrot.lane.b32.xlu0 %v4335_v50, %s6107_s13  ;;  %v4337_v39 = vmul.f32 %v4332_v60, %v4328_v55  ;;  %v11387_v50 = vld [vmem:[#allocation37_spill] sm:$0xff]  ;;  %v4747_v7 = vmul.f32 %v9340_v12, %v11435_v8  ;;  %v11439_v8 = vld [vmem:[#allocation86_spill] sm:$0xff] }
0x1b80   : > { %4348 = vrot.lane.b32.xlu1 %v4336_v61, %s6107_s13  ;;  %v4338_v6 = vmul.f32 %v4332_v60, %v4329_v40  ;;  %v11383_v60 = vld [vmem:[#allocation13_spill] sm:$0xff]  ;;  %v4411_v14 = vmul.f32 %v9340_v12, %v11387_v50  ;;  %v4413_v40 = vmul.f32 %v9346_v46, %v11388_v17 }
0x1b81   : > { %v4370_v57 = vmul.f32 %v9342_v0, %v11383_v60 }
0x1b83   : > { %4350 = vrot.lane.b32.xlu0 %v4337_v39, %s6107_s13 }
0x1b84   : > { %4352 = vrot.lane.b32.xlu1 %v4338_v6, %s6107_s13  ;;  %v6177_v6 = vmov 59  }
0x1b87   : > { %4373 = vperm.xlu0 %6003, %v11355_v62   ;;  %v11381_v62 = vld [vmem:[#allocation12_spill] sm:$0xff] }
0x1b88   : > { %v4371_v15 = vmul.f32 %v9346_v46, %v11381_v62 }
0x1bd6   : > { %v9385_v51 = vpop.permute.xlu1 %4344 }
0x1bf1   : > { %v9361_v22 = vpop.permute.xlu0 %4346 }
0x1bf2   : > { %v9387_v49 = vpop.permute.xlu1 %4348 }
0x1bf5   : > { %v9363_v44 = vpop.permute.xlu0 %4350 }
0x1bf6   : > { %v9389_v38 = vpop.permute.xlu1 %4352 }
0x1c06   : > { %v4374_v45 = vpop.permute.xlu0 %4373 }
0x1c07   : > { %v4378_v48 = vmul.f32 %v4374_v45, %v4369_v25  ;;  %v4376_v54 = vmul.f32 %v4374_v45, %v11380_v10  ;;  %v4380_v19 = vmul.f32 %v4374_v45, %v4371_v15  ;;  %v4377_v41 = vmul.f32 %v4374_v45, %v4368_v37  ;;  %v11389_v25 = vld [vmem:[#allocation22_spill] sm:$0xff]  ;;  %v11391_v15 = vld [vmem:[#allocation25_spill] sm:$0xff] }
0x1c08   : > { %v4379_v26 = vmul.f32 %v4374_v45, %v4370_v57  ;;  %v4452_v45 = vmul.f32 %v9338_v43, %v11389_v25  ;;  %v4454_v58 = vmul.f32 %v9342_v0, %v11391_v15  ;;  %v11392_v37 = vld [vmem:[#allocation38_spill] sm:$0xff]  ;;  %v11393_v57 = vld [vmem:[#allocation24_spill] sm:$0xff] }
0x1c09   : > { %4390 = vrot.lane.b32.xlu0 %v4378_v48, %s6108_s15  ;;  %4386 = vrot.lane.b32.xlu1 %v4376_v54, %s6108_s15  ;;  %v11390_v54 = vld [vmem:[#allocation26_spill] sm:$0xff] }
0x1c0d   : > { %4394 = vrot.lane.b32.xlu0 %v4380_v19, %s6108_s15  ;;  %4388 = vrot.lane.b32.xlu1 %v4377_v41, %s6108_s15  ;;  %v4453_v19 = vmul.f32 %v9340_v12, %v11392_v37 }
0x1c11   : > { %4392 = vrot.lane.b32.xlu1 %v4379_v26, %s6108_s15  ;;  %v4455_v26 = vmul.f32 %v9346_v46, %v11393_v57 }
0x1c15   : > { %4415 = vperm.xlu1 %6004, %v9382_v24  }
0x1c19   : > { %6005 = vset.pattern.permute.xlu1 %v6176_v30 }
0x1c7b   : > { %v9391_v16 = vpop.permute.xlu1 %4386 }
0x1c7f   : > { %v9393_v3 = vpop.permute.xlu1 %4388 }
0x1c83   : > { %v9395_v18 = vpop.permute.xlu1 %4392 }
0x1c94   : > { %v4416_v27 = vpop.permute.xlu1 %4415 }
0x1c95   : > { %v4419_v42 = vmul.f32 %v4416_v27, %v4410_v35  ;;  %v4418_v59 = vmul.f32 %v4416_v27, %v11385_v4  ;;  %v4421_v55 = vmul.f32 %v4416_v27, %v4412_v28  ;;  %v4420_v61 = vmul.f32 %v4416_v27, %v4411_v14  ;;  %v11395_v28 = vld [vmem:[#allocation30_spill] sm:$0xff]  ;;  %v11396_v14 = vld [vmem:[#allocation29_spill] sm:$0xff] }
0x1c96   : > { %v4422_v39 = vmul.f32 %v4416_v27, %v4413_v40 }
0x1c97   : > { %4430 = vrot.lane.b32.xlu1 %v4419_v42, %s6109_s16  ;;  %4428 = vrot.lane.b32.xlu0 %v4418_v59, %s6109_s16  ;;  %v11394_v42 = vld [vmem:[#allocation27_spill] sm:$0xff] }
0x1c98   : > { %v4494_v4 = vmul.f32 %v9338_v43, %v11394_v42 }
0x1c9b   : > { %4434 = vrot.lane.b32.xlu1 %v4421_v55, %s6109_s16  ;;  %4432 = vrot.lane.b32.xlu0 %v4420_v61, %s6109_s16  ;;  %v4496_v55 = vmul.f32 %v9342_v0, %v11396_v14  ;;  %v11397_v61 = vld [vmem:[#allocation39_spill] sm:$0xff] }
0x1c9c   : > { %v4495_v17 = vmul.f32 %v9340_v12, %v11397_v61 }
0x1c9f   : > { %4457 = vperm.xlu1 %6005, %v9382_v24   ;;  %4436 = vrot.lane.b32.xlu0 %v4422_v39, %s6109_s16 }
0x1ca3   : > { %6006 = vset.pattern.permute.xlu1 %v6177_v6  ;;  %v11398_v6 = vld [vmem:[#allocation28_spill] sm:$0xff] }
0x1ca4   : > { %v4497_v25 = vmul.f32 %v9346_v46, %v11398_v6 }
0x1d09   : > { %v9412_v1 = vpop.permute.xlu1 %4430 }
0x1d0d   : > { %v9414_v33 = vpop.permute.xlu1 %4434 }
0x1d1e   : > { %v4458_v48 = vpop.permute.xlu1 %4457 }
0x1d1f   : > { %v4461_v10 = vmul.f32 %v4458_v48, %v4452_v45  ;;  %v4460_v62 = vmul.f32 %v4458_v48, %v11390_v54  ;;  %v4463_v41 = vmul.f32 %v4458_v48, %v4454_v58  ;;  %v4462_v60 = vmul.f32 %v4458_v48, %v4453_v19  ;;  %v11400_v19 = vld [vmem:[#allocation35_spill] sm:$0xff] }
0x1d20   : > { %v4464_v30 = vmul.f32 %v4458_v48, %v4455_v26  ;;  %v6179_v48 = vmov 61   ;;  %v11402_v26 = vld [vmem:[#allocation40_spill] sm:$0xff] }
0x1d21   : > { %4472 = vrot.lane.b32.xlu1 %v4461_v10, %s6110_s18  ;;  %4470 = vrot.lane.b32.xlu0 %v4460_v62, %s6110_s18  ;;  %v11399_v62 = vld [vmem:[#allocation31_spill] sm:$0xff] }
0x1d22   : > { %v4536_v15 = vmul.f32 %v9338_v43, %v11399_v62 }
0x1d25   : > { %4476 = vrot.lane.b32.xlu1 %v4463_v41, %s6110_s18  ;;  %4474 = vrot.lane.b32.xlu0 %v4462_v60, %s6110_s18  ;;  %v11401_v60 = vld [vmem:[#allocation34_spill] sm:$0xff] }
0x1d26   : > { %v4538_v57 = vmul.f32 %v9342_v0, %v11401_v60  ;;  %v6181_v60 = vmov 63  }
0x1d29   : > { %4499 = vperm.xlu1 %6006, %v9382_v24   ;;  %4478 = vrot.lane.b32.xlu0 %v4464_v30, %s6110_s18  ;;  %v4537_v30 = vmul.f32 %v9340_v12, %v11402_v26 }
0x1d2d   : > { %6007 = vset.pattern.permute.xlu1 %v6178_v56 }
0x1d93   : > { %v9431_v35 = vpop.permute.xlu1 %4472 }
0x1d97   : > { %v9433_v27 = vpop.permute.xlu1 %4476 }
0x1da8   : > { %v4500_v59 = vpop.permute.xlu1 %4499 }
0x1da9   : > { %v4503_v63 = vmul.f32 %v4500_v59, %v4494_v4  ;;  %v4502_v50 = vmul.f32 %v4500_v59, %v11395_v28  ;;  %v4505_v40 = vmul.f32 %v4500_v59, %v4496_v55  ;;  %v4504_v39 = vmul.f32 %v4500_v59, %v4495_v17  ;;  %v11403_v4 = vld [vmem:[#allocation32_spill] sm:$0xff]  ;;  %v11404_v55 = vld [vmem:[#allocation41_spill] sm:$0xff] }
0x1daa   : > { %v4506_v45 = vmul.f32 %v4500_v59, %v4497_v25  ;;  %v4539_v59 = vmul.f32 %v9346_v46, %v11403_v4  ;;  %v6180_v28 = vmov 62   ;;  %v4578_v61 = vmul.f32 %v9338_v43, %v11404_v55  ;;  %v11406_v25 = vld [vmem:[#allocation45_spill] sm:$0xff] }
0x1dab   : > { %4514 = vrot.lane.b32.xlu1 %v4503_v63, %s6111_s20  ;;  %4512 = vrot.lane.b32.xlu0 %v4502_v50, %s6111_s20 }
0x1daf   : > { %4518 = vrot.lane.b32.xlu1 %v4505_v40, %s6111_s20  ;;  %4516 = vrot.lane.b32.xlu0 %v4504_v39, %s6111_s20  ;;  %v11405_v39 = vld [vmem:[#allocation42_spill] sm:$0xff] }
0x1db3   : > { %4541 = vperm.xlu1 %6007, %v9382_v24   ;;  %4520 = vrot.lane.b32.xlu0 %v4506_v45, %s6111_s20  ;;  %v4580_v45 = vmul.f32 %v9342_v0, %v11406_v25 }
0x1db7   : > { %6008 = vset.pattern.permute.xlu1 %v6179_v48  ;;  %v11407_v48 = vld [vmem:[#allocation43_spill] sm:$0xff] }
0x1db8   : > { %v4579_v62 = vmul.f32 %v9340_v12, %v11407_v48  ;;  %v6182_v48 = vmov 64  }
0x1db9   : > { %6011 = vset.pattern.permute.xlu0 %v6182_v48 }
0x1e1d   : > { %v9450_v10 = vpop.permute.xlu1 %4514 }
0x1e21   : > { %v9452_v54 = vpop.permute.xlu1 %4518 }
0x1e32   : > { %v4542_v58 = vpop.permute.xlu1 %4541 }
0x1e33   : > { %v4545_v37 = vmul.f32 %v4542_v58, %v4536_v15  ;;  %v4544_v41 = vmul.f32 %v4542_v58, %v11400_v19  ;;  %v4547_v56 = vmul.f32 %v4542_v58, %v4538_v57  ;;  %v4546_v42 = vmul.f32 %v4542_v58, %v4537_v30  ;;  %v11410_v30 = vld [vmem:[#allocation46_spill] sm:$0xff] }
0x1e34   : > { %v4548_v63 = vmul.f32 %v4542_v58, %v4539_v59  ;;  %v11411_v59 = vld [vmem:[#allocation48_spill] sm:$0xff] }
0x1e35   : > { %4556 = vrot.lane.b32.xlu1 %v4545_v37, %s6112_s22  ;;  %4554 = vrot.lane.b32.xlu0 %v4544_v41, %s6112_s22  ;;  %v11408_v37 = vld [vmem:[#allocation44_spill] sm:$0xff] }
0x1e36   : > { %v4581_v19 = vmul.f32 %v9346_v46, %v11408_v37  ;;  %v11416_v37 = vld [vmem:[#allocation56_spill] sm:$0xff] }
0x1e39   : > { %4560 = vrot.lane.b32.xlu1 %v4547_v56, %s6112_s22  ;;  %4558 = vrot.lane.b32.xlu0 %v4546_v42, %s6112_s22  ;;  %v4620_v56 = vmul.f32 %v9338_v43, %v11410_v30  ;;  %v11417_v30 = vld [vmem:[#allocation58_spill] sm:$0xff] }
0x1e3d   : > { %4583 = vperm.xlu1 %6008, %v9382_v24   ;;  %4562 = vrot.lane.b32.xlu0 %v4548_v63, %s6112_s22 }
0x1e41   : > { %6009 = vset.pattern.permute.xlu1 %v6180_v28  ;;  %v11412_v28 = vld [vmem:[#allocation50_spill] sm:$0xff] }
0x1e42   : > { %v4622_v55 = vmul.f32 %v9342_v0, %v11412_v28 }
0x1ea7   : > { %v9469_v50 = vpop.permute.xlu1 %4556 }
0x1eab   : > { %v9471_v14 = vpop.permute.xlu1 %4560 }
0x1ebc   : > { %v4584_v17 = vpop.permute.xlu1 %4583 }
0x1ebd   : > { %v4587_v40 = vmul.f32 %v4584_v17, %v4578_v61  ;;  %v4586_v6 = vmul.f32 %v4584_v17, %v11405_v39  ;;  %v4589_v15 = vmul.f32 %v4584_v17, %v4580_v45  ;;  %v4588_v58 = vmul.f32 %v4584_v17, %v4579_v62  ;;  %v11413_v61 = vld [vmem:[#allocation49_spill] sm:$0xff] }
0x1ebe   : > { %v4590_v41 = vmul.f32 %v4584_v17, %v4581_v19  ;;  %v4621_v17 = vmul.f32 %v9340_v12, %v11413_v61  ;;  %v6183_v62 = vmov 65   ;;  %v4662_v19 = vmul.f32 %v9338_v43, %v11416_v37 }
0x1ebf   : > { %4598 = vrot.lane.b32.xlu1 %v4587_v40, %s10955_s25  ;;  %4596 = vrot.lane.b32.xlu0 %v4586_v6, %s10955_s25  ;;  %v11414_v6 = vld [vmem:[#allocation47_spill] sm:$0xff]  ;;  %v6184_v61 = vmov 66   ;;  %v6191_v37 = vmov 77  }
0x1ec0   : > { %v4623_v25 = vmul.f32 %v9346_v46, %v11414_v6  ;;  %v9534_v6 = vpop.permute.xlu0 %4390 }
0x1ec3   : > { %4602 = vrot.lane.b32.xlu1 %v4589_v15, %s10955_s25  ;;  %4600 = vrot.lane.b32.xlu0 %v4588_v58, %s10955_s25 }
0x1ec4   : > { %v9538_v48 = vpop.permute.xlu0 %4394 }
0x1ec7   : > { %4625 = vperm.xlu1 %6009, %v9382_v24   ;;  %4604 = vrot.lane.b32.xlu0 %v4590_v41, %s10955_s25 }
0x1ecb   : > { %6010 = vset.pattern.permute.xlu1 %v6181_v60 }
0x1f31   : > { %v9488_v57 = vpop.permute.xlu1 %4598 }
0x1f35   : > { %v9490_v26 = vpop.permute.xlu1 %4602 }
0x1f36   : > { %11409 = vst [vmem:[#allocation196_spill] sm:$0xff] %v9490_v26  ;;  %v11496_v26 = vld [vmem:[#allocation189_spill] sm:$0xff] }
0x1f46   : > { %v4626_v42 = vpop.permute.xlu1 %4625 }
0x1f47   : > { %v4629_v4 = vmul.f32 %v4626_v42, %v4620_v56  ;;  %v4628_v63 = vmul.f32 %v4626_v42, %v11411_v59  ;;  %v4631_v40 = vmul.f32 %v4626_v42, %v4622_v55  ;;  %v4630_v39 = vmul.f32 %v4626_v42, %v4621_v17  ;;  %v11419_v59 = vld [vmem:[#allocation59_spill] sm:$0xff] }
0x1f48   : > { %v4632_v45 = vmul.f32 %v4626_v42, %v4623_v25  ;;  %v11418_v42 = vld [vmem:[#allocation60_spill] sm:$0xff]  ;;  %v6185_v17 = vmov 67   ;;  %v6188_v25 = vmov 69  }
0x1f49   : > { %4640 = vrot.lane.b32.xlu1 %v4629_v4, %s10962_s29  ;;  %4638 = vrot.lane.b32.xlu0 %v4628_v63, %s10962_s29  ;;  %v4664_v4 = vmul.f32 %v9342_v0, %v11418_v42  ;;  %v4663_v63 = vmul.f32 %v9340_v12, %v11419_v59  ;;  %v6194_v42 = vmov 75  }
0x1f4d   : > { %4644 = vrot.lane.b32.xlu1 %v4631_v40, %s10962_s29  ;;  %4642 = vrot.lane.b32.xlu0 %v4630_v39, %s10962_s29  ;;  %v6186_v40 = vmov 68   ;;  %v6187_v39 = vmov 70  }
0x1f51   : > { %4667 = vperm.xlu1 %6010, %v9382_v24   ;;  %4646 = vrot.lane.b32.xlu0 %v4632_v45, %s10962_s29  ;;  %v6189_v45 = vmov 74  }
0x1f55   : > { %6012 = vset.pattern.permute.xlu1 %v6183_v62  ;;  %v6190_v62 = vmov 71  }
0x1fbb   : > { %v9507_v15 = vpop.permute.xlu1 %4640 }
0x1fbf   : > { %v9509_v58 = vpop.permute.xlu1 %4644 }
0x1fc0   : > { %11415 = vst [vmem:[#allocation205_spill] sm:$0xff] %v9509_v58 }
0x1fd0   : > { %v9513_v41 = vpop.permute.xlu1 %4667 }
0x1fd1   : > { %v4671_v60 = vmul.f32 %v9513_v41, %v4662_v19  ;;  %v4670_v56 = vmul.f32 %v9513_v41, %v11417_v30  ;;  %v4673_v28 = vmul.f32 %v9513_v41, %v4664_v4  ;;  %v4672_v55 = vmul.f32 %v9513_v41, %v4663_v63  ;;  %v9542_v19 = vpop.permute.xlu0 %4428 }
0x1fd2   : > { %v6193_v30 = vmov 80   ;;  %v11420_v4 = vmov 1   ;;  %v6195_v63 = vmov 76  }
0x1fd3   : > { %4682 = vrot.lane.b32.xlu1 %v4671_v60, %s6099_s14  ;;  %4680 = vrot.lane.b32.xlu0 %v4670_v56, %s6099_s14  ;;  %v6192_v60 = vmov 73  }
0x1fd5   : > { %v9546_v56 = vpop.permute.xlu0 %4432 }
0x1fd7   : > { %4686 = vrot.lane.b32.xlu1 %v4673_v28, %s6099_s14  ;;  %4684 = vrot.lane.b32.xlu0 %v4672_v55, %s6099_s14  ;;  %v6196_v55 = vmov 78  }
0x1fd9   : > { %v9550_v59 = vpop.permute.xlu0 %4436 }
0x1fdb   : > { %4751 = vperm.xlu1 %6012, %v9382_v24   ;;  %4709 = vperm.xlu0 %6011, %v9382_v24  }
0x1fdd   : > { %v9553_v28 = vpop.permute.xlu0 %4470 }
0x1fdf   : > { %6013 = vset.pattern.permute.xlu1 %v6184_v61  ;;  %6014 = vset.pattern.permute.xlu0 %v6185_v17  ;;  %v6197_v17 = vmov 79  }
0x1fe0   : > { %4793 = vperm.xlu1 %6013, %v9382_v24   ;;  %4835 = vperm.xlu0 %6014, %v9382_v24  }
0x1fe1   : > { %v9556_v61 = vpop.permute.xlu0 %4474 }
0x1fe4   : > { %6015 = vset.pattern.permute.xlu1 %v6186_v40  ;;  %6017 = vset.pattern.permute.xlu0 %v6187_v39  ;;  %v11421_v40 = vld [vmem:[#allocation57_spill] sm:$0xff] }
0x1fe5   : > { %4872 = vperm.xlu1 %6015, %v9382_v24   ;;  %4956 = vperm.xlu0 %6017, %v9382_v24   ;;  %v4665_v39 = vmul.f32 %v9346_v46, %v11421_v40 }
0x1fe9   : > { %6016 = vset.pattern.permute.xlu1 %v6188_v25  ;;  %6020 = vset.pattern.permute.xlu0 %v6189_v45  ;;  %v4674_v25 = vmul.f32 %v9513_v41, %v4665_v39  ;;  %v9562_v45 = vpop.permute.xlu0 %4478 }
0x1fea   : > { %4914 = vperm.xlu1 %6016, %v9382_v24   ;;  %5100 = vperm.xlu0 %6020, %v9382_v24  }
0x1fee   : > { %6018 = vset.pattern.permute.xlu1 %v6190_v62  ;;  %6023 = vset.pattern.permute.xlu0 %v6191_v37  ;;  %v6198_v62 = vmov 72   ;;  %v9565_v37 = vpop.permute.xlu0 %4512 }
0x1fef   : > { %4998 = vperm.xlu1 %6018, %v9382_v24   ;;  %5226 = vperm.xlu0 %6023, %v9382_v24  }
0x1ff3   : > { %6019 = vset.pattern.permute.xlu1 %v6192_v60  ;;  %6026 = vset.pattern.permute.xlu0 %v6193_v30  ;;  %v9567_v60 = vpop.permute.xlu0 %4516 }
0x1ff4   : > { %5058 = vperm.xlu1 %6019, %v9382_v24   ;;  %5352 = vperm.xlu0 %6026, %v9382_v24  }
0x1ff7   : > { %v9569_v30 = vpop.permute.xlu0 %4520 }
0x1ff8   : > { %6021 = vset.pattern.permute.xlu1 %v6194_v42  ;;  %6030 = vset.pattern.permute.xlu0 %v11420_v4 }
0x1ff9   : > { %5142 = vperm.xlu1 %6021, %v9382_v24  }
0x1ffb   : > { %v9571_v42 = vpop.permute.xlu0 %4554 }
0x1ffd   : > { %6022 = vset.pattern.permute.xlu1 %v6195_v63 }
0x1ffe   : > { %5184 = vperm.xlu1 %6022, %v9382_v24  }
0x1fff   : > { %v9573_v4 = vpop.permute.xlu0 %4558 }
0x2002   : > { %6024 = vset.pattern.permute.xlu1 %v6196_v55 }
0x2003   : > { %5268 = vperm.xlu1 %6024, %v9382_v24   ;;  %v9575_v63 = vpop.permute.xlu0 %4562 }
0x2007   : > { %6025 = vset.pattern.permute.xlu1 %v6197_v17  ;;  %v9577_v55 = vpop.permute.xlu0 %4596 }
0x2008   : > { %5310 = vperm.xlu1 %6025, %v9382_v24  }
0x200b   : > { %v9579_v41 = vpop.permute.xlu0 %4600 }
0x200c   : > { %4688 = vrot.lane.b32.xlu1 %v4674_v25, %s6099_s14  ;;  %s11430_s14 = smov 63  }
0x200d   : > { %6027 = vset.pattern.permute.xlu1 %v6198_v62 }
0x200f   : > { %v9581_v17 = vpop.permute.xlu0 %4604 }
0x2010   : > { %11422 = vst [vmem:[#allocation204_spill] sm:$0xff] %v9581_v17 }
0x2013   : > { %v9583_v40 = vpop.permute.xlu0 %4638 }
0x2017   : > { %v9585_v39 = vpop.permute.xlu0 %4642 }
0x201b   : > { %v9587_v25 = vpop.permute.xlu0 %4646 }
0x201c   : > { %11423 = vst [vmem:[#allocation207_spill] sm:$0xff] %v9587_v25 }
0x2045   : > { %v9589_v62 = vpop.permute.xlu0 %4680  ;;  %v9591_v53 = vpop.permute.xlu1 %4682 }
0x2046   : > { %11424 = vst [vmem:[#allocation206_spill] sm:$0xff] %v9589_v62  ;;  %11425 = vst [vmem:[#allocation198_spill] sm:$0xff] %v9591_v53 }
0x2049   : > { %v9593_v20 = vpop.permute.xlu0 %4684  ;;  %v9598_v23 = vpop.permute.xlu1 %4686 }
0x204a   : > { %11426 = vst [vmem:[#allocation208_spill] sm:$0xff] %v9593_v20  ;;  %11429 = vst [vmem:[#allocation62_spill] sm:$0xff] %v9598_v23  ;;  %v11485_v20 = vld [vmem:[#allocation219_spill] sm:$0xff] }
0x205a   : > { %v4710_v21 = vpop.permute.xlu0 %4709  ;;  %v4752_v36 = vpop.permute.xlu1 %4751 }
0x205b   : > { %v4713_v31 = vmul.f32 %v4710_v21, %v4704_v11  ;;  %v4712_v5 = vmul.f32 %v4710_v21, %v11428_v47  ;;  %v4715_v32 = vmul.f32 %v4710_v21, %v4706_v34  ;;  %v4714_v2 = vmul.f32 %v4710_v21, %v4705_v52  ;;  %v11433_v47 = vld [vmem:[#allocation67_spill] sm:$0xff]  ;;  %v11436_v34 = vld [vmem:[#allocation76_spill] sm:$0xff] }
0x205c   : > { %v4707_v11 = vmul.f32 %v9346_v46, %v11433_v47  ;;  %v4746_v52 = vmul.f32 %v9338_v43, %v11436_v34 }
0x205d   : > { %4724 = vrot.lane.b32.xlu0 %v4713_v31, %s11430_s14  ;;  %4722 = vrot.lane.b32.xlu1 %v4712_v5, %s11430_s14  ;;  %v4754_v31 = vmul.f32 %v4752_v36, %v11434_v13  ;;  %v4756_v5 = vmul.f32 %v4752_v36, %v4747_v7  ;;  %v4788_v7 = vmul.f32 %v9338_v43, %v11439_v8 }
0x205e   : > { %v4716_v23 = vmul.f32 %v4710_v21, %v4707_v11  ;;  %v11438_v21 = vld [vmem:[#allocation80_spill] sm:$0xff] }
0x205f   : > { %v4748_v11 = vmul.f32 %v9342_v0, %v11438_v21 }
0x2061   : > { %4728 = vrot.lane.b32.xlu0 %v4715_v32, %s11430_s14  ;;  %4726 = vrot.lane.b32.xlu1 %v4714_v2, %s11430_s14  ;;  %v4755_v32 = vmul.f32 %v4752_v36, %v4746_v52  ;;  %v11437_v2 = vld [vmem:[#allocation77_spill] sm:$0xff]  ;;  %v11440_v52 = vld [vmem:[#allocation88_spill] sm:$0xff] }
0x2062   : > { %v4749_v47 = vmul.f32 %v9346_v46, %v11437_v2 }
0x2064   : > { %v4758_v13 = vmul.f32 %v4752_v36, %v4749_v47  ;;  %v11443_v47 = vld [vmem:[#allocation89_spill] sm:$0xff] }
0x2065   : > { %4764 = vrot.lane.b32.xlu0 %v4754_v31, %s11129_s23  ;;  %4730 = vrot.lane.b32.xlu1 %v4716_v23, %s11430_s14  ;;  %v4757_v23 = vmul.f32 %v4752_v36, %v4748_v11  ;;  %v4794_v31 = vpop.permute.xlu1 %4793  ;;  %v4789_v36 = vmul.f32 %v9340_v12, %v11443_v47  ;;  %v11448_v47 = vld [vmem:[#allocation96_spill] sm:$0xff] }
0x2066   : > { %v4797_v34 = vmul.f32 %v4794_v31, %v4788_v7  ;;  %v11445_v7 = vld [vmem:[#allocation93_spill] sm:$0xff] }
0x2067   : > { %v4798_v11 = vmul.f32 %v4794_v31, %v4789_v36  ;;  %v4832_v36 = vmul.f32 %v9342_v0, %v11448_v47 }
0x2069   : > { %4768 = vrot.lane.b32.xlu0 %v4756_v5, %s11129_s23  ;;  %4766 = vrot.lane.b32.xlu1 %v4755_v32, %s11129_s23  ;;  %v4796_v5 = vmul.f32 %v4794_v31, %v11440_v52  ;;  %v11442_v32 = vld [vmem:[#allocation90_spill] sm:$0xff]  ;;  %v4873_v25 = vpop.permute.xlu1 %4872 }
0x206a   : > { %v4790_v2 = vmul.f32 %v9342_v0, %v11442_v32  ;;  %v11447_v32 = vld [vmem:[#allocation92_spill] sm:$0xff] }
0x206c   : > { %v4799_v21 = vmul.f32 %v4794_v31, %v4790_v2  ;;  %v4831_v2 = vmul.f32 %v9340_v12, %v11447_v32 }
0x206d   : > { %4772 = vrot.lane.b32.xlu0 %v4758_v13, %s11129_s23  ;;  %4770 = vrot.lane.b32.xlu1 %v4757_v23, %s11129_s23  ;;  %v4836_v13 = vpop.permute.xlu0 %4835  ;;  %v11444_v23 = vld [vmem:[#allocation87_spill] sm:$0xff]  ;;  %s11446_s23 = smov 55  }
0x206e   : > { %v4791_v8 = vmul.f32 %v9346_v46, %v11444_v23  ;;  %v11449_v23 = vld [vmem:[#allocation95_spill] sm:$0xff] }
0x2070   : > { %v4800_v52 = vmul.f32 %v4794_v31, %v4791_v8  ;;  %v4833_v31 = vmul.f32 %v9346_v46, %v11449_v23  ;;  %v11450_v8 = vld [vmem:[#allocation103_spill] sm:$0xff] }
0x2071   : > { %4808 = vrot.lane.b32.xlu0 %v4797_v34, %s11441_s24  ;;  %4806 = vrot.lane.b32.xlu1 %v4796_v5, %s11441_s24  ;;  %v4830_v34 = vmul.f32 %v9338_v43, %v11445_v7  ;;  %v4867_v7 = vmul.f32 %v9338_v43, %v11450_v8 }
0x2073   : > { %v4838_v5 = vmul.f32 %v4836_v13, %v4830_v34  ;;  %v4841_v34 = vmul.f32 %v4836_v13, %v4833_v31  ;;  %v11454_v31 = vld [vmem:[#allocation107_spill] sm:$0xff] }
0x2074   : > { %v4879_v8 = vmul.f32 %v4873_v25, %v11454_v31 }
0x2075   : > { %4812 = vrot.lane.b32.xlu0 %v4799_v21, %s11441_s24  ;;  %4810 = vrot.lane.b32.xlu1 %v4798_v11, %s11441_s24  ;;  %v4839_v21 = vmul.f32 %v4836_v13, %v4831_v2  ;;  %v4840_v11 = vmul.f32 %v4836_v13, %v4832_v36  ;;  %v11452_v2 = vld [vmem:[#allocation105_spill] sm:$0xff] }
0x2076   : > { %v4869_v47 = vmul.f32 %v9342_v0, %v11452_v2 }
0x2079   : > { %4814 = vrot.lane.b32.xlu1 %v4800_v52, %s11441_s24  ;;  %4846 = vrot.lane.b32.xlu0 %v4838_v5, %s11446_s23  ;;  %v4875_v52 = vmul.f32 %v4873_v25, %v4867_v7  ;;  %v11451_v5 = vld [vmem:[#allocation106_spill] sm:$0xff]  ;;  %v4915_v7 = vpop.permute.xlu1 %4914 }
0x207a   : > { %v4868_v32 = vmul.f32 %v9340_v12, %v11451_v5 }
0x207c   : > { %v4876_v36 = vmul.f32 %v4873_v25, %v4868_v32  ;;  %v11456_v32 = vld [vmem:[#allocation115_spill] sm:$0xff] }
0x207d   : > { %4848 = vrot.lane.b32.xlu1 %v4839_v21, %s11446_s23  ;;  %4850 = vrot.lane.b32.xlu0 %v4840_v11, %s11446_s23  ;;  %v4877_v21 = vmul.f32 %v4873_v25, %v4869_v47  ;;  %v11453_v11 = vld [vmem:[#allocation108_spill] sm:$0xff]  ;;  %v4910_v2 = vmul.f32 %v9340_v12, %v11456_v32 }
0x207e   : > { %v4870_v13 = vmul.f32 %v9346_v46, %v11453_v11  ;;  %v11457_v47 = vld [vmem:[#allocation116_spill] sm:$0xff]  ;;  %v11458_v11 = vld [vmem:[#allocation117_spill] sm:$0xff] }
0x2080   : > { %v4878_v23 = vmul.f32 %v4873_v25, %v4870_v13  ;;  %v4918_v25 = vmul.f32 %v4915_v7, %v4910_v2  ;;  %v4912_v13 = vmul.f32 %v9346_v46, %v11458_v11 }
0x2081   : > { %4852 = vrot.lane.b32.xlu1 %v4841_v34, %s11446_s23  ;;  %4885 = vrot.lane.b32.xlu0 %v4875_v52, %s11163_s17  ;;  %v11455_v34 = vld [vmem:[#allocation114_spill] sm:$0xff] }
0x2082   : > { %v4909_v52 = vmul.f32 %v9338_v43, %v11455_v34  ;;  %v11460_v34 = vld [vmem:[#allocation125_spill] sm:$0xff] }
0x2084   : > { %v4917_v5 = vmul.f32 %v4915_v7, %v4909_v52  ;;  %v4952_v52 = vmul.f32 %v9340_v12, %v11460_v34 }
0x2085   : > { %4887 = vrot.lane.b32.xlu1 %v4876_v36, %s11163_s17  ;;  %4889 = vrot.lane.b32.xlu0 %v4877_v21, %s11163_s17  ;;  %v4911_v36 = vmul.f32 %v9342_v0, %v11457_v47 }
0x2087   : > { %v4919_v21 = vmul.f32 %v4915_v7, %v4911_v36  ;;  %v11463_v36 = vld [vmem:[#allocation127_spill] sm:$0xff] }
0x2089   : > { %4891 = vrot.lane.b32.xlu1 %v4878_v23, %s11163_s17  ;;  %4893 = vrot.lane.b32.xlu0 %v4879_v8, %s11163_s17  ;;  %v11459_v23 = vld [vmem:[#allocation118_spill] sm:$0xff]  ;;  %v4957_v8 = vpop.permute.xlu0 %4956  ;;  %s11462_s17 = smov 47  }
0x208a   : > { %v4921_v31 = vmul.f32 %v4915_v7, %v11459_v23  ;;  %v4960_v2 = vmul.f32 %v4957_v8, %v4952_v52  ;;  %v11465_v23 = vld [vmem:[#allocation134_spill] sm:$0xff]  ;;  %v11466_v52 = vld [vmem:[#allocation128_spill] sm:$0xff] }
0x208d   : > { %5040 = vperm.xlu1 %6027, %v9382_v24   ;;  %4927 = vrot.lane.b32.xlu0 %v4917_v5, %s11174_s27  ;;  %v4920_v24 = vmul.f32 %v4915_v7, %v4912_v13  ;;  %v11461_v5 = vld [vmem:[#allocation124_spill] sm:$0xff]  ;;  %v4954_v7 = vmul.f32 %v9346_v46, %v11463_v36 }
0x208e   : > { %v4951_v32 = vmul.f32 %v9338_v43, %v11461_v5  ;;  %v4963_v5 = vmul.f32 %v4957_v8, %v11466_v52 }
0x208f   : > { %v4962_v11 = vmul.f32 %v4957_v8, %v4954_v7 }
0x2090   : > { %v4959_v47 = vmul.f32 %v4957_v8, %v4951_v32  ;;  %v11467_v32 = vld [vmem:[#allocation136_spill] sm:$0xff] }
0x2091   : > { %4929 = vrot.lane.b32.xlu1 %v4918_v25, %s11174_s27  ;;  %4931 = vrot.lane.b32.xlu0 %v4919_v21, %s11174_s27  ;;  %v11464_v25 = vld [vmem:[#allocation126_spill] sm:$0xff] }
0x2092   : > { %6028 = vset.pattern.permute.xlu1 %v11356_v29  ;;  %v4953_v21 = vmul.f32 %v9342_v0, %v11464_v25 }
0x2094   : > { %v4961_v13 = vmul.f32 %v4957_v8, %v4953_v21  ;;  %v11469_v21 = vld [vmem:[#allocation137_spill] sm:$0xff]  ;;  %v11470_v8 = vld [vmem:[#allocation138_spill] sm:$0xff] }
0x2095   : > { %4933 = vrot.lane.b32.xlu1 %v4920_v24, %s11174_s27  ;;  %4935 = vrot.lane.b32.xlu0 %v4921_v31, %s11174_s27  ;;  %v4999_v24 = vpop.permute.xlu1 %4998  ;;  %v4993_v31 = vmul.f32 %v9338_v43, %v11465_v23 }
0x2097   : > { %v5001_v34 = vmul.f32 %v4999_v24, %v4993_v31 }
0x2099   : > { %4971 = vrot.lane.b32.xlu0 %v4960_v2, %s11462_s17  ;;  %4969 = vrot.lane.b32.xlu1 %v4959_v47, %s11462_s17  ;;  %v4995_v2 = vmul.f32 %v9342_v0, %v11467_v32  ;;  %v11468_v47 = vld [vmem:[#allocation135_spill] sm:$0xff]  ;;  %v5059_v31 = vpop.permute.xlu1 %5058 }
0x209a   : > { %v4994_v36 = vmul.f32 %v9340_v12, %v11468_v47 }
0x209b   : > { %v5003_v7 = vmul.f32 %v4999_v24, %v4995_v2 }
0x209c   : > { %v5002_v25 = vmul.f32 %v4999_v24, %v4994_v36  ;;  %v11473_v36 = vld [vmem:[#allocation153_spill] sm:$0xff] }
0x209d   : > { %4975 = vrot.lane.b32.xlu0 %v4962_v11, %s11462_s17  ;;  %4973 = vrot.lane.b32.xlu1 %v4961_v13, %s11462_s17  ;;  %v4996_v11 = vmul.f32 %v9346_v46, %v11469_v21  ;;  %v5005_v13 = vmul.f32 %v4999_v24, %v11470_v8  ;;  %v5101_v8 = vpop.permute.xlu0 %5100 }
0x209f   : > { %v5004_v23 = vmul.f32 %v4999_v24, %v4996_v11  ;;  %v5056_v24 = vmul.f32 %v9346_v46, %v11473_v36  ;;  %v11478_v36 = vld [vmem:[#allocation161_spill] sm:$0xff] }
0x20a1   : > { %5011 = vrot.lane.b32.xlu0 %v5001_v34, %s11189_s21  ;;  %4977 = vrot.lane.b32.xlu1 %v4963_v5, %s11462_s17  ;;  %v11471_v34 = vld [vmem:[#allocation151_spill] sm:$0xff]  ;;  %v11472_v5 = vld [vmem:[#allocation149_spill] sm:$0xff]  ;;  %v5064_v21 = vmul.f32 %v5059_v31, %v5056_v24  ;;  %v5097_v24 = vmul.f32 %v9342_v0, %v11478_v36 }
0x20a2   : > { %v5054_v52 = vmul.f32 %v9340_v12, %v11471_v34  ;;  %v5053_v32 = vmul.f32 %v9338_v43, %v11472_v5  ;;  %v9723_v34 = vpop.permute.xlu1 %5142 }
0x20a4   : > { %v5062_v2 = vmul.f32 %v5059_v31, %v5054_v52  ;;  %v5061_v47 = vmul.f32 %v5059_v31, %v5053_v32  ;;  %v11476_v52 = vld [vmem:[#allocation152_spill] sm:$0xff] }
0x20a5   : > { %5015 = vrot.lane.b32.xlu0 %v5003_v7, %s11189_s21  ;;  %5013 = vrot.lane.b32.xlu1 %v5002_v25, %s11189_s21  ;;  %v11474_v7 = vld [vmem:[#allocation150_spill] sm:$0xff]  ;;  %v5065_v5 = vmul.f32 %v5059_v31, %v11476_v52 }
0x20a6   : > { %v5055_v25 = vmul.f32 %v9342_v0, %v11474_v7  ;;  %v11482_v52 = vld [vmem:[#allocation6_spill] sm:$0xff] }
0x20a8   : > { %v5063_v11 = vmul.f32 %v5059_v31, %v5055_v25  ;;  %v5105_v25 = vmul.f32 %v5101_v8, %v5097_v24  ;;  %v11481_v31 = vld [vmem:[#allocation222_spill] sm:$0xff]  ;;  %v11484_v24 = vld [vmem:[#allocation163_spill] sm:$0xff] }
0x20a9   : > { %5019 = vrot.lane.b32.xlu0 %v5005_v13, %s11189_s21  ;;  %5017 = vrot.lane.b32.xlu1 %v5004_v23, %s11189_s21  ;;  %v11475_v13 = vld [vmem:[#allocation159_spill] sm:$0xff] }
0x20aa   : > { %v5095_v23 = vmul.f32 %v9338_v43, %v11475_v13  ;;  %v11480_v13 = vld [vmem:[#allocation221_spill] sm:$0xff] }
0x20ab   : > { %v4309_v29 = vmul.f32 %v9340_v12, %v11480_v13  ;;  %v4316_v13 = vmul.f32 %v9359_v9, %v11485_v20 }
0x20ac   : > { %v5103_v32 = vmul.f32 %v5101_v8, %v5095_v23  ;;  %v4310_v23 = vmul.f32 %v9342_v0, %v11481_v31 }
0x20ad   : > { %5073 = vrot.lane.b32.xlu0 %v5062_v2, %s6107_s13  ;;  %5071 = vrot.lane.b32.xlu1 %v5061_v47, %s6107_s13  ;;  %v11477_v2 = vld [vmem:[#allocation160_spill] sm:$0xff]  ;;  %v4318_v62 = vmul.f32 %v9359_v9, %v4309_v29 }
0x20ae   : > { %v5096_v47 = vmul.f32 %v9340_v12, %v11477_v2  ;;  %v11483_v2 = vld [vmem:[#allocation162_spill] sm:$0xff] }
0x20b0   : > { %v5104_v7 = vmul.f32 %v5101_v8, %v5096_v47  ;;  %v5098_v47 = vmul.f32 %v9346_v46, %v11483_v2  ;;  %v11487_v2 = vld [vmem:[#allocation170_spill] sm:$0xff] }
0x20b1   : > { %5077 = vrot.lane.b32.xlu0 %v5064_v21, %s6107_s13  ;;  %5075 = vrot.lane.b32.xlu1 %v5063_v11, %s6107_s13  ;;  %v11479_v21 = vld [vmem:[#allocation220_spill] sm:$0xff] }
0x20b2   : > { %v4308_v11 = vmul.f32 %v9338_v43, %v11479_v21  ;;  %v5106_v36 = vmul.f32 %v5101_v8, %v5098_v47  ;;  %v5107_v21 = vmul.f32 %v5101_v8, %v11484_v24  ;;  %v5138_v8 = vmul.f32 %v9340_v12, %v11487_v2  ;;  %v11488_v47 = vld [vmem:[#allocation171_spill] sm:$0xff] }
0x20b3   : > { %v5139_v20 = vmul.f32 %v9342_v0, %v11488_v47  ;;  %v11490_v24 = vld [vmem:[#allocation179_spill] sm:$0xff]  ;;  %v11493_v47 = vld [vmem:[#allocation181_spill] sm:$0xff] }
0x20b4   : > { %v4317_v31 = vmul.f32 %v9359_v9, %v4308_v11  ;;  %v11489_v11 = vld [vmem:[#allocation172_spill] sm:$0xff]  ;;  %v5146_v2 = vmul.f32 %v9723_v34, %v5138_v8  ;;  %v5181_v58 = vmul.f32 %v9342_v0, %v11493_v47  ;;  %v4355_v8 = vsel %vm672_vm11, %v9361_v22, %v9387_v49 }
0x20b5   : > { %5079 = vrot.lane.b32.xlu1 %v5065_v5, %s6107_s13  ;;  %5113 = vrot.lane.b32.xlu0 %v5103_v32, %s6108_s15  ;;  %v4311_v5 = vmul.f32 %v9346_v46, %v11482_v52  ;;  %v9740_v32 = vpop.permute.xlu1 %5184  ;;  %v4319_v52 = vmul.f32 %v9359_v9, %v4310_v23  ;;  %v5140_v29 = vmul.f32 %v9346_v46, %v11489_v11  ;;  %v11494_v11 = vld [vmem:[#allocation182_spill] sm:$0xff] }
0x20b6   : > { %v5179_v23 = vmul.f32 %v9338_v43, %v11490_v24  ;;  %v9778_v17 = vmul.f32 %v9346_v46, %v11494_v11  ;;  %v11495_v24 = vld [vmem:[#allocation190_spill] sm:$0xff]  ;;  %v4356_v47 = vsel %vm672_vm11, %v9387_v49, %v9363_v44  ;;  %v11499_v11 = vld [vmem:[#allocation191_spill] sm:$0xff] }
0x20b7   : > { %v4320_v53 = vmul.f32 %v9359_v9, %v4311_v5  ;;  %v11491_v9 = vld [vmem:[#allocation180_spill] sm:$0xff] }
0x20b8   : > { %v5180_v5 = vmul.f32 %v9340_v12, %v11491_v9  ;;  %v9782_v9 = vmul.f32 %v9340_v12, %v11495_v24 }
0x20b9   : > { %5115 = vrot.lane.b32.xlu1 %v5104_v7, %s6108_s15  ;;  %5117 = vrot.lane.b32.xlu0 %v5105_v25, %s6108_s15  ;;  %v11486_v7 = vld [vmem:[#allocation169_spill] sm:$0xff] }
0x20ba   : > { %v5137_v25 = vmul.f32 %v9338_v43, %v11486_v7 }
0x20bc   : > { %v5145_v7 = vmul.f32 %v9723_v34, %v5137_v25 }
0x20bd   : > { %5119 = vrot.lane.b32.xlu1 %v5106_v36, %s6108_s15  ;;  %5121 = vrot.lane.b32.xlu0 %v5107_v21, %s6108_s15  ;;  %v4354_v36 = vsel %vm672_vm11, %v9385_v51, %v9361_v22  ;;  %v9770_v21 = vpop.permute.xlu1 %5268  ;;  %v9786_v51 = vmul.f32 %v9338_v43, %v11496_v26  ;;  %v9802_v26 = vmul.f32 %v9342_v0, %v11499_v11 }
0x20be   : > { %11492 = vst [vmem:[#allocation75_spill] sm:$0xff] %v9770_v21  ;;  %v11497_v21 = vld [vmem:[#allocation192_spill] sm:$0xff]  ;;  %v4363_v24 = vadd.f32 %v4354_v36, %v4316_v13  ;;  %v4397_v13 = vsel %vm752_vm4, %v9393_v3, %v9534_v6  ;;  %v5147_v36 = vmul.f32 %v9723_v34, %v5139_v20  ;;  %v4365_v11 = vadd.f32 %v4356_v47, %v4318_v62 }
0x20bf   : > { %v9790_v25 = vmul.f32 %v9346_v46, %v11497_v21  ;;  %v4357_v21 = vsel %vm672_vm11, %v9363_v44, %v9389_v38  ;;  %v11500_v46 = vld [vmem:[#allocation199_spill] sm:$0xff]  ;;  %v5148_v44 = vmul.f32 %v9723_v34, %v5140_v29  ;;  %v4439_v20 = vsel %vm832_vm9, %v9412_v1, %v9546_v56  ;;  %v11502_v29 = vld [vmem:[#allocation173_spill] sm:$0xff] }
0x20c0   : > { %v9809_v22 = vmul.f32 %v9338_v43, %v11500_v46  ;;  %v4367_v46 = vadd.f32 %v9389_v38, %v4320_v53  ;;  %v4366_v53 = vadd.f32 %v4357_v21, %v4319_v52  ;;  %v5187_v47 = vmul.f32 %v9740_v32, %v5179_v23 }
0x20c1   : > { %11498 = vst [vmem:[#allocation61_spill] sm:$0xff] %v9790_v25  ;;  %5155 = vrot.lane.b32.xlu1 %v5145_v7, %s6109_s16  ;;  %5157 = vrot.lane.b32.xlu0 %v5146_v2, %s6109_s16  ;;  %v11501_v25 = vld [vmem:[#allocation201_spill] sm:$0xff]  ;;  %v4396_v7 = vsel %vm752_vm4, %v9391_v16, %v9393_v3  ;;  %v4364_v2 = vadd.f32 %v4355_v8, %v4317_v31  ;;  %v9836_v31 = vpop.permute.xlu0 %5226  ;;  %v9838_v62 = vpop.permute.xlu1 %5310 }
0x20c2   : > { %v9813_v49 = vmul.f32 %v9342_v0, %v11501_v25  ;;  %v4398_v25 = vsel %vm752_vm4, %v9534_v6, %v9395_v18  ;;  %v4399_v16 = vsel %vm752_vm4, %v9395_v18, %v9538_v48  ;;  %v4438_v3 = vsel %vm832_vm9, %v9542_v19, %v9412_v1 }
0x20c3   : > { %v4409_v38 = vadd.f32 %v9538_v48, %v4367_v46  ;;  %v4405_v18 = vadd.f32 %v4396_v7, %v4363_v24  ;;  %v4406_v6 = vadd.f32 %v4397_v13, %v4364_v2  ;;  %v4440_v19 = vsel %vm832_vm9, %v9546_v56, %v9414_v33 }
0x20c4   : > { %v4441_v1 = vsel %vm832_vm9, %v9414_v33, %v9550_v59  ;;  %v5149_v8 = vmul.f32 %v9723_v34, %v11502_v29  ;;  %v4480_v48 = vsel %vm912_vm8, %v9553_v28, %v9431_v35  ;;  %v4481_v56 = vsel %vm912_vm8, %v9431_v35, %v9556_v61 }
0x20c5   : > { %5159 = vrot.lane.b32.xlu1 %v5147_v36, %s6109_s16  ;;  %5161 = vrot.lane.b32.xlu0 %v5148_v44, %s6109_s16  ;;  %v4407_v36 = vadd.f32 %v4398_v25, %v4365_v11  ;;  %v4408_v44 = vadd.f32 %v4399_v16, %v4366_v53  ;;  %v4447_v52 = vadd.f32 %v4438_v3, %v4405_v18  ;;  %v9873_v7 = vpop.permute.xlu0 %5352  ;;  %v9875_v13 = vpop.permute.xlu1 %4688 }
0x20c6   : > { %v4448_v21 = vadd.f32 %v4439_v20, %v4406_v6  ;;  %v4482_v33 = vsel %vm912_vm8, %v9556_v61, %v9433_v27  ;;  %v4451_v24 = vadd.f32 %v9550_v59, %v4409_v38  ;;  %v4483_v28 = vsel %vm912_vm8, %v9433_v27, %v9562_v45  ;;  %v11503_v27 = vld [vmem:[#allocation200_spill] sm:$0xff] }
0x20c7   : > { %v4449_v34 = vadd.f32 %v4440_v19, %v4407_v36  ;;  %v4450_v23 = vadd.f32 %v4441_v1, %v4408_v44  ;;  %v4522_v35 = vsel %vm992_vm5, %v9565_v37, %v9450_v10  ;;  %v4523_v61 = vsel %vm992_vm5, %v9450_v10, %v9567_v60  ;;  %v11504_v19 = vld [vmem:[#allocation183_spill] sm:$0xff] }
0x20c8   : > { %v5188_v2 = vmul.f32 %v9740_v32, %v5180_v5  ;;  %v5189_v59 = vmul.f32 %v9740_v32, %v5181_v58  ;;  %v4489_v11 = vadd.f32 %v4480_v48, %v4447_v52  ;;  %v4490_v46 = vadd.f32 %v4481_v56, %v4448_v21 }
0x20c9   : > { %5163 = vrot.lane.b32.xlu1 %v5149_v8, %s6109_s16  ;;  %5197 = vrot.lane.b32.xlu0 %v5187_v47, %s6110_s18  ;;  %v4491_v25 = vadd.f32 %v4482_v33, %v4449_v34  ;;  %v9881_v16 = vmul.f32 %v9340_v12, %v11503_v27  ;;  %v4492_v37 = vadd.f32 %v4483_v28, %v4450_v23  ;;  %v11508_v34 = vld [vmem:[#allocation196_spill] sm:$0xff]  ;;  %v11510_v28 = vld [vmem:[#allocation205_spill] sm:$0xff] }
0x20ca   : > { %v4493_v3 = vadd.f32 %v9562_v45, %v4451_v24  ;;  %v4524_v10 = vsel %vm992_vm5, %v9567_v60, %v9452_v54  ;;  %v4531_v5 = vadd.f32 %v4522_v35, %v4489_v11  ;;  %v4532_v58 = vadd.f32 %v4523_v61, %v4490_v46  ;;  %v11509_v24 = vld [vmem:[#allocation204_spill] sm:$0xff]  ;;  %v11511_v35 = vld [vmem:[#allocation198_spill] sm:$0xff]  ;;  %v11516_v46 = vld [vmem:[#allocation207_spill] sm:$0xff] }
0x20cb   : > { %v4525_v20 = vsel %vm992_vm5, %v9452_v54, %v9569_v30  ;;  %v4564_v53 = vsel %vm1072_vm6, %v9571_v42, %v9469_v50  ;;  %v4565_v45 = vsel %vm1072_vm6, %v9469_v50, %v9573_v4  ;;  %v4566_v60 = vsel %vm1072_vm6, %v9573_v4, %v9471_v14  ;;  %v11512_v61 = vld [vmem:[#allocation206_spill] sm:$0xff] }
0x20cc   : > { %v5190_v6 = vmul.f32 %v9740_v32, %v9778_v17  ;;  %v5191_v54 = vmul.f32 %v9740_v32, %v11504_v19  ;;  %v4533_v1 = vadd.f32 %v4524_v10, %v4491_v25  ;;  %v4535_v29 = vadd.f32 %v9569_v30, %v4493_v3  ;;  %v11517_v3 = vld [vmem:[#allocation61_spill] sm:$0xff] }
0x20cd   : > { %5199 = vrot.lane.b32.xlu1 %v5188_v2, %s6110_s18  ;;  %5201 = vrot.lane.b32.xlu0 %v5189_v59, %s6110_s18  ;;  %v4567_v42 = vsel %vm1072_vm6, %v9471_v14, %v9575_v63  ;;  %v4534_v8 = vadd.f32 %v4525_v20, %v4492_v37  ;;  %v4573_v47 = vadd.f32 %v4564_v53, %v4531_v5  ;;  %v11514_v59 = vld [vmem:[#allocation208_spill] sm:$0xff] }
0x20ce   : > { %v4606_v4 = vsel %vm1152_vm10, %v9577_v55, %v9488_v57  ;;  %v4574_v17 = vadd.f32 %v4565_v45, %v4532_v58  ;;  %v4575_v32 = vadd.f32 %v4566_v60, %v4533_v1  ;;  %v4577_v30 = vadd.f32 %v9575_v63, %v4535_v29  ;;  %v11518_v60 = vld [vmem:[#allocation62_spill] sm:$0xff] }
0x20cf   : > { %v4723_v38 = vpop.permute.xlu1 %4722  ;;  %v4725_v18 = vpop.permute.xlu0 %4724  ;;  %v4607_v14 = vsel %vm1152_vm10, %v9488_v57, %v9579_v41  ;;  %v4576_v36 = vadd.f32 %v4567_v42, %v4534_v8  ;;  %v4648_v44 = vsel %vm1232_vm12, %v9583_v40, %v9507_v15  ;;  %v5230_v55 = vmul.f32 %v9836_v31, %v9782_v9 }
0x20d0   : > { %v4732_v50 = vsel %vm11505_vm2, %v4723_v38, %v4725_v18  ;;  %v5229_v48 = vmul.f32 %v9836_v31, %v9786_v51  ;;  %v4615_v56 = vadd.f32 %v4606_v4, %v4573_v47  ;;  %v4649_v63 = vsel %vm1232_vm12, %v9507_v15, %v9585_v39  ;;  %vm11515_vm2 = vmmov %vm11513_vm13  ;;  %v11521_v47 = vld [vmem:[#allocation75_spill] sm:$0xff] }
0x20d1   : > { %5203 = vrot.lane.b32.xlu1 %v5190_v6, %s6110_s18  ;;  %5205 = vrot.lane.b32.xlu0 %v5191_v54, %s6110_s18  ;;  %v4608_v40 = vsel %vm1152_vm10, %v9579_v41, %v11508_v34  ;;  %v4616_v23 = vadd.f32 %v4607_v14, %v4574_v17  ;;  %v4609_v9 = vsel %vm1152_vm10, %v11508_v34, %v11509_v24  ;;  %v11522_v17 = vld [vmem:[#allocation193_spill] sm:$0xff] }
0x20d2   : > { %v4657_v51 = vadd.f32 %v4648_v44, %v4615_v56  ;;  %v4650_v15 = vsel %vm1232_vm12, %v9585_v39, %v11510_v28  ;;  %v4690_v2 = vsel %vm11513_vm13, %v11512_v61, %v11511_v35  ;;  %v4691_v41 = vsel %vm11515_vm2, %v11511_v35, %v11514_v59  ;;  %vm11520_vm13 = vmmov %vm11515_vm2 }
0x20d3   : > { %v4727_v52 = vpop.permute.xlu1 %4726  ;;  %v4729_v21 = vpop.permute.xlu0 %4728  ;;  %v4658_v11 = vadd.f32 %v4649_v63, %v4616_v23  ;;  %v4651_v25 = vsel %vm1232_vm12, %v11510_v28, %v11516_v46  ;;  %v5232_v10 = vmul.f32 %v9836_v31, %v11517_v3  ;;  %v5231_v39 = vmul.f32 %v9836_v31, %v9802_v26  ;;  %v11534_v3 = vld [vmem:[#allocation211_spill] sm:$0xff] }
0x20d4   : > { %v4733_v57 = vsel %vm11506_vm3, %v4725_v18, %v4727_v52  ;;  %v4734_v33 = vsel %vm11507_vm7, %v4727_v52, %v4729_v21  ;;  %v4617_v5 = vadd.f32 %v4608_v40, %v4575_v32  ;;  %v4618_v58 = vadd.f32 %v4609_v9, %v4576_v36  ;;  %vm11519_vm7 = vmmov %vm11515_vm2  ;;  %v11528_v9 = vld [vmem:[#allocation197_spill] sm:$0xff] }
0x20d5   : > { %5241 = vrot.lane.b32.xlu0 %v5230_v55, %s6111_s20  ;;  %5239 = vrot.lane.b32.xlu1 %v5229_v48, %s6111_s20  ;;  %v4619_v20 = vadd.f32 %v11509_v24, %v4577_v30  ;;  %v4699_v45 = vadd.f32 %v4690_v2, %v4657_v51  ;;  %v4692_v38 = vsel %vm11519_vm7, %v11514_v59, %v11518_v60  ;;  %vm11523_vm2 = vcmask 506880   ;;  %v11531_v59 = vld [vmem:[#allocation209_spill] sm:$0xff] }
0x20d6   : > { %v4700_v18 = vadd.f32 %v4691_v41, %v4658_v11  ;;  %v4659_v6 = vadd.f32 %v4650_v15, %v4617_v5  ;;  %v4660_v19 = vadd.f32 %v4651_v25, %v4618_v58  ;;  %v4693_v54 = vsel %vm11520_vm13, %v11518_v60, %v9875_v13  ;;  %vm11525_vm7 = vmmov %vm11523_vm2  ;;  %v6079_v58 = vld [vmem:[%s10255_s7] sm:$0xff] }
0x20d7   : > { %v4731_v27 = vpop.permute.xlu1 %4730  ;;  %v4765_v37 = vpop.permute.xlu0 %4764  ;;  %v4661_v26 = vadd.f32 %v11516_v46, %v4619_v20  ;;  %v4741_v1 = vadd.f32 %v4732_v50, %v4699_v45  ;;  %v5271_v4 = vmul.f32 %v11521_v47, %v9809_v22  ;;  %v5233_v32 = vmul.f32 %v9836_v31, %v11522_v17  ;;  %vm11526_vm13 = vmmov %vm11523_vm2  ;;  %v11535_v20 = vld [vmem:[#allocation210_spill] sm:$0xff] }
0x20d8   : > { %v4735_v53 = vsel %vm11506_vm3, %v4729_v21, %v4731_v27  ;;  %v4742_v29 = vadd.f32 %v4733_v57, %v4700_v18  ;;  %v4701_v30 = vadd.f32 %v4692_v38, %v4659_v6  ;;  %vm11524_vm3 = vmmov %vm11523_vm2  ;;  %v4702_v52 = vadd.f32 %v4693_v54, %v4660_v19 }
0x20d9   : > { %5245 = vrot.lane.b32.xlu0 %v5232_v10, %s6111_s20  ;;  %5243 = vrot.lane.b32.xlu1 %v5231_v39, %s6111_s20  ;;  %v4703_v14 = vadd.f32 %v9875_v13, %v4661_v26  ;;  %v5273_v31 = vmul.f32 %v11521_v47, %v9813_v49  ;;  %v5272_v13 = vmul.f32 %v11521_v47, %v9881_v16  ;;  %v11529_v49 = vld [vmem:[#allocation203_spill] sm:$0xff] }
0x20da   : > { %v4743_v48 = vadd.f32 %v4734_v33, %v4701_v30  ;;  %v4744_v22 = vadd.f32 %v4735_v53, %v4702_v52  ;;  %v11527_v33 = vld [vmem:[#allocation202_spill] sm:$0xff]  ;;  %v5275_v35 = vmul.f32 %v11521_v47, %v11529_v49  ;;  %v5305_v41 = vmul.f32 %v9338_v43, %v11531_v59 }
0x20db   : > { %v4767_v42 = vpop.permute.xlu1 %4766  ;;  %v4769_v8 = vpop.permute.xlu0 %4768  ;;  %v4745_v50 = vadd.f32 %v4731_v27, %v4703_v14  ;;  %v5266_v51 = vmul.f32 %v11528_v9, %v11527_v33  ;;  %v5307_v10 = vmul.f32 %v9342_v0, %v11534_v3  ;;  %v5306_v53 = vmul.f32 %v9340_v12, %v11535_v20 }
0x20dc   : > { %v4774_v36 = vsel %vm11523_vm2, %v4765_v37, %v4767_v42  ;;  %v4775_v44 = vsel %vm11524_vm3, %v4767_v42, %v4769_v8  ;;  %vm11530_vm2 = vcmask 457728   ;;  %v5313_v25 = vmul.f32 %v9838_v62, %v5305_v41 }
0x20dd   : > { %v4783_v21 = vadd.f32 %v4774_v36, %v4741_v1  ;;  %v4784_v55 = vadd.f32 %v4775_v44, %v4742_v29  ;;  %5281 = vrot.lane.b32.xlu0 %v5271_v4, %s6112_s22  ;;  %5247 = vrot.lane.b32.xlu1 %v5233_v32, %s6111_s20  ;;  %v5274_v16 = vmul.f32 %v11521_v47, %v5266_v51  ;;  %vm11532_vm3 = vmmov %vm11530_vm2  ;;  %v11537_v1 = vld [vmem:[#allocation212_spill] sm:$0xff]  ;;  %v11538_v47 = vld [vmem:[#allocation213_spill] sm:$0xff]  ;;  %v11546_v20 = vmov 3  }
0x20de   : > { %v5315_v38 = vmul.f32 %v9838_v62, %v5307_v10  ;;  %v5314_v18 = vmul.f32 %v9838_v62, %v5306_v53  ;;  %v5308_v29 = vmul.f32 %v11528_v9, %v11537_v1  ;;  %v5317_v4 = vmul.f32 %v9838_v62, %v11538_v47  ;;  %v11539_v44 = vld [vmem:[#allocation214_spill] sm:$0xff] }
0x20df   : > { %v4771_v56 = vpop.permute.xlu1 %4770  ;;  %v4773_v63 = vpop.permute.xlu0 %4772  ;;  %v5347_v52 = vmul.f32 %v9338_v43, %v11539_v44  ;;  %v10049_v10 = vld [vmem:[%s10253_s5] sm:$0xf] }
0x20e0   : > { %v4776_v57 = vsel %vm11525_vm7, %v4769_v8, %v4771_v56  ;;  %v4777_v34 = vsel %vm11526_vm13, %v4771_v56, %v4773_v63  ;;  %v4787_v40 = vadd.f32 %v4773_v63, %v4745_v50  ;;  %vm11533_vm7 = vmmov %vm11530_vm2  ;;  %v5316_v17 = vmul.f32 %v9838_v62, %v5308_v29  ;;  %v6080_v63 = vld [vmem:[%s10256_s8] sm:$0xff] }
0x20e1   : > { %v4785_v23 = vadd.f32 %v4776_v57, %v4743_v48  ;;  %v4786_v24 = vadd.f32 %v4777_v34, %v4744_v22  ;;  %5285 = vrot.lane.b32.xlu0 %v5273_v31, %s6112_s22  ;;  %5283 = vrot.lane.b32.xlu1 %v5272_v13, %s6112_s22  ;;  %vm11536_vm13 = vmmov %vm11530_vm2  ;;  %v5355_v50 = vmul.f32 %v9873_v7, %v5347_v52  ;;  %v11540_v31 = vld [vmem:[#allocation215_spill] sm:$0xff]  ;;  %v11541_v57 = vld [vmem:[#allocation216_spill] sm:$0xff] }
0x20e2   : > { %v5348_v13 = vmul.f32 %v9340_v12, %v11540_v31  ;;  %v5349_v34 = vmul.f32 %v9342_v0, %v11541_v57 }
0x20e3   : > { %v4807_v28 = vpop.permute.xlu1 %4806  ;;  %v4809_v15 = vpop.permute.xlu0 %4808 }
0x20e4   : > { %v4816_v61 = vsel %vm11530_vm2, %v4807_v28, %v4809_v15  ;;  %v5357_v33 = vmul.f32 %v9873_v7, %v5349_v34 }
0x20e5   : > { %v4825_v2 = vadd.f32 %v4816_v61, %v4783_v21  ;;  %5289 = vrot.lane.b32.xlu0 %v5275_v35, %s6112_s22  ;;  %5287 = vrot.lane.b32.xlu1 %v5274_v16, %s6112_s22  ;;  %v11542_v35 = vld [vmem:[#allocation217_spill] sm:$0xff]  ;;  %v11543_v61 = vmov 0  }
0x20e6   : > { %v5350_v16 = vmul.f32 %v11528_v9, %v11542_v35 }
0x20e7   : > { %v4811_v11 = vpop.permute.xlu1 %4810  ;;  %v4813_v46 = vpop.permute.xlu0 %4812 }
0x20e8   : > { %v4817_v27 = vsel %vm11532_vm3, %v4809_v15, %v4811_v11  ;;  %v4818_v37 = vsel %vm11533_vm7, %v4811_v11, %v4813_v46  ;;  %v5358_v41 = vmul.f32 %v9873_v7, %v5350_v16  ;;  %v11544_v11 = vld [vmem:[#allocation218_spill] sm:$0xff] }
0x20e9   : > { %v4826_v39 = vadd.f32 %v4817_v27, %v4784_v55  ;;  %v4827_v5 = vadd.f32 %v4818_v37, %v4785_v23  ;;  %5323 = vrot.lane.b32.xlu0 %v5313_v25, %s10955_s25  ;;  %5390 = vperm.xlu1 %6028, %v6079_v58   ;;  %v11545_v58 = vmov 2  }
0x20eb   : > { %v4815_v45 = vpop.permute.xlu1 %4814  ;;  %v4847_v60 = vpop.permute.xlu0 %4846 }
0x20ec   : > { %v4819_v6 = vsel %vm11536_vm13, %v4813_v46, %v4815_v45  ;;  %v4829_v19 = vadd.f32 %v4815_v45, %v4787_v40  ;;  %v4862_v26 = vadd.f32 %v4847_v60, %v4825_v2  ;;  %v5359_v46 = vmul.f32 %v9873_v7, %v11544_v11 }
0x20ed   : > { %v4828_v54 = vadd.f32 %v4819_v6, %v4786_v24  ;;  %5327 = vrot.lane.b32.xlu0 %v5315_v38, %s10955_s25  ;;  %5325 = vrot.lane.b32.xlu1 %v5314_v18, %s10955_s25  ;;  %v5356_v24 = vmul.f32 %v9873_v7, %v5348_v13 }
0x20ef   : > { %v4849_v42 = vpop.permute.xlu1 %4848  ;;  %v4851_v8 = vpop.permute.xlu0 %4850 }
0x20f0   : > { %v4854_v32 = vsel %vm578_vm1, %v4847_v60, %v4849_v42  ;;  %v4855_v30 = vsel %vm578_vm1, %v4849_v42, %v4851_v8 }
0x20f1   : > { %v4863_v14 = vadd.f32 %v4854_v32, %v4826_v39  ;;  %v4864_v36 = vadd.f32 %v4855_v30, %v4827_v5  ;;  %5331 = vrot.lane.b32.xlu0 %v5317_v4, %s10955_s25  ;;  %5329 = vrot.lane.b32.xlu1 %v5316_v17, %s10955_s25  ;;  %s11572_s25 = sshll.u32 %s11574_s10, 4 }
0x20f2   : > { %s332_s27 = scalar_lea.vmem %s10257_s9, %s11572_s25 }
0x20f3   : > { %v4853_v21 = vpop.permute.xlu1 %4852  ;;  %v4886_v55 = vpop.permute.xlu0 %4885 }
0x20f4   : > { %v4856_v48 = vsel %vm578_vm1, %v4851_v8, %v4853_v21  ;;  %v4866_v62 = vadd.f32 %v4853_v21, %v4829_v19  ;;  %v4904_v22 = vadd.f32 %v4886_v55, %v4862_v26  ;;  %vm11547_vm1 = vcmask 384000  }
0x20f5   : > { %v4865_v56 = vadd.f32 %v4856_v48, %v4828_v54  ;;  %5399 = vperm.xlu1 %6028, %v6080_v63   ;;  %5365 = vrot.lane.b32.xlu0 %v5355_v50, %s10962_s29  ;;  %vm11550_vm2 = vmmov %vm11547_vm1 }
0x20f7   : > { %v4888_v40 = vpop.permute.xlu1 %4887  ;;  %v4890_v23 = vpop.permute.xlu0 %4889 }
0x20f8   : > { %v4895_v51 = vsel %vm1686_vm14, %v4886_v55, %v4888_v40  ;;  %v4896_v28 = vsel %vm1686_vm14, %v4888_v40, %v4890_v23 }
0x20f9   : > { %v4905_v15 = vadd.f32 %v4895_v51, %v4863_v14  ;;  %v4906_v49 = vadd.f32 %v4896_v28, %v4864_v36  ;;  %5367 = vrot.lane.b32.xlu1 %v5356_v24, %s10962_s29  ;;  %5369 = vrot.lane.b32.xlu0 %v5357_v33, %s10962_s29  ;;  %v11548_v36 = vld [vmem:[#allocation145_spill] sm:$0xff]  ;;  %v11552_v33 = vld [vmem:[#allocation52_spill] sm:$0xff]  ;;  %v11553_v28 = vld [vmem:[#allocation51_spill] sm:$0xff] }
0x20fa   : > { %6029 = vset.pattern.permute.xlu1 %v11543_v61  ;;  %v5035_v44 = vmul.f32 %v9338_v43, %v11548_v36  ;;  %v5036_v51 = vmul.f32 %v9340_v12, %v11552_v33 }
0x20fb   : > { %v4892_v2 = vpop.permute.xlu1 %4891  ;;  %v4894_v59 = vpop.permute.xlu0 %4893 }
0x20fc   : > { %v4897_v25 = vsel %vm1686_vm14, %v4890_v23, %v4892_v2  ;;  %v4898_v27 = vsel %vm1686_vm14, %v4892_v2, %v4894_v59  ;;  %vm11549_vm14 = vmmov %vm11547_vm1 }
0x20fd   : > { %v4907_v37 = vadd.f32 %v4897_v25, %v4865_v56  ;;  %v4908_v3 = vadd.f32 %v4898_v27, %v4866_v62  ;;  %5371 = vrot.lane.b32.xlu1 %v5358_v41, %s10962_s29  ;;  %5373 = vrot.lane.b32.xlu0 %v5359_v46, %s10962_s29  ;;  %v11554_v27 = vld [vmem:[#allocation53_spill] sm:$0xff] }
0x20ff   : > { %v4928_v39 = vpop.permute.xlu0 %4927 }
0x2100   : > { %v4946_v5 = vadd.f32 %v4928_v39, %v4904_v22 }
0x2101   : > { %5442 = vperm.xlu1 %6029, %v10049_v10   ;;  %5466 = vperm.xlu0 %6030, %v10049_v10  }
0x2103   : > { %v4932_v7 = vpop.permute.xlu0 %4931 }
0x2105   : > { %6031 = vset.pattern.permute.xlu1 %v11545_v58  ;;  %6032 = vset.pattern.permute.xlu0 %v11546_v20  ;;  %v11555_v20 = vld [vmem:[#allocation54_spill] sm:$0xff] }
0x2107   : > { %v4936_v53 = vpop.permute.xlu0 %4935 }
0x210b   : > { %v4972_v45 = vpop.permute.xlu0 %4971 }
0x210c   : > { %v5041_v60 = vpop.permute.xlu1 %5040 }
0x210d   : > { %v5043_v50 = vmul.f32 %v5041_v60, %v5035_v44  ;;  %v5044_v2 = vmul.f32 %v5041_v60, %v5036_v51 }
0x210f   : > { %v4976_v38 = vpop.permute.xlu0 %4975 }
0x2110   : > { %v4930_v18 = vpop.permute.xlu1 %4929 }
0x2111   : > { %v4937_v6 = vsel %vm1766_vm15, %v4928_v39, %v4930_v18  ;;  %v4938_v19 = vsel %vm1766_vm15, %v4930_v18, %v4932_v7 }
0x2112   : > { %v4947_v26 = vadd.f32 %v4937_v6, %v4905_v15  ;;  %v4948_v54 = vadd.f32 %v4938_v19, %v4906_v49  ;;  %v5037_v15 = vmul.f32 %v9342_v0, %v11553_v28 }
0x2113   : > { %v5012_v1 = vpop.permute.xlu0 %5011 }
0x2114   : > { %v4934_v29 = vpop.permute.xlu1 %4933  ;;  %v5045_v59 = vmul.f32 %v5041_v60, %v5037_v15 }
0x2115   : > { %v4939_v42 = vsel %vm1766_vm15, %v4932_v7, %v4934_v29  ;;  %v4940_v8 = vsel %vm1766_vm15, %v4934_v29, %v4936_v53  ;;  %vm11551_vm15 = vmmov %vm11547_vm1  ;;  %v5047_v53 = vmul.f32 %v5041_v60, %v11555_v20 }
0x2116   : > { %v4949_v47 = vadd.f32 %v4939_v42, %v4907_v37  ;;  %v4950_v4 = vadd.f32 %v4940_v8, %v4908_v3  ;;  %v5038_v37 = vmul.f32 %v11528_v9, %v11554_v27 }
0x2117   : > { %v5016_v17 = vpop.permute.xlu0 %5015 }
0x2118   : > { %v4970_v32 = vpop.permute.xlu1 %4969  ;;  %v5046_v58 = vmul.f32 %v5041_v60, %v5038_v37 }
0x2119   : > { %v4979_v30 = vsel %vm11547_vm1, %v4970_v32, %v4972_v45  ;;  %v4988_v14 = vadd.f32 %v4970_v32, %v4946_v5 }
0x211a   : > { %v4989_v52 = vadd.f32 %v4979_v30, %v4947_v26 }
0x211b   : > { %v5030_v21 = vadd.f32 %v5012_v1, %v4988_v14  ;;  %v5020_v55 = vpop.permute.xlu0 %5019 }
0x211c   : > { %v4974_v48 = vpop.permute.xlu1 %4973 }
0x211d   : > { %v4980_v62 = vsel %vm11549_vm14, %v4972_v45, %v4974_v48  ;;  %v4981_v22 = vsel %vm11550_vm2, %v4974_v48, %v4976_v38  ;;  %v10064_v56 = vadd.f32 %v5043_v50, %v5030_v21 }
0x211e   : > { %v4990_v63 = vadd.f32 %v4980_v62, %v4948_v54  ;;  %v4991_v31 = vadd.f32 %v4981_v22, %v4949_v47 }
0x211f   : > { %v5074_v13 = vpop.permute.xlu0 %5073 }
0x2120   : > { %v4978_v57 = vpop.permute.xlu1 %4977 }
0x2121   : > { %v4982_v34 = vsel %vm11551_vm15, %v4976_v38, %v4978_v57 }
0x2122   : > { %v4992_v40 = vadd.f32 %v4982_v34, %v4950_v4 }
0x2123   : > { %v10067_v23 = vpop.permute.xlu0 %5077 }
0x2124   : > { %v5014_v24 = vpop.permute.xlu1 %5013 }
0x2125   : > { %v5021_v49 = vsel %vm1926_vm0, %v5012_v1, %v5014_v24  ;;  %v5022_v35 = vsel %vm1926_vm0, %v5014_v24, %v5016_v17 }
0x2126   : > { %v5031_v16 = vadd.f32 %v5021_v49, %v4989_v52  ;;  %v5032_v61 = vadd.f32 %v5022_v35, %v4990_v63 }
0x2127   : > { %v5114_v41 = vpop.permute.xlu0 %5113 }
0x2128   : > { %v5018_v11 = vpop.permute.xlu1 %5017  ;;  %v5049_v46 = vadd.f32 %v5044_v2, %v5031_v16  ;;  %v5050_v25 = vadd.f32 %v5045_v59, %v5032_v61 }
0x2129   : > { %v5023_v3 = vsel %vm1926_vm0, %v5016_v17, %v5018_v11  ;;  %v5024_v39 = vsel %vm1926_vm0, %v5018_v11, %v5020_v55  ;;  %vm11560_vm0 = vcmask 596992  }
0x212a   : > { %v5033_v5 = vadd.f32 %v5023_v3, %v4991_v31  ;;  %v5034_v7 = vadd.f32 %v5024_v39, %v4992_v40 }
0x212b   : > { %v5118_v45 = vpop.permute.xlu0 %5117 }
0x212c   : > { %v5072_v38 = vpop.permute.xlu1 %5071  ;;  %v5051_v18 = vadd.f32 %v5046_v58, %v5033_v5  ;;  %v5052_v6 = vadd.f32 %v5047_v53, %v5034_v7 }
0x212d   : > { %v5081_v33 = vsel %vm672_vm11, %v5072_v38, %v5074_v13 }
0x212e   : > { %v5090_v35 = vadd.f32 %v5081_v33, %v10064_v56 }
0x212f   : > { %v5122_v19 = vpop.permute.xlu0 %5121 }
0x2130   : > { %v5076_v26 = vpop.permute.xlu1 %5075 }
0x2131   : > { %v5082_v28 = vsel %vm672_vm11, %v5074_v13, %v5076_v26  ;;  %v5083_v15 = vsel %vm672_vm11, %v5076_v26, %v10067_v23 }
0x2132   : > { %v5091_v2 = vadd.f32 %v5082_v28, %v5049_v46  ;;  %v5092_v13 = vadd.f32 %v5083_v15, %v5050_v25 }
0x2133   : > { %v5158_v54 = vpop.permute.xlu0 %5157 }
0x2134   : > { %v5080_v1 = vpop.permute.xlu1 %5079 }
0x2135   : > { %v5094_v40 = vadd.f32 %v5080_v1, %v5052_v6  ;;  %v5084_v59 = vsel %vm672_vm11, %v10067_v23, %v5080_v1  ;;  %vm11563_vm11 = vmmov %vm11560_vm0 }
0x2136   : > { %v5093_v58 = vadd.f32 %v5084_v59, %v5051_v18 }
0x2137   : > { %v5162_v29 = vpop.permute.xlu0 %5161  ;;  %v5136_v49 = vadd.f32 %v5122_v19, %v5094_v40 }
0x2138   : > { %v5116_v42 = vpop.permute.xlu1 %5115 }
0x2139   : > { %v5123_v16 = vsel %vm752_vm4, %v5114_v41, %v5116_v42  ;;  %v5124_v61 = vsel %vm752_vm4, %v5116_v42, %v5118_v45 }
0x213a   : > { %v5132_v7 = vadd.f32 %v5123_v16, %v5090_v35  ;;  %v5133_v56 = vadd.f32 %v5124_v61, %v5091_v2 }
0x213b   : > { %v5198_v8 = vpop.permute.xlu0 %5197 }
0x213c   : > { %v5120_v47 = vpop.permute.xlu1 %5119 }
0x213d   : > { %v5125_v11 = vsel %vm752_vm4, %v5118_v45, %v5120_v47  ;;  %v5126_v41 = vsel %vm752_vm4, %v5120_v47, %v5122_v19 }
0x213e   : > { %v5134_v20 = vadd.f32 %v5125_v11, %v5092_v13  ;;  %v5135_v26 = vadd.f32 %v5126_v41, %v5093_v58 }
0x213f   : > { %v5202_v4 = vpop.permute.xlu0 %5201 }
0x2140   : > { %v5156_v17 = vpop.permute.xlu1 %5155 }
0x2141   : > { %v5165_v39 = vsel %vm832_vm9, %v5156_v17, %v5158_v54 }
0x2142   : > { %v5174_v53 = vadd.f32 %v5165_v39, %v5132_v7 }
0x2143   : > { %v5206_v32 = vpop.permute.xlu0 %5205 }
0x2144   : > { %v5160_v30 = vpop.permute.xlu1 %5159 }
0x2145   : > { %v5166_v5 = vsel %vm832_vm9, %v5158_v54, %v5160_v30  ;;  %v5167_v45 = vsel %vm832_vm9, %v5160_v30, %v5162_v29 }
0x2146   : > { %v5175_v38 = vadd.f32 %v5166_v5, %v5133_v56 }
0x2147   : > { %v5242_v14 = vpop.permute.xlu0 %5241 }
0x2148   : > { %v5164_v36 = vpop.permute.xlu1 %5163 }
0x2149   : > { %v5178_v27 = vadd.f32 %v5164_v36, %v5136_v49  ;;  %v5168_v1 = vsel %vm832_vm9, %v5162_v29, %v5164_v36  ;;  %vm11562_vm9 = vmmov %vm11560_vm0 }
0x214a   : > { %v5177_v28 = vadd.f32 %v5168_v1, %v5135_v26 }
0x214b   : > { %v10080_v44 = vpop.permute.xlu0 %5245  ;;  %v5220_v6 = vadd.f32 %v5206_v32, %v5178_v27 }
0x214c   : > { %v5200_v60 = vpop.permute.xlu1 %5199 }
0x214d   : > { %v5207_v46 = vsel %vm912_vm8, %v5198_v8, %v5200_v60  ;;  %v5208_v23 = vsel %vm912_vm8, %v5200_v60, %v5202_v4  ;;  %v5176_v60 = vadd.f32 %v5167_v45, %v5134_v20 }
0x214e   : > { %v5216_v19 = vadd.f32 %v5207_v46, %v5174_v53  ;;  %v5217_v18 = vadd.f32 %v5208_v23, %v5175_v38 }
0x214f   : > { %v5282_v52 = vpop.permute.xlu0 %5281 }
0x2150   : > { %v5204_v21 = vpop.permute.xlu1 %5203 }
0x2151   : > { %v5209_v47 = vsel %vm912_vm8, %v5202_v4, %v5204_v21  ;;  %v5210_v40 = vsel %vm912_vm8, %v5204_v21, %v5206_v32  ;;  %vm11561_vm8 = vmmov %vm11560_vm0 }
0x2152   : > { %v5218_v15 = vadd.f32 %v5209_v47, %v5176_v60  ;;  %v11558_v60 = vmov 5  }
0x2153   : > { %v10082_v55 = vpop.permute.xlu0 %5285 }
0x2154   : > { %v5240_v50 = vpop.permute.xlu1 %5239 }
0x2155   : > { %v5249_v54 = vsel %vm992_vm5, %v5240_v50, %v5242_v14 }
0x2156   : > { %v5258_v29 = vadd.f32 %v5249_v54, %v5216_v19 }
0x2157   : > { %v10084_v48 = vpop.permute.xlu0 %5289 }
0x2158   : > { %v5244_v62 = vpop.permute.xlu1 %5243 }
0x2159   : > { %v5250_v42 = vsel %vm992_vm5, %v5242_v14, %v5244_v62  ;;  %v5251_v36 = vsel %vm992_vm5, %v5244_v62, %v10080_v44 }
0x215a   : > { %v5259_v14 = vadd.f32 %v5250_v42, %v5217_v18  ;;  %v5260_v16 = vadd.f32 %v5251_v36, %v5218_v15 }
0x215b   : > { %v5324_v22 = vpop.permute.xlu0 %5323 }
0x215c   : > { %v5248_v63 = vpop.permute.xlu1 %5247 }
0x215d   : > { %v5262_v8 = vadd.f32 %v5248_v63, %v5220_v6  ;;  %v5252_v4 = vsel %vm992_vm5, %v10080_v44, %v5248_v63 }
0x215f   : > { %v10086_v31 = vpop.permute.xlu0 %5327 }
0x2160   : > { %v5284_v57 = vpop.permute.xlu1 %5283 }
0x2161   : > { %v5291_v30 = vsel %vm1072_vm6, %v5282_v52, %v5284_v57  ;;  %v5292_v33 = vsel %vm1072_vm6, %v5284_v57, %v10082_v55  ;;  %v5219_v52 = vadd.f32 %v5210_v40, %v5177_v28  ;;  %v5304_v57 = vadd.f32 %v10084_v48, %v5262_v8 }
0x2162   : > { %v5300_v21 = vadd.f32 %v5291_v30, %v5258_v29  ;;  %v5301_v35 = vadd.f32 %v5292_v33, %v5259_v14  ;;  %v11559_v40 = vmov 7  }
0x2163   : > { %v10088_v24 = vpop.permute.xlu0 %5331  ;;  %v5261_v2 = vadd.f32 %v5252_v4, %v5219_v52 }
0x2164   : > { %v5288_v34 = vpop.permute.xlu1 %5287  ;;  %v5346_v44 = vadd.f32 %v10088_v24, %v5304_v57  ;;  %v11564_v57 = vld [vmem:[#allocation3_spill] sm:$0xff] }
0x2165   : > { %v5293_v62 = vsel %vm1072_vm6, %v10082_v55, %v5288_v34  ;;  %v5294_v61 = vsel %vm1072_vm6, %v5288_v34, %v10084_v48 }
0x2166   : > { %v5302_v39 = vadd.f32 %v5293_v62, %v5260_v16  ;;  %v5303_v5 = vadd.f32 %v5294_v61, %v5261_v2  ;;  %v11565_v62 = vld [vmem:[#allocation4_spill] sm:$0xff] }
0x2167   : > { %v5366_v37 = vpop.permute.xlu0 %5365 }
0x2168   : > { %v10091_v51 = vpop.permute.xlu1 %5390 }
0x216b   : > { %v5370_v17 = vpop.permute.xlu0 %5369 }
0x216c   : > { %v5326_v3 = vpop.permute.xlu1 %5325 }
0x216d   : > { %v5333_v49 = vsel %vm1152_vm10, %v5324_v22, %v5326_v3  ;;  %v5334_v32 = vsel %vm1152_vm10, %v5326_v3, %v10086_v31 }
0x216e   : > { %v5342_v63 = vadd.f32 %v5333_v49, %v5300_v21  ;;  %v5343_v22 = vadd.f32 %v5334_v32, %v5301_v35 }
0x216f   : > { %v5374_v59 = vpop.permute.xlu0 %5373 }
0x2170   : > { %v5330_v25 = vpop.permute.xlu1 %5329  ;;  %v5388_v7 = vadd.f32 %v5374_v59, %v5346_v44 }
0x2171   : > { %v5335_v27 = vsel %vm1152_vm10, %v10086_v31, %v5330_v25  ;;  %v5336_v3 = vsel %vm1152_vm10, %v5330_v25, %v10088_v24 }
0x2172   : > { %v5344_v56 = vadd.f32 %v5335_v27, %v5302_v39  ;;  %v5345_v41 = vadd.f32 %v5336_v3, %v5303_v5  ;;  %v5397_v45 = vmul.f32 %v10091_v51, %v5388_v7  ;;  %v11566_v39 = vld [vmem:[#allocation2_spill] sm:$0xff] }
0x2174   : > { %v5400_v50 = vpop.permute.xlu1 %5399 }
0x2175   : > { %v5406_v18 = vadd.f32 %v5400_v50, %v5397_v45 }
0x2177   : > { %v5411_v8 = vmax.f32 %v5406_v18, 0.0 }
0x2178   : > { %v5368_v11 = vpop.permute.xlu1 %5367 }
0x2179   : > { %v5375_v13 = vsel %vm1232_vm12, %v5366_v37, %v5368_v11  ;;  %v5376_v55 = vsel %vm1232_vm12, %v5368_v11, %v5370_v17 }
0x217a   : > { %v5384_v48 = vadd.f32 %v5375_v13, %v5342_v63  ;;  %v5385_v34 = vadd.f32 %v5376_v55, %v5343_v22 }
0x217c   : > { %v5393_v58 = vmul.f32 %v10091_v51, %v5384_v48  ;;  %v5394_v20 = vmul.f32 %v10091_v51, %v5385_v34  ;;  %v5372_v46 = vpop.permute.xlu1 %5371  ;;  %v11567_v34 = vld [vmem:[#allocation5_spill] sm:$0xff] }
0x217d   : > { %v5377_v31 = vsel %vm1232_vm12, %v5370_v17, %v5372_v46  ;;  %v5378_v24 = vsel %vm1232_vm12, %v5372_v46, %v5374_v59  ;;  %v11557_v17 = vmov 4  }
0x217e   : > { %v5402_v23 = vadd.f32 %v5400_v50, %v5393_v58  ;;  %v5386_v37 = vadd.f32 %v5377_v31, %v5344_v56  ;;  %v5387_v53 = vadd.f32 %v5378_v24, %v5345_v41  ;;  %v5403_v38 = vadd.f32 %v5400_v50, %v5394_v20 }
0x2180   : > { %v5407_v6 = vmax.f32 %v5402_v23, 0.0  ;;  %v5395_v25 = vmul.f32 %v10091_v51, %v5386_v37  ;;  %v5396_v26 = vmul.f32 %v10091_v51, %v5387_v53  ;;  %v5408_v54 = vmax.f32 %v5403_v38, 0.0  ;;  %v5443_v30 = vpop.permute.xlu1 %5442  ;;  %v5467_v33 = vpop.permute.xlu0 %5466 }
0x2181   : > { %v11556_v51 = vmov 6  }
0x2182   : > { %v5404_v1 = vadd.f32 %v5400_v50, %v5395_v25  ;;  %5417 = vrot.lane.b32.xlu1 %v5407_v6, %s10957_s26  ;;  %v5405_v42 = vadd.f32 %v5400_v50, %v5396_v26 }
0x2184   : > { %v5409_v19 = vmax.f32 %v5404_v1, 0.0  ;;  %v5410_v47 = vmax.f32 %v5405_v42, 0.0 }
0x2186   : > { %5421 = vrot.lane.b32.xlu0 %v5409_v19, %s10957_s26  ;;  %5419 = vrot.lane.b32.xlu1 %v5408_v54, %s10957_s26 }
0x218a   : > { %5425 = vrot.lane.b32.xlu0 %v5411_v8, %s10957_s26  ;;  %5423 = vrot.lane.b32.xlu1 %v5410_v47, %s10957_s26 }
0x218e   : > { %5522 = vperm.xlu0 %6032, %v10049_v10   ;;  %5494 = vperm.xlu1 %6031, %v10049_v10  }
0x2192   : > { %6035 = vset.pattern.permute.xlu0 %v11556_v51  ;;  %6033 = vset.pattern.permute.xlu1 %v11557_v17  ;;  %v11568_v17 = vld [vmem:[#allocation19_spill] sm:$0xff] }
0x2193   : > { %5606 = vperm.xlu0 %6035, %v10049_v10   ;;  %5550 = vperm.xlu1 %6033, %v10049_v10  }
0x2197   : > { %6034 = vset.pattern.permute.xlu1 %v11558_v60  ;;  %6037 = vset.pattern.permute.xlu0 %v11559_v40 }
0x2198   : > { %5578 = vperm.xlu1 %6034, %v10049_v10  }
0x219c   : > { %6036 = vset.pattern.permute.xlu1 %v11559_v40 }
0x219d   : > { %5634 = vperm.xlu1 %6036, %v10049_v10  }
0x21f4   : > { %v5418_v28 = vpop.permute.xlu1 %5417 }
0x21f8   : > { %v5420_v29 = vpop.permute.xlu1 %5419  ;;  %v5422_v36 = vpop.permute.xlu0 %5421 }
0x21f9   : > { %v5427_v15 = vsel %vm11560_vm0, %v5418_v28, %v5420_v29  ;;  %v5428_v4 = vsel %vm11561_vm8, %v5420_v29, %v5422_v36 }
0x21fa   : > { %v10163_v52 = vadd.f32 %v5427_v15, %v9338_v43  ;;  %v10166_v10 = vadd.f32 %v5428_v4, %v9340_v12 }
0x21fc   : > { %v5424_v14 = vpop.permute.xlu1 %5423  ;;  %v5426_v50 = vpop.permute.xlu0 %5425  ;;  %v5448_v16 = vrot.slane %v10163_v52, %v11564_v57  ;;  %v5472_v61 = vrot.slane %v10163_v52, %v11565_v62  ;;  %v5452_v2 = vrot.slane %v10166_v10, %v11564_v57  ;;  %v5476_v43 = vrot.slane %v10166_v10, %v11565_v62 }
0x21fd   : > { %v5429_v49 = vsel %vm11562_vm9, %v5422_v36, %v5424_v14  ;;  %v5430_v32 = vsel %vm11563_vm11, %v5424_v14, %v5426_v50  ;;  %v5500_v5 = vrot.slane %v10163_v52, %v11566_v39  ;;  %v5504_v48 = vrot.slane %v10166_v10, %v11566_v39 }
0x21fe   : > { %v10169_v21 = vadd.f32 %v5429_v49, %v9342_v0  ;;  %v10172_v35 = vadd.f32 %v5430_v32, %v11528_v9  ;;  %v5461_v63 = vmul.f32 %v5448_v16, %v5443_v30  ;;  %v5462_v22 = vmul.f32 %v5452_v2, %v5443_v30 }
0x21ff   : > { %v5485_v59 = vmul.f32 %v5472_v61, %v5467_v33  ;;  %v5486_v11 = vmul.f32 %v5476_v43, %v5467_v33  ;;  %v5528_v7 = vrot.slane %v10163_v52, %v11567_v34  ;;  %v5532_v56 = vrot.slane %v10166_v10, %v11567_v34 }
0x2200   : > { %v5456_v12 = vrot.slane %v10169_v21, %v11564_v57  ;;  %v5460_v0 = vrot.slane %v10172_v35, %v11564_v57  ;;  %v5480_v9 = vrot.slane %v10169_v21, %v11565_v62  ;;  %v5484_v44 = vrot.slane %v10172_v35, %v11565_v62  ;;  %v11569_v57 = vld [vmem:[#allocation21_spill] sm:$0xff] }
0x2201   : > { %v5489_v41 = vadd.f32 %v5485_v59, %v5461_v63  ;;  %v5490_v58 = vadd.f32 %v5486_v11, %v5462_v22  ;;  %v5508_v20 = vrot.slane %v10169_v21, %v11566_v39  ;;  %v5512_v46 = vrot.slane %v10172_v35, %v11566_v39 }
0x2202   : > { %v5463_v27 = vmul.f32 %v5456_v12, %v5443_v30  ;;  %v5464_v3 = vmul.f32 %v5460_v0, %v5443_v30  ;;  %v5487_v13 = vmul.f32 %v5480_v9, %v5467_v33  ;;  %v5488_v55 = vmul.f32 %v5484_v44, %v5467_v33  ;;  %v11570_v12 = vld [vmem:[#allocation18_spill] sm:$0xff] }
0x2203   : > { %v5536_v37 = vrot.slane %v10169_v21, %v11567_v34  ;;  %v5540_v53 = vrot.slane %v10172_v35, %v11567_v34  ;;  %v5556_v60 = vrot.slane %v10163_v52, %v11568_v17  ;;  %v5560_v40 = vrot.slane %v10166_v10, %v11568_v17 }
0x2204   : > { %v5491_v24 = vadd.f32 %v5487_v13, %v5463_v27  ;;  %v5492_v23 = vadd.f32 %v5488_v55, %v5464_v3  ;;  %v5564_v30 = vrot.slane %v10169_v21, %v11568_v17  ;;  %v5568_v33 = vrot.slane %v10172_v35, %v11568_v17 }
0x2205   : > { %v5612_v16 = vrot.slane %v10163_v52, %v11569_v57  ;;  %v5616_v62 = vrot.slane %v10166_v10, %v11569_v57  ;;  %v5620_v61 = vrot.slane %v10169_v21, %v11569_v57  ;;  %v5624_v2 = vrot.slane %v10172_v35, %v11569_v57 }
0x2206   : > { %v5584_v0 = vrot.slane %v10163_v52, %v11570_v12  ;;  %v5588_v9 = vrot.slane %v10166_v10, %v11570_v12  ;;  %v5592_v44 = vrot.slane %v10169_v21, %v11570_v12  ;;  %v5596_v63 = vrot.slane %v10172_v35, %v11570_v12  ;;  %v6082_v12 = vld [vmem:[%s6407_s12 + $0x8] sm:$0xff] }
0x220d   : > { %v5495_v31 = vpop.permute.xlu1 %5494  ;;  %v5523_v45 = vpop.permute.xlu0 %5522 }
0x220e   : > { %v5513_v38 = vmul.f32 %v5500_v5, %v5495_v31  ;;  %v5514_v6 = vmul.f32 %v5504_v48, %v5495_v31  ;;  %v5515_v25 = vmul.f32 %v5508_v20, %v5495_v31  ;;  %v5516_v26 = vmul.f32 %v5512_v46, %v5495_v31  ;;  %v11571_v31 = vld [vmem:[#allocation23_spill] sm:$0xff] }
0x220f   : > { %v5541_v1 = vmul.f32 %v5528_v7, %v5523_v45  ;;  %v5542_v54 = vmul.f32 %v5532_v56, %v5523_v45  ;;  %v5543_v42 = vmul.f32 %v5536_v37, %v5523_v45  ;;  %v5544_v19 = vmul.f32 %v5540_v53, %v5523_v45 }
0x2210   : > { %v5517_v18 = vadd.f32 %v5513_v38, %v5489_v41  ;;  %v5518_v47 = vadd.f32 %v5514_v6, %v5490_v58  ;;  %v5519_v8 = vadd.f32 %v5515_v25, %v5491_v24  ;;  %v5520_v51 = vadd.f32 %v5516_v26, %v5492_v23 }
0x2211   : > { %v5640_v24 = vrot.slane %v10163_v52, %v11571_v31  ;;  %v5644_v23 = vrot.slane %v10166_v10, %v11571_v31  ;;  %v5648_v37 = vrot.slane %v10169_v21, %v11571_v31  ;;  %v5652_v53 = vrot.slane %v10172_v35, %v11571_v31 }
0x2212   : > { %v5545_v28 = vadd.f32 %v5541_v1, %v5517_v18  ;;  %v5546_v29 = vadd.f32 %v5542_v54, %v5518_v47  ;;  %v5547_v36 = vadd.f32 %v5543_v42, %v5519_v8  ;;  %v5548_v14 = vadd.f32 %v5544_v19, %v5520_v51  ;;  %v5551_v50 = vpop.permute.xlu1 %5550  ;;  %v5607_v43 = vpop.permute.xlu0 %5606 }
0x2213   : > { %v5569_v15 = vmul.f32 %v5556_v60, %v5551_v50  ;;  %v5570_v4 = vmul.f32 %v5560_v40, %v5551_v50  ;;  %v5571_v49 = vmul.f32 %v5564_v30, %v5551_v50  ;;  %v5572_v32 = vmul.f32 %v5568_v33, %v5551_v50 }
0x2214   : > { %v5625_v48 = vmul.f32 %v5612_v16, %v5607_v43  ;;  %v5626_v34 = vmul.f32 %v5616_v62, %v5607_v43  ;;  %v5627_v7 = vmul.f32 %v5620_v61, %v5607_v43  ;;  %v5628_v56 = vmul.f32 %v5624_v2, %v5607_v43  ;;  %v6081_v2 = vld [vmem:[%s6407_s12] sm:$0xff] }
0x2215   : > { %v5573_v22 = vadd.f32 %v5569_v15, %v5545_v28  ;;  %v5574_v59 = vadd.f32 %v5570_v4, %v5546_v29  ;;  %v5575_v11 = vadd.f32 %v5571_v49, %v5547_v36  ;;  %v5576_v27 = vadd.f32 %v5572_v32, %v5548_v14 }
0x2217   : > { %v5579_v3 = vpop.permute.xlu1 %5578 }
0x2218   : > { %v5597_v13 = vmul.f32 %v5584_v0, %v5579_v3  ;;  %v5598_v55 = vmul.f32 %v5588_v9, %v5579_v3  ;;  %v5599_v39 = vmul.f32 %v5592_v44, %v5579_v3  ;;  %v5600_v5 = vmul.f32 %v5596_v63, %v5579_v3 }
0x221a   : > { %v5601_v41 = vadd.f32 %v5597_v13, %v5573_v22  ;;  %v5602_v58 = vadd.f32 %v5598_v55, %v5574_v59  ;;  %v5603_v20 = vadd.f32 %v5599_v39, %v5575_v11  ;;  %v5604_v46 = vadd.f32 %v5600_v5, %v5576_v27 }
0x221c   : > { %v5635_v45 = vpop.permute.xlu1 %5634  ;;  %v5629_v38 = vadd.f32 %v5625_v48, %v5601_v41  ;;  %v5630_v6 = vadd.f32 %v5626_v34, %v5602_v58  ;;  %v5631_v25 = vadd.f32 %v5627_v7, %v5603_v20  ;;  %v5632_v26 = vadd.f32 %v5628_v56, %v5604_v46 }
0x221d   : > { %v5653_v1 = vmul.f32 %v5640_v24, %v5635_v45  ;;  %v5654_v54 = vmul.f32 %v5644_v23, %v5635_v45  ;;  %v5655_v42 = vmul.f32 %v5648_v37, %v5635_v45  ;;  %v5656_v19 = vmul.f32 %v5652_v53, %v5635_v45 }
0x221f   : > { %v5657_v18 = vadd.f32 %v5653_v1, %v5629_v38  ;;  %v5658_v52 = vadd.f32 %v5654_v54, %v5630_v6  ;;  %v5659_v47 = vadd.f32 %v5655_v42, %v5631_v25  ;;  %v5660_v8 = vadd.f32 %v5656_v19, %v5632_v26 }
0x2221   : > { %v5661_v10 = vmax.f32 %v5657_v18, 0.0  ;;  %v5662_v51 = vmax.f32 %v5658_v52, 0.0  ;;  %v5663_v17 = vmax.f32 %v5659_v47, 0.0  ;;  %v5664_v21 = vmax.f32 %v5660_v8, 0.0 }
0x2223   : > { %v5797_v60 = vmul.f32 -1.442695, %v5661_v10  ;;  %v5798_v40 = vmul.f32 -1.442695, %v5662_v51  ;;  %v5799_v35 = vmul.f32 -1.442695, %v5663_v17 }
0x2224   : > { %v5800_v30 = vmul.f32 -1.442695, %v5664_v21 }
0x2225   : > { %6054 = vpow2.f32 %v5797_v60 }
0x2226   : > { %6056 = vpow2.f32 %v5798_v40 }
0x2227   : > { %6058 = vpow2.f32 %v5799_v35 }
0x2228   : > { %6060 = vpow2.f32 %v5800_v30 }
0x222f   : > { %v6055_v33 = vpop.eup %6054 }
0x2230   : > { %v6057_v28 = vpop.eup %6056  ;;  %v5677_v29 = vadd.f32 1.0, %v6055_v33 }
0x2231   : > { %v6059_v36 = vpop.eup %6058  ;;  %v5678_v14 = vadd.f32 1.0, %v6057_v28 }
0x2232   : > { %v6061_v50 = vpop.eup %6060  ;;  %v5679_v15 = vadd.f32 1.0, %v6059_v36  ;;  %6062 = vrcp.f32 %v5677_v29 }
0x2233   : > { %v5680_v4 = vadd.f32 1.0, %v6061_v50  ;;  %6064 = vrcp.f32 %v5678_v14 }
0x2234   : > { %6066 = vrcp.f32 %v5679_v15 }
0x2235   : > { %6068 = vrcp.f32 %v5680_v4 }
0x223c   : > { %v6063_v49 = vpop.eup %6062 }
0x223d   : > { %v6065_v32 = vpop.eup %6064 }
0x223e   : > { %v6067_v57 = vpop.eup %6066  ;;  %v5693_v16 = vcombine.low %v6063_v49, %v6065_v32 }
0x223f   : > { %v6069_v62 = vpop.eup %6068 }
0x2240   : > { %v5694_v61 = vcombine.low %v6067_v57, %v6069_v62  ;;  %v5697_v43 = vmul.f32 %v6081_v2, %v5693_v16 }
0x2242   : > { %v5698_v0 = vmul.f32 %v6082_v12, %v5694_v61  ;;  %v5699_v9 = vadd.f32 %v6081_v2, %v5697_v43 }
0x2244   : > { %v5700_v44 = vadd.f32 %v6082_v12, %v5698_v0  ;;  %5701 = vst [vmem:[%s332_s27] sm:$0xff] %v5699_v9 }
0x2246   : > { %5702 = vst [vmem:[%s332_s27 + $0x8] sm:$0xff] %v5700_v44 }
0x2247 PF: > { %s19_s30 = sadd.s32 1, %s6089_s30  }
0x2248   : > { %p16_p4 = scmp.ge.s32.totalorder %s19_s30, 4  }
0x224a   :  { %18 = sbr.rel (!%p16_p4) target bundleno = 1 (0x1), region = 112 }

</bundles_post_ra>
